<compile_context>
chip_gen: v7x
topology: tpu7x:2x2x1
jax: 0.10.0
libtpu: 0.0.40
codegen_flags: <defaults>
</compile_context>

<pallas_src>
import math

import jax
import jax.numpy as jnp
from jax.experimental import pallas as pl
from jax.experimental.pallas import tpu as pltpu

INPUT_DIM = 100
PADDED_INPUT_DIM = 128          # latent zero-padded to a full lane tile
HIDDEN = (256, 512, 1024)
OUTPUT_DIM = 8192


def _is_v7x() -> bool:
    try:
        kind = jax.devices()[0].device_kind.lower()
    except Exception:
        return False
    return ("v7" in kind) or ("7x" in kind)


IS_V7X = _is_v7x()
# Single-TC chips: biggest tile -> fewest grid steps (int8 W4 tile = 4 MiB,
# double-buffered 8 MiB, well under the 32 MiB scoped limit).  v7x: keep 4
# steps so each TensorCore still pipelines two tiles.
TN = 2048 if IS_V7X else 4096


# ---------------------------------------------------------------------------
# Kernel bodies
# ---------------------------------------------------------------------------

def _small_chain(x, w1_ref, b1_ref, w2_ref, b2_ref, w3_ref, b3_ref):
    """z(B,128) -> [Linear + ReLU] x3 -> h3(B,1024). bf16 weights, f32 acc."""
    h = x
    for w_ref, b_ref in ((w1_ref, b1_ref), (w2_ref, b2_ref), (w3_ref, b3_ref)):
        h = jnp.dot(h.astype(jnp.bfloat16), w_ref[...],
                    preferred_element_type=jnp.float32) + b_ref[...]
        h = jnp.maximum(h, 0.0)
    return h


def _layer4_tile(h3, w4_ref, s4_ref, b4_ref):
    """One TN-wide slice of the 1024->8192 layer from an int8 weight tile.

    int8 -> bf16 is exact; the per-output-channel dequant scale multiplies the
    small (B,TN) matmul result on the VPU, so the MXU only sees bf16 and the
    HBM stream is int8."""
    w = w4_ref[...].astype(jnp.bfloat16)                       # (1024, TN)
    y = jnp.dot(h3.astype(jnp.bfloat16), w,
                preferred_element_type=jnp.float32)            # (B, TN) f32
    return y * s4_ref[...] + b4_ref[...]


def _fused_kernel(x_ref, w1_ref, b1_ref, w2_ref, b2_ref, w3_ref, b3_ref,
                  w4_ref, s4_ref, b4_ref, o_ref):
    """v5e/v6e path: whole network in one call; the tiny chain is recomputed
    per grid step (negligible) so the grid axis stays 'parallel'."""
    h3 = _small_chain(x_ref[...], w1_ref, b1_ref, w2_ref, b2_ref,
                      w3_ref, b3_ref)
    o_ref[...] = _layer4_tile(h3, w4_ref, s4_ref, b4_ref).astype(o_ref.dtype)


def _hidden_chain_kernel(x_ref, w1_ref, b1_ref, w2_ref, b2_ref, w3_ref, b3_ref,
                         h_ref):
    """v7x preamble: compute h3 once so the streaming kernel only moves W4."""
    h_ref[...] = _small_chain(x_ref[...], w1_ref, b1_ref, w2_ref, b2_ref,
                              w3_ref, b3_ref).astype(h_ref.dtype)


def _stream_kernel(h_ref, w4_ref, s4_ref, b4_ref, o_ref):
    """v7x main: pure W4 tile streaming, megacore-sharded across output cols."""
    o_ref[...] = _layer4_tile(h_ref[...], w4_ref, s4_ref,
                              b4_ref).astype(o_ref.dtype)


# ---------------------------------------------------------------------------
# Host-side wrapper
# ---------------------------------------------------------------------------

@jax.jit
def generator_forward(z, params):
    w1, b1, w2, b2, w3, b3, w4t, s4, b4 = params
    B = z.shape[0]
    Kp = w1.shape[0]                    # 128 (padded latent dim)
    G, K3, tn = w4t.shape               # (N // TN, 1024, TN) tile-contiguous
    N = G * tn

    # Zero-pad the latent; padded W1 rows are zero so the result is exact.
    z_p = jnp.pad(z.astype(jnp.float32), ((0, 0), (0, Kp - z.shape[1])))

    tile2 = lambda j: (0, j)                                  # along out feats
    w4_spec = pl.BlockSpec((None, K3, tn), lambda j: (j, 0, 0))  # one slab/step

    compiler_params = pltpu.CompilerParams(
        dimension_semantics=("parallel",),    # megacore-shards steps on v7x
        vmem_limit_bytes=32 << 20,            # explicit: v5e scoped default=16M
    )

    if IS_V7X:
        # Compute the small chain once (whole arrays resident in VMEM).
        h3 = pl.pallas_call(
            _hidden_chain_kernel,
            out_shape=jax.ShapeDtypeStruct((B, K3), jnp.float32),
        )(z_p, w1, b1, w2, b2, w3, b3)
        kernel = _stream_kernel
        args = (h3, w4t, s4, b4)
        in_specs = [
            pl.BlockSpec((B, K3), lambda j: (0, 0)),   # h3 (grid-invariant)
            w4_spec,                                   # int8 W4 tile
            pl.BlockSpec((1, tn), tile2),              # per-channel scales
            pl.BlockSpec((1, tn), tile2),              # bias tile
        ]
    else:
        const2 = lambda j: (0, 0)
        kernel = _fused_kernel
        args = (z_p, w1, b1, w2, b2, w3, b3, w4t, s4, b4)
        in_specs = [
            pl.BlockSpec((B, Kp), const2),             # z (padded), f32
            pl.BlockSpec(w1.shape, const2),            # W1 (128, 256)  bf16
            pl.BlockSpec(b1.shape, const2),            # b1 (1, 256)    f32
            pl.BlockSpec(w2.shape, const2),            # W2 (256, 512)  bf16
            pl.BlockSpec(b2.shape, const2),            # b2 (1, 512)    f32
            pl.BlockSpec(w3.shape, const2),            # W3 (512, 1024) bf16
            pl.BlockSpec(b3.shape, const2),            # b3 (1, 1024)   f32
            w4_spec,                                   # int8 W4 tile
            pl.BlockSpec((1, tn), tile2),              # per-channel scales
            pl.BlockSpec((1, tn), tile2),              # bias tile
        ]

    return pl.pallas_call(
        kernel,
        out_shape=jax.ShapeDtypeStruct((B, N), jnp.float32),
        grid_spec=pltpu.PrefetchScalarGridSpec(
            num_scalar_prefetch=0,
            grid=(G,),
            in_specs=in_specs,
            out_specs=pl.BlockSpec((B, tn), tile2),
        ),
        compiler_params=compiler_params,
    )(*args)


# ---------------------------------------------------------------------------
# Parameter construction (PyTorch nn.Linear init) + packing
# ---------------------------------------------------------------------------

def init_generator_params_f32(key, input_dim=INPUT_DIM, output_dim=OUTPUT_DIM,
                              hidden=HIDDEN):
    """U(-1/sqrt(fan_in), 1/sqrt(fan_in)) init; weights stored (in, out)."""
    dims = (input_dim,) + tuple(hidden) + (output_dim,)
    params = []
    for i in range(len(dims) - 1):
        fan_in, fan_out = dims[i], dims[i + 1]
        key, kw, kb = jax.random.split(key, 3)
        bound = 1.0 / math.sqrt(fan_in)
        w = jax.random.uniform(kw, (fan_in, fan_out), jnp.float32, -bound, bound)
        b = jax.random.uniform(kb, (fan_out,), jnp.float32, -bound, bound)
        params.append((w, b))
    return params


def pack_generator_params(f32_params, tn=TN, padded_input_dim=PADDED_INPUT_DIM):
    """Kernel-ready params: W1-W3 bf16 (W1 zero-padded to 128 rows), biases f32
    (1,out); W4 as per-output-channel int8 in tile-contiguous (N//tn,1024,tn)
    layout plus f32 scales."""
    (w1, b1), (w2, b2), (w3, b3), (w4, b4) = f32_params
    w1p = jnp.pad(w1, ((0, padded_input_dim - w1.shape[0]), (0, 0)))
    packed = [w1p.astype(jnp.bfloat16), b1.reshape(1, -1).astype(jnp.float32),
              w2.astype(jnp.bfloat16), b2.reshape(1, -1).astype(jnp.float32),
              w3.astype(jnp.bfloat16), b3.reshape(1, -1).astype(jnp.float32)]

    K, N = w4.shape
    assert N % tn == 0
    s4 = jnp.maximum(jnp.max(jnp.abs(w4), axis=0, keepdims=True), 1e-12) / 127.0
    w4q = jnp.clip(jnp.round(w4 / s4), -127.0, 127.0).astype(jnp.int8)
    w4t = w4q.reshape(K, N // tn, tn).transpose(1, 0, 2)        # (G, K, tn)
    packed += [w4t, s4.astype(jnp.float32),
               b4.reshape(1, -1).astype(jnp.float32)]
    return tuple(packed)


# ---------------------------------------------------------------------------
# References
# ---------------------------------------------------------------------------

def generator_reference_quantized(z, params):
    """Pure-JAX reference with the exact same bf16 / int8-per-channel math."""
    w1, b1, w2, b2, w3, b3, w4t, s4, b4 = params
    Kp = w1.shape[0]
    h = jnp.pad(z.astype(jnp.float32), ((0, 0), (0, Kp - z.shape[1])))
    for w, b in ((w1, b1), (w2, b2), (w3, b3)):
        h = jnp.dot(h.astype(jnp.bfloat16), w,
                    preferred_element_type=jnp.float32) + b
        h = jnp.maximum(h, 0.0)
    G, K, tn = w4t.shape
    w4 = w4t.transpose(1, 0, 2).reshape(K, G * tn).astype(jnp.bfloat16)
    y = jnp.dot(h.astype(jnp.bfloat16), w4, preferred_element_type=jnp.float32)
    return y * s4 + b4


def generator_reference_f32(z, f32_params):
    """Unquantized reference matching the original PyTorch Linear chain."""
    h = z.astype(jnp.float32)
    for i, (w, b) in enumerate(f32_params):
        h = jnp.dot(h, w) + b
        if i < len(f32_params) - 1:
            h = jnp.maximum(h, 0.0)
    return h


# ---------------------------------------------------------------------------

if __name__ == "__main__":
    key = jax.random.PRNGKey(0)
    key, kz = jax.random.split(key)

    # z = torch.randn((1, input_dim))  -> batch=1, 100 latent dims
    z = jax.random.normal(kz, (1, INPUT_DIM), dtype=jnp.float32)
    f32_params = init_generator_params_f32(key)
    params = pack_generator_params(f32_params)

    out = jax.block_until_ready(generator_forward(z, params))
    assert out.shape == (1, OUTPUT_DIM), out.shape

    # Tight check: identical quantized math (only accumulation-order noise).
    ref_q = generator_reference_quantized(z, params)
    assert jnp.allclose(out, ref_q, atol=2e-2, rtol=2e-2), \
        float(jnp.max(jnp.abs(out - ref_q)))

    # Loose check against the true f32 Linear chain (bf16 + int8-per-channel
    # quantization error; expected ~1e-3 abs on O(0.1) outputs).
    ref_f = generator_reference_f32(z, f32_params)
    assert jnp.allclose(out, ref_f, atol=1e-1, rtol=0.0), \
        float(jnp.max(jnp.abs(out - ref_f)))

    print("KERNEL_OK")
</pallas_src>

<mosaic_0001>
module attributes {stable_mosaic.version = 11 : i64} {
  func.func @_fused_kernel(%arg0: i32, %arg1: memref<1x128xf32, #tpu.memory_space<vmem>>, %arg2: memref<128x256xbf16, #tpu.memory_space<vmem>>, %arg3: memref<1x256xf32, #tpu.memory_space<vmem>>, %arg4: memref<256x512xbf16, #tpu.memory_space<vmem>>, %arg5: memref<1x512xf32, #tpu.memory_space<vmem>>, %arg6: memref<512x1024xbf16, #tpu.memory_space<vmem>>, %arg7: memref<1x1024xf32, #tpu.memory_space<vmem>>, %arg8: memref<1x1024x4096xi8, #tpu.memory_space<vmem>>, %arg9: memref<1x4096xf32, #tpu.memory_space<vmem>>, %arg10: memref<1x4096xf32, #tpu.memory_space<vmem>>, %arg11: memref<1x4096xf32, #tpu.memory_space<vmem>>) attributes {dimension_semantics = [#tpu.dimension_semantics<parallel>], iteration_bounds = array<i64: 2>, scalar_prefetch = 0 : i64, scratch_operands = 0 : i64, tpu.core_type = #tpu.core_type<tc>, window_params = [{pipeline_mode = #tpu.pipeline_mode<synchronous>, transform_indices = @transform_0, window_bounds = array<i64: 1, 128>}, {pipeline_mode = #tpu.pipeline_mode<synchronous>, transform_indices = @transform_1, window_bounds = array<i64: 128, 256>}, {pipeline_mode = #tpu.pipeline_mode<synchronous>, transform_indices = @transform_2, window_bounds = array<i64: 1, 256>}, {pipeline_mode = #tpu.pipeline_mode<synchronous>, transform_indices = @transform_3, window_bounds = array<i64: 256, 512>}, {pipeline_mode = #tpu.pipeline_mode<synchronous>, transform_indices = @transform_4, window_bounds = array<i64: 1, 512>}, {pipeline_mode = #tpu.pipeline_mode<synchronous>, transform_indices = @transform_5, window_bounds = array<i64: 512, 1024>}, {pipeline_mode = #tpu.pipeline_mode<synchronous>, transform_indices = @transform_6, window_bounds = array<i64: 1, 1024>}, {transform_indices = @transform_7, window_bounds = array<i64: 1, 1024, 4096>}, {transform_indices = @transform_8, window_bounds = array<i64: 1, 4096>}, {transform_indices = @transform_9, window_bounds = array<i64: 1, 4096>}, {transform_indices = @transform_10, window_bounds = array<i64: 1, 4096>}]} {
    %c0 = arith.constant 0 : index
    %c0_0 = arith.constant 0 : index
    %0 = vector.load %arg1[%c0, %c0_0] : memref<1x128xf32, #tpu.memory_space<vmem>>, vector<1x128xf32>
    %1 = arith.truncf %0 : vector<1x128xf32> to vector<1x128xbf16>
    %c0_1 = arith.constant 0 : index
    %c0_2 = arith.constant 0 : index
    %2 = vector.load %arg2[%c0_1, %c0_2] : memref<128x256xbf16, #tpu.memory_space<vmem>>, vector<128x256xbf16>
    %cst = arith.constant dense<0.000000e+00> : vector<1x256xf32>
    %3 = tpu.matmul %1, %2, %cst {dimension_numbers = #tpu.dot_dimension_numbers<[1], [0], [0], [1], [0, 0, 1, 1], [], []>} : vector<1x128xbf16>, vector<128x256xbf16>, vector<1x256xf32> -> vector<1x256xf32>
    %c0_3 = arith.constant 0 : index
    %c0_4 = arith.constant 0 : index
    %4 = vector.load %arg3[%c0_3, %c0_4] : memref<1x256xf32, #tpu.memory_space<vmem>>, vector<1x256xf32>
    %5 = arith.addf %3, %4 : vector<1x256xf32>
    %cst_5 = arith.constant 0.000000e+00 : f32
    %6 = vector.broadcast %cst_5 : f32 to vector<1x256xf32>
    %7 = arith.maximumf %5, %6 : vector<1x256xf32>
    %8 = arith.truncf %7 : vector<1x256xf32> to vector<1x256xbf16>
    %c0_6 = arith.constant 0 : index
    %c0_7 = arith.constant 0 : index
    %9 = vector.load %arg4[%c0_6, %c0_7] : memref<256x512xbf16, #tpu.memory_space<vmem>>, vector<256x512xbf16>
    %cst_8 = arith.constant dense<0.000000e+00> : vector<1x512xf32>
    %10 = tpu.matmul %8, %9, %cst_8 {dimension_numbers = #tpu.dot_dimension_numbers<[1], [0], [0], [1], [0, 0, 1, 1], [], []>} : vector<1x256xbf16>, vector<256x512xbf16>, vector<1x512xf32> -> vector<1x512xf32>
    %c0_9 = arith.constant 0 : index
    %c0_10 = arith.constant 0 : index
    %11 = vector.load %arg5[%c0_9, %c0_10] : memref<1x512xf32, #tpu.memory_space<vmem>>, vector<1x512xf32>
    %12 = arith.addf %10, %11 : vector<1x512xf32>
    %cst_11 = arith.constant 0.000000e+00 : f32
    %13 = vector.broadcast %cst_11 : f32 to vector<1x512xf32>
    %14 = arith.maximumf %12, %13 : vector<1x512xf32>
    %15 = arith.truncf %14 : vector<1x512xf32> to vector<1x512xbf16>
    %c0_12 = arith.constant 0 : index
    %c0_13 = arith.constant 0 : index
    %16 = vector.load %arg6[%c0_12, %c0_13] : memref<512x1024xbf16, #tpu.memory_space<vmem>>, vector<512x1024xbf16>
    %cst_14 = arith.constant dense<0.000000e+00> : vector<1x1024xf32>
    %17 = tpu.matmul %15, %16, %cst_14 {dimension_numbers = #tpu.dot_dimension_numbers<[1], [0], [0], [1], [0, 0, 1, 1], [], []>} : vector<1x512xbf16>, vector<512x1024xbf16>, vector<1x1024xf32> -> vector<1x1024xf32>
    %c0_15 = arith.constant 0 : index
    %c0_16 = arith.constant 0 : index
    %18 = vector.load %arg7[%c0_15, %c0_16] : memref<1x1024xf32, #tpu.memory_space<vmem>>, vector<1x1024xf32>
    %19 = arith.addf %17, %18 : vector<1x1024xf32>
    %cst_17 = arith.constant 0.000000e+00 : f32
    %20 = vector.broadcast %cst_17 : f32 to vector<1x1024xf32>
    %21 = arith.maximumf %19, %20 : vector<1x1024xf32>
    %c0_18 = arith.constant 0 : index
    %c0_19 = arith.constant 0 : index
    %c0_20 = arith.constant 0 : index
    %22 = vector.load %arg8[%c0_18, %c0_19, %c0_20] : memref<1x1024x4096xi8, #tpu.memory_space<vmem>>, vector<1x1024x4096xi8>
    %23 = vector.shape_cast %22 : vector<1x1024x4096xi8> to vector<1024x4096xi8>
    %24 = arith.sitofp %23 : vector<1024x4096xi8> to vector<1024x4096xbf16>
    %25 = arith.truncf %21 : vector<1x1024xf32> to vector<1x1024xbf16>
    %cst_21 = arith.constant dense<0.000000e+00> : vector<1x4096xf32>
    %26 = tpu.matmul %25, %24, %cst_21 {dimension_numbers = #tpu.dot_dimension_numbers<[1], [0], [0], [1], [0, 0, 1, 1], [], []>} : vector<1x1024xbf16>, vector<1024x4096xbf16>, vector<1x4096xf32> -> vector<1x4096xf32>
    %c0_22 = arith.constant 0 : index
    %c0_23 = arith.constant 0 : index
    %27 = vector.load %arg9[%c0_22, %c0_23] : memref<1x4096xf32, #tpu.memory_space<vmem>>, vector<1x4096xf32>
    %28 = arith.mulf %26, %27 : vector<1x4096xf32>
    %c0_24 = arith.constant 0 : index
    %c0_25 = arith.constant 0 : index
    %29 = vector.load %arg10[%c0_24, %c0_25] : memref<1x4096xf32, #tpu.memory_space<vmem>>, vector<1x4096xf32>
    %30 = arith.addf %28, %29 : vector<1x4096xf32>
    %c0_26 = arith.constant 0 : index
    %c0_27 = arith.constant 0 : index
    %31 = vector.load %arg11[%c0_26, %c0_27] : memref<1x4096xf32, #tpu.memory_space<vmem>>, vector<1x4096xf32>
    tpu.vector_store %arg11[%c0_26, %c0_27], %30 {strides = array<i32>} : memref<1x4096xf32, #tpu.memory_space<vmem>>, vector<1x4096xf32>,
    return
  }
  func.func @transform_0(%arg0: i32) -> (i32, i32) {
    %c0_i32 = arith.constant 0 : i32
    %c0_i32_0 = arith.constant 0 : i32
    %c0_i32_1 = arith.constant 0 : i32
    return %c0_i32, %c0_i32_0 : i32, i32
  }
  func.func @transform_1(%arg0: i32) -> (i32, i32) {
    %c0_i32 = arith.constant 0 : i32
    %c0_i32_0 = arith.constant 0 : i32
    %c0_i32_1 = arith.constant 0 : i32
    return %c0_i32, %c0_i32_0 : i32, i32
  }
  func.func @transform_2(%arg0: i32) -> (i32, i32) {
    %c0_i32 = arith.constant 0 : i32
    %c0_i32_0 = arith.constant 0 : i32
    %c0_i32_1 = arith.constant 0 : i32
    return %c0_i32, %c0_i32_0 : i32, i32
  }
  func.func @transform_3(%arg0: i32) -> (i32, i32) {
    %c0_i32 = arith.constant 0 : i32
    %c0_i32_0 = arith.constant 0 : i32
    %c0_i32_1 = arith.constant 0 : i32
    return %c0_i32, %c0_i32_0 : i32, i32
  }
  func.func @transform_4(%arg0: i32) -> (i32, i32) {
    %c0_i32 = arith.constant 0 : i32
    %c0_i32_0 = arith.constant 0 : i32
    %c0_i32_1 = arith.constant 0 : i32
    return %c0_i32, %c0_i32_0 : i32, i32
  }
  func.func @transform_5(%arg0: i32) -> (i32, i32) {
    %c0_i32 = arith.constant 0 : i32
    %c0_i32_0 = arith.constant 0 : i32
    %c0_i32_1 = arith.constant 0 : i32
    return %c0_i32, %c0_i32_0 : i32, i32
  }
  func.func @transform_6(%arg0: i32) -> (i32, i32) {
    %c0_i32 = arith.constant 0 : i32
    %c0_i32_0 = arith.constant 0 : i32
    %c0_i32_1 = arith.constant 0 : i32
    return %c0_i32, %c0_i32_0 : i32, i32
  }
  func.func @transform_7(%arg0: i32) -> (i32, i32, i32) {
    %c0_i32 = arith.constant 0 : i32
    %c0_i32_0 = arith.constant 0 : i32
    %c0_i32_1 = arith.constant 0 : i32
    return %arg0, %c0_i32, %c0_i32_0 : i32, i32, i32
  }
  func.func @transform_8(%arg0: i32) -> (i32, i32) {
    %c0_i32 = arith.constant 0 : i32
    %c0_i32_0 = arith.constant 0 : i32
    return %c0_i32, %arg0 : i32, i32
  }
  func.func @transform_9(%arg0: i32) -> (i32, i32) {
    %c0_i32 = arith.constant 0 : i32
    %c0_i32_0 = arith.constant 0 : i32
    return %c0_i32, %arg0 : i32, i32
  }
  func.func @transform_10(%arg0: i32) -> (i32, i32) {
    %c0_i32 = arith.constant 0 : i32
    %c0_i32_0 = arith.constant 0 : i32
    return %c0_i32, %arg0 : i32, i32
  }
}

</mosaic_0001>

<bundles_post_ra>
// kernel: generator_forward.1
= control target key start
LH: loop header
LB: loop body
LE: loop exit
PB: predicated region body
PF: predicated region fallthrough
CT: control target
= control target key end

     0   :  { %s12689_s0 = inlined_call_operand.vmem [shape: f32[1,128], index: 0, kind: input, shape index: {}]   ;;  %s12690_s1 = inlined_call_operand.hbm [shape: bf16[128,256], index: 1, kind: input, shape index: {}]   ;;  %s12691_s2 = inlined_call_operand.hbm [shape: f32[1,256], index: 2, kind: input, shape index: {}]   ;;  %s12692_s3 = inlined_call_operand.hbm [shape: bf16[256,512], index: 3, kind: input, shape index: {}]   ;;  %s12693_s4 = inlined_call_operand.hbm [shape: f32[1,512], index: 4, kind: input, shape index: {}]   ;;  %s12694_s5 = inlined_call_operand.hbm [shape: bf16[512,1024], index: 5, kind: input, shape index: {}]   ;;  %s12695_s6 = inlined_call_operand.hbm [shape: f32[1,1024], index: 6, kind: input, shape index: {}]   ;;  %s12696_s7 = inlined_call_operand.hbm [shape: s8[2,1024,4096], index: 7, kind: input, shape index: {}]   ;;  %s12697_s8 = inlined_call_operand.hbm [shape: f32[1,8192], index: 8, kind: input, shape index: {}]   ;;  %s12698_s9 = inlined_call_operand.hbm [shape: f32[1,8192], index: 9, kind: input, shape index: {}]   ;;  %s12699_s10 = inlined_call_operand.hbm [shape: f32[1,8192], index: 10, kind: output, shape index: {}]  }
   0x1   :  { %12727 = sst [smem:[#allocation30_spill]] %s12689_s0 }
   0x2   :  { %12728 = sst [smem:[#allocation31_spill]] %s12690_s1 }
   0x3   :  { %12729 = sst [smem:[#allocation32_spill]] %s12691_s2 }
   0x4   :  { %12730 = sst [smem:[#allocation33_spill]] %s12692_s3 }
   0x5   :  { %12731 = sst [smem:[#allocation34_spill]] %s12693_s4 }
   0x6   :  { %12732 = sst [smem:[#allocation35_spill]] %s12696_s7 }
   0x7   :  { %12733 = sst [smem:[#allocation36_spill]] %s12697_s8 }
   0x8   :  { %12734 = sst [smem:[#allocation37_spill]] %s12699_s10 }
   0x9   :  { %15 = vsyncpa [#allocation3], 0 }
   0xa   :  { %16 = vsyncpa [#allocation6], 0 }
   0xb   :  { %17 = vsyncpa [#allocation9], 0 }
   0xc   :  { %18 = vsyncpa [#allocation12], 0 }
   0xd   :  { %19 = vsyncpa [#allocation4], 0 }
   0xe   :  { %21 = vsyncpa [#allocation4 + $0x1], 0  ;;  %s10877_s13 = smov 0   ;;  %s10879_s14 = smov 0  }
   0xf   :  { %s10881_s15 = smov 0   ;;  %s10883_s16 = smov 0  }
  0x10 LB: > { %12735 = sst [smem:[#allocation23_spill]] %s10789_s13  ;;  %s10803_s17 = smov [#allocation2]   ;;  %s10801_s16 = sphi %s10883_s16, %s12788_s16   ;;  %s10797_s15 = sphi %s10881_s15, %s12792_s15   ;;  %s10793_s14 = sphi %s10879_s14, %s12791_s14   ;;  %s10789_s13 = sphi %s10877_s13, %s12789_s13  }
  0x11   : > { %12736 = sst [smem:[#allocation24_spill]] %s10793_s14  ;;  %s298_s18 = sshll.u32 %s10803_s17, 4  ;;  %s299_s18 = int_to_ptr.vmem [resolvable:$true] %s298_s18 }
  0x12   : > { %s10898_s19 = sadd.s32 4294967295, %s10801_s16   ;;  %p9619_p0 = scmp.ge.s32.totalorder %s10801_s16, 1 }
  0x13   : > { %p12700_p1 = scmp.eq.s32.totalorder %s10898_s19, 0  ;;  %p283_p2 = scmp.lt.s32.totalorder %s10801_s16, 3 }
  0x14   : > { %s9618_s22 = sadd.s32 4294967294, %s10801_s16   ;;  %s12739_s1 = sld [smem:[#allocation31_spill]] }
  0x15   : > { %p10903_p3 = pnand %p9619_p0, %p283_p2 }
  0x17   : > { %s12737_s20 = scalar_select %p10903_p3, 1, 0 }
  0x18   : > { %p10240_p5 = pneg %p10903_p3 }
  0x1a   : > { %p10912_p6 = pnand %p10240_p5, %p12700_p1  ;;  %s10461_s25 = scalar_lea.hbm %s12739_s1, 2048 }
  0x1b   : > { %p10462_p7 = scmp.ne.s32.totalorder %s12739_s1, %s10461_s25  ;;  %p10468_p11 = scmp.lt.u32.totalorder %s10461_s25, %s12739_s1 }
  0x1c   : > { %s12738_s21 = scalar_select %p10912_p6, 1, 0 }
  0x1d   : > { %p10925_p8 = pneg %p10912_p6 }
  0x1f   : > { %s12740_s28 = scalar_select %p10925_p8, 1, 0 }
  0x20   : > { %p10464_p9 = pnand %p10925_p8, %p10462_p7 }
  0x22   : > { %p10465_p10 = pneg %p10464_p9 }
  0x24   : > { %p10470_p12 = pnand %p10468_p11, %p10465_p10 }
  0x26   : > { %10473 = shalt.err (!%p10470_p12)
}
  0x27   : > { %s10474_s11 = scalar_lea.vmem %s299_s18, 2048  ;;  %p10482_p5 = scmp.lt.s32.totalorder %s299_s18, %s299_s18 }
  0x28   : > { %p10475_p13 = scmp.ne.s32.totalorder %s299_s18, %s10474_s11  ;;  %p10483_p4 = scmp.lt.s32.totalorder %s10474_s11, %s10474_s11 }
  0x2a   : > { %p10477_p0 = pnand %p10475_p13, %p10925_p8  ;;  %p10484_p1 = por %p10483_p4, %p10482_p5 }
  0x2c   : > { %p10478_p2 = pneg %p10477_p0 }
  0x2e   : > { %p10485_p3 = pnand %p10484_p1, %p10478_p2 }
  0x30   : > { %10488 = shalt.err (!%p10485_p3)
}
  0x31   : > { %s10804_s12 = smov 128   ;;  %s10805_s17 = smov 8  }
  0x32   : > { %10243 = dma.hbm_to_vmem [thread:$0]  (!%p10912_p6), %s12739_s1, 2048, %s299_s18, [#allocation3], %s10804_s12, %s10804_s12, %s10805_s17  }
  0x33   : > { %s10942_s25 = sadd.s32 1, %s10801_s16   ;;  %s181_s26 = sadd.s32 1, %s10797_s15 }
  0x34   : > { %12741 = sst [smem:[#allocation25_spill]] %s10942_s25  ;;  %s178_s27 = ssub.s32 %s10801_s16, %s10942_s25 }
  0x35   : > { %p188_p1 = scmp.ne.s32.totalorder %s10797_s15, %s10793_s14  ;;  %p179_p3 = scmp.eq.s32.totalorder %s178_s27, 0 }
  0x36   : > { %p189_p4 = scmp.eq.s32.totalorder %s10801_s16, 0  ;;  %p194_p7 = scmp.ne.s32.totalorder %s10793_s14, %s10789_s13 }
  0x37   : > { %p270_p9 = scmp.eq.s32.totalorder %s10898_s19, 1  ;;  %p12744_p11 = scmp.eq.s32.totalorder %s10898_s19, 0 }
  0x38   : > { %s10954_s29 = scalar_select %p179_p3, %s10797_s15, %s181_s26  }
  0x39   : > { %p10956_p10 = por %p189_p4, %p188_p1  ;;  %p10962_p12 = por %p12744_p11, %p194_p7 }
  0x3a   : > { %12742 = sst [smem:[#allocation26_spill]] %s10954_s29  ;;  %p10966_p13 = por %p270_p9, %p188_p1 }
  0x3b   : > { %s12745_s18 = scalar_select %p10962_p12, 1, 0 }
  0x3c   : > { %s12747_s11 = scalar_select %p10966_p13, 1, 0 }
  0x3d   : > { %12746 = sst [smem:[#allocation27_spill]] %s12745_s18  ;;  %p276_p0 = scmp.eq.s32.totalorder %s9618_s22, 1 }
  0x3e   : > { %12748 = sst [smem:[#allocation28_spill]] %s12747_s11  ;;  %p10279_p2 = scmp.lt.s32.totalorder %s10801_s16, 2 }
  0x3f   : > { %p10973_p5 = por %p276_p0, %p194_p7  ;;  %s371_s17 = sand.u32 1, %s10801_s16  }
  0x40   : > { %s12705_s23 = sand.u32 1, %s10797_s15   ;;  %s9988_s26 = sshll.u32 %s10801_s16, 17 }
  0x41   : > { %s12749_s12 = scalar_select %p10973_p5, 1, 0 }
  0x42   : > { %s9627_s24 = sshll.u32 %s12705_s23, 13  ;;  %s12751_s7 = sld [smem:[#allocation35_spill]] }
  0x43   : > { %12750 = sst [smem:[#allocation29_spill]] %s12749_s12  ;;  %s375_s22 = scalar_lea.vmem [#allocation13], %s9627_s24 }
  0x44   : > { %s382_s25 = sshll.u32 %s375_s22, 4  ;;  %p10989_p1 = pnand %p10279_p2, %p10956_p10  ;;  %s10993_s25 = int_to_ptr.vmem [resolvable:$true] %s382_s25 }
  0x45   : > { %s10995_s23 = scalar_lea.sflag [#allocation3], %s371_s17 }
  0x46   : > { %s12752_s13 = scalar_select %p10989_p1, 1, 0 }
  0x47   : > { %p11001_p4 = pneg %p10989_p1 }
  0x48   : > { %s10985_s29 = scalar_lea.hbm %s12751_s7, %s9988_s26  ;;  %s10494_s26 = scalar_lea.hbm %s12751_s7, 262144 }
  0x49   : > { %s10489_s12 = scalar_lea.hbm %s10985_s29, 131072  ;;  %p10495_p10 = scmp.lt.u32.totalorder %s10985_s29, %s12751_s7 }
  0x4a   : > { %p10490_p3 = scmp.ne.s32.totalorder %s10985_s29, %s10489_s12  ;;  %p10496_p11 = scmp.lt.u32.totalorder %s10494_s26, %s10489_s12 }
  0x4b   : > { %s12753_s1 = scalar_select %p11001_p4, 1, 0 }
  0x4c   : > { %p10492_p7 = pnand %p11001_p4, %p10490_p3  ;;  %p10497_p0 = por %p10496_p11, %p10495_p10 }
  0x4d   : > { %p10498_p2 = scmp.lt.u32.totalorder %s10489_s12, %s10985_s29 }
  0x4e   : > { %p10493_p9 = pneg %p10492_p7 }
  0x4f   : > { %p10499_p5 = por %p10498_p2, %p10497_p0 }
  0x51   : > { %p10500_p13 = pnand %p10499_p5, %p10493_p9 }
  0x53   : > { %10503 = shalt.err (!%p10500_p13)
}
  0x54   : > { %s10504_s17 = scalar_lea.vmem %s10993_s25, 131072  ;;  %s10806_s30 = smov [#allocation13]  }
  0x55   : > { %p10505_p3 = scmp.ne.s32.totalorder %s10993_s25, %s10504_s17  ;;  %s10509_s24 = sshll.u32 %s10806_s30, 4  ;;  %s10510_s24 = int_to_ptr.vmem [resolvable:$false] %s10509_s24 }
  0x56   : > { %s10511_s27 = scalar_lea.vmem %s10510_s24, 262144  ;;  %p10512_p6 = scmp.lt.s32.totalorder %s10993_s25, %s10510_s24 }
  0x57   : > { %p10507_p7 = pnand %p10505_p3, %p11001_p4  ;;  %p10513_p8 = scmp.lt.s32.totalorder %s10511_s27, %s10504_s17 }
  0x59   : > { %p10508_p12 = pneg %p10507_p7  ;;  %p10514_p10 = por %p10513_p8, %p10512_p6 }
  0x5b   : > { %p10515_p11 = pnand %p10514_p10, %p10508_p12 }
  0x5d   : > { %10518 = shalt.err (!%p10515_p11)
}
  0x5e   : > { %s10807_s12 = smov 4096   ;;  %s10808_s26 = smov 256  }
  0x5f   : > { %10262 = dma.hbm_to_vmem [thread:$0]  (!%p10989_p1), %s10985_s29, 131072, %s10993_s25, %s10995_s23, %s10807_s12, %s10807_s12, %s10808_s26  }
  0x60   : > { %s10809_s22 = smov [#allocation5]   ;;  %s10810_s30 = smov [#allocation8]  }
  0x61   : > { %s312_s7 = sshll.u32 %s10809_s22, 4  ;;  %s336_s10 = sshll.u32 %s10810_s30, 4  ;;  %s313_s7 = int_to_ptr.vmem [resolvable:$true] %s312_s7  ;;  %s337_s10 = int_to_ptr.vmem [resolvable:$true] %s336_s10 }
  0x62   : > { %s12754_s2 = sld [smem:[#allocation32_spill]]  ;;  %p12755_p8 = scmp.ne.s32.totalorder %s12740_s28, 0 }
  0x68   : > { %s10519_s27 = scalar_lea.hbm %s12754_s2, 32 }
  0x69   : > { %p10520_p6 = scmp.ne.s32.totalorder %s12754_s2, %s10519_s27  ;;  %p10526_p5 = scmp.lt.u32.totalorder %s10519_s27, %s12754_s2 }
  0x6b   : > { %p10522_p12 = pnand %p10520_p6, %p12755_p8 }
  0x6d   : > { %p10523_p13 = pneg %p10522_p12 }
  0x6f   : > { %p10528_p9 = pnand %p10526_p5, %p10523_p13 }
  0x71   : > { %10531 = shalt.err (!%p10528_p9)
}
  0x72   : > { %s10532_s25 = scalar_lea.vmem %s313_s7, 32  ;;  %p10540_p7 = scmp.lt.s32.totalorder %s313_s7, %s313_s7 }
  0x73   : > { %p10533_p0 = scmp.ne.s32.totalorder %s313_s7, %s10532_s25  ;;  %p10541_p10 = scmp.lt.s32.totalorder %s10532_s25, %s10532_s25 }
  0x75   : > { %p10535_p2 = pnand %p10533_p0, %p12755_p8  ;;  %p10542_p11 = por %p10541_p10, %p10540_p7 }
  0x77   : > { %p10536_p3 = pneg %p10535_p2 }
  0x79   : > { %p10543_p1 = pnand %p10542_p11, %p10536_p3 }
  0x7b   : > { %10546 = shalt.err (!%p10543_p1)
}
  0x7c   : > { %p12756_p6 = scmp.ne.s32.totalorder %s12738_s21, 0  ;;  %s12757_s14 = sand.u32 1, %s10797_s15  }
  0x7d   : > { %s11046_s18 = sshll.u32 %s12757_s14, 5  ;;  %s12758_s4 = sld [smem:[#allocation34_spill]] }
  0x7e   : > { %10246 = dma.hbm_to_vmem [thread:$0]  (!%p12756_p6), %s12754_s2, 32, %s313_s7, [#allocation6]  }
  0x83   : > { %s10547_s22 = scalar_lea.hbm %s12758_s4, 64 }
  0x84   : > { %p10548_p1 = scmp.ne.s32.totalorder %s12758_s4, %s10547_s22  ;;  %p10554_p5 = scmp.lt.u32.totalorder %s10547_s22, %s12758_s4 }
  0x86   : > { %p10550_p12 = pnand %p10548_p1, %p12755_p8 }
  0x88   : > { %p10551_p13 = pneg %p10550_p12 }
  0x8a   : > { %p10556_p9 = pnand %p10554_p5, %p10551_p13 }
  0x8c   : > { %10559 = shalt.err (!%p10556_p9)
}
  0x8d   : > { %s10560_s7 = scalar_lea.vmem %s337_s10, 64  ;;  %p10568_p7 = scmp.lt.s32.totalorder %s337_s10, %s337_s10 }
  0x8e   : > { %p10561_p0 = scmp.ne.s32.totalorder %s337_s10, %s10560_s7  ;;  %p10569_p10 = scmp.lt.s32.totalorder %s10560_s7, %s10560_s7 }
  0x90   : > { %p10563_p2 = pnand %p10561_p0, %p12755_p8  ;;  %p10570_p11 = por %p10569_p10, %p10568_p7 }
  0x92   : > { %p10564_p3 = pneg %p10563_p2 }
  0x94   : > { %p10571_p4 = pnand %p10570_p11, %p10564_p3 }
  0x96   : > { %10574 = shalt.err (!%p10571_p4)
}
  0x97   : > { %10252 = dma.hbm_to_vmem [thread:$0]  (!%p12756_p6), %s12758_s4, 64, %s337_s10, [#allocation9]  }
  0x98   : > { %s12725_s29 = sshll.u32 %s10801_s16, 9  ;;  %s12759_s8 = sld [smem:[#allocation36_spill]] }
  0x99   : > { %s396_s22 = scalar_lea.vmem [#allocation14], %s11046_s18  ;;  %p12760_p1 = scmp.ne.s32.totalorder %s12753_s1, 0 }
  0x9a   : > { %s404_s30 = sshll.u32 %s396_s22, 4  ;;  %s405_s30 = int_to_ptr.vmem [resolvable:$true] %s404_s30 }
  0x9e   : > { %s11072_s12 = scalar_lea.hbm %s12759_s8, %s12725_s29  ;;  %s10580_s27 = scalar_lea.hbm %s12759_s8, 1024 }
  0x9f   : > { %s10575_s24 = scalar_lea.hbm %s11072_s12, 512  ;;  %p10581_p5 = scmp.lt.u32.totalorder %s11072_s12, %s12759_s8 }
  0xa0   : > { %p10576_p4 = scmp.ne.s32.totalorder %s11072_s12, %s10575_s24  ;;  %p10582_p9 = scmp.lt.u32.totalorder %s10580_s27, %s10575_s24 }
  0xa1   : > { %p10584_p2 = scmp.lt.u32.totalorder %s10575_s24, %s11072_s12 }
  0xa2   : > { %p10578_p12 = pnand %p10576_p4, %p12760_p1  ;;  %p10583_p0 = por %p10582_p9, %p10581_p5 }
  0xa4   : > { %p10579_p13 = pneg %p10578_p12  ;;  %p10585_p3 = por %p10584_p2, %p10583_p0 }
  0xa6   : > { %p10586_p7 = pnand %p10585_p3, %p10579_p13 }
  0xa8   : > { %10589 = shalt.err (!%p10586_p7)
}
  0xa9   : > { %s10590_s0 = scalar_lea.vmem %s405_s30, 512  ;;  %s10811_s14 = smov [#allocation14]  }
  0xaa   : > { %p10591_p10 = scmp.ne.s32.totalorder %s405_s30, %s10590_s0  ;;  %s10595_s11 = sshll.u32 %s10811_s14, 4  ;;  %s10596_s11 = int_to_ptr.vmem [resolvable:$false] %s10595_s11 }
  0xab   : > { %s10597_s22 = scalar_lea.vmem %s10596_s11, 1024  ;;  %p10598_p12 = scmp.lt.s32.totalorder %s405_s30, %s10596_s11 }
  0xac   : > { %p10593_p11 = pnand %p10591_p10, %p12760_p1  ;;  %p10599_p6 = scmp.lt.s32.totalorder %s10597_s22, %s10590_s0 }
  0xae   : > { %p10594_p4 = pneg %p10593_p11  ;;  %p10600_p8 = por %p10599_p6, %p10598_p12 }
  0xb0   : > { %p10601_p5 = pnand %p10600_p8, %p10594_p4 }
  0xb2   : > { %10604 = shalt.err (!%p10601_p5)
}
  0xb3   : > { %p12761_p9 = scmp.ne.s32.totalorder %s12752_s13, 0  ;;  %s10812_s24 = smov [#allocation7]  }
  0xb4   : > { %s322_s10 = sshll.u32 %s10812_s24, 4  ;;  %s12762_s3 = sld [smem:[#allocation33_spill]]  ;;  %s323_s10 = int_to_ptr.vmem [resolvable:$true] %s322_s10 }
  0xb5   : > { %10265 = dma.hbm_to_vmem [thread:$0]  (!%p12761_p9), %s11072_s12, 512, %s405_s30, %s10995_s23  }
  0xb6   : > { %p12763_p6 = scmp.ne.s32.totalorder %s12740_s28, 0 }
  0xba   : > { %s10605_s7 = scalar_lea.hbm %s12762_s3, 8192 }
  0xbb   : > { %p10606_p13 = scmp.ne.s32.totalorder %s12762_s3, %s10605_s7  ;;  %p10612_p2 = scmp.lt.u32.totalorder %s10605_s7, %s12762_s3 }
  0xbd   : > { %p10608_p8 = pnand %p10606_p13, %p12763_p6 }
  0xbf   : > { %p10609_p0 = pneg %p10608_p8 }
  0xc1   : > { %p10614_p3 = pnand %p10612_p2, %p10609_p0 }
  0xc3   : > { %10617 = shalt.err (!%p10614_p3)
}
  0xc4   : > { %s10618_s12 = scalar_lea.vmem %s323_s10, 8192  ;;  %p10626_p4 = scmp.lt.s32.totalorder %s323_s10, %s323_s10 }
  0xc5   : > { %p10619_p7 = scmp.ne.s32.totalorder %s323_s10, %s10618_s12  ;;  %p10627_p12 = scmp.lt.s32.totalorder %s10618_s12, %s10618_s12 }
  0xc7   : > { %p10621_p10 = pnand %p10619_p7, %p12763_p6  ;;  %p10628_p5 = por %p10627_p12, %p10626_p4 }
  0xc9   : > { %p10622_p11 = pneg %p10621_p10 }
  0xcb   : > { %p10629_p9 = pnand %p10628_p5, %p10622_p11 }
  0xcd   : > { %10632 = shalt.err (!%p10629_p9)
}
  0xce   : > { %s10813_s30 = smov 16   ;;  %p12764_p13 = scmp.ne.s32.totalorder %s12738_s21, 0 }
  0xcf   : > { %s10814_s17 = smov [#allocation10]   ;;  %s10633_s14 = scalar_lea.hbm %s12694_s5, 32768 }
  0xd0   : > { %10249 = dma.hbm_to_vmem [thread:$0]  (!%p12764_p13), %s12762_s3, 8192, %s323_s10, [#allocation6], %s10808_s26, %s10808_s26, %s10813_s30  }
  0xd1   : > { %s346_s27 = sshll.u32 %s10814_s17, 4  ;;  %p10634_p9 = scmp.ne.s32.totalorder %s12694_s5, %s10633_s14  ;;  %s347_s27 = int_to_ptr.vmem [resolvable:$true] %s346_s27 }
  0xd2   : > { %p10640_p2 = scmp.lt.u32.totalorder %s10633_s14, %s12694_s5 }
  0xd3   : > { %p10636_p8 = pnand %p10634_p9, %p12763_p6 }
  0xd5   : > { %p10637_p0 = pneg %p10636_p8 }
  0xd7   : > { %p10642_p3 = pnand %p10640_p2, %p10637_p0 }
  0xd9   : > { %10645 = shalt.err (!%p10642_p3)
}
  0xda   : > { %s10646_s26 = scalar_lea.vmem %s347_s27, 32768  ;;  %p10654_p4 = scmp.lt.s32.totalorder %s347_s27, %s347_s27 }
  0xdb   : > { %p10647_p7 = scmp.ne.s32.totalorder %s347_s27, %s10646_s26  ;;  %p10655_p12 = scmp.lt.s32.totalorder %s10646_s26, %s10646_s26 }
  0xdd   : > { %p10649_p10 = pnand %p10647_p7, %p12763_p6  ;;  %p10656_p5 = por %p10655_p12, %p10654_p4 }
  0xdf   : > { %p10650_p11 = pneg %p10649_p10 }
  0xe1   : > { %p10657_p1 = pnand %p10656_p5, %p10650_p11 }
  0xe3   : > { %10660 = shalt.err (!%p10657_p1)
}
  0xe4   : > { %s10815_s10 = smov 512   ;;  %s10816_s29 = smov 32  }
  0xe5   : > { %10255 = dma.hbm_to_vmem [thread:$0]  (!%p12764_p13), %s12694_s5, 32768, %s347_s27, [#allocation9], %s10815_s10, %s10815_s10, %s10816_s29  }
  0xe6   : > { %s10817_s24 = smov [#allocation11]   ;;  %s12765_s7 = sshll.u32 %s10801_s16, 9 }
  0xe7   : > { %s360_s17 = sshll.u32 %s10817_s24, 4  ;;  %s11136_s0 = scalar_lea.hbm %s12698_s9, %s12765_s7  ;;  %s361_s17 = int_to_ptr.vmem [resolvable:$true] %s360_s17 }
  0xe8   : > { %s415_s11 = scalar_lea.vmem [#allocation15], %s11046_s18  ;;  %s10661_s3 = scalar_lea.hbm %s12695_s6, 128 }
  0xe9   : > { %s423_s12 = sshll.u32 %s415_s11, 4  ;;  %p10662_p1 = scmp.ne.s32.totalorder %s12695_s6, %s10661_s3  ;;  %s424_s12 = int_to_ptr.vmem [resolvable:$true] %s423_s12 }
  0xea   : > { %p10668_p0 = scmp.lt.u32.totalorder %s10661_s3, %s12695_s6 }
  0xeb   : > { %p10664_p9 = pnand %p10662_p1, %p12763_p6 }
  0xed   : > { %p10665_p8 = pneg %p10664_p9 }
  0xef   : > { %p10670_p2 = pnand %p10668_p0, %p10665_p8 }
  0xf1   : > { %10673 = shalt.err (!%p10670_p2)
}
  0xf2   : > { %s10674_s29 = scalar_lea.vmem %s361_s17, 128  ;;  %p10682_p11 = scmp.lt.s32.totalorder %s361_s17, %s361_s17 }
  0xf3   : > { %p10675_p3 = scmp.ne.s32.totalorder %s361_s17, %s10674_s29  ;;  %p10683_p4 = scmp.lt.s32.totalorder %s10674_s29, %s10674_s29 }
  0xf5   : > { %p10677_p7 = pnand %p10675_p3, %p12763_p6  ;;  %p10684_p12 = por %p10683_p4, %p10682_p11 }
  0xf7   : > { %p10678_p10 = pneg %p10677_p7 }
  0xf9   : > { %p10685_p5 = pnand %p10684_p12, %p10678_p10 }
  0xfb   : > { %10688 = shalt.err (!%p10685_p5)
}
  0xfc   : > { %10258 = dma.hbm_to_vmem [thread:$0]  (!%p12764_p13), %s12695_s6, 128, %s361_s17, [#allocation12]  }
  0xfd   : > { %s10689_s3 = scalar_lea.hbm %s11136_s0, 512  ;;  %p12766_p1 = scmp.ne.s32.totalorder %s12753_s1, 0 }
  0xfe   : > { %p10690_p6 = scmp.ne.s32.totalorder %s11136_s0, %s10689_s3  ;;  %s10694_s18 = scalar_lea.hbm %s12698_s9, 1024 }
  0xff   : > { %p10695_p0 = scmp.lt.u32.totalorder %s11136_s0, %s12698_s9  ;;  %p10696_p2 = scmp.lt.u32.totalorder %s10694_s18, %s10689_s3 }
 0x100   : > { %p10692_p9 = pnand %p10690_p6, %p12766_p1  ;;  %p10698_p7 = scmp.lt.u32.totalorder %s10689_s3, %s11136_s0 }
 0x101   : > { %p10697_p3 = por %p10696_p2, %p10695_p0 }
 0x102   : > { %p10693_p8 = pneg %p10692_p9 }
 0x103   : > { %p10699_p10 = por %p10698_p7, %p10697_p3 }
 0x105   : > { %p10700_p11 = pnand %p10699_p10, %p10693_p8 }
 0x107   : > { %10703 = shalt.err (!%p10700_p11)
}
 0x108   : > { %s10704_s22 = scalar_lea.vmem %s424_s12, 512  ;;  %s10818_s24 = smov [#allocation15]  }
 0x109   : > { %p10705_p13 = scmp.ne.s32.totalorder %s424_s12, %s10704_s22  ;;  %s10709_s17 = sshll.u32 %s10818_s24, 4  ;;  %s10710_s17 = int_to_ptr.vmem [resolvable:$false] %s10709_s17 }
 0x10a   : > { %s10711_s7 = scalar_lea.vmem %s10710_s17, 1024  ;;  %p10712_p5 = scmp.lt.s32.totalorder %s424_s12, %s10710_s17 }
 0x10b   : > { %p10707_p4 = pnand %p10705_p13, %p12766_p1  ;;  %p10713_p6 = scmp.lt.s32.totalorder %s10711_s7, %s10704_s22 }
 0x10d   : > { %p10708_p12 = pneg %p10707_p4  ;;  %p10714_p9 = por %p10713_p6, %p10712_p5 }
 0x10f   : > { %p10715_p0 = pnand %p10714_p9, %p10708_p12 }
 0x111   : > { %10718 = shalt.err (!%p10715_p0)
}
 0x112   : > { %p12767_p2 = scmp.ne.s32.totalorder %s12752_s13, 0  ;;  %p12768_p8 = scmp.ne.s32.totalorder %s12737_s20, 0 }
 0x113   : > { %p12769_p1 = scmp.eq.s32.totalorder (!%p12768_p8), %s10898_s19, 0 }
 0x114   : > { %10268 = dma.hbm_to_vmem [thread:$0]  (!%p12767_p2), %s11136_s0, 512, %s424_s12, %s10995_s23  }
 0x115   : > { %432 = sbr.rel (%p12768_p8) target bundleno = 3287 (0xcd7), region = 60 }
 0x11c   : > { %10764 = dma.done.wait (%p12769_p1), [#allocation3], 2048   ;;  %p12770_p3 = pmov %p12769_p1 }
 0x11d   : > { %p12771_p7 = pmov %p12769_p1 }
 0x11e   : > { %10766 = vsyncadd (%p12770_p3), [#allocation3], 4294965248 }
 0x11f   : > { %10768 = dma.done.wait (%p12771_p7), [#allocation6], 8224   ;;  %p12772_p10 = pmov %p12769_p1 }
 0x120   : > { %p12773_p11 = pmov %p12769_p1 }
 0x121   : > { %10770 = vsyncadd (%p12772_p10), [#allocation6], 4294959072 }
 0x122   : > { %10772 = dma.done.wait (%p12773_p11), [#allocation9], 32832   ;;  %p12774_p13 = pmov %p12769_p1 }
 0x123   : > { %p12775_p4 = pmov %p12769_p1 }
 0x124   : > { %10774 = vsyncadd (%p12774_p13), [#allocation9], 4294934464 }
 0x125   : > { %10776 = dma.done.wait (%p12775_p4), [#allocation12], 128   ;;  %p12776_p12 = pmov %p12769_p1 }
 0x126   : > { %s12777_s13 = sld [smem:[#allocation24_spill]]  ;;  %s12778_s20 = sld [smem:[#allocation27_spill]] }
 0x127   : > { %10778 = vsyncadd (%p12776_p12), [#allocation12], 4294967168  ;;  %s458_s23 = sand.u32 1, %s10898_s19  }
 0x128   : > { %s459_s14 = scalar_lea.sflag [#allocation3], %s458_s23 }
 0x12c   : > { %s11195_s1 = sand.u32 1, %s12777_s13   ;;  %p12779_p5 = scmp.ne.s32.totalorder %s12778_s20, 0 }
 0x12d   : > { %s9643_s25 = sshll.u32 %s11195_s1, 13 }
 0x12e   : > { %s11198_s0 = scalar_lea.vmem [#allocation13], %s9643_s25 }
 0x12f   : > { %10780 = dma.done.wait (%p12779_p5), %s459_s14, 132096  }
 0x130   : > { %10782 = vsyncadd (%p12779_p5), %s459_s14, 4294835200  ;;  %v10819_v0 = vmov 0   ;;  %v10334_v1 = vld [vmem:[#allocation2 + $0x4] ss:$8 sps:$4 sm:$0xff]   ;;  %v10336_v2 = vld [vmem:[#allocation2] ss:$8 sps:$4 sm:$0xff]  }
 0x131   : > { %673 = vmatprep.mubr.bf16.mxu0 %v10819_v0  ;;  %641 = vmatprep.subr.bf16.mxu0 %v10334_v1  ;;  %v10337_v3 = vld [vmem:[#allocation2 + $0x14] ss:$8 sps:$4 sm:$0xff]   ;;  %v10339_v4 = vld [vmem:[#allocation2 + $0x10] ss:$8 sps:$4 sm:$0xff]   ;;  %v10340_v5 = vld [vmem:[#allocation2 + $0x24] ss:$8 sps:$4 sm:$0xff]  }
 0x132   : > { %642 = vmatpush1.bf16.msra.mxu0 %v10336_v2  ;;  %v10342_v6 = vld [vmem:[#allocation2 + $0x20] ss:$8 sps:$4 sm:$0xff]   ;;  %v10343_v7 = vld [vmem:[#allocation2 + $0x34] ss:$8 sps:$4 sm:$0xff]   ;;  %v10345_v8 = vld [vmem:[#allocation2 + $0x30] ss:$8 sps:$4 sm:$0xff]  }
 0x133   : > { %643 = vmatprep.subr.bf16.mxu0 %v10337_v3  ;;  %v10358_v9 = vld [vmem:[#allocation7 + $0x4] ss:$16 sps:$4 sm:$0xff]   ;;  %v10363_v11 = vld [vmem:[#allocation7] ss:$16 sps:$4 sm:$0xff]   ;;  %s12780_s26 = sld [smem:[#allocation30_spill]]  ;;  %s11575_s27 = sshll.u32 %s11195_s1, 5 }
 0x134   : > { %v10346_v10 = vld [vmem:[#allocation2 + $0x44] ss:$8 sps:$4 sm:$0xff]   ;;  %1092 = vmatprep.subr.bf16.mxu1 %v10358_v9  ;;  %v10348_v13 = vld [vmem:[#allocation2 + $0x40] ss:$8 sps:$4 sm:$0xff]   ;;  %v10349_v14 = vld [vmem:[#allocation2 + $0x54] ss:$8 sps:$4 sm:$0xff]  }
 0x135   : > { %v10364_v12 = vld [vmem:[#allocation7 + $0x24] ss:$16 sps:$4 sm:$0xff]   ;;  %1093 = vmatpush1.bf16.msra.mxu1 %v10363_v11  ;;  %v10369_v15 = vld [vmem:[#allocation7 + $0x20] ss:$16 sps:$4 sm:$0xff]   ;;  %v10362_v27 = vld [vmem:[#allocation7 + $0xc] ss:$16 sps:$4 sm:$0xff]  }
 0x136   : > { %644 = vmatpush1.bf16.msra.mxu0 %v10339_v4  ;;  %1094 = vmatprep.subr.bf16.mxu1 %v10364_v12  ;;  %v10370_v16 = vld [vmem:[#allocation7 + $0x44] ss:$16 sps:$4 sm:$0xff]   ;;  %v10375_v19 = vld [vmem:[#allocation7 + $0x40] ss:$16 sps:$4 sm:$0xff]   ;;  %v10360_v31 = vld [vmem:[#allocation7 + $0x8] ss:$16 sps:$4 sm:$0xff]  }
 0x137   : > { %645 = vmatprep.subr.bf16.mxu0 %v10340_v5  ;;  %v10351_v17 = vld [vmem:[#allocation2 + $0x50] ss:$8 sps:$4 sm:$0xff]   ;;  %v10352_v18 = vld [vmem:[#allocation2 + $0x64] ss:$8 sps:$4 sm:$0xff]   ;;  %v10354_v21 = vld [vmem:[#allocation2 + $0x60] ss:$8 sps:$4 sm:$0xff]  }
 0x138   : > { %v10376_v20 = vld [vmem:[#allocation7 + $0x64] ss:$16 sps:$4 sm:$0xff]   ;;  %v10381_v23 = vld [vmem:[#allocation7 + $0x60] ss:$16 sps:$4 sm:$0xff]   ;;  %v10368_v32 = vld [vmem:[#allocation7 + $0x2c] ss:$16 sps:$4 sm:$0xff]  }
 0x139   : > { %1095 = vmatpush1.bf16.msra.mxu1 %v10369_v15  ;;  %v10355_v22 = vld [vmem:[#allocation2 + $0x74] ss:$8 sps:$4 sm:$0xff]   ;;  %v10357_v25 = vld [vmem:[#allocation2 + $0x70] ss:$8 sps:$4 sm:$0xff]   ;;  %s11581_s10 = scalar_lea.vmem [#allocation14], %s11575_s27  ;;  %s11585_s29 = scalar_lea.vmem [#allocation15], %s11575_s27 }
 0x13a   : > { %646 = vmatpush1.bf16.msra.mxu0 %v10342_v6  ;;  %1096 = vmatprep.subr.bf16.mxu1 %v10370_v16  ;;  %v10382_v24 = vld [vmem:[#allocation7 + $0x84] ss:$16 sps:$4 sm:$0xff]   ;;  %v10387_v28 = vld [vmem:[#allocation7 + $0x80] ss:$16 sps:$4 sm:$0xff]   ;;  %v10366_v35 = vld [vmem:[#allocation7 + $0x28] ss:$16 sps:$4 sm:$0xff]  }
 0x13b   : > { %647 = vmatprep.subr.bf16.mxu0 %v10343_v7  ;;  %v531_v26 = vld [vmem:[%s12780_s26] sm:$0x1]  ;;  %v10393_v33 = vld [vmem:[#allocation7 + $0xa0] ss:$16 sps:$4 sm:$0xff]   ;;  %v10374_v36 = vld [vmem:[#allocation7 + $0x4c] ss:$16 sps:$4 sm:$0xff]  }
 0x13c   : > { %v10388_v29 = vld [vmem:[#allocation7 + $0xa4] ss:$16 sps:$4 sm:$0xff]   ;;  %v532_v30 = vpack.c.bf16 %v531_v26, %v531_v26  ;;  %v10399_v37 = vld [vmem:[#allocation7 + $0xc0] ss:$16 sps:$4 sm:$0xff]   ;;  %v10372_v39 = vld [vmem:[#allocation7 + $0x48] ss:$16 sps:$4 sm:$0xff]  }
 0x13d   : > { %1097 = vmatpush1.bf16.msra.mxu1 %v10375_v19  ;;  %v10394_v34 = vld [vmem:[#allocation7 + $0xc4] ss:$16 sps:$4 sm:$0xff]   ;;  %v10380_v40 = vld [vmem:[#allocation7 + $0x6c] ss:$16 sps:$4 sm:$0xff]   ;;  %v10405_v41 = vld [vmem:[#allocation7 + $0xe0] ss:$16 sps:$4 sm:$0xff]  }
 0x13e   : > { %648 = vmatpush1.bf16.msra.mxu0 %v10345_v8  ;;  %1098 = vmatprep.subr.bf16.mxu1 %v10376_v20  ;;  %v10400_v38 = vld [vmem:[#allocation7 + $0xe4] ss:$16 sps:$4 sm:$0xff]   ;;  %v10378_v43 = vld [vmem:[#allocation7 + $0x68] ss:$16 sps:$4 sm:$0xff]   ;;  %v10386_v44 = vld [vmem:[#allocation7 + $0x8c] ss:$16 sps:$4 sm:$0xff]  }
 0x13f   : > { %649 = vmatprep.subr.bf16.mxu0 %v10346_v10  ;;  %v10406_v42 = vld [vmem:[#allocation7 + $0x104] ss:$16 sps:$4 sm:$0xff]   ;;  %v10411_v45 = vld [vmem:[#allocation7 + $0x100] ss:$16 sps:$4 sm:$0xff]   ;;  %v10384_v47 = vld [vmem:[#allocation7 + $0x88] ss:$16 sps:$4 sm:$0xff]  }
 0x140   : > { %v10412_v46 = vld [vmem:[#allocation7 + $0x124] ss:$16 sps:$4 sm:$0xff]   ;;  %v10417_v48 = vld [vmem:[#allocation7 + $0x120] ss:$16 sps:$4 sm:$0xff]   ;;  %v10392_v49 = vld [vmem:[#allocation7 + $0xac] ss:$16 sps:$4 sm:$0xff]  }
 0x141   : > { %1099 = vmatpush1.bf16.msra.mxu1 %v10381_v23  ;;  %v10418_v50 = vld [vmem:[#allocation7 + $0x144] ss:$16 sps:$4 sm:$0xff]   ;;  %v10390_v51 = vld [vmem:[#allocation7 + $0xa8] ss:$16 sps:$4 sm:$0xff]   ;;  %v10423_v52 = vld [vmem:[#allocation7 + $0x140] ss:$16 sps:$4 sm:$0xff]  }
 0x142   : > { %650 = vmatpush1.bf16.msra.mxu0 %v10348_v13  ;;  %1100 = vmatprep.subr.bf16.mxu1 %v10382_v24  ;;  %v10398_v53 = vld [vmem:[#allocation7 + $0xcc] ss:$16 sps:$4 sm:$0xff]   ;;  %v10424_v54 = vld [vmem:[#allocation7 + $0x164] ss:$16 sps:$4 sm:$0xff]   ;;  %v10396_v55 = vld [vmem:[#allocation7 + $0xc8] ss:$16 sps:$4 sm:$0xff]  }
 0x143   : > { %651 = vmatprep.subr.bf16.mxu0 %v10349_v14  ;;  %v10429_v56 = vld [vmem:[#allocation7 + $0x160] ss:$16 sps:$4 sm:$0xff]   ;;  %v10404_v57 = vld [vmem:[#allocation7 + $0xec] ss:$16 sps:$4 sm:$0xff]   ;;  %v10430_v58 = vld [vmem:[#allocation7 + $0x184] ss:$16 sps:$4 sm:$0xff]  }
 0x144   : > { %v10402_v59 = vld [vmem:[#allocation7 + $0xe8] ss:$16 sps:$4 sm:$0xff]   ;;  %v10435_v60 = vld [vmem:[#allocation7 + $0x180] ss:$16 sps:$4 sm:$0xff]   ;;  %v10410_v61 = vld [vmem:[#allocation7 + $0x10c] ss:$16 sps:$4 sm:$0xff]  }
 0x145   : > { %1101 = vmatpush1.bf16.msra.mxu1 %v10387_v28  ;;  %v10436_v62 = vld [vmem:[#allocation7 + $0x1a4] ss:$16 sps:$4 sm:$0xff]   ;;  %v10408_v63 = vld [vmem:[#allocation7 + $0x108] ss:$16 sps:$4 sm:$0xff]   ;;  %v10441_v0 = vld [vmem:[#allocation7 + $0x1a0] ss:$16 sps:$4 sm:$0xff]  }
 0x146   : > { %652 = vmatpush1.bf16.msra.mxu0 %v10351_v17  ;;  %1102 = vmatprep.subr.bf16.mxu1 %v10388_v29  ;;  %v10416_v1 = vld [vmem:[#allocation7 + $0x12c] ss:$16 sps:$4 sm:$0xff]   ;;  %v10414_v2 = vld [vmem:[#allocation7 + $0x128] ss:$16 sps:$4 sm:$0xff]   ;;  %v10442_v11 = vld [vmem:[#allocation7 + $0x1c4] ss:$16 sps:$4 sm:$0xff]  }
 0x147   : > { %653 = vmatprep.subr.bf16.mxu0 %v10352_v18  ;;  %v10422_v3 = vld [vmem:[#allocation7 + $0x14c] ss:$16 sps:$4 sm:$0xff]   ;;  %v10420_v4 = vld [vmem:[#allocation7 + $0x148] ss:$16 sps:$4 sm:$0xff]   ;;  %v10447_v14 = vld [vmem:[#allocation7 + $0x1c0] ss:$16 sps:$4 sm:$0xff]  }
 0x148   : > { %v10428_v5 = vld [vmem:[#allocation7 + $0x16c] ss:$16 sps:$4 sm:$0xff]   ;;  %v10426_v6 = vld [vmem:[#allocation7 + $0x168] ss:$16 sps:$4 sm:$0xff]   ;;  %v10448_v15 = vld [vmem:[#allocation7 + $0x1e4] ss:$16 sps:$4 sm:$0xff]  }
 0x149   : > { %1103 = vmatpush1.bf16.msra.mxu1 %v10393_v33  ;;  %v10434_v7 = vld [vmem:[#allocation7 + $0x18c] ss:$16 sps:$4 sm:$0xff]   ;;  %v10432_v8 = vld [vmem:[#allocation7 + $0x188] ss:$16 sps:$4 sm:$0xff]   ;;  %v10453_v18 = vld [vmem:[#allocation7 + $0x1e0] ss:$16 sps:$4 sm:$0xff]  }
 0x14a   : > { %654 = vmatpush1.bf16.msra.mxu0 %v10354_v21  ;;  %1104 = vmatprep.subr.bf16.mxu1 %v10394_v34  ;;  %v10440_v9 = vld [vmem:[#allocation7 + $0x1ac] ss:$16 sps:$4 sm:$0xff]   ;;  %v10438_v10 = vld [vmem:[#allocation7 + $0x1a8] ss:$16 sps:$4 sm:$0xff]   ;;  %s11781_s2 = scalar_lea.vmem [#allocation16], %s11575_s27  ;;  %s12781_s4 = sld [smem:[#allocation28_spill]] }
 0x14b   : > { %655 = vmatprep.subr.bf16.mxu0 %v10355_v22  ;;  %v10446_v12 = vld [vmem:[#allocation7 + $0x1cc] ss:$16 sps:$4 sm:$0xff]   ;;  %v10444_v13 = vld [vmem:[#allocation7 + $0x1c8] ss:$16 sps:$4 sm:$0xff]   ;;  %s9991_s3 = sshll.u32 %s10898_s19, 9  ;;  %s9451_s8 = sshll.u32 %s11781_s2, 4  ;;  %s12646_s8 = int_to_ptr.vmem [resolvable:$true] %s9451_s8 }
 0x14c   : > { %v10452_v16 = vld [vmem:[#allocation7 + $0x1ec] ss:$16 sps:$4 sm:$0xff]   ;;  %v10450_v17 = vld [vmem:[#allocation7 + $0x1e8] ss:$16 sps:$4 sm:$0xff]   ;;  %s12782_s21 = sld [smem:[#allocation37_spill]]  ;;  %s9437_s19 = scalar_lea.sflag [#allocation4], %s11195_s1 }
 0x14d   : > { %1105 = vmatpush1.bf16.msra.mxu1 %v10399_v37  ;;  %v1182_v19 = vld [vmem:[#allocation10] sm:$0xff]  ;;  %v1183_v21 = vld [vmem:[#allocation10 + $0x8] sm:$0xff]  ;;  %s10719_s22 = scalar_lea.vmem %s12646_s8, 512  ;;  %s10821_s24 = smov [#allocation16]  }
 0x14e   : > { %656 = vmatpush1.bf16.msra.mxu0 %v10357_v25  ;;  %1106 = vmatprep.subr.bf16.mxu1 %v10400_v38  ;;  %v1186_v20 = vld [vmem:[#allocation10 + $0x20] sm:$0xff]  ;;  %v1187_v24 = vld [vmem:[#allocation10 + $0x28] sm:$0xff]  ;;  %p10720_p6 = scmp.ne.s32.totalorder %s12646_s8, %s10719_s22  ;;  %s10723_s17 = sshll.u32 %s10821_s24, 4  ;;  %s10724_s17 = int_to_ptr.vmem [resolvable:$false] %s10723_s17 }
 0x14f   : > { %1133 = vmatprep.subr.bf16.mxu0 %v10362_v27  ;;  %v9727_v22 = vcombine.low %v1182_v19, %v1186_v20  ;;  %v9728_v23 = vcombine.high %v1182_v19, %v1186_v20  ;;  %v9729_v25 = vcombine.low %v1183_v21, %v1187_v24  ;;  %v9730_v26 = vcombine.high %v1183_v21, %v1187_v24  ;;  %v1234_v19 = vld [vmem:[#allocation10 + $0x1a0] sm:$0xff]  ;;  %v1231_v20 = vld [vmem:[#allocation10 + $0x188] sm:$0xff]  ;;  %s10725_s7 = scalar_lea.vmem %s10724_s17, 1024  ;;  %p10726_p8 = scmp.lt.s32.totalorder %s12646_s8, %s10724_s17 }
 0x150   : > { %v631_v27 = vlaneseq  ;;  %v1235_v21 = vld [vmem:[#allocation10 + $0x1a8] sm:$0xff]  ;;  %p12783_p9 = scmp.ne.s32.totalorder %s12781_s4, 0  ;;  %p10727_p1 = scmp.lt.s32.totalorder %s10725_s7, %s10719_s22 }
 0x151   : > { %674 = vmatmul.mubr.bf16.vlgmr.msra.gmra.mrb[0].mxu0 %v532_v30  ;;  %1107 = vmatpush1.bf16.msra.mxu1 %v10405_v41  ;;  %v549_v30 = vld [vmem:[#allocation5] sm:$0x3]  ;;  %v1190_v41 = vld [vmem:[#allocation10 + $0x40] sm:$0xff] }
 0x152   : > { %1134 = vmatpush1.bf16.msra.mxu0 %v10360_v31  ;;  %1108 = vmatprep.subr.bf16.mxu1 %v10406_v42  ;;  %v11207_v28 = vshrl.u32 %v631_v27, 7  ;;  %v1242_v27 = vld [vmem:[#allocation10 + $0x1e0] sm:$0xff]  ;;  %s12644_s30 = scalar_lea.hbm %s12782_s21, %s9991_s3  ;;  %p10721_p0 = pnand %p10720_p6, %p12783_p9 }
 0x153   : > { %1135 = vmatprep.subr.bf16.mxu0 %v10368_v32  ;;  %p10728_p3 = por %p10727_p1, %p10726_p8 }
 0x154   : > { %v11210_v29 = vsub.s32 0, %v11207_v28  ;;  %v11213_v31 = vsub.s32 1, %v11207_v28  ;;  %p10722_p2 = pneg %p10721_p0 }
 0x155   : > { %1109 = vmatpush1.bf16.msra.mxu1 %v10411_v45  ;;  %v1195_v45 = vld [vmem:[#allocation10 + $0x68] sm:$0xff] }
 0x156   : > { %1136 = vmatpush1.bf16.msra.mxu0 %v10366_v35  ;;  %1110 = vmatprep.subr.bf16.mxu1 %v10412_v46  ;;  %v634_v32 = vrot.slane %v549_v30, %v11210_v29  ;;  %v638_v33 = vrot.slane %v549_v30, %v11213_v31  ;;  %v1239_v30 = vld [vmem:[#allocation10 + $0x1c8] sm:$0xff]  ;;  %p10729_p7 = pnand %p10728_p3, %p10722_p2 }
 0x157   : > { %1137 = vmatprep.subr.bf16.mxu0 %v10374_v36 }
 0x159   : > { %1111 = vmatpush1.bf16.msra.mxu1 %v10417_v48 }
 0x15a   : > { %1138 = vmatpush1.bf16.msra.mxu0 %v10372_v39  ;;  %1112 = vmatprep.subr.bf16.mxu1 %v10418_v50  ;;  %v1198_v50 = vld [vmem:[#allocation10 + $0x80] sm:$0xff] }
 0x15b   : > { %1139 = vmatprep.subr.bf16.mxu0 %v10380_v40 }
 0x15d   : > { %1113 = vmatpush1.bf16.msra.mxu1 %v10423_v52  ;;  %v1199_v52 = vld [vmem:[#allocation10 + $0x88] sm:$0xff] }
 0x15e   : > { %1140 = vmatpush1.bf16.msra.mxu0 %v10378_v43  ;;  %1114 = vmatprep.subr.bf16.mxu1 %v10424_v54  ;;  %v1194_v43 = vld [vmem:[#allocation10 + $0x60] sm:$0xff] }
 0x15f   : > { %1141 = vmatprep.subr.bf16.mxu0 %v10386_v44  ;;  %v1191_v44 = vld [vmem:[#allocation10 + $0x48] sm:$0xff]  ;;  %v9736_v48 = vcombine.high %v1190_v41, %v1194_v43  ;;  %v9735_v54 = vcombine.low %v1190_v41, %v1194_v43 }
 0x161   : > { %1115 = vmatpush1.bf16.msra.mxu1 %v10429_v56 }
 0x162   : > { %1142 = vmatpush1.bf16.msra.mxu0 %v10384_v47  ;;  %1116 = vmatprep.subr.bf16.mxu1 %v10430_v58  ;;  %v1206_v58 = vld [vmem:[#allocation10 + $0xc0] sm:$0xff] }
 0x163   : > { %1143 = vmatprep.subr.bf16.mxu0 %v10392_v49  ;;  %v9738_v49 = vcombine.high %v1191_v44, %v1195_v45 }
 0x165   : > { %1117 = vmatpush1.bf16.msra.mxu1 %v10435_v60  ;;  %v1207_v60 = vld [vmem:[#allocation10 + $0xc8] sm:$0xff] }
 0x166   : > { %1144 = vmatpush1.bf16.msra.mxu0 %v10390_v51  ;;  %1118 = vmatprep.subr.bf16.mxu1 %v10436_v62  ;;  %v1202_v51 = vld [vmem:[#allocation10 + $0xa0] sm:$0xff] }
 0x167   : > { %1145 = vmatprep.subr.bf16.mxu0 %v10398_v53  ;;  %v1203_v53 = vld [vmem:[#allocation10 + $0xa8] sm:$0xff]  ;;  %v9744_v56 = vcombine.high %v1198_v50, %v1202_v51  ;;  %v9743_v62 = vcombine.low %v1198_v50, %v1202_v51 }
 0x169   : > { %1119 = vmatpush1.bf16.msra.mxu1 %v10441_v0 }
 0x16a   : > { %1146 = vmatpush1.bf16.msra.mxu0 %v10396_v55  ;;  %1120 = vmatprep.subr.bf16.mxu1 %v10442_v11  ;;  %v9737_v55 = vcombine.low %v1191_v44, %v1195_v45  ;;  %v1226_v11 = vld [vmem:[#allocation10 + $0x160] sm:$0xff] }
 0x16b   : > { %1147 = vmatprep.subr.bf16.mxu0 %v10404_v57  ;;  %v9746_v57 = vcombine.high %v1199_v52, %v1203_v53  ;;  %v1254_v45 = vld [vmem:[#allocation10 + $0x240] sm:$0xff] }
 0x16d   : > { %1121 = vmatpush1.bf16.msra.mxu1 %v10447_v14 }
 0x16e   : > { %1148 = vmatpush1.bf16.msra.mxu0 %v10402_v59  ;;  %1122 = vmatprep.subr.bf16.mxu1 %v10448_v15  ;;  %v1210_v59 = vld [vmem:[#allocation10 + $0xe0] sm:$0xff] }
 0x16f   : > { %1149 = vmatprep.subr.bf16.mxu0 %v10410_v61  ;;  %v1211_v61 = vld [vmem:[#allocation10 + $0xe8] sm:$0xff]  ;;  %v9752_v0 = vcombine.high %v1206_v58, %v1210_v59 }
 0x171   : > { %1123 = vmatpush1.bf16.msra.mxu1 %v10453_v18  ;;  %v1230_v18 = vld [vmem:[#allocation10 + $0x180] sm:$0xff] }
 0x172   : > { %1150 = vmatpush1.bf16.msra.mxu0 %v10408_v63  ;;  %2760 = vmatprep.subr.bf16.mxu1 %v9728_v23  ;;  %v9745_v63 = vcombine.low %v1199_v52, %v1203_v53  ;;  %v9776_v24 = vcombine.high %v1230_v18, %v1234_v19  ;;  %v1262_v53 = vld [vmem:[#allocation10 + $0x280] sm:$0xff] }
 0x173   : > { %1151 = vmatprep.subr.bf16.mxu0 %v10416_v1  ;;  %v9754_v1 = vcombine.high %v1207_v60, %v1211_v61 }
 0x176   : > { %1152 = vmatpush1.bf16.msra.mxu0 %v10414_v2  ;;  %v1214_v2 = vld [vmem:[#allocation10 + $0x100] sm:$0xff] }
 0x177   : > { %1153 = vmatprep.subr.bf16.mxu0 %v10422_v3  ;;  %v1218_v3 = vld [vmem:[#allocation10 + $0x120] sm:$0xff] }
 0x178   : > { %v9759_v14 = vcombine.low %v1214_v2, %v1218_v3 }
 0x17a   : > { %1154 = vmatpush1.bf16.msra.mxu0 %v10420_v4  ;;  %v1215_v4 = vld [vmem:[#allocation10 + $0x108] sm:$0xff] }
 0x17b   : > { %1155 = vmatprep.subr.bf16.mxu0 %v10428_v5  ;;  %v1219_v5 = vld [vmem:[#allocation10 + $0x128] sm:$0xff] }
 0x17c   : > { %v9761_v15 = vcombine.low %v1215_v4, %v1219_v5 }
 0x17e   : > { %1156 = vmatpush1.bf16.msra.mxu0 %v10426_v6  ;;  %v9751_v6 = vcombine.low %v1206_v58, %v1210_v59 }
 0x17f   : > { %1157 = vmatprep.subr.bf16.mxu0 %v10434_v7  ;;  %v9753_v7 = vcombine.low %v1207_v60, %v1211_v61  ;;  %v1270_v61 = vld [vmem:[#allocation10 + $0x2c0] sm:$0xff] }
 0x182   : > { %1158 = vmatpush1.bf16.msra.mxu0 %v10432_v8  ;;  %v9760_v8 = vcombine.high %v1214_v2, %v1218_v3 }
 0x183   : > { %1159 = vmatprep.subr.bf16.mxu0 %v10440_v9  ;;  %v9762_v9 = vcombine.high %v1215_v4, %v1219_v5  ;;  %v1278_v5 = vld [vmem:[#allocation10 + $0x300] sm:$0xff] }
 0x186   : > { %1160 = vmatpush1.bf16.msra.mxu0 %v10438_v10  ;;  %v1222_v10 = vld [vmem:[#allocation10 + $0x140] sm:$0xff] }
 0x187   : > { %1161 = vmatprep.subr.bf16.mxu0 %v10446_v12  ;;  %v1223_v12 = vld [vmem:[#allocation10 + $0x148] sm:$0xff] }
 0x18a   : > { %1162 = vmatpush1.bf16.msra.mxu0 %v10444_v13  ;;  %v1227_v13 = vld [vmem:[#allocation10 + $0x168] sm:$0xff] }
 0x18b   : > { %1163 = vmatprep.subr.bf16.mxu0 %v10452_v16  ;;  %v9768_v16 = vcombine.high %v1222_v10, %v1226_v11  ;;  %v9769_v23 = vcombine.low %v1223_v12, %v1227_v13 }
 0x18e   : > { %1164 = vmatpush1.bf16.msra.mxu0 %v10450_v17  ;;  %v9770_v17 = vcombine.high %v1223_v12, %v1227_v13  ;;  %v1286_v13 = vld [vmem:[#allocation10 + $0x340] sm:$0xff] }
 0x18f   : > { %2842 = vmatprep.subr.bf16.mxu0 %v9730_v26  ;;  %v1238_v26 = vld [vmem:[#allocation10 + $0x1c0] sm:$0xff] }
 0x190   : > { %v9783_v41 = vcombine.low %v1238_v26, %v1242_v27 }
 0x224   : > { %v675_v34 = vpop.f32.mrb[0].mxu0 }
 0x225   : > { %v676_v35 = vadd.f32 %v675_v34, %v634_v32  ;;  %v677_v36 = vpop.f32.mrb[1].mxu0  ;;  %v1243_v32 = vld [vmem:[#allocation10 + $0x1e8] sm:$0xff]  ;;  %v9777_v34 = vcombine.low %v1231_v20, %v1235_v21 }
 0x226   : > { %v678_v37 = vadd.f32 %v677_v36, %v638_v33  ;;  %v679_v38 = vpop.f32.mrb[2].mxu0  ;;  %v9775_v33 = vcombine.low %v1230_v18, %v1234_v19  ;;  %v9786_v36 = vcombine.high %v1239_v30, %v1243_v32 }
 0x227   : > { %v682_v39 = vmax.f32 %v676_v35, 0.0  ;;  %v680_v40 = vpop.f32.mrb[3].mxu0  ;;  %v9784_v35 = vcombine.high %v1238_v26, %v1242_v27  ;;  %v1250_v38 = vld [vmem:[#allocation10 + $0x220] sm:$0xff]  ;;  %v1299_v27 = vld [vmem:[#allocation10 + $0x3a8] sm:$0xff] }
 0x228   : > { %v683_v42 = vmax.f32 %v678_v37, 0.0  ;;  %v1246_v37 = vld [vmem:[#allocation10 + $0x200] sm:$0xff]  ;;  %v1251_v40 = vld [vmem:[#allocation10 + $0x228] sm:$0xff] }
 0x229   : > { %v684_v47 = vpack.c.bf16 %v682_v39, %v682_v39  ;;  %v1247_v39 = vld [vmem:[#allocation10 + $0x208] sm:$0xff]  ;;  %v9792_v43 = vcombine.high %v1246_v37, %v1250_v38 }
 0x22a   : > { %v685_v46 = vpack.c.bf16 %v683_v42, %v683_v42  ;;  %v9785_v42 = vcombine.low %v1239_v30, %v1243_v32  ;;  %v9794_v44 = vcombine.high %v1247_v39, %v1251_v40  ;;  %v9793_v50 = vcombine.low %v1247_v39, %v1251_v40 }
 0x22c   : > { %1124 = vmatprep.mubr.bf16.mxu1 %v685_v46  ;;  %1165 = vmatprep.mubr.bf16.mxu0 %v685_v46  ;;  %v1258_v46 = vld [vmem:[#allocation10 + $0x260] sm:$0xff] }
 0x22d   : > { %1125 = vmatmul.mubr.bf16.vlgmr.msra.gmra.mrb[0].mxu1 %v684_v47  ;;  %1166 = vmatmul.mubr.bf16.vlgmr.msra.gmra.mrb[4].mxu0 %v684_v47  ;;  %v1255_v47 = vld [vmem:[#allocation10 + $0x248] sm:$0xff]  ;;  %v9800_v51 = vcombine.high %v1254_v45, %v1258_v46 }
 0x22e   : > { %2761 = vmatpush1.bf16.msra.mxu1 %v9727_v22  ;;  %2843 = vmatpush1.bf16.msra.mxu0 %v9729_v25  ;;  %v9767_v22 = vcombine.low %v1222_v10, %v1226_v11  ;;  %v9778_v25 = vcombine.high %v1231_v20, %v1235_v21 }
 0x22f   : > { %2762 = vmatprep.subr.bf16.mxu1 %v9736_v48  ;;  %2844 = vmatprep.subr.bf16.mxu0 %v9738_v49  ;;  %v1259_v48 = vld [vmem:[#allocation10 + $0x268] sm:$0xff]  ;;  %v9791_v49 = vcombine.low %v1246_v37, %v1250_v38 }
 0x230   : > { %v9802_v52 = vcombine.high %v1255_v47, %v1259_v48  ;;  %v9801_v58 = vcombine.low %v1255_v47, %v1259_v48  ;;  %v1307_v38 = vld [vmem:[#allocation10 + $0x3e8] sm:$0xff] }
 0x232   : > { %2763 = vmatpush1.bf16.msra.mxu1 %v9735_v54  ;;  %2845 = vmatpush1.bf16.msra.mxu0 %v9737_v55  ;;  %v1266_v54 = vld [vmem:[#allocation10 + $0x2a0] sm:$0xff]  ;;  %v1263_v55 = vld [vmem:[#allocation10 + $0x288] sm:$0xff] }
 0x233   : > { %2764 = vmatprep.subr.bf16.mxu1 %v9744_v56  ;;  %2846 = vmatprep.subr.bf16.mxu0 %v9746_v57  ;;  %v1267_v56 = vld [vmem:[#allocation10 + $0x2a8] sm:$0xff]  ;;  %v9799_v57 = vcombine.low %v1254_v45, %v1258_v46  ;;  %v9808_v59 = vcombine.high %v1262_v53, %v1266_v54 }
 0x234   : > { %v9810_v60 = vcombine.high %v1263_v55, %v1267_v56  ;;  %v9809_v2 = vcombine.low %v1263_v55, %v1267_v56  ;;  %v1315_v46 = vld [vmem:[#allocation10 + $0x428] sm:$0xff] }
 0x236   : > { %2765 = vmatpush1.bf16.msra.mxu1 %v9743_v62  ;;  %2847 = vmatpush1.bf16.msra.mxu0 %v9745_v63  ;;  %v1274_v62 = vld [vmem:[#allocation10 + $0x2e0] sm:$0xff]  ;;  %v1271_v63 = vld [vmem:[#allocation10 + $0x2c8] sm:$0xff] }
 0x237   : > { %2766 = vmatprep.subr.bf16.mxu1 %v9752_v0  ;;  %2848 = vmatprep.subr.bf16.mxu0 %v9754_v1  ;;  %v1275_v0 = vld [vmem:[#allocation10 + $0x2e8] sm:$0xff]  ;;  %v9807_v1 = vcombine.low %v1262_v53, %v1266_v54  ;;  %v9816_v3 = vcombine.high %v1270_v61, %v1274_v62 }
 0x238   : > { %v9818_v4 = vcombine.high %v1271_v63, %v1275_v0  ;;  %v9817_v10 = vcombine.low %v1271_v63, %v1275_v0 }
 0x23a   : > { %2767 = vmatpush1.bf16.msra.mxu1 %v9751_v6  ;;  %2849 = vmatpush1.bf16.msra.mxu0 %v9753_v7  ;;  %v1282_v6 = vld [vmem:[#allocation10 + $0x320] sm:$0xff]  ;;  %v1279_v7 = vld [vmem:[#allocation10 + $0x308] sm:$0xff] }
 0x23b   : > { %2768 = vmatprep.subr.bf16.mxu1 %v9760_v8  ;;  %2850 = vmatprep.subr.bf16.mxu0 %v9762_v9  ;;  %v1283_v8 = vld [vmem:[#allocation10 + $0x328] sm:$0xff]  ;;  %v9815_v9 = vcombine.low %v1270_v61, %v1274_v62  ;;  %v9824_v11 = vcombine.high %v1278_v5, %v1282_v6 }
 0x23c   : > { %v9826_v12 = vcombine.high %v1279_v7, %v1283_v8  ;;  %v9825_v18 = vcombine.low %v1279_v7, %v1283_v8  ;;  %v1319_v7 = vld [vmem:[#allocation10 + $0x448] sm:$0xff] }
 0x23d   : > { %v1323_v8 = vld [vmem:[#allocation10 + $0x468] sm:$0xff] }
 0x23e   : > { %2769 = vmatpush1.bf16.msra.mxu1 %v9759_v14  ;;  %2851 = vmatpush1.bf16.msra.mxu0 %v9761_v15  ;;  %v1290_v14 = vld [vmem:[#allocation10 + $0x360] sm:$0xff]  ;;  %v1287_v15 = vld [vmem:[#allocation10 + $0x348] sm:$0xff] }
 0x23f   : > { %2770 = vmatprep.subr.bf16.mxu1 %v9768_v16  ;;  %2852 = vmatprep.subr.bf16.mxu0 %v9770_v17  ;;  %v1291_v16 = vld [vmem:[#allocation10 + $0x368] sm:$0xff]  ;;  %v9823_v17 = vcombine.low %v1278_v5, %v1282_v6  ;;  %v9832_v19 = vcombine.high %v1286_v13, %v1290_v14  ;;  %v9831_v21 = vcombine.low %v1286_v13, %v1290_v14  ;;  %v1322_v6 = vld [vmem:[#allocation10 + $0x460] sm:$0xff] }
 0x240   : > { %v9834_v20 = vcombine.high %v1287_v15, %v1291_v16  ;;  %v9866_v13 = vcombine.high %v1319_v7, %v1323_v8  ;;  %v1330_v14 = vld [vmem:[#allocation10 + $0x4a0] sm:$0xff] }
 0x242   : > { %2771 = vmatpush1.bf16.msra.mxu1 %v9767_v22  ;;  %2853 = vmatpush1.bf16.msra.mxu0 %v9769_v23  ;;  %v9833_v22 = vcombine.low %v1287_v15, %v1291_v16  ;;  %v1294_v23 = vld [vmem:[#allocation10 + $0x380] sm:$0xff]  ;;  %v1327_v15 = vld [vmem:[#allocation10 + $0x488] sm:$0xff] }
 0x243   : > { %2772 = vmatprep.subr.bf16.mxu1 %v9776_v24  ;;  %2854 = vmatprep.subr.bf16.mxu0 %v9778_v25  ;;  %v1298_v24 = vld [vmem:[#allocation10 + $0x3a0] sm:$0xff]  ;;  %v1295_v25 = vld [vmem:[#allocation10 + $0x388] sm:$0xff] }
 0x244   : > { %v9840_v26 = vcombine.high %v1294_v23, %v1298_v24  ;;  %v9839_v30 = vcombine.low %v1294_v23, %v1298_v24  ;;  %v9841_v32 = vcombine.low %v1295_v25, %v1299_v27  ;;  %v1331_v16 = vld [vmem:[#allocation10 + $0x4a8] sm:$0xff]  ;;  %v1338_v23 = vld [vmem:[#allocation10 + $0x4e0] sm:$0xff] }
 0x245   : > { %v1335_v24 = vld [vmem:[#allocation10 + $0x4c8] sm:$0xff] }
 0x246   : > { %2773 = vmatpush1.bf16.msra.mxu1 %v9775_v33  ;;  %2855 = vmatpush1.bf16.msra.mxu0 %v9777_v34  ;;  %v9842_v33 = vcombine.high %v1295_v25, %v1299_v27  ;;  %v1302_v34 = vld [vmem:[#allocation10 + $0x3c0] sm:$0xff]  ;;  %v1339_v25 = vld [vmem:[#allocation10 + $0x4e8] sm:$0xff]  ;;  %v9873_v27 = vcombine.low %v1327_v15, %v1331_v16 }
 0x247   : > { %2774 = vmatprep.subr.bf16.mxu1 %v9784_v35  ;;  %2856 = vmatprep.subr.bf16.mxu0 %v9786_v36  ;;  %v1306_v35 = vld [vmem:[#allocation10 + $0x3e0] sm:$0xff]  ;;  %v1303_v36 = vld [vmem:[#allocation10 + $0x3c8] sm:$0xff] }
 0x248   : > { %v9848_v37 = vcombine.high %v1302_v34, %v1306_v35  ;;  %v9847_v39 = vcombine.low %v1302_v34, %v1306_v35  ;;  %v9849_v40 = vcombine.low %v1303_v36, %v1307_v38  ;;  %v1346_v34 = vld [vmem:[#allocation10 + $0x520] sm:$0xff]  ;;  %v1343_v35 = vld [vmem:[#allocation10 + $0x508] sm:$0xff] }
 0x24a   : > { %2775 = vmatpush1.bf16.msra.mxu1 %v9783_v41  ;;  %2857 = vmatpush1.bf16.msra.mxu0 %v9785_v42  ;;  %v9850_v41 = vcombine.high %v1303_v36, %v1307_v38  ;;  %v1310_v42 = vld [vmem:[#allocation10 + $0x400] sm:$0xff]  ;;  %v1347_v36 = vld [vmem:[#allocation10 + $0x528] sm:$0xff]  ;;  %v9881_v38 = vcombine.low %v1335_v24, %v1339_v25 }
 0x24b   : > { %2776 = vmatprep.subr.bf16.mxu1 %v9792_v43  ;;  %2858 = vmatprep.subr.bf16.mxu0 %v9794_v44  ;;  %v1314_v43 = vld [vmem:[#allocation10 + $0x420] sm:$0xff]  ;;  %v1311_v44 = vld [vmem:[#allocation10 + $0x408] sm:$0xff] }
 0x24c   : > { %v9856_v45 = vcombine.high %v1310_v42, %v1314_v43  ;;  %v9855_v47 = vcombine.low %v1310_v42, %v1314_v43  ;;  %v9857_v48 = vcombine.low %v1311_v44, %v1315_v46  ;;  %v1354_v42 = vld [vmem:[#allocation10 + $0x560] sm:$0xff]  ;;  %v1351_v43 = vld [vmem:[#allocation10 + $0x548] sm:$0xff] }
 0x24e   : > { %2777 = vmatpush1.bf16.msra.mxu1 %v9791_v49  ;;  %2859 = vmatpush1.bf16.msra.mxu0 %v9793_v50  ;;  %v9858_v49 = vcombine.high %v1311_v44, %v1315_v46  ;;  %v11217_v50 = vld [vmem:[#allocation8] sm:$0xf]  ;;  %v1355_v44 = vld [vmem:[#allocation10 + $0x568] sm:$0xff]  ;;  %v9889_v46 = vcombine.low %v1343_v35, %v1347_v36 }
 0x24f   : > { %2778 = vmatprep.subr.bf16.mxu1 %v9800_v51  ;;  %2860 = vmatprep.subr.bf16.mxu0 %v9802_v52  ;;  %v11220_v51 = vsub.s32 3, %v11207_v28  ;;  %v1075_v52 = vrot.slane %v11217_v50, %v11210_v29  ;;  %v1079_v53 = vrot.slane %v11217_v50, %v11213_v31 }
 0x251   : > { %v1087_v54 = vrot.slane %v11217_v50, %v11220_v51 }
 0x252   : > { %2779 = vmatpush1.bf16.msra.mxu1 %v9799_v57  ;;  %2861 = vmatpush1.bf16.msra.mxu0 %v9801_v58 }
 0x253   : > { %2780 = vmatprep.subr.bf16.mxu1 %v9808_v59  ;;  %2862 = vmatprep.subr.bf16.mxu0 %v9810_v60 }
 0x256   : > { %2781 = vmatpush1.bf16.msra.mxu1 %v9807_v1  ;;  %2863 = vmatpush1.bf16.msra.mxu0 %v9809_v2 }
 0x257   : > { %2782 = vmatprep.subr.bf16.mxu1 %v9816_v3  ;;  %2864 = vmatprep.subr.bf16.mxu0 %v9818_v4  ;;  %v1318_v4 = vld [vmem:[#allocation10 + $0x440] sm:$0xff] }
 0x25a   : > { %2783 = vmatpush1.bf16.msra.mxu1 %v9815_v9  ;;  %2865 = vmatpush1.bf16.msra.mxu0 %v9817_v10 }
 0x25b   : > { %2784 = vmatprep.subr.bf16.mxu1 %v9824_v11  ;;  %2866 = vmatprep.subr.bf16.mxu0 %v9826_v12  ;;  %v1326_v11 = vld [vmem:[#allocation10 + $0x480] sm:$0xff]  ;;  %v9864_v12 = vcombine.high %v1318_v4, %v1322_v6 }
 0x25e   : > { %2785 = vmatpush1.bf16.msra.mxu1 %v9823_v17  ;;  %2867 = vmatpush1.bf16.msra.mxu0 %v9825_v18  ;;  %v9863_v18 = vcombine.low %v1318_v4, %v1322_v6  ;;  %v1374_v4 = vld [vmem:[#allocation10 + $0x600] sm:$0xff]  ;;  %v1375_v6 = vld [vmem:[#allocation10 + $0x608] sm:$0xff] }
 0x25f   : > { %2786 = vmatprep.subr.bf16.mxu1 %v9832_v19  ;;  %2868 = vmatprep.subr.bf16.mxu0 %v9834_v20  ;;  %v9865_v19 = vcombine.low %v1319_v7, %v1323_v8  ;;  %v9872_v20 = vcombine.high %v1326_v11, %v1330_v14  ;;  %v1379_v7 = vld [vmem:[#allocation10 + $0x628] sm:$0xff] }
 0x262   : > { %2787 = vmatpush1.bf16.msra.mxu1 %v9831_v21  ;;  %2869 = vmatpush1.bf16.msra.mxu0 %v9833_v22  ;;  %v9874_v21 = vcombine.high %v1327_v15, %v1331_v16  ;;  %v1334_v22 = vld [vmem:[#allocation10 + $0x4c0] sm:$0xff]  ;;  %v1383_v16 = vld [vmem:[#allocation10 + $0x648] sm:$0xff] }
 0x263   : > { %2788 = vmatprep.subr.bf16.mxu1 %v9840_v26  ;;  %2870 = vmatprep.subr.bf16.mxu0 %v9842_v33  ;;  %v9871_v26 = vcombine.low %v1326_v11, %v1330_v14  ;;  %v1342_v33 = vld [vmem:[#allocation10 + $0x500] sm:$0xff] }
 0x264   : > { %v1382_v14 = vld [vmem:[#allocation10 + $0x640] sm:$0xff] }
 0x265   : > { %v1386_v15 = vld [vmem:[#allocation10 + $0x660] sm:$0xff] }
 0x266   : > { %2789 = vmatpush1.bf16.msra.mxu1 %v9839_v30  ;;  %2871 = vmatpush1.bf16.msra.mxu0 %v9841_v32  ;;  %v9880_v30 = vcombine.high %v1334_v22, %v1338_v23  ;;  %v9882_v32 = vcombine.high %v1335_v24, %v1339_v25  ;;  %v1394_v24 = vld [vmem:[#allocation10 + $0x6a0] sm:$0xff]  ;;  %v1391_v25 = vld [vmem:[#allocation10 + $0x688] sm:$0xff] }
 0x267   : > { %2790 = vmatprep.subr.bf16.mxu1 %v9848_v37  ;;  %2872 = vmatprep.subr.bf16.mxu0 %v9850_v41  ;;  %v9879_v37 = vcombine.low %v1334_v22, %v1338_v23  ;;  %v1350_v41 = vld [vmem:[#allocation10 + $0x540] sm:$0xff] }
 0x268   : > { %v1390_v23 = vld [vmem:[#allocation10 + $0x680] sm:$0xff] }
 0x26a   : > { %2791 = vmatpush1.bf16.msra.mxu1 %v9847_v39  ;;  %2873 = vmatpush1.bf16.msra.mxu0 %v9849_v40  ;;  %v9888_v39 = vcombine.high %v1342_v33, %v1346_v34  ;;  %v9890_v40 = vcombine.high %v1343_v35, %v1347_v36  ;;  %v1402_v35 = vld [vmem:[#allocation10 + $0x6e0] sm:$0xff]  ;;  %v1399_v36 = vld [vmem:[#allocation10 + $0x6c8] sm:$0xff] }
 0x26b   : > { %2801 = vmatprep.subr.bf16.mxu1 %v9856_v45  ;;  %2883 = vmatprep.subr.bf16.mxu0 %v9858_v49  ;;  %v9887_v45 = vcombine.low %v1342_v33, %v1346_v34  ;;  %v1358_v49 = vld [vmem:[#allocation10 + $0x580] sm:$0xff] }
 0x26c   : > { %v1398_v34 = vld [vmem:[#allocation10 + $0x6c0] sm:$0xff] }
 0x300   : > { %v1126_v55 = vpop.f32.mrb[0].mxu1  ;;  %v11228_v56 = vpop.f32.mrb[4].mxu0 }
 0x301   : > { %v1127_v57 = vadd.f32 %v1126_v55, %v1075_v52  ;;  %v1128_v58 = vpop.f32.mrb[1].mxu1  ;;  %v1169_v59 = vpop.f32.mrb[5].mxu0  ;;  %v1362_v52 = vld [vmem:[#allocation10 + $0x5a0] sm:$0xff]  ;;  %v9895_v55 = vcombine.low %v1350_v41, %v1354_v42 }
 0x302   : > { %v1129_v60 = vadd.f32 %v1128_v58, %v1079_v53  ;;  %v1170_v61 = vadd.f32 %v1169_v59, %v1087_v54  ;;  %v1130_v62 = vpop.f32.mrb[2].mxu1  ;;  %v1171_v63 = vpop.f32.mrb[6].mxu0  ;;  %v1359_v53 = vld [vmem:[#allocation10 + $0x588] sm:$0xff]  ;;  %v9904_v58 = vcombine.high %v1358_v49, %v1362_v52 }
 0x303   : > { %v1174_v0 = vmax.f32 %v1127_v57, 0.0  ;;  %v1131_v1 = vpop.f32.mrb[3].mxu1  ;;  %v1172_v2 = vpop.f32.mrb[7].mxu0  ;;  %v1363_v54 = vld [vmem:[#allocation10 + $0x5a8] sm:$0xff]  ;;  %v9897_v57 = vcombine.low %v1351_v43, %v1355_v44 }
 0x304   : > { %v1175_v3 = vmax.f32 %v1129_v60, 0.0  ;;  %v1177_v5 = vmax.f32 %v1170_v61, 0.0  ;;  %v9906_v59 = vcombine.high %v1359_v53, %v1363_v54  ;;  %v1366_v60 = vld [vmem:[#allocation10 + $0x5c0] sm:$0xff]  ;;  %v1367_v62 = vld [vmem:[#allocation10 + $0x5c8] sm:$0xff]  ;;  %v9905_v1 = vcombine.low %v1359_v53, %v1363_v54 }
 0x305   : > { %v11232_v10 = vpack.c.bf16 %v1174_v0, %v1174_v0  ;;  %v1370_v61 = vld [vmem:[#allocation10 + $0x5e0] sm:$0xff]  ;;  %v1371_v63 = vld [vmem:[#allocation10 + $0x5e8] sm:$0xff]  ;;  %v9903_v0 = vcombine.low %v1358_v49, %v1362_v52 }
 0x306   : > { %v11230_v9 = vpack.c.bf16 %v1175_v3, %v1175_v3  ;;  %v11236_v17 = vpack.c.bf16 %v1177_v5, %v1177_v5  ;;  %v9912_v2 = vcombine.high %v1366_v60, %v1370_v61  ;;  %v9914_v3 = vcombine.high %v1367_v62, %v1371_v63  ;;  %v1378_v5 = vld [vmem:[#allocation10 + $0x620] sm:$0xff]  ;;  %v1415_v54 = vld [vmem:[#allocation10 + $0x748] sm:$0xff] }
 0x307   : > { %v9911_v8 = vcombine.low %v1366_v60, %v1370_v61  ;;  %v9913_v11 = vcombine.low %v1367_v62, %v1371_v63  ;;  %v1414_v52 = vld [vmem:[#allocation10 + $0x740] sm:$0xff] }
 0x308   : > { %2792 = vmatprep.mubr.bf16.mxu1 %v11230_v9  ;;  %2874 = vmatprep.mubr.bf16.mxu0 %v11230_v9  ;;  %v1418_v53 = vld [vmem:[#allocation10 + $0x760] sm:$0xff] }
 0x309   : > { %2793 = vmatmul.mubr.bf16.vlgmr.msra.gmra.mrb[4].mxu1 %v11232_v10  ;;  %2875 = vmatmul.mubr.bf16.vlgmr.msra.gmra.mrb[8].mxu0 %v11232_v10  ;;  %v9960_v60 = vcombine.high %v1414_v52, %v1418_v53  ;;  %v1422_v62 = vld [vmem:[#allocation10 + $0x780] sm:$0xff] }
 0x30a   : > { %2802 = vmatpush1.bf16.msra.mxu1 %v9855_v47  ;;  %2884 = vmatpush1.bf16.msra.mxu0 %v9857_v48  ;;  %v9896_v47 = vcombine.high %v1350_v41, %v1354_v42  ;;  %v9898_v48 = vcombine.high %v1351_v43, %v1355_v44  ;;  %v1406_v42 = vld [vmem:[#allocation10 + $0x700] sm:$0xff]  ;;  %v1407_v44 = vld [vmem:[#allocation10 + $0x708] sm:$0xff] }
 0x30b   : > { %2833 = vmatprep.mubr.bf16.mxu1 %v11236_v17  ;;  %2915 = vmatprep.mubr.bf16.mxu0 %v11236_v17  ;;  %v1410_v43 = vld [vmem:[#allocation10 + $0x720] sm:$0xff] }
 0x30c   : > { %2803 = vmatprep.subr.bf16.mxu1 %v9864_v12  ;;  %2885 = vmatprep.subr.bf16.mxu0 %v9866_v13  ;;  %v9920_v12 = vcombine.high %v1374_v4, %v1378_v5  ;;  %v9922_v13 = vcombine.high %v1375_v6, %v1379_v7  ;;  %v1426_v63 = vld [vmem:[#allocation10 + $0x7a0] sm:$0xff] }
 0x30e   : > { %2804 = vmatpush1.bf16.msra.mxu1 %v9863_v18  ;;  %2886 = vmatpush1.bf16.msra.mxu0 %v9865_v19  ;;  %v1387_v18 = vld [vmem:[#allocation10 + $0x668] sm:$0xff]  ;;  %v9919_v19 = vcombine.low %v1374_v4, %v1378_v5  ;;  %v9968_v5 = vcombine.high %v1422_v62, %v1426_v63 }
 0x30f   : > { %2805 = vmatprep.subr.bf16.mxu1 %v9872_v20  ;;  %2887 = vmatprep.subr.bf16.mxu0 %v9874_v21  ;;  %v9921_v20 = vcombine.low %v1375_v6, %v1379_v7  ;;  %v9928_v21 = vcombine.high %v1382_v14, %v1386_v15  ;;  %v9930_v22 = vcombine.high %v1383_v16, %v1387_v18  ;;  %v1430_v7 = vld [vmem:[#allocation10 + $0x7c0] sm:$0xff] }
 0x312   : > { %2806 = vmatpush1.bf16.msra.mxu1 %v9871_v26  ;;  %2888 = vmatpush1.bf16.msra.mxu0 %v9873_v27  ;;  %v1395_v26 = vld [vmem:[#allocation10 + $0x6a8] sm:$0xff]  ;;  %v9927_v27 = vcombine.low %v1382_v14, %v1386_v15 }
 0x313   : > { %2807 = vmatprep.subr.bf16.mxu1 %v9880_v30  ;;  %2889 = vmatprep.subr.bf16.mxu0 %v9882_v32  ;;  %v9929_v30 = vcombine.low %v1383_v16, %v1387_v18  ;;  %v9936_v32 = vcombine.high %v1390_v23, %v1394_v24  ;;  %v9938_v33 = vcombine.high %v1391_v25, %v1395_v26 }
 0x316   : > { %2808 = vmatpush1.bf16.msra.mxu1 %v9879_v37  ;;  %2890 = vmatpush1.bf16.msra.mxu0 %v9881_v38  ;;  %v1403_v37 = vld [vmem:[#allocation10 + $0x6e8] sm:$0xff]  ;;  %v9935_v38 = vcombine.low %v1390_v23, %v1394_v24 }
 0x317   : > { %2809 = vmatprep.subr.bf16.mxu1 %v9888_v39  ;;  %2891 = vmatprep.subr.bf16.mxu0 %v9890_v40  ;;  %v9937_v39 = vcombine.low %v1391_v25, %v1395_v26  ;;  %v9944_v40 = vcombine.high %v1398_v34, %v1402_v35  ;;  %v9946_v41 = vcombine.high %v1399_v36, %v1403_v37 }
 0x31a   : > { %2810 = vmatpush1.bf16.msra.mxu1 %v9887_v45  ;;  %2892 = vmatpush1.bf16.msra.mxu0 %v9889_v46  ;;  %v1411_v45 = vld [vmem:[#allocation10 + $0x728] sm:$0xff]  ;;  %v9943_v46 = vcombine.low %v1398_v34, %v1402_v35 }
 0x31b   : > { %2811 = vmatprep.subr.bf16.mxu1 %v9896_v47  ;;  %2893 = vmatprep.subr.bf16.mxu0 %v9898_v48  ;;  %v9945_v47 = vcombine.low %v1399_v36, %v1403_v37  ;;  %v9952_v48 = vcombine.high %v1406_v42, %v1410_v43  ;;  %v9954_v49 = vcombine.high %v1407_v44, %v1411_v45 }
 0x31e   : > { %2812 = vmatpush1.bf16.msra.mxu1 %v9895_v55  ;;  %2894 = vmatpush1.bf16.msra.mxu0 %v9897_v57  ;;  %v1419_v55 = vld [vmem:[#allocation10 + $0x768] sm:$0xff]  ;;  %v9951_v57 = vcombine.low %v1406_v42, %v1410_v43 }
 0x31f   : > { %2813 = vmatprep.subr.bf16.mxu1 %v9904_v58  ;;  %2895 = vmatprep.subr.bf16.mxu0 %v9906_v59  ;;  %v9953_v58 = vcombine.low %v1407_v44, %v1411_v45  ;;  %v11243_v59 = vsub.s32 2, %v11207_v28  ;;  %v9962_v61 = vcombine.high %v1415_v54, %v1419_v55 }
 0x321   : > { %v1083_v4 = vrot.slane %v11217_v50, %v11243_v59  ;;  %v1188_v50 = vld [vmem:[#allocation10 + $0x30] sm:$0xff] }
 0x322   : > { %2814 = vmatpush1.bf16.msra.mxu1 %v9903_v0  ;;  %2896 = vmatpush1.bf16.msra.mxu0 %v9905_v1  ;;  %v1423_v0 = vld [vmem:[#allocation10 + $0x788] sm:$0xff] }
 0x323   : > { %2815 = vmatprep.subr.bf16.mxu1 %v9912_v2  ;;  %2897 = vmatprep.subr.bf16.mxu0 %v9914_v3  ;;  %v1427_v1 = vld [vmem:[#allocation10 + $0x7a8] sm:$0xff]  ;;  %v9959_v2 = vcombine.low %v1414_v52, %v1418_v53  ;;  %v9961_v3 = vcombine.low %v1415_v54, %v1419_v55  ;;  %v1168_v15 = vadd.f32 %v11228_v56, %v1083_v4  ;;  %v1193_v56 = vld [vmem:[#allocation10 + $0x58] sm:$0xff] }
 0x324   : > { %v9970_v6 = vcombine.high %v1423_v0, %v1427_v1  ;;  %v9969_v14 = vcombine.low %v1423_v0, %v1427_v1  ;;  %v1224_v1 = vld [vmem:[#allocation10 + $0x150] sm:$0xff]  ;;  %v1229_v4 = vld [vmem:[#allocation10 + $0x178] sm:$0xff] }
 0x325   : > { %v1176_v24 = vmax.f32 %v1168_v15, 0.0 }
 0x326   : > { %2816 = vmatpush1.bf16.msra.mxu1 %v9911_v8  ;;  %2898 = vmatpush1.bf16.msra.mxu0 %v9913_v11  ;;  %v1434_v8 = vld [vmem:[#allocation10 + $0x7e0] sm:$0xff]  ;;  %v1431_v11 = vld [vmem:[#allocation10 + $0x7c8] sm:$0xff] }
 0x327   : > { %2817 = vmatprep.subr.bf16.mxu1 %v9920_v12  ;;  %2899 = vmatprep.subr.bf16.mxu0 %v9922_v13  ;;  %v1435_v12 = vld [vmem:[#allocation10 + $0x7e8] sm:$0xff]  ;;  %v9967_v13 = vcombine.low %v1422_v62, %v1426_v63  ;;  %v9976_v16 = vcombine.high %v1430_v7, %v1434_v8  ;;  %v11248_v34 = vpack.c.bf16 %v1176_v24, %v1176_v24 }
 0x328   : > { %v9978_v18 = vcombine.high %v1431_v11, %v1435_v12  ;;  %v9977_v23 = vcombine.low %v1431_v11, %v1435_v12  ;;  %v1232_v11 = vld [vmem:[#allocation10 + $0x190] sm:$0xff] }
 0x329   : > { %v1236_v12 = vld [vmem:[#allocation10 + $0x1b0] sm:$0xff] }
 0x32a   : > { %2818 = vmatpush1.bf16.msra.mxu1 %v9919_v19  ;;  %2900 = vmatpush1.bf16.msra.mxu0 %v9921_v20  ;;  %v1184_v19 = vld [vmem:[#allocation10 + $0x10] sm:$0xff]  ;;  %v1185_v20 = vld [vmem:[#allocation10 + $0x18] sm:$0xff] }
 0x32b   : > { %2819 = vmatprep.subr.bf16.mxu1 %v9928_v21  ;;  %2901 = vmatprep.subr.bf16.mxu0 %v9930_v22  ;;  %v1189_v21 = vld [vmem:[#allocation10 + $0x38] sm:$0xff]  ;;  %v9975_v22 = vcombine.low %v1430_v7, %v1434_v8  ;;  %v9732_v25 = vcombine.high %v1184_v19, %v1188_v50 }
 0x32c   : > { %v9734_v26 = vcombine.high %v1185_v20, %v1189_v21  ;;  %v9733_v35 = vcombine.low %v1185_v20, %v1189_v21  ;;  %v1244_v20 = vld [vmem:[#allocation10 + $0x1f0] sm:$0xff]  ;;  %v1241_v21 = vld [vmem:[#allocation10 + $0x1d8] sm:$0xff] }
 0x32e   : > { %2820 = vmatpush1.bf16.msra.mxu1 %v9927_v27  ;;  %2902 = vmatpush1.bf16.msra.mxu0 %v9929_v30  ;;  %v1192_v27 = vld [vmem:[#allocation10 + $0x50] sm:$0xff] }
 0x32f   : > { %2821 = vmatprep.subr.bf16.mxu1 %v9936_v32  ;;  %2903 = vmatprep.subr.bf16.mxu0 %v9938_v33  ;;  %v1196_v30 = vld [vmem:[#allocation10 + $0x70] sm:$0xff]  ;;  %v1197_v32 = vld [vmem:[#allocation10 + $0x78] sm:$0xff]  ;;  %v9731_v33 = vcombine.low %v1184_v19, %v1188_v50 }
 0x330   : > { %v9740_v36 = vcombine.high %v1192_v27, %v1196_v30  ;;  %v9742_v37 = vcombine.high %v1193_v56, %v1197_v32  ;;  %v9739_v42 = vcombine.low %v1192_v27, %v1196_v30  ;;  %v9741_v43 = vcombine.low %v1193_v56, %v1197_v32  ;;  %v1240_v50 = vld [vmem:[#allocation10 + $0x1d0] sm:$0xff]  ;;  %v1249_v56 = vld [vmem:[#allocation10 + $0x218] sm:$0xff] }
 0x331   : > { %v1248_v27 = vld [vmem:[#allocation10 + $0x210] sm:$0xff]  ;;  %v1253_v32 = vld [vmem:[#allocation10 + $0x238] sm:$0xff] }
 0x332   : > { %2822 = vmatpush1.bf16.msra.mxu1 %v9935_v38  ;;  %2904 = vmatpush1.bf16.msra.mxu0 %v9937_v39  ;;  %v1200_v38 = vld [vmem:[#allocation10 + $0x90] sm:$0xff] }
 0x333   : > { %2823 = vmatprep.subr.bf16.mxu1 %v9944_v40  ;;  %2905 = vmatprep.subr.bf16.mxu0 %v9946_v41  ;;  %v1204_v39 = vld [vmem:[#allocation10 + $0xb0] sm:$0xff]  ;;  %v1201_v40 = vld [vmem:[#allocation10 + $0x98] sm:$0xff] }
 0x334   : > { %v1205_v41 = vld [vmem:[#allocation10 + $0xb8] sm:$0xff]  ;;  %v9748_v44 = vcombine.high %v1200_v38, %v1204_v39  ;;  %v9747_v52 = vcombine.low %v1200_v38, %v1204_v39  ;;  %v1252_v30 = vld [vmem:[#allocation10 + $0x230] sm:$0xff] }
 0x335   : > { %v9750_v45 = vcombine.high %v1201_v40, %v1205_v41  ;;  %v9749_v53 = vcombine.low %v1201_v40, %v1205_v41  ;;  %v1256_v38 = vld [vmem:[#allocation10 + $0x250] sm:$0xff]  ;;  %v1257_v40 = vld [vmem:[#allocation10 + $0x258] sm:$0xff] }
 0x336   : > { %2824 = vmatpush1.bf16.msra.mxu1 %v9943_v46  ;;  %2906 = vmatpush1.bf16.msra.mxu0 %v9945_v47  ;;  %v1208_v46 = vld [vmem:[#allocation10 + $0xd0] sm:$0xff]  ;;  %v1261_v41 = vld [vmem:[#allocation10 + $0x278] sm:$0xff] }
 0x337   : > { %2825 = vmatprep.subr.bf16.mxu1 %v9952_v48  ;;  %2907 = vmatprep.subr.bf16.mxu0 %v9954_v49  ;;  %v1212_v47 = vld [vmem:[#allocation10 + $0xf0] sm:$0xff]  ;;  %v1209_v48 = vld [vmem:[#allocation10 + $0xd8] sm:$0xff] }
 0x338   : > { %v1213_v49 = vld [vmem:[#allocation10 + $0xf8] sm:$0xff]  ;;  %v9756_v54 = vcombine.high %v1208_v46, %v1212_v47  ;;  %v1260_v39 = vld [vmem:[#allocation10 + $0x270] sm:$0xff] }
 0x339   : > { %v9758_v55 = vcombine.high %v1209_v48, %v1213_v49  ;;  %v9757_v62 = vcombine.low %v1209_v48, %v1213_v49  ;;  %v1265_v48 = vld [vmem:[#allocation10 + $0x298] sm:$0xff] }
 0x33a   : > { %2826 = vmatpush1.bf16.msra.mxu1 %v9951_v57  ;;  %2908 = vmatpush1.bf16.msra.mxu0 %v9953_v58  ;;  %v1216_v57 = vld [vmem:[#allocation10 + $0x110] sm:$0xff]  ;;  %v1269_v49 = vld [vmem:[#allocation10 + $0x2b8] sm:$0xff] }
 0x33b   : > { %2827 = vmatprep.subr.bf16.mxu1 %v9960_v60  ;;  %2909 = vmatprep.subr.bf16.mxu0 %v9962_v61  ;;  %v1220_v58 = vld [vmem:[#allocation10 + $0x130] sm:$0xff]  ;;  %v1221_v60 = vld [vmem:[#allocation10 + $0x138] sm:$0xff]  ;;  %v9755_v61 = vcombine.low %v1208_v46, %v1212_v47 }
 0x33c   : > { %v9764_v63 = vcombine.high %v1216_v57, %v1220_v58  ;;  %v1264_v46 = vld [vmem:[#allocation10 + $0x290] sm:$0xff] }
 0x33d   : > { %v1268_v47 = vld [vmem:[#allocation10 + $0x2b0] sm:$0xff] }
 0x33e   : > { %2828 = vmatpush1.bf16.msra.mxu1 %v9959_v2  ;;  %2910 = vmatpush1.bf16.msra.mxu0 %v9961_v3  ;;  %v1228_v2 = vld [vmem:[#allocation10 + $0x170] sm:$0xff]  ;;  %v1225_v3 = vld [vmem:[#allocation10 + $0x158] sm:$0xff] }
 0x33f   : > { %2829 = vmatprep.subr.bf16.mxu1 %v9968_v5  ;;  %2911 = vmatprep.subr.bf16.mxu0 %v9970_v6  ;;  %v9763_v5 = vcombine.low %v1216_v57, %v1220_v58  ;;  %v9772_v7 = vcombine.high %v1224_v1, %v1228_v2  ;;  %v9774_v8 = vcombine.high %v1225_v3, %v1229_v4  ;;  %v1272_v57 = vld [vmem:[#allocation10 + $0x2d0] sm:$0xff] }
 0x340   : > { %v9771_v15 = vcombine.low %v1224_v1, %v1228_v2  ;;  %v1276_v58 = vld [vmem:[#allocation10 + $0x2f0] sm:$0xff] }
 0x341   : > { %v1280_v1 = vld [vmem:[#allocation10 + $0x310] sm:$0xff] }
 0x342   : > { %2830 = vmatpush1.bf16.msra.mxu1 %v9967_v13  ;;  %2912 = vmatpush1.bf16.msra.mxu0 %v9969_v14  ;;  %v1233_v13 = vld [vmem:[#allocation10 + $0x198] sm:$0xff]  ;;  %v1284_v2 = vld [vmem:[#allocation10 + $0x330] sm:$0xff] }
 0x343   : > { %2831 = vmatprep.subr.bf16.mxu1 %v9976_v16  ;;  %2913 = vmatprep.subr.bf16.mxu0 %v9978_v18  ;;  %v1237_v14 = vld [vmem:[#allocation10 + $0x1b8] sm:$0xff]  ;;  %v9773_v16 = vcombine.low %v1225_v3, %v1229_v4  ;;  %v9780_v18 = vcombine.high %v1232_v11, %v1236_v12 }
 0x344   : > { %v9782_v19 = vcombine.high %v1233_v13, %v1237_v14  ;;  %v9781_v24 = vcombine.low %v1233_v13, %v1237_v14  ;;  %v1281_v3 = vld [vmem:[#allocation10 + $0x318] sm:$0xff] }
 0x345   : > { %v1285_v4 = vld [vmem:[#allocation10 + $0x338] sm:$0xff] }
 0x346   : > { %2832 = vmatpush1.bf16.msra.mxu1 %v9975_v22  ;;  %2914 = vmatpush1.bf16.msra.mxu0 %v9977_v23  ;;  %v1245_v22 = vld [vmem:[#allocation10 + $0x1f8] sm:$0xff]  ;;  %v9779_v23 = vcombine.low %v1232_v11, %v1236_v12  ;;  %v1288_v11 = vld [vmem:[#allocation10 + $0x350] sm:$0xff] }
 0x347   : > { %2924 = vmatprep.subr.bf16.mxu1 %v9732_v25  ;;  %3006 = vmatprep.subr.bf16.mxu0 %v9734_v26  ;;  %v9788_v25 = vcombine.high %v1240_v50, %v1244_v20  ;;  %v9790_v26 = vcombine.high %v1241_v21, %v1245_v22  ;;  %v1292_v12 = vld [vmem:[#allocation10 + $0x370] sm:$0xff]  ;;  %v1289_v13 = vld [vmem:[#allocation10 + $0x358] sm:$0xff] }
 0x348   : > { %v1293_v14 = vld [vmem:[#allocation10 + $0x378] sm:$0xff] }
 0x349   : > { %2834 = vmatmul.mubr.bf16.vlgmr.msra.gmra.mrb[4].mxu1 %v11248_v34  ;;  %2916 = vmatmul.mubr.bf16.vlgmr.msra.gmra.mrb[8].mxu0 %v11248_v34 }
 0x34a   : > { %2925 = vmatpush1.bf16.msra.mxu1 %v9731_v33  ;;  %2956 = vmatprep.mubr.bf16.mxu1 %v11230_v9  ;;  %v9787_v33 = vcombine.low %v1240_v50, %v1244_v20  ;;  %v1296_v50 = vld [vmem:[#allocation10 + $0x390] sm:$0xff] }
 0x34b   : > { %3007 = vmatpush1.bf16.msra.mxu0 %v9733_v35  ;;  %3038 = vmatprep.mubr.bf16.mxu0 %v11230_v9  ;;  %v1217_v9 = vld [vmem:[#allocation10 + $0x118] sm:$0xff]  ;;  %v9789_v35 = vcombine.low %v1241_v21, %v1245_v22  ;;  %v1300_v20 = vld [vmem:[#allocation10 + $0x3b0] sm:$0xff] }
 0x34c   : > { %2926 = vmatprep.subr.bf16.mxu1 %v9740_v36  ;;  %3008 = vmatprep.subr.bf16.mxu0 %v9742_v37  ;;  %v9766_v0 = vcombine.high %v1217_v9, %v1221_v60  ;;  %v9765_v6 = vcombine.low %v1217_v9, %v1221_v60  ;;  %v9796_v36 = vcombine.high %v1248_v27, %v1252_v30  ;;  %v1273_v9 = vld [vmem:[#allocation10 + $0x2d8] sm:$0xff] }
 0x34d   : > { %v9798_v37 = vcombine.high %v1249_v56, %v1253_v32  ;;  %v1277_v60 = vld [vmem:[#allocation10 + $0x2f8] sm:$0xff] }
 0x34e   : > { %2927 = vmatpush1.bf16.msra.mxu1 %v9739_v42  ;;  %v9795_v42 = vcombine.low %v1248_v27, %v1252_v30  ;;  %v1297_v21 = vld [vmem:[#allocation10 + $0x398] sm:$0xff]  ;;  %v1304_v27 = vld [vmem:[#allocation10 + $0x3d0] sm:$0xff] }
 0x34f   : > { %3009 = vmatpush1.bf16.msra.mxu0 %v9741_v43  ;;  %2928 = vmatprep.subr.bf16.mxu1 %v9748_v44  ;;  %v9797_v43 = vcombine.low %v1249_v56, %v1253_v32  ;;  %v9804_v44 = vcombine.high %v1256_v38, %v1260_v39  ;;  %v1301_v22 = vld [vmem:[#allocation10 + $0x3b8] sm:$0xff]  ;;  %v1308_v30 = vld [vmem:[#allocation10 + $0x3f0] sm:$0xff] }
 0x350   : > { %3010 = vmatprep.subr.bf16.mxu0 %v9750_v45  ;;  %v9806_v45 = vcombine.high %v1257_v40, %v1261_v41  ;;  %v1305_v56 = vld [vmem:[#allocation10 + $0x3d8] sm:$0xff] }
 0x351   : > { %v1309_v32 = vld [vmem:[#allocation10 + $0x3f8] sm:$0xff] }
 0x352   : > { %2929 = vmatpush1.bf16.msra.mxu1 %v9747_v52  ;;  %v9803_v52 = vcombine.low %v1256_v38, %v1260_v39  ;;  %v1312_v38 = vld [vmem:[#allocation10 + $0x410] sm:$0xff] }
 0x353   : > { %3011 = vmatpush1.bf16.msra.mxu0 %v9749_v53  ;;  %2930 = vmatprep.subr.bf16.mxu1 %v9756_v54  ;;  %v9805_v53 = vcombine.low %v1257_v40, %v1261_v41  ;;  %v9812_v54 = vcombine.high %v1264_v46, %v1268_v47  ;;  %v1316_v39 = vld [vmem:[#allocation10 + $0x430] sm:$0xff]  ;;  %v1313_v40 = vld [vmem:[#allocation10 + $0x418] sm:$0xff] }
 0x354   : > { %3012 = vmatprep.subr.bf16.mxu0 %v9758_v55  ;;  %v9814_v55 = vcombine.high %v1265_v48, %v1269_v49  ;;  %v1317_v41 = vld [vmem:[#allocation10 + $0x438] sm:$0xff] }
 0x356   : > { %2931 = vmatpush1.bf16.msra.mxu1 %v9755_v61  ;;  %v9811_v61 = vcombine.low %v1264_v46, %v1268_v47  ;;  %v1320_v46 = vld [vmem:[#allocation10 + $0x450] sm:$0xff] }
 0x357   : > { %3013 = vmatpush1.bf16.msra.mxu0 %v9757_v62  ;;  %2932 = vmatprep.subr.bf16.mxu1 %v9764_v63  ;;  %v9813_v62 = vcombine.low %v1265_v48, %v1269_v49  ;;  %v9820_v63 = vcombine.high %v1272_v57, %v1276_v58  ;;  %v1324_v47 = vld [vmem:[#allocation10 + $0x470] sm:$0xff]  ;;  %v9859_v48 = vcombine.low %v1312_v38, %v1316_v39  ;;  %v1321_v49 = vld [vmem:[#allocation10 + $0x458] sm:$0xff] }
 0x358   : > { %3014 = vmatprep.subr.bf16.mxu0 %v9766_v0  ;;  %v9822_v0 = vcombine.high %v1273_v9, %v1277_v60 }
 0x35a   : > { %2933 = vmatpush1.bf16.msra.mxu1 %v9763_v5  ;;  %v9819_v5 = vcombine.low %v1272_v57, %v1276_v58  ;;  %v1332_v57 = vld [vmem:[#allocation10 + $0x4b0] sm:$0xff] }
 0x35b   : > { %3015 = vmatpush1.bf16.msra.mxu0 %v9765_v6  ;;  %2934 = vmatprep.subr.bf16.mxu1 %v9772_v7  ;;  %v9821_v6 = vcombine.low %v1273_v9, %v1277_v60  ;;  %v9828_v7 = vcombine.high %v1280_v1, %v1284_v2  ;;  %v1329_v9 = vld [vmem:[#allocation10 + $0x498] sm:$0xff] }
 0x35c   : > { %3016 = vmatprep.subr.bf16.mxu0 %v9774_v8  ;;  %v9830_v8 = vcombine.high %v1281_v3, %v1285_v4  ;;  %v1333_v60 = vld [vmem:[#allocation10 + $0x4b8] sm:$0xff] }
 0x35e   : > { %2935 = vmatpush1.bf16.msra.mxu1 %v9771_v15  ;;  %v9827_v15 = vcombine.low %v1280_v1, %v1284_v2  ;;  %v1336_v1 = vld [vmem:[#allocation10 + $0x4d0] sm:$0xff] }
 0x35f   : > { %3017 = vmatpush1.bf16.msra.mxu0 %v9773_v16  ;;  %2936 = vmatprep.subr.bf16.mxu1 %v9780_v18  ;;  %v9829_v16 = vcombine.low %v1281_v3, %v1285_v4  ;;  %v9836_v18 = vcombine.high %v1288_v11, %v1292_v12  ;;  %v1340_v2 = vld [vmem:[#allocation10 + $0x4f0] sm:$0xff]  ;;  %v1337_v3 = vld [vmem:[#allocation10 + $0x4d8] sm:$0xff] }
 0x360   : > { %3018 = vmatprep.subr.bf16.mxu0 %v9782_v19  ;;  %v9838_v19 = vcombine.high %v1289_v13, %v1293_v14  ;;  %v1341_v4 = vld [vmem:[#allocation10 + $0x4f8] sm:$0xff] }
 0x362   : > { %2937 = vmatpush1.bf16.msra.mxu1 %v9779_v23  ;;  %v9835_v23 = vcombine.low %v1288_v11, %v1292_v12  ;;  %v1348_v11 = vld [vmem:[#allocation10 + $0x530] sm:$0xff]  ;;  %v1345_v12 = vld [vmem:[#allocation10 + $0x518] sm:$0xff] }
 0x363   : > { %3019 = vmatpush1.bf16.msra.mxu0 %v9781_v24  ;;  %2938 = vmatprep.subr.bf16.mxu1 %v9788_v25  ;;  %v9837_v24 = vcombine.low %v1289_v13, %v1293_v14  ;;  %v9844_v25 = vcombine.high %v1296_v50, %v1300_v20  ;;  %v1349_v13 = vld [vmem:[#allocation10 + $0x538] sm:$0xff]  ;;  %v9885_v14 = vcombine.low %v1337_v3, %v1341_v4 }
 0x364   : > { %3020 = vmatprep.subr.bf16.mxu0 %v9790_v26  ;;  %v9846_v26 = vcombine.high %v1297_v21, %v1301_v22 }
 0x366   : > { %2939 = vmatpush1.bf16.msra.mxu1 %v9787_v33  ;;  %v9843_v33 = vcombine.low %v1296_v50, %v1300_v20  ;;  %v1353_v50 = vld [vmem:[#allocation10 + $0x558] sm:$0xff] }
 0x367   : > { %3021 = vmatpush1.bf16.msra.mxu0 %v9789_v35  ;;  %2940 = vmatprep.subr.bf16.mxu1 %v9796_v36  ;;  %v9845_v35 = vcombine.low %v1297_v21, %v1301_v22  ;;  %v9852_v36 = vcombine.high %v1304_v27, %v1308_v30  ;;  %v1357_v20 = vld [vmem:[#allocation10 + $0x578] sm:$0xff]  ;;  %v9893_v22 = vcombine.low %v1345_v12, %v1349_v13 }
 0x368   : > { %3022 = vmatprep.subr.bf16.mxu0 %v9798_v37  ;;  %v9854_v37 = vcombine.high %v1305_v56, %v1309_v32 }
 0x36a   : > { %2941 = vmatpush1.bf16.msra.mxu1 %v9795_v42  ;;  %v9851_v42 = vcombine.low %v1304_v27, %v1308_v30  ;;  %v1361_v27 = vld [vmem:[#allocation10 + $0x598] sm:$0xff] }
 0x36b   : > { %3023 = vmatpush1.bf16.msra.mxu0 %v9797_v43  ;;  %2942 = vmatprep.subr.bf16.mxu1 %v9804_v44  ;;  %v9853_v43 = vcombine.low %v1305_v56, %v1309_v32  ;;  %v9860_v44 = vcombine.high %v1312_v38, %v1316_v39  ;;  %v1365_v30 = vld [vmem:[#allocation10 + $0x5b8] sm:$0xff]  ;;  %v9901_v32 = vcombine.low %v1353_v50, %v1357_v20 }
 0x36c   : > { %3024 = vmatprep.subr.bf16.mxu0 %v9806_v45  ;;  %v9862_v45 = vcombine.high %v1313_v40, %v1317_v41  ;;  %v1369_v38 = vld [vmem:[#allocation10 + $0x5d8] sm:$0xff] }
 0x36d   : > { %v1373_v39 = vld [vmem:[#allocation10 + $0x5f8] sm:$0xff] }
 0x36e   : > { %2943 = vmatpush1.bf16.msra.mxu1 %v9803_v52  ;;  %v1325_v52 = vld [vmem:[#allocation10 + $0x478] sm:$0xff] }
 0x36f   : > { %3025 = vmatpush1.bf16.msra.mxu0 %v9805_v53  ;;  %2944 = vmatprep.subr.bf16.mxu1 %v9812_v54  ;;  %v9861_v53 = vcombine.low %v1313_v40, %v1317_v41  ;;  %v9868_v54 = vcombine.high %v1320_v46, %v1324_v47  ;;  %v9870_v58 = vcombine.high %v1321_v49, %v1325_v52 }
 0x370   : > { %3026 = vmatprep.subr.bf16.mxu0 %v9814_v55  ;;  %v1328_v55 = vld [vmem:[#allocation10 + $0x490] sm:$0xff]  ;;  %v9909_v41 = vcombine.low %v1361_v27, %v1365_v30 }
 0x372   : > { %2945 = vmatpush1.bf16.msra.mxu1 %v9811_v61  ;;  %v9867_v61 = vcombine.low %v1320_v46, %v1324_v47  ;;  %v1377_v46 = vld [vmem:[#allocation10 + $0x618] sm:$0xff] }
 0x373   : > { %3027 = vmatpush1.bf16.msra.mxu0 %v9813_v62  ;;  %2946 = vmatprep.subr.bf16.mxu1 %v9820_v63  ;;  %v9869_v62 = vcombine.low %v1321_v49, %v1325_v52  ;;  %v9876_v63 = vcombine.high %v1328_v55, %v1332_v57  ;;  %v1381_v47 = vld [vmem:[#allocation10 + $0x638] sm:$0xff]  ;;  %v9917_v49 = vcombine.low %v1369_v38, %v1373_v39 }
 0x374   : > { %3028 = vmatprep.subr.bf16.mxu0 %v9822_v0  ;;  %v9878_v0 = vcombine.high %v1329_v9, %v1333_v60 }
 0x376   : > { %2947 = vmatpush1.bf16.msra.mxu1 %v9819_v5  ;;  %v9875_v5 = vcombine.low %v1328_v55, %v1332_v57  ;;  %v1388_v55 = vld [vmem:[#allocation10 + $0x670] sm:$0xff]  ;;  %v1385_v57 = vld [vmem:[#allocation10 + $0x658] sm:$0xff] }
 0x377   : > { %3029 = vmatpush1.bf16.msra.mxu0 %v9821_v6  ;;  %2948 = vmatprep.subr.bf16.mxu1 %v9828_v7  ;;  %v9884_v6 = vcombine.high %v1336_v1, %v1340_v2  ;;  %v9886_v7 = vcombine.high %v1337_v3, %v1341_v4 }
 0x378   : > { %3030 = vmatprep.subr.bf16.mxu0 %v9830_v8  ;;  %v1344_v8 = vld [vmem:[#allocation10 + $0x510] sm:$0xff] }
 0x379   : > { %v9891_v21 = vcombine.low %v1344_v8, %v1348_v11 }
 0x37a   : > { %2949 = vmatpush1.bf16.msra.mxu1 %v9827_v15  ;;  %v9892_v15 = vcombine.high %v1344_v8, %v1348_v11  ;;  %v1401_v8 = vld [vmem:[#allocation10 + $0x6d8] sm:$0xff] }
 0x37b   : > { %3031 = vmatpush1.bf16.msra.mxu0 %v9829_v16  ;;  %2950 = vmatprep.subr.bf16.mxu1 %v9836_v18  ;;  %v9894_v16 = vcombine.high %v1345_v12, %v1349_v13  ;;  %v1352_v18 = vld [vmem:[#allocation10 + $0x550] sm:$0xff]  ;;  %v1405_v11 = vld [vmem:[#allocation10 + $0x6f8] sm:$0xff] }
 0x37c   : > { %3032 = vmatprep.subr.bf16.mxu0 %v9838_v19  ;;  %v1356_v19 = vld [vmem:[#allocation10 + $0x570] sm:$0xff] }
 0x37d   : > { %v9899_v56 = vcombine.low %v1352_v18, %v1356_v19 }
 0x37e   : > { %2951 = vmatpush1.bf16.msra.mxu1 %v9835_v23  ;;  %v9900_v23 = vcombine.high %v1352_v18, %v1356_v19  ;;  %v1409_v18 = vld [vmem:[#allocation10 + $0x718] sm:$0xff] }
 0x37f   : > { %3033 = vmatpush1.bf16.msra.mxu0 %v9837_v24  ;;  %2952 = vmatprep.subr.bf16.mxu1 %v9844_v25  ;;  %v9902_v24 = vcombine.high %v1353_v50, %v1357_v20  ;;  %v1360_v25 = vld [vmem:[#allocation10 + $0x590] sm:$0xff]  ;;  %v1413_v19 = vld [vmem:[#allocation10 + $0x738] sm:$0xff]  ;;  %v9949_v20 = vcombine.low %v1401_v8, %v1405_v11 }
 0x380   : > { %3034 = vmatprep.subr.bf16.mxu0 %v9846_v26  ;;  %v1364_v26 = vld [vmem:[#allocation10 + $0x5b0] sm:$0xff] }
 0x381   : > { %v9907_v40 = vcombine.low %v1360_v25, %v1364_v26 }
 0x382   : > { %2953 = vmatpush1.bf16.msra.mxu1 %v9843_v33  ;;  %v9908_v33 = vcombine.high %v1360_v25, %v1364_v26  ;;  %v1417_v25 = vld [vmem:[#allocation10 + $0x758] sm:$0xff] }
 0x383   : > { %3035 = vmatpush1.bf16.msra.mxu0 %v9845_v35  ;;  %2954 = vmatprep.subr.bf16.mxu1 %v9852_v36  ;;  %v9910_v35 = vcombine.high %v1361_v27, %v1365_v30  ;;  %v1368_v36 = vld [vmem:[#allocation10 + $0x5d0] sm:$0xff]  ;;  %v1421_v26 = vld [vmem:[#allocation10 + $0x778] sm:$0xff]  ;;  %v9957_v30 = vcombine.low %v1409_v18, %v1413_v19 }
 0x384   : > { %3036 = vmatprep.subr.bf16.mxu0 %v9854_v37  ;;  %v1372_v37 = vld [vmem:[#allocation10 + $0x5f0] sm:$0xff] }
 0x386   : > { %2955 = vmatpush1.bf16.msra.mxu1 %v9851_v42  ;;  %v9916_v42 = vcombine.high %v1368_v36, %v1372_v37 }
 0x387   : > { %3037 = vmatpush1.bf16.msra.mxu0 %v9853_v43  ;;  %2965 = vmatprep.subr.bf16.mxu1 %v9860_v44  ;;  %v9918_v43 = vcombine.high %v1369_v38, %v1373_v39  ;;  %v1376_v44 = vld [vmem:[#allocation10 + $0x610] sm:$0xff]  ;;  %v9965_v39 = vcombine.low %v1417_v25, %v1421_v26 }
 0x388   : > { %3047 = vmatprep.subr.bf16.mxu0 %v9862_v45  ;;  %v1380_v45 = vld [vmem:[#allocation10 + $0x630] sm:$0xff] }
 0x389   : > { %2957 = vmatmul.mubr.bf16.vlgmr.msra.gmra.mrb[8].mxu1 %v11232_v10  ;;  %v9924_v52 = vcombine.high %v1376_v44, %v1380_v45 }
 0x38a   : > { %3039 = vmatmul.mubr.bf16.vlgmr.msra.gmra.mrb[12].mxu0 %v11232_v10  ;;  %2966 = vmatpush1.bf16.msra.mxu1 %v9859_v48  ;;  %v9877_v10 = vcombine.low %v1329_v9, %v1333_v60  ;;  %v9915_v48 = vcombine.low %v1368_v36, %v1372_v37  ;;  %v9923_v9 = vcombine.low %v1376_v44, %v1380_v45  ;;  %v1425_v36 = vld [vmem:[#allocation10 + $0x798] sm:$0xff] }
 0x38b   : > { %2997 = vmatprep.mubr.bf16.mxu1 %v11236_v17  ;;  %3048 = vmatpush1.bf16.msra.mxu0 %v9861_v53  ;;  %v9926_v53 = vcombine.high %v1377_v46, %v1381_v47  ;;  %v9925_v60 = vcombine.low %v1377_v46, %v1381_v47  ;;  %v1429_v37 = vld [vmem:[#allocation10 + $0x7b8] sm:$0xff] }
 0x38c   : > { %3079 = vmatprep.mubr.bf16.mxu0 %v11236_v17  ;;  %2967 = vmatprep.subr.bf16.mxu1 %v9868_v54  ;;  %v9883_v17 = vcombine.low %v1336_v1, %v1340_v2  ;;  %v1384_v54 = vld [vmem:[#allocation10 + $0x650] sm:$0xff]  ;;  %v1393_v1 = vld [vmem:[#allocation10 + $0x698] sm:$0xff]  ;;  %v9973_v47 = vcombine.low %v1425_v36, %v1429_v37 }
 0x38d   : > { %3049 = vmatprep.subr.bf16.mxu0 %v9870_v58  ;;  %v1389_v58 = vld [vmem:[#allocation10 + $0x678] sm:$0xff]  ;;  %v9931_v3 = vcombine.low %v1384_v54, %v1388_v55 }
 0x38e   : > { %2968 = vmatpush1.bf16.msra.mxu1 %v9867_v61  ;;  %v9932_v61 = vcombine.high %v1384_v54, %v1388_v55  ;;  %v1397_v2 = vld [vmem:[#allocation10 + $0x6b8] sm:$0xff]  ;;  %v9933_v4 = vcombine.low %v1385_v57, %v1389_v58 }
 0x38f   : > { %3050 = vmatpush1.bf16.msra.mxu0 %v9869_v62  ;;  %2969 = vmatprep.subr.bf16.mxu1 %v9876_v63  ;;  %v9934_v62 = vcombine.high %v1385_v57, %v1389_v58  ;;  %v1392_v63 = vld [vmem:[#allocation10 + $0x690] sm:$0xff]  ;;  %v9941_v13 = vcombine.low %v1393_v1, %v1397_v2  ;;  %v1433_v44 = vld [vmem:[#allocation10 + $0x7d8] sm:$0xff]  ;;  %v3096_v58 = vld [vmem:[%s11198_s0] sm:$0xff] }
 0x390   : > { %3051 = vmatprep.subr.bf16.mxu0 %v9878_v0  ;;  %v1396_v0 = vld [vmem:[#allocation10 + $0x6b0] sm:$0xff]  ;;  %v1437_v45 = vld [vmem:[#allocation10 + $0x7f8] sm:$0xff] }
 0x391   : > { %v9939_v12 = vcombine.low %v1392_v63, %v1396_v0  ;;  %v9981_v55 = vcombine.low %v1433_v44, %v1437_v45 }
 0x392   : > { %2970 = vmatpush1.bf16.msra.mxu1 %v9875_v5  ;;  %v9940_v5 = vcombine.high %v1392_v63, %v1396_v0 }
 0x393   : > { %3052 = vmatpush1.bf16.msra.mxu0 %v9877_v10  ;;  %2971 = vmatprep.subr.bf16.mxu1 %v9884_v6  ;;  %v9942_v10 = vcombine.high %v1393_v1, %v1397_v2  ;;  %v1400_v6 = vld [vmem:[#allocation10 + $0x6d0] sm:$0xff]  ;;  %v3131_v2 = vld [vmem:[%s11198_s0 + $0x118] sm:$0xff] }
 0x394   : > { %3053 = vmatprep.subr.bf16.mxu0 %v9886_v7  ;;  %v1404_v7 = vld [vmem:[#allocation10 + $0x6f0] sm:$0xff] }
 0x395   : > { %v9947_v50 = vcombine.low %v1400_v6, %v1404_v7  ;;  %v3129_v1 = vld [vmem:[%s11198_s0 + $0x108] sm:$0xff] }
 0x396   : > { %2972 = vmatpush1.bf16.msra.mxu1 %v9883_v17  ;;  %v9948_v17 = vcombine.high %v1400_v6, %v1404_v7  ;;  %v4187_v6 = vunpack.c.l.s8.bf16 %v3131_v2  ;;  %v3130_v7 = vld [vmem:[%s11198_s0 + $0x110] sm:$0xff] }
 0x397   : > { %3054 = vmatpush1.bf16.msra.mxu0 %v9885_v14  ;;  %2973 = vmatprep.subr.bf16.mxu1 %v9892_v15  ;;  %v9950_v14 = vcombine.high %v1401_v8, %v1405_v11  ;;  %v1408_v15 = vld [vmem:[#allocation10 + $0x710] sm:$0xff]  ;;  %v4186_v11 = vunpack.c.l.s8.bf16 %v3130_v7 }
 0x398   : > { %3055 = vmatprep.subr.bf16.mxu0 %v9894_v16  ;;  %v1412_v16 = vld [vmem:[#allocation10 + $0x730] sm:$0xff] }
 0x399   : > { %v9955_v27 = vcombine.low %v1408_v15, %v1412_v16 }
 0x39a   : > { %2974 = vmatpush1.bf16.msra.mxu1 %v9891_v21  ;;  %v9956_v21 = vcombine.high %v1408_v15, %v1412_v16  ;;  %v4218_v15 = vunpack.c.h.s8.bf16 %v3130_v7 }
 0x39b   : > { %3056 = vmatpush1.bf16.msra.mxu0 %v9893_v22  ;;  %2975 = vmatprep.subr.bf16.mxu1 %v9900_v23  ;;  %v9958_v22 = vcombine.high %v1409_v18, %v1413_v19  ;;  %v1416_v23 = vld [vmem:[#allocation10 + $0x750] sm:$0xff]  ;;  %v3160_v18 = vld [vmem:[%s11198_s0 + $0x200] sm:$0xff] }
 0x39c   : > { %3057 = vmatprep.subr.bf16.mxu0 %v9902_v24  ;;  %v1420_v24 = vld [vmem:[#allocation10 + $0x770] sm:$0xff] }
 0x39d   : > { %v9963_v38 = vcombine.low %v1416_v23, %v1420_v24 }
 0x39e   : > { %2976 = vmatpush1.bf16.msra.mxu1 %v9899_v56  ;;  %v9964_v56 = vcombine.high %v1416_v23, %v1420_v24  ;;  %v3193_v24 = vld [vmem:[%s11198_s0 + $0x308] sm:$0xff] }
 0x39f   : > { %3058 = vmatpush1.bf16.msra.mxu0 %v9901_v32  ;;  %2977 = vmatprep.subr.bf16.mxu1 %v9908_v33  ;;  %v9966_v32 = vcombine.high %v1417_v25, %v1421_v26  ;;  %v1424_v33 = vld [vmem:[#allocation10 + $0x790] sm:$0xff]  ;;  %v3195_v25 = vld [vmem:[%s11198_s0 + $0x318] sm:$0xff]  ;;  %v4280_v26 = vunpack.c.h.s8.bf16 %v3160_v18 }
 0x3a0   : > { %3059 = vmatprep.subr.bf16.mxu0 %v9910_v35  ;;  %v1428_v35 = vld [vmem:[#allocation10 + $0x7b0] sm:$0xff] }
 0x3a1   : > { %v9971_v46 = vcombine.low %v1424_v33, %v1428_v35 }
 0x3a2   : > { %2978 = vmatpush1.bf16.msra.mxu1 %v9907_v40  ;;  %v9972_v40 = vcombine.high %v1424_v33, %v1428_v35  ;;  %v3194_v33 = vld [vmem:[%s11198_s0 + $0x310] sm:$0xff] }
 0x3a3   : > { %3060 = vmatpush1.bf16.msra.mxu0 %v9909_v41  ;;  %2979 = vmatprep.subr.bf16.mxu1 %v9916_v42  ;;  %v9974_v41 = vcombine.high %v1425_v36, %v1429_v37  ;;  %v1432_v42 = vld [vmem:[#allocation10 + $0x7d0] sm:$0xff]  ;;  %v4314_v36 = vunpack.c.l.s8.bf16 %v3194_v33  ;;  %v4345_v37 = vunpack.c.h.s8.bf16 %v3193_v24 }
 0x3a4   : > { %3061 = vmatprep.subr.bf16.mxu0 %v9918_v43  ;;  %v1436_v43 = vld [vmem:[#allocation10 + $0x7f0] sm:$0xff] }
 0x3a5   : > { %v9979_v54 = vcombine.low %v1432_v42, %v1436_v43 }
 0x3a6   : > { %2980 = vmatpush1.bf16.msra.mxu1 %v9915_v48  ;;  %v9980_v48 = vcombine.high %v1432_v42, %v1436_v43  ;;  %v4346_v42 = vunpack.c.h.s8.bf16 %v3194_v33  ;;  %v11294_v33 = vld [vmem:[#allocation11] sm:$0xff] }
 0x3a7   : > { %3062 = vmatpush1.bf16.msra.mxu0 %v9917_v49  ;;  %2981 = vmatprep.subr.bf16.mxu1 %v9924_v52  ;;  %v9982_v49 = vcombine.high %v1433_v44, %v1437_v45  ;;  %v3097_v52 = vld [vmem:[%s11198_s0 + $0x8] sm:$0xff]  ;;  %v3224_v44 = vld [vmem:[%s11198_s0 + $0x400] sm:$0xff] }
 0x3a8   : > { %3063 = vmatprep.subr.bf16.mxu0 %v9926_v53  ;;  %v3099_v53 = vld [vmem:[%s11198_s0 + $0x18] sm:$0xff]  ;;  %v4121_v57 = vunpack.c.l.s8.bf16 %v3097_v52  ;;  %v4153_v63 = vunpack.c.h.s8.bf16 %v3097_v52 }
 0x3a9   : > { %v4155_v0 = vunpack.c.h.s8.bf16 %v3099_v53 }
 0x3aa   : > { %2982 = vmatpush1.bf16.msra.mxu1 %v9923_v9  ;;  %v4123_v9 = vunpack.c.l.s8.bf16 %v3099_v53  ;;  %v3257_v53 = vld [vmem:[%s11198_s0 + $0x508] sm:$0xff] }
 0x3ab   : > { %3064 = vmatpush1.bf16.msra.mxu0 %v9925_v60  ;;  %2983 = vmatprep.subr.bf16.mxu1 %v9932_v61  ;;  %v3098_v60 = vld [vmem:[%s11198_s0 + $0x10] sm:$0xff]  ;;  %v4120_v61 = vunpack.c.l.s8.bf16 %v3096_v58 }
 0x3ac   : > { %3065 = vmatprep.subr.bf16.mxu0 %v9934_v62  ;;  %v4122_v62 = vunpack.c.l.s8.bf16 %v3098_v60 }
 0x3ae   : > { %2984 = vmatpush1.bf16.msra.mxu1 %v9931_v3  ;;  %v4152_v3 = vunpack.c.h.s8.bf16 %v3096_v58  ;;  %v4441_v58 = vunpack.c.l.s8.bf16 %v3257_v53 }
 0x3af   : > { %3066 = vmatpush1.bf16.msra.mxu0 %v9933_v4  ;;  %2985 = vmatprep.subr.bf16.mxu1 %v9940_v5  ;;  %v4154_v4 = vunpack.c.h.s8.bf16 %v3098_v60  ;;  %v4185_v5 = vunpack.c.l.s8.bf16 %v3129_v1 }
 0x3b0   : > { %3067 = vmatprep.subr.bf16.mxu0 %v9942_v10  ;;  %v3128_v10 = vld [vmem:[%s11198_s0 + $0x100] sm:$0xff] }
 0x3b1   : > { %v4184_v8 = vunpack.c.l.s8.bf16 %v3128_v10 }
 0x3b2   : > { %2986 = vmatpush1.bf16.msra.mxu1 %v9939_v12  ;;  %v4219_v12 = vunpack.c.h.s8.bf16 %v3131_v2  ;;  %v3289_v2 = vld [vmem:[%s11198_s0 + $0x608] sm:$0xff] }
 0x3b3   : > { %3068 = vmatpush1.bf16.msra.mxu0 %v9941_v13  ;;  %2987 = vmatprep.subr.bf16.mxu1 %v9948_v17  ;;  %v3161_v13 = vld [vmem:[%s11198_s0 + $0x208] sm:$0xff]  ;;  %v3163_v17 = vld [vmem:[%s11198_s0 + $0x218] sm:$0xff] }
 0x3b4   : > { %3069 = vmatprep.subr.bf16.mxu0 %v9950_v14  ;;  %v4216_v14 = vunpack.c.h.s8.bf16 %v3128_v10  ;;  %v4249_v16 = vunpack.c.l.s8.bf16 %v3161_v13  ;;  %v4251_v19 = vunpack.c.l.s8.bf16 %v3163_v17  ;;  %v4283_v23 = vunpack.c.h.s8.bf16 %v3163_v17  ;;  %v3321_v17 = vld [vmem:[%s11198_s0 + $0x708] sm:$0xff] }
 0x3b5   : > { %v4505_v10 = vunpack.c.l.s8.bf16 %v3289_v2 }
 0x3b6   : > { %2988 = vmatpush1.bf16.msra.mxu1 %v9947_v50  ;;  %v3162_v50 = vld [vmem:[%s11198_s0 + $0x210] sm:$0xff] }
 0x3b7   : > { %3070 = vmatpush1.bf16.msra.mxu0 %v9949_v20  ;;  %2989 = vmatprep.subr.bf16.mxu1 %v9956_v21  ;;  %v4248_v20 = vunpack.c.l.s8.bf16 %v3160_v18  ;;  %v4250_v21 = vunpack.c.l.s8.bf16 %v3162_v50  ;;  %v4569_v18 = vunpack.c.l.s8.bf16 %v3321_v17 }
 0x3b8   : > { %3071 = vmatprep.subr.bf16.mxu0 %v9958_v22  ;;  %v4281_v22 = vunpack.c.h.s8.bf16 %v3161_v13 }
 0x3ba   : > { %2990 = vmatpush1.bf16.msra.mxu1 %v9955_v27  ;;  %v4282_v27 = vunpack.c.h.s8.bf16 %v3162_v50 }
 0x3bb   : > { %3072 = vmatpush1.bf16.msra.mxu0 %v9957_v30  ;;  %2991 = vmatprep.subr.bf16.mxu1 %v9964_v56  ;;  %v4313_v30 = vunpack.c.l.s8.bf16 %v3193_v24  ;;  %v3192_v56 = vld [vmem:[%s11198_s0 + $0x300] sm:$0xff] }
 0x3bc   : > { %3073 = vmatprep.subr.bf16.mxu0 %v9966_v32  ;;  %v4315_v32 = vunpack.c.l.s8.bf16 %v3195_v25  ;;  %v4312_v35 = vunpack.c.l.s8.bf16 %v3192_v56 }
 0x3be   : > { %2992 = vmatpush1.bf16.msra.mxu1 %v9963_v38  ;;  %v4347_v38 = vunpack.c.h.s8.bf16 %v3195_v25  ;;  %v3353_v25 = vld [vmem:[%s11198_s0 + $0x808] sm:$0xff] }
 0x3bf   : > { %3074 = vmatpush1.bf16.msra.mxu0 %v9965_v39  ;;  %2993 = vmatprep.subr.bf16.mxu1 %v9972_v40  ;;  %v3225_v39 = vld [vmem:[%s11198_s0 + $0x408] sm:$0xff]  ;;  %v3227_v40 = vld [vmem:[%s11198_s0 + $0x418] sm:$0xff] }
 0x3c0   : > { %3075 = vmatprep.subr.bf16.mxu0 %v9974_v41  ;;  %v4344_v41 = vunpack.c.h.s8.bf16 %v3192_v56  ;;  %v4377_v43 = vunpack.c.l.s8.bf16 %v3225_v39  ;;  %v4379_v45 = vunpack.c.l.s8.bf16 %v3227_v40  ;;  %v4411_v52 = vunpack.c.h.s8.bf16 %v3227_v40 }
 0x3c1   : > { %v4633_v56 = vunpack.c.l.s8.bf16 %v3353_v25 }
 0x3c2   : > { %2994 = vmatpush1.bf16.msra.mxu1 %v9971_v46  ;;  %v3226_v46 = vld [vmem:[%s11198_s0 + $0x410] sm:$0xff] }
 0x3c3   : > { %3076 = vmatpush1.bf16.msra.mxu0 %v9973_v47  ;;  %2995 = vmatprep.subr.bf16.mxu1 %v9980_v48  ;;  %v4376_v47 = vunpack.c.l.s8.bf16 %v3224_v44  ;;  %v4378_v48 = vunpack.c.l.s8.bf16 %v3226_v46 }
 0x3c4   : > { %3077 = vmatprep.subr.bf16.mxu0 %v9982_v49  ;;  %v4409_v49 = vunpack.c.h.s8.bf16 %v3225_v39 }
 0x3c6   : > { %2996 = vmatpush1.bf16.msra.mxu1 %v9979_v54  ;;  %v3259_v54 = vld [vmem:[%s11198_s0 + $0x518] sm:$0xff] }
 0x3c7   : > { %3078 = vmatpush1.bf16.msra.mxu0 %v9981_v55  ;;  %6176 = vmatprep.subr.bf16.mxu1 %v4121_v57  ;;  %v4408_v55 = vunpack.c.h.s8.bf16 %v3224_v44  ;;  %v4410_v57 = vunpack.c.h.s8.bf16 %v3226_v46  ;;  %v4443_v60 = vunpack.c.l.s8.bf16 %v3259_v54 }
 0x3c8   : > { %6340 = vmatprep.subr.bf16.mxu0 %v4123_v9  ;;  %v3256_v9 = vld [vmem:[%s11198_s0 + $0x500] sm:$0xff] }
 0x3c9   : > { %2998 = vmatmul.mubr.bf16.vlgmr.msra.gmra.mrb[8].mxu1 %v11248_v34 }
 0x3ca   : > { %3080 = vmatmul.mubr.bf16.vlgmr.msra.gmra.mrb[12].mxu0 %v11248_v34  ;;  %6177 = vmatpush1.bf16.msra.mxu1 %v4120_v61  ;;  %v4217_v34 = vunpack.c.h.s8.bf16 %v3129_v1  ;;  %v3258_v61 = vld [vmem:[%s11198_s0 + $0x510] sm:$0xff]  ;;  %v4475_v1 = vunpack.c.h.s8.bf16 %v3259_v54 }
 0x3cb   : > { %6341 = vmatpush1.bf16.msra.mxu0 %v4122_v62  ;;  %6178 = vmatprep.subr.bf16.mxu1 %v4153_v63  ;;  %v4440_v62 = vunpack.c.l.s8.bf16 %v3256_v9  ;;  %v4442_v63 = vunpack.c.l.s8.bf16 %v3258_v61 }
 0x3cc   : > { %6342 = vmatprep.subr.bf16.mxu0 %v4155_v0  ;;  %v4473_v0 = vunpack.c.h.s8.bf16 %v3257_v53  ;;  %v3354_v53 = vld [vmem:[%s11198_s0 + $0x810] sm:$0xff] }
 0x3ce   : > { %6179 = vmatpush1.bf16.msra.mxu1 %v4152_v3  ;;  %v3291_v3 = vld [vmem:[%s11198_s0 + $0x618] sm:$0xff] }
 0x3cf   : > { %6343 = vmatpush1.bf16.msra.mxu0 %v4154_v4  ;;  %6180 = vmatprep.subr.bf16.mxu1 %v4185_v5  ;;  %v4472_v4 = vunpack.c.h.s8.bf16 %v3256_v9  ;;  %v4474_v5 = vunpack.c.h.s8.bf16 %v3258_v61  ;;  %v4507_v7 = vunpack.c.l.s8.bf16 %v3291_v3  ;;  %v4539_v13 = vunpack.c.h.s8.bf16 %v3291_v3 }
 0x3d0   : > { %6344 = vmatprep.subr.bf16.mxu0 %v4187_v6  ;;  %v3288_v6 = vld [vmem:[%s11198_s0 + $0x600] sm:$0xff]  ;;  %v4634_v9 = vunpack.c.l.s8.bf16 %v3354_v53  ;;  %v4665_v61 = vunpack.c.h.s8.bf16 %v3353_v25  ;;  %v4666_v3 = vunpack.c.h.s8.bf16 %v3354_v53 }
 0x3d2   : > { %6181 = vmatpush1.bf16.msra.mxu1 %v4184_v8  ;;  %v3290_v8 = vld [vmem:[%s11198_s0 + $0x610] sm:$0xff] }
 0x3d3   : > { %6345 = vmatpush1.bf16.msra.mxu0 %v4186_v11  ;;  %6182 = vmatprep.subr.bf16.mxu1 %v4217_v34  ;;  %v4504_v11 = vunpack.c.l.s8.bf16 %v3288_v6  ;;  %v4506_v34 = vunpack.c.l.s8.bf16 %v3290_v8 }
 0x3d4   : > { %6346 = vmatprep.subr.bf16.mxu0 %v4219_v12  ;;  %v4537_v12 = vunpack.c.h.s8.bf16 %v3289_v2 }
 0x3d6   : > { %6183 = vmatpush1.bf16.msra.mxu1 %v4216_v14  ;;  %v3323_v14 = vld [vmem:[%s11198_s0 + $0x718] sm:$0xff] }
 0x3d7   : > { %6347 = vmatpush1.bf16.msra.mxu0 %v4218_v15  ;;  %6184 = vmatprep.subr.bf16.mxu1 %v4249_v16  ;;  %v4536_v15 = vunpack.c.h.s8.bf16 %v3288_v6  ;;  %v4538_v16 = vunpack.c.h.s8.bf16 %v3290_v8  ;;  %v4571_v50 = vunpack.c.l.s8.bf16 %v3323_v14  ;;  %v4603_v24 = vunpack.c.h.s8.bf16 %v3323_v14  ;;  %v3386_v6 = vld [vmem:[%s11198_s0 + $0x910] sm:$0xff] }
 0x3d8   : > { %6348 = vmatprep.subr.bf16.mxu0 %v4251_v19  ;;  %v3320_v19 = vld [vmem:[%s11198_s0 + $0x700] sm:$0xff]  ;;  %v4698_v8 = vunpack.c.l.s8.bf16 %v3386_v6  ;;  %v4730_v14 = vunpack.c.h.s8.bf16 %v3386_v6  ;;  %v3547_v6 = vld [vmem:[%s11198_s0 + $0xe18] sm:$0xff] }
 0x3da   : > { %6185 = vmatpush1.bf16.msra.mxu1 %v4248_v20  ;;  %v3322_v20 = vld [vmem:[%s11198_s0 + $0x710] sm:$0xff] }
 0x3db   : > { %6349 = vmatpush1.bf16.msra.mxu0 %v4250_v21  ;;  %6186 = vmatprep.subr.bf16.mxu1 %v4281_v22  ;;  %v4568_v21 = vunpack.c.l.s8.bf16 %v3320_v19  ;;  %v4570_v22 = vunpack.c.l.s8.bf16 %v3322_v20 }
 0x3dc   : > { %6350 = vmatprep.subr.bf16.mxu0 %v4283_v23  ;;  %v4601_v23 = vunpack.c.h.s8.bf16 %v3321_v17 }
 0x3de   : > { %6187 = vmatpush1.bf16.msra.mxu1 %v4280_v26  ;;  %v3355_v26 = vld [vmem:[%s11198_s0 + $0x818] sm:$0xff] }
 0x3df   : > { %6351 = vmatpush1.bf16.msra.mxu0 %v4282_v27  ;;  %6188 = vmatprep.subr.bf16.mxu1 %v4313_v30  ;;  %v4600_v27 = vunpack.c.h.s8.bf16 %v3320_v19  ;;  %v4602_v30 = vunpack.c.h.s8.bf16 %v3322_v20  ;;  %v3418_v19 = vld [vmem:[%s11198_s0 + $0xa10] sm:$0xff] }
 0x3e0   : > { %6352 = vmatprep.subr.bf16.mxu0 %v4315_v32  ;;  %v4635_v32 = vunpack.c.l.s8.bf16 %v3355_v26  ;;  %v4762_v20 = vunpack.c.l.s8.bf16 %v3418_v19 }
 0x3e2   : > { %6189 = vmatpush1.bf16.msra.mxu1 %v4312_v35  ;;  %v2723_v35 = vrot.slane %v11294_v33, %v11210_v29 }
 0x3e3   : > { %6353 = vmatpush1.bf16.msra.mxu0 %v4314_v36  ;;  %6190 = vmatprep.subr.bf16.mxu1 %v4345_v37  ;;  %v2727_v36 = vrot.slane %v11294_v33, %v11213_v31  ;;  %v2735_v37 = vrot.slane %v11294_v33, %v11220_v51 }
 0x3e4   : > { %6354 = vmatprep.subr.bf16.mxu0 %v4347_v38 }
 0x3e6   : > { %6191 = vmatpush1.bf16.msra.mxu1 %v4344_v41 }
 0x3e7   : > { %6355 = vmatpush1.bf16.msra.mxu0 %v4346_v42  ;;  %6192 = vmatprep.subr.bf16.mxu1 %v4377_v43 }
 0x3e8   : > { %6356 = vmatprep.subr.bf16.mxu0 %v4379_v45 }
 0x3ea   : > { %6193 = vmatpush1.bf16.msra.mxu1 %v4376_v47 }
 0x3eb   : > { %6357 = vmatpush1.bf16.msra.mxu0 %v4378_v48  ;;  %6194 = vmatprep.subr.bf16.mxu1 %v4409_v49 }
 0x3ec   : > { %6358 = vmatprep.subr.bf16.mxu0 %v4411_v52  ;;  %v3352_v52 = vld [vmem:[%s11198_s0 + $0x800] sm:$0xff] }
 0x3ed   : > { %v4664_v2 = vunpack.c.h.s8.bf16 %v3352_v52 }
 0x3ee   : > { %6195 = vmatpush1.bf16.msra.mxu1 %v4408_v55 }
 0x3ef   : > { %6359 = vmatpush1.bf16.msra.mxu0 %v4410_v57  ;;  %6196 = vmatprep.subr.bf16.mxu1 %v4441_v58  ;;  %v4632_v58 = vunpack.c.l.s8.bf16 %v3352_v52 }
 0x3f0   : > { %6360 = vmatprep.subr.bf16.mxu0 %v4443_v60 }
 0x3f2   : > { %6197 = vmatpush1.bf16.msra.mxu1 %v4440_v62  ;;  %v4667_v62 = vunpack.c.h.s8.bf16 %v3355_v26  ;;  %v4794_v26 = vunpack.c.h.s8.bf16 %v3418_v19  ;;  %v3579_v19 = vld [vmem:[%s11198_s0 + $0xf18] sm:$0xff] }
 0x3f3   : > { %6361 = vmatpush1.bf16.msra.mxu0 %v4442_v63  ;;  %6198 = vmatprep.subr.bf16.mxu1 %v4473_v0  ;;  %v3385_v63 = vld [vmem:[%s11198_s0 + $0x908] sm:$0xff]  ;;  %v3387_v0 = vld [vmem:[%s11198_s0 + $0x918] sm:$0xff] }
 0x3f4   : > { %6362 = vmatprep.subr.bf16.mxu0 %v4475_v1 }
 0x3f6   : > { %6199 = vmatpush1.bf16.msra.mxu1 %v4472_v4  ;;  %v4697_v4 = vunpack.c.l.s8.bf16 %v3385_v63 }
 0x3f7   : > { %6363 = vmatpush1.bf16.msra.mxu0 %v4474_v5  ;;  %6200 = vmatprep.subr.bf16.mxu1 %v4505_v10  ;;  %v4699_v5 = vunpack.c.l.s8.bf16 %v3387_v0  ;;  %v3384_v10 = vld [vmem:[%s11198_s0 + $0x900] sm:$0xff] }
 0x3f8   : > { %6364 = vmatprep.subr.bf16.mxu0 %v4507_v7  ;;  %v4696_v7 = vunpack.c.l.s8.bf16 %v3384_v10  ;;  %v4728_v17 = vunpack.c.h.s8.bf16 %v3384_v10  ;;  %v3545_v10 = vld [vmem:[%s11198_s0 + $0xe08] sm:$0xff] }
 0x3fa   : > { %6201 = vmatpush1.bf16.msra.mxu1 %v4504_v11  ;;  %v4729_v11 = vunpack.c.h.s8.bf16 %v3385_v63  ;;  %v3512_v63 = vld [vmem:[%s11198_s0 + $0xd00] sm:$0xff] }
 0x3fb   : > { %6365 = vmatpush1.bf16.msra.mxu0 %v4506_v34  ;;  %6202 = vmatprep.subr.bf16.mxu1 %v4537_v12  ;;  %v4731_v34 = vunpack.c.h.s8.bf16 %v3387_v0  ;;  %v3417_v12 = vld [vmem:[%s11198_s0 + $0xa08] sm:$0xff]  ;;  %v3514_v0 = vld [vmem:[%s11198_s0 + $0xd10] sm:$0xff] }
 0x3fc   : > { %6366 = vmatprep.subr.bf16.mxu0 %v4539_v13  ;;  %v3419_v13 = vld [vmem:[%s11198_s0 + $0xa18] sm:$0xff] }
 0x3fe   : > { %6203 = vmatpush1.bf16.msra.mxu1 %v4536_v15  ;;  %v4761_v15 = vunpack.c.l.s8.bf16 %v3417_v12 }
 0x3ff   : > { %6367 = vmatpush1.bf16.msra.mxu0 %v4538_v16  ;;  %6204 = vmatprep.subr.bf16.mxu1 %v4569_v18  ;;  %v4763_v16 = vunpack.c.l.s8.bf16 %v3419_v13  ;;  %v3416_v18 = vld [vmem:[%s11198_s0 + $0xa00] sm:$0xff] }
 0x400   : > { %6368 = vmatprep.subr.bf16.mxu0 %v4571_v50  ;;  %v4760_v50 = vunpack.c.l.s8.bf16 %v3416_v18  ;;  %v4792_v25 = vunpack.c.h.s8.bf16 %v3416_v18  ;;  %v3577_v18 = vld [vmem:[%s11198_s0 + $0xf08] sm:$0xff] }
 0x402   : > { %6205 = vmatpush1.bf16.msra.mxu1 %v4568_v21  ;;  %v4793_v21 = vunpack.c.h.s8.bf16 %v3417_v12  ;;  %v3544_v12 = vld [vmem:[%s11198_s0 + $0xe00] sm:$0xff] }
 0x403   : > { %6369 = vmatpush1.bf16.msra.mxu0 %v4570_v22  ;;  %6206 = vmatprep.subr.bf16.mxu1 %v4601_v23  ;;  %v4795_v22 = vunpack.c.h.s8.bf16 %v3419_v13  ;;  %v3449_v23 = vld [vmem:[%s11198_s0 + $0xb08] sm:$0xff]  ;;  %v3546_v13 = vld [vmem:[%s11198_s0 + $0xe10] sm:$0xff] }
 0x404   : > { %6370 = vmatprep.subr.bf16.mxu0 %v4603_v24  ;;  %v3451_v24 = vld [vmem:[%s11198_s0 + $0xb18] sm:$0xff] }
 0x406   : > { %6207 = vmatpush1.bf16.msra.mxu1 %v4600_v27  ;;  %v4825_v27 = vunpack.c.l.s8.bf16 %v3449_v23 }
 0x407   : > { %6371 = vmatpush1.bf16.msra.mxu0 %v4602_v30  ;;  %6217 = vmatprep.subr.bf16.mxu1 %v4633_v56  ;;  %v4827_v30 = vunpack.c.l.s8.bf16 %v3451_v24  ;;  %v3448_v56 = vld [vmem:[%s11198_s0 + $0xb00] sm:$0xff] }
 0x408   : > { %6381 = vmatprep.subr.bf16.mxu0 %v4635_v32  ;;  %v3450_v32 = vld [vmem:[%s11198_s0 + $0xb10] sm:$0xff] }
 0x41c   : > { %v2835_v38 = vpop.f32.mrb[4].mxu1  ;;  %v11302_v39 = vpop.f32.mrb[8].mxu0 }
 0x41d   : > { %v9992_v40 = vadd.f32 %v2835_v38, %v2723_v35  ;;  %v2837_v41 = vpop.f32.mrb[5].mxu1  ;;  %v2919_v42 = vpop.f32.mrb[9].mxu0  ;;  %v4824_v35 = vunpack.c.l.s8.bf16 %v3448_v56  ;;  %v4859_v38 = vunpack.c.h.s8.bf16 %v3451_v24  ;;  %v3576_v24 = vld [vmem:[%s11198_s0 + $0xf00] sm:$0xff] }
 0x41e   : > { %v9993_v43 = vadd.f32 %v2837_v41, %v2727_v36  ;;  %v9995_v44 = vadd.f32 %v2919_v42, %v2735_v37  ;;  %v2839_v45 = vpop.f32.mrb[6].mxu1  ;;  %v2921_v46 = vpop.f32.mrb[10].mxu0  ;;  %v4826_v36 = vunpack.c.l.s8.bf16 %v3450_v32  ;;  %v4857_v37 = vunpack.c.h.s8.bf16 %v3449_v23  ;;  %v3483_v41 = vld [vmem:[%s11198_s0 + $0xc18] sm:$0xff] }
 0x41f   : > { %v3088_v47 = vmax.f32 %v9992_v40, 0.0  ;;  %v2840_v48 = vpop.f32.mrb[7].mxu1  ;;  %v2922_v49 = vpop.f32.mrb[11].mxu0  ;;  %v3481_v40 = vld [vmem:[%s11198_s0 + $0xc08] sm:$0xff]  ;;  %v4856_v42 = vunpack.c.h.s8.bf16 %v3448_v56  ;;  %v4891_v45 = vunpack.c.l.s8.bf16 %v3483_v41  ;;  %v3480_v46 = vld [vmem:[%s11198_s0 + $0xc00] sm:$0xff]  ;;  %v4923_v53 = vunpack.c.h.s8.bf16 %v3483_v41 }
 0x420   : > { %v3089_v54 = vmax.f32 %v9993_v43, 0.0  ;;  %v3091_v55 = vmax.f32 %v9995_v44, 0.0  ;;  %v4858_v43 = vunpack.c.h.s8.bf16 %v3450_v32  ;;  %v4889_v44 = vunpack.c.l.s8.bf16 %v3481_v40 }
 0x421   : > { %v11308_v60 = vpack.c.bf16 %v3088_v47, %v3088_v47  ;;  %v3482_v47 = vld [vmem:[%s11198_s0 + $0xc10] sm:$0xff]  ;;  %v4888_v48 = vunpack.c.l.s8.bf16 %v3480_v46  ;;  %v4921_v52 = vunpack.c.h.s8.bf16 %v3481_v40  ;;  %v5083_v23 = vunpack.c.l.s8.bf16 %v3579_v19 }
 0x422   : > { %v11306_v57 = vpack.c.bf16 %v3089_v54, %v3089_v54  ;;  %v11314_v1 = vpack.c.bf16 %v3091_v55, %v3091_v55  ;;  %v4890_v49 = vunpack.c.l.s8.bf16 %v3482_v47  ;;  %v3513_v54 = vld [vmem:[%s11198_s0 + $0xd08] sm:$0xff]  ;;  %v3515_v55 = vld [vmem:[%s11198_s0 + $0xd18] sm:$0xff]  ;;  %v5113_v56 = vunpack.c.h.s8.bf16 %v3577_v18 }
 0x423   : > { %v5115_v32 = vunpack.c.h.s8.bf16 %v3579_v19 }
 0x424   : > { %6208 = vmatprep.mubr.bf16.mxu1 %v11306_v57  ;;  %6372 = vmatprep.mubr.bf16.mxu0 %v11306_v57 }
 0x425   : > { %6209 = vmatmul.mubr.bf16.vlgmr.msra.gmra.mrb[12].mxu1 %v11308_v60  ;;  %6373 = vmatmul.mubr.bf16.vlgmr.msra.gmra.mrb[16].mxu0 %v11308_v60 }
 0x426   : > { %6218 = vmatpush1.bf16.msra.mxu1 %v4632_v58  ;;  %6382 = vmatpush1.bf16.msra.mxu0 %v4634_v9  ;;  %v4920_v58 = vunpack.c.h.s8.bf16 %v3480_v46  ;;  %v4922_v9 = vunpack.c.h.s8.bf16 %v3482_v47 }
 0x427   : > { %6249 = vmatprep.mubr.bf16.mxu1 %v11314_v1  ;;  %6413 = vmatprep.mubr.bf16.mxu0 %v11314_v1 }
 0x428   : > { %6219 = vmatprep.subr.bf16.mxu1 %v4665_v61  ;;  %6383 = vmatprep.subr.bf16.mxu0 %v4667_v62  ;;  %v4953_v61 = vunpack.c.l.s8.bf16 %v3513_v54  ;;  %v4955_v62 = vunpack.c.l.s8.bf16 %v3515_v55 }
 0x42a   : > { %6220 = vmatpush1.bf16.msra.mxu1 %v4664_v2  ;;  %6384 = vmatpush1.bf16.msra.mxu0 %v4666_v3  ;;  %v4952_v2 = vunpack.c.l.s8.bf16 %v3512_v63  ;;  %v4954_v3 = vunpack.c.l.s8.bf16 %v3514_v0 }
 0x42b   : > { %6221 = vmatprep.subr.bf16.mxu1 %v4697_v4  ;;  %6385 = vmatprep.subr.bf16.mxu0 %v4699_v5  ;;  %v4985_v4 = vunpack.c.h.s8.bf16 %v3513_v54  ;;  %v4987_v5 = vunpack.c.h.s8.bf16 %v3515_v55 }
 0x42e   : > { %6222 = vmatpush1.bf16.msra.mxu1 %v4696_v7  ;;  %6386 = vmatpush1.bf16.msra.mxu0 %v4698_v8  ;;  %v4984_v7 = vunpack.c.h.s8.bf16 %v3512_v63  ;;  %v4986_v8 = vunpack.c.h.s8.bf16 %v3514_v0 }
 0x42f   : > { %6223 = vmatprep.subr.bf16.mxu1 %v4729_v11  ;;  %6387 = vmatprep.subr.bf16.mxu0 %v4731_v34  ;;  %v5017_v11 = vunpack.c.l.s8.bf16 %v3545_v10  ;;  %v5019_v34 = vunpack.c.l.s8.bf16 %v3547_v6 }
 0x432   : > { %6224 = vmatpush1.bf16.msra.mxu1 %v4728_v17  ;;  %6388 = vmatpush1.bf16.msra.mxu0 %v4730_v14  ;;  %v5016_v17 = vunpack.c.l.s8.bf16 %v3544_v12  ;;  %v5018_v14 = vunpack.c.l.s8.bf16 %v3546_v13 }
 0x433   : > { %6225 = vmatprep.subr.bf16.mxu1 %v4761_v15  ;;  %6389 = vmatprep.subr.bf16.mxu0 %v4763_v16  ;;  %v5049_v15 = vunpack.c.h.s8.bf16 %v3545_v10  ;;  %v5051_v16 = vunpack.c.h.s8.bf16 %v3547_v6 }
 0x436   : > { %6226 = vmatpush1.bf16.msra.mxu1 %v4760_v50  ;;  %6390 = vmatpush1.bf16.msra.mxu0 %v4762_v20  ;;  %v5048_v50 = vunpack.c.h.s8.bf16 %v3544_v12  ;;  %v5050_v20 = vunpack.c.h.s8.bf16 %v3546_v13 }
 0x437   : > { %6227 = vmatprep.subr.bf16.mxu1 %v4793_v21  ;;  %6391 = vmatprep.subr.bf16.mxu0 %v4795_v22  ;;  %v2731_v21 = vrot.slane %v11294_v33, %v11243_v59  ;;  %v5081_v22 = vunpack.c.l.s8.bf16 %v3577_v18 }
 0x43a   : > { %6228 = vmatpush1.bf16.msra.mxu1 %v4792_v25  ;;  %6392 = vmatpush1.bf16.msra.mxu0 %v4794_v26  ;;  %v3578_v25 = vld [vmem:[%s11198_s0 + $0xf10] sm:$0xff]  ;;  %v5080_v26 = vunpack.c.l.s8.bf16 %v3576_v24 }
 0x43b   : > { %6229 = vmatprep.subr.bf16.mxu1 %v4825_v27  ;;  %6393 = vmatprep.subr.bf16.mxu0 %v4827_v30  ;;  %v5082_v27 = vunpack.c.l.s8.bf16 %v3578_v25  ;;  %v9994_v30 = vadd.f32 %v11302_v39, %v2731_v21  ;;  %v3608_v39 = vld [vmem:[%s11198_s0 + $0x1000] sm:$0xff]  ;;  %v3706_v21 = vld [vmem:[%s11198_s0 + $0x1310] sm:$0xff] }
 0x43d   : > { %v3090_v40 = vmax.f32 %v9994_v30, 0.0 }
 0x43e   : > { %6230 = vmatpush1.bf16.msra.mxu1 %v4824_v35  ;;  %6394 = vmatpush1.bf16.msra.mxu0 %v4826_v36  ;;  %v3609_v35 = vld [vmem:[%s11198_s0 + $0x1008] sm:$0xff]  ;;  %v3611_v36 = vld [vmem:[%s11198_s0 + $0x1018] sm:$0xff] }
 0x43f   : > { %6231 = vmatprep.subr.bf16.mxu1 %v4857_v37  ;;  %6395 = vmatprep.subr.bf16.mxu0 %v4859_v38  ;;  %v5112_v37 = vunpack.c.h.s8.bf16 %v3576_v24  ;;  %v5114_v38 = vunpack.c.h.s8.bf16 %v3578_v25  ;;  %v5145_v41 = vunpack.c.l.s8.bf16 %v3609_v35  ;;  %v11353_v46 = vpack.c.bf16 %v3090_v40, %v3090_v40 }
 0x440   : > { %v5177_v47 = vunpack.c.h.s8.bf16 %v3609_v35 }
 0x442   : > { %6232 = vmatpush1.bf16.msra.mxu1 %v4856_v42  ;;  %6396 = vmatpush1.bf16.msra.mxu0 %v4858_v43  ;;  %v5147_v42 = vunpack.c.l.s8.bf16 %v3611_v36  ;;  %v3610_v43 = vld [vmem:[%s11198_s0 + $0x1010] sm:$0xff] }
 0x443   : > { %6233 = vmatprep.subr.bf16.mxu1 %v4889_v44  ;;  %6397 = vmatprep.subr.bf16.mxu0 %v4891_v45  ;;  %v5144_v44 = vunpack.c.l.s8.bf16 %v3608_v39  ;;  %v5146_v45 = vunpack.c.l.s8.bf16 %v3610_v43  ;;  %v5178_v54 = vunpack.c.h.s8.bf16 %v3610_v43  ;;  %v3771_v43 = vld [vmem:[%s11198_s0 + $0x1518] sm:$0xff] }
 0x446   : > { %6234 = vmatpush1.bf16.msra.mxu1 %v4888_v48  ;;  %6398 = vmatpush1.bf16.msra.mxu0 %v4890_v49  ;;  %v5179_v48 = vunpack.c.h.s8.bf16 %v3611_v36  ;;  %v3641_v49 = vld [vmem:[%s11198_s0 + $0x1108] sm:$0xff]  ;;  %v3736_v36 = vld [vmem:[%s11198_s0 + $0x1400] sm:$0xff] }
 0x447   : > { %6235 = vmatprep.subr.bf16.mxu1 %v4921_v52  ;;  %6399 = vmatprep.subr.bf16.mxu0 %v4923_v53  ;;  %v3643_v52 = vld [vmem:[%s11198_s0 + $0x1118] sm:$0xff]  ;;  %v5176_v53 = vunpack.c.h.s8.bf16 %v3608_v39  ;;  %v5209_v55 = vunpack.c.l.s8.bf16 %v3641_v49  ;;  %v5241_v0 = vunpack.c.h.s8.bf16 %v3641_v49  ;;  %v3769_v39 = vld [vmem:[%s11198_s0 + $0x1508] sm:$0xff]  ;;  %v3768_v49 = vld [vmem:[%s11198_s0 + $0x1500] sm:$0xff] }
 0x44a   : > { %6236 = vmatpush1.bf16.msra.mxu1 %v4920_v58  ;;  %6400 = vmatpush1.bf16.msra.mxu0 %v4922_v9  ;;  %v5211_v58 = vunpack.c.l.s8.bf16 %v3643_v52  ;;  %v3640_v9 = vld [vmem:[%s11198_s0 + $0x1100] sm:$0xff] }
 0x44b   : > { %6237 = vmatprep.subr.bf16.mxu1 %v4953_v61  ;;  %6401 = vmatprep.subr.bf16.mxu0 %v4955_v62  ;;  %v3642_v61 = vld [vmem:[%s11198_s0 + $0x1110] sm:$0xff]  ;;  %v5208_v62 = vunpack.c.l.s8.bf16 %v3640_v9 }
 0x44c   : > { %v5210_v63 = vunpack.c.l.s8.bf16 %v3642_v61  ;;  %v5242_v10 = vunpack.c.h.s8.bf16 %v3642_v61  ;;  %v3803_v61 = vld [vmem:[%s11198_s0 + $0x1618] sm:$0xff] }
 0x44e   : > { %6238 = vmatpush1.bf16.msra.mxu1 %v4952_v2  ;;  %6402 = vmatpush1.bf16.msra.mxu0 %v4954_v3  ;;  %v5243_v2 = vunpack.c.h.s8.bf16 %v3643_v52  ;;  %v3673_v3 = vld [vmem:[%s11198_s0 + $0x1208] sm:$0xff]  ;;  %v3770_v52 = vld [vmem:[%s11198_s0 + $0x1510] sm:$0xff] }
 0x44f   : > { %6239 = vmatprep.subr.bf16.mxu1 %v4985_v4  ;;  %6403 = vmatprep.subr.bf16.mxu0 %v4987_v5  ;;  %v3675_v4 = vld [vmem:[%s11198_s0 + $0x1218] sm:$0xff]  ;;  %v5240_v5 = vunpack.c.h.s8.bf16 %v3640_v9  ;;  %v5273_v6 = vunpack.c.l.s8.bf16 %v3673_v3  ;;  %v5305_v13 = vunpack.c.h.s8.bf16 %v3673_v3  ;;  %v3801_v9 = vld [vmem:[%s11198_s0 + $0x1608] sm:$0xff]  ;;  %v3800_v3 = vld [vmem:[%s11198_s0 + $0x1600] sm:$0xff] }
 0x452   : > { %6240 = vmatpush1.bf16.msra.mxu1 %v4984_v7  ;;  %6404 = vmatpush1.bf16.msra.mxu0 %v4986_v8  ;;  %v5275_v7 = vunpack.c.l.s8.bf16 %v3675_v4  ;;  %v3672_v8 = vld [vmem:[%s11198_s0 + $0x1200] sm:$0xff] }
 0x453   : > { %6241 = vmatprep.subr.bf16.mxu1 %v5017_v11  ;;  %6405 = vmatprep.subr.bf16.mxu0 %v5019_v34  ;;  %v3674_v11 = vld [vmem:[%s11198_s0 + $0x1210] sm:$0xff]  ;;  %v5272_v34 = vunpack.c.l.s8.bf16 %v3672_v8 }
 0x454   : > { %v5274_v12 = vunpack.c.l.s8.bf16 %v3674_v11  ;;  %v5306_v18 = vunpack.c.h.s8.bf16 %v3674_v11  ;;  %v3835_v11 = vld [vmem:[%s11198_s0 + $0x1718] sm:$0xff] }
 0x456   : > { %6242 = vmatpush1.bf16.msra.mxu1 %v5016_v17  ;;  %6406 = vmatpush1.bf16.msra.mxu0 %v5018_v14  ;;  %v5307_v17 = vunpack.c.h.s8.bf16 %v3675_v4  ;;  %v3705_v14 = vld [vmem:[%s11198_s0 + $0x1308] sm:$0xff]  ;;  %v3802_v4 = vld [vmem:[%s11198_s0 + $0x1610] sm:$0xff] }
 0x457   : > { %6243 = vmatprep.subr.bf16.mxu1 %v5049_v15  ;;  %6407 = vmatprep.subr.bf16.mxu0 %v5051_v16  ;;  %v3707_v15 = vld [vmem:[%s11198_s0 + $0x1318] sm:$0xff]  ;;  %v5304_v16 = vunpack.c.h.s8.bf16 %v3672_v8  ;;  %v5337_v19 = vunpack.c.l.s8.bf16 %v3705_v14  ;;  %v5369_v24 = vunpack.c.h.s8.bf16 %v3705_v14  ;;  %v3833_v8 = vld [vmem:[%s11198_s0 + $0x1708] sm:$0xff] }
 0x458   : > { %v5371_v25 = vunpack.c.h.s8.bf16 %v3707_v15  ;;  %v5593_v14 = vunpack.c.l.s8.bf16 %v3833_v8 }
 0x45a   : > { %6244 = vmatpush1.bf16.msra.mxu1 %v5048_v50  ;;  %6408 = vmatpush1.bf16.msra.mxu0 %v5050_v20  ;;  %v5339_v50 = vunpack.c.l.s8.bf16 %v3707_v15  ;;  %v3704_v20 = vld [vmem:[%s11198_s0 + $0x1300] sm:$0xff]  ;;  %v5595_v15 = vunpack.c.l.s8.bf16 %v3835_v11 }
 0x45b   : > { %6245 = vmatprep.subr.bf16.mxu1 %v5081_v22  ;;  %6409 = vmatprep.subr.bf16.mxu0 %v5083_v23  ;;  %v5336_v22 = vunpack.c.l.s8.bf16 %v3704_v20  ;;  %v5338_v23 = vunpack.c.l.s8.bf16 %v3706_v21  ;;  %v5368_v30 = vunpack.c.h.s8.bf16 %v3704_v20 }
 0x45e   : > { %6246 = vmatpush1.bf16.msra.mxu1 %v5080_v26  ;;  %6410 = vmatpush1.bf16.msra.mxu0 %v5082_v27  ;;  %v3737_v26 = vld [vmem:[%s11198_s0 + $0x1408] sm:$0xff]  ;;  %v3739_v27 = vld [vmem:[%s11198_s0 + $0x1418] sm:$0xff] }
 0x45f   : > { %6247 = vmatprep.subr.bf16.mxu1 %v5113_v56  ;;  %6411 = vmatprep.subr.bf16.mxu0 %v5115_v32  ;;  %v5370_v56 = vunpack.c.h.s8.bf16 %v3706_v21  ;;  %v5401_v32 = vunpack.c.l.s8.bf16 %v3737_v26  ;;  %v5403_v35 = vunpack.c.l.s8.bf16 %v3739_v27 }
 0x462   : > { %6248 = vmatpush1.bf16.msra.mxu1 %v5112_v37  ;;  %6412 = vmatpush1.bf16.msra.mxu0 %v5114_v38  ;;  %v3738_v37 = vld [vmem:[%s11198_s0 + $0x1410] sm:$0xff]  ;;  %v5400_v38 = vunpack.c.l.s8.bf16 %v3736_v36 }
 0x463   : > { %6258 = vmatprep.subr.bf16.mxu1 %v5145_v41  ;;  %6422 = vmatprep.subr.bf16.mxu0 %v5147_v42  ;;  %v5402_v40 = vunpack.c.l.s8.bf16 %v3738_v37  ;;  %v5433_v41 = vunpack.c.h.s8.bf16 %v3737_v26  ;;  %v5435_v42 = vunpack.c.h.s8.bf16 %v3739_v27  ;;  %v3865_v27 = vld [vmem:[%s11198_s0 + $0x1808] sm:$0xff] }
 0x465   : > { %6250 = vmatmul.mubr.bf16.vlgmr.msra.gmra.mrb[12].mxu1 %v11353_v46  ;;  %6414 = vmatmul.mubr.bf16.vlgmr.msra.gmra.mrb[16].mxu0 %v11353_v46 }
 0x466   : > { %6259 = vmatpush1.bf16.msra.mxu1 %v5144_v44  ;;  %6423 = vmatpush1.bf16.msra.mxu0 %v5146_v45  ;;  %v5432_v44 = vunpack.c.h.s8.bf16 %v3736_v36  ;;  %v5434_v45 = vunpack.c.h.s8.bf16 %v3738_v37 }
 0x467   : > { %6260 = vmatprep.subr.bf16.mxu1 %v5177_v47  ;;  %6424 = vmatprep.subr.bf16.mxu0 %v5179_v48  ;;  %v5465_v47 = vunpack.c.l.s8.bf16 %v3769_v39  ;;  %v5467_v48 = vunpack.c.l.s8.bf16 %v3771_v43 }
 0x46a   : > { %6261 = vmatpush1.bf16.msra.mxu1 %v5176_v53  ;;  %6425 = vmatpush1.bf16.msra.mxu0 %v5178_v54  ;;  %v5464_v53 = vunpack.c.l.s8.bf16 %v3768_v49  ;;  %v5466_v54 = vunpack.c.l.s8.bf16 %v3770_v52 }
 0x46b   : > { %6262 = vmatprep.subr.bf16.mxu1 %v5209_v55  ;;  %6426 = vmatprep.subr.bf16.mxu0 %v5211_v58  ;;  %v5497_v55 = vunpack.c.h.s8.bf16 %v3769_v39  ;;  %v5499_v58 = vunpack.c.h.s8.bf16 %v3771_v43 }
 0x46e   : > { %6263 = vmatpush1.bf16.msra.mxu1 %v5208_v62  ;;  %6427 = vmatpush1.bf16.msra.mxu0 %v5210_v63  ;;  %v5496_v62 = vunpack.c.h.s8.bf16 %v3768_v49  ;;  %v5498_v63 = vunpack.c.h.s8.bf16 %v3770_v52 }
 0x46f   : > { %6264 = vmatprep.subr.bf16.mxu1 %v5241_v0  ;;  %6428 = vmatprep.subr.bf16.mxu0 %v5243_v2  ;;  %v5529_v0 = vunpack.c.l.s8.bf16 %v3801_v9  ;;  %v5531_v2 = vunpack.c.l.s8.bf16 %v3803_v61 }
 0x472   : > { %6265 = vmatpush1.bf16.msra.mxu1 %v5240_v5  ;;  %6429 = vmatpush1.bf16.msra.mxu0 %v5242_v10  ;;  %v5528_v5 = vunpack.c.l.s8.bf16 %v3800_v3  ;;  %v5530_v10 = vunpack.c.l.s8.bf16 %v3802_v4 }
 0x473   : > { %6266 = vmatprep.subr.bf16.mxu1 %v5273_v6  ;;  %6430 = vmatprep.subr.bf16.mxu0 %v5275_v7  ;;  %v5561_v6 = vunpack.c.h.s8.bf16 %v3801_v9  ;;  %v5563_v7 = vunpack.c.h.s8.bf16 %v3803_v61  ;;  %v5689_v61 = vunpack.c.h.s8.bf16 %v3865_v27 }
 0x476   : > { %6267 = vmatpush1.bf16.msra.mxu1 %v5272_v34  ;;  %6431 = vmatpush1.bf16.msra.mxu0 %v5274_v12  ;;  %v11384_v34 = vsub.s32 4, %v11207_v28  ;;  %v5560_v12 = vunpack.c.h.s8.bf16 %v3800_v3 }
 0x477   : > { %6268 = vmatprep.subr.bf16.mxu1 %v5305_v13  ;;  %6432 = vmatprep.subr.bf16.mxu0 %v5307_v17  ;;  %v5562_v13 = vunpack.c.h.s8.bf16 %v3802_v4  ;;  %v11387_v17 = vsub.s32 5, %v11207_v28 }
 0x479   : > { %v2743_v20 = vrot.slane %v11294_v33, %v11387_v17 }
 0x47a   : > { %6269 = vmatpush1.bf16.msra.mxu1 %v5304_v16  ;;  %6433 = vmatpush1.bf16.msra.mxu0 %v5306_v18  ;;  %v11390_v16 = vsub.s32 7, %v11207_v28  ;;  %v3832_v18 = vld [vmem:[%s11198_s0 + $0x1700] sm:$0xff] }
 0x47b   : > { %6270 = vmatprep.subr.bf16.mxu1 %v5337_v19  ;;  %6434 = vmatprep.subr.bf16.mxu0 %v5339_v50  ;;  %v3834_v19 = vld [vmem:[%s11198_s0 + $0x1710] sm:$0xff]  ;;  %v2739_v50 = vrot.slane %v11294_v33, %v11384_v34  ;;  %v5592_v21 = vunpack.c.l.s8.bf16 %v3832_v18 }
 0x47e   : > { %6271 = vmatpush1.bf16.msra.mxu1 %v5336_v22  ;;  %6435 = vmatpush1.bf16.msra.mxu0 %v5338_v23  ;;  %v5594_v22 = vunpack.c.l.s8.bf16 %v3834_v19  ;;  %v2751_v23 = vrot.slane %v11294_v33, %v11390_v16 }
 0x47f   : > { %6272 = vmatprep.subr.bf16.mxu1 %v5369_v24  ;;  %6436 = vmatprep.subr.bf16.mxu0 %v5371_v25  ;;  %v5625_v24 = vunpack.c.h.s8.bf16 %v3833_v8  ;;  %v5627_v25 = vunpack.c.h.s8.bf16 %v3835_v11 }
 0x482   : > { %6273 = vmatpush1.bf16.msra.mxu1 %v5368_v30  ;;  %6437 = vmatpush1.bf16.msra.mxu0 %v5370_v56  ;;  %v3867_v30 = vld [vmem:[%s11198_s0 + $0x1818] sm:$0xff] }
 0x483   : > { %6274 = vmatprep.subr.bf16.mxu1 %v5401_v32  ;;  %6438 = vmatprep.subr.bf16.mxu0 %v5403_v35 }
 0x486   : > { %6275 = vmatpush1.bf16.msra.mxu1 %v5400_v38  ;;  %6439 = vmatpush1.bf16.msra.mxu0 %v5402_v40  ;;  %v5624_v40 = vunpack.c.h.s8.bf16 %v3832_v18 }
 0x487   : > { %6276 = vmatprep.subr.bf16.mxu1 %v5433_v41  ;;  %6440 = vmatprep.subr.bf16.mxu0 %v5435_v42  ;;  %v5626_v41 = vunpack.c.h.s8.bf16 %v3834_v19 }
 0x48a   : > { %6277 = vmatpush1.bf16.msra.mxu1 %v5432_v44  ;;  %6441 = vmatpush1.bf16.msra.mxu0 %v5434_v45  ;;  %v5657_v44 = vunpack.c.l.s8.bf16 %v3865_v27  ;;  %v5659_v45 = vunpack.c.l.s8.bf16 %v3867_v30  ;;  %v3961_v27 = vld [vmem:[%s11198_s0 + $0x1b08] sm:$0xff] }
 0x48b   : > { %6278 = vmatprep.subr.bf16.mxu1 %v5465_v47  ;;  %6442 = vmatprep.subr.bf16.mxu0 %v5467_v48  ;;  %v3864_v47 = vld [vmem:[%s11198_s0 + $0x1800] sm:$0xff]  ;;  %v3866_v48 = vld [vmem:[%s11198_s0 + $0x1810] sm:$0xff] }
 0x48c   : > { %v5688_v3 = vunpack.c.h.s8.bf16 %v3864_v47  ;;  %v5690_v4 = vunpack.c.h.s8.bf16 %v3866_v48 }
 0x48e   : > { %6279 = vmatpush1.bf16.msra.mxu1 %v5464_v53  ;;  %6443 = vmatpush1.bf16.msra.mxu0 %v5466_v54 }
 0x48f   : > { %6280 = vmatprep.subr.bf16.mxu1 %v5497_v55  ;;  %6444 = vmatprep.subr.bf16.mxu0 %v5499_v58  ;;  %v5656_v55 = vunpack.c.l.s8.bf16 %v3864_v47  ;;  %v5658_v58 = vunpack.c.l.s8.bf16 %v3866_v48 }
 0x492   : > { %6281 = vmatpush1.bf16.msra.mxu1 %v5496_v62  ;;  %6445 = vmatpush1.bf16.msra.mxu0 %v5498_v63  ;;  %v5691_v62 = vunpack.c.h.s8.bf16 %v3867_v30  ;;  %v3897_v63 = vld [vmem:[%s11198_s0 + $0x1908] sm:$0xff]  ;;  %v3963_v30 = vld [vmem:[%s11198_s0 + $0x1b18] sm:$0xff] }
 0x493   : > { %6282 = vmatprep.subr.bf16.mxu1 %v5529_v0  ;;  %6446 = vmatprep.subr.bf16.mxu0 %v5531_v2  ;;  %v3899_v0 = vld [vmem:[%s11198_s0 + $0x1918] sm:$0xff] }
 0x496   : > { %6283 = vmatpush1.bf16.msra.mxu1 %v5528_v5  ;;  %6447 = vmatpush1.bf16.msra.mxu0 %v5530_v10  ;;  %v5721_v5 = vunpack.c.l.s8.bf16 %v3897_v63  ;;  %v5723_v10 = vunpack.c.l.s8.bf16 %v3899_v0 }
 0x497   : > { %6284 = vmatprep.subr.bf16.mxu1 %v5561_v6  ;;  %6448 = vmatprep.subr.bf16.mxu0 %v5563_v7  ;;  %v3896_v6 = vld [vmem:[%s11198_s0 + $0x1900] sm:$0xff]  ;;  %v3898_v7 = vld [vmem:[%s11198_s0 + $0x1910] sm:$0xff] }
 0x498   : > { %v5720_v8 = vunpack.c.l.s8.bf16 %v3896_v6  ;;  %v5722_v11 = vunpack.c.l.s8.bf16 %v3898_v7  ;;  %v5752_v18 = vunpack.c.h.s8.bf16 %v3896_v6  ;;  %v5754_v19 = vunpack.c.h.s8.bf16 %v3898_v7  ;;  %v4024_v6 = vld [vmem:[%s11198_s0 + $0x1d00] sm:$0xff]  ;;  %v4026_v7 = vld [vmem:[%s11198_s0 + $0x1d10] sm:$0xff] }
 0x49a   : > { %6285 = vmatpush1.bf16.msra.mxu1 %v5560_v12  ;;  %6449 = vmatpush1.bf16.msra.mxu0 %v5562_v13  ;;  %v5753_v12 = vunpack.c.h.s8.bf16 %v3897_v63  ;;  %v5755_v13 = vunpack.c.h.s8.bf16 %v3899_v0  ;;  %v4025_v63 = vld [vmem:[%s11198_s0 + $0x1d08] sm:$0xff]  ;;  %v4027_v0 = vld [vmem:[%s11198_s0 + $0x1d18] sm:$0xff] }
 0x49b   : > { %6286 = vmatprep.subr.bf16.mxu1 %v5593_v14  ;;  %6450 = vmatprep.subr.bf16.mxu0 %v5595_v15  ;;  %v3929_v14 = vld [vmem:[%s11198_s0 + $0x1a08] sm:$0xff]  ;;  %v3931_v15 = vld [vmem:[%s11198_s0 + $0x1a18] sm:$0xff] }
 0x49c   : > { %v2999_v26 = vpop.f32.mrb[8].mxu1 }
 0x49d   : > { %v9996_v56 = vadd.f32 %v2999_v26, %v2739_v50  ;;  %v11402_v32 = vpop.f32.mrb[12].mxu0  ;;  %v3001_v35 = vpop.f32.mrb[9].mxu1  ;;  %v5785_v50 = vunpack.c.l.s8.bf16 %v3929_v14  ;;  %v5819_v26 = vunpack.c.h.s8.bf16 %v3931_v15 }
 0x49e   : > { %v9997_v36 = vadd.f32 %v3001_v35, %v2743_v20  ;;  %v3083_v37 = vpop.f32.mrb[13].mxu0  ;;  %6287 = vmatpush1.bf16.msra.mxu1 %v5592_v21  ;;  %6451 = vmatpush1.bf16.msra.mxu0 %v5594_v22  ;;  %v3003_v38 = vpop.f32.mrb[10].mxu1  ;;  %v5787_v20 = vunpack.c.l.s8.bf16 %v3931_v15  ;;  %v3928_v21 = vld [vmem:[%s11198_s0 + $0x1a00] sm:$0xff]  ;;  %v3930_v22 = vld [vmem:[%s11198_s0 + $0x1a10] sm:$0xff]  ;;  %v4059_v15 = vld [vmem:[%s11198_s0 + $0x1e18] sm:$0xff] }
 0x49f   : > { %v3092_v42 = vmax.f32 %v9996_v56, 0.0  ;;  %v9999_v33 = vadd.f32 %v3083_v37, %v2751_v23  ;;  %v3085_v39 = vpop.f32.mrb[14].mxu0  ;;  %v3004_v43 = vpop.f32.mrb[11].mxu1  ;;  %6288 = vmatprep.subr.bf16.mxu1 %v5625_v24  ;;  %6452 = vmatprep.subr.bf16.mxu0 %v5627_v25  ;;  %v5784_v23 = vunpack.c.l.s8.bf16 %v3928_v21  ;;  %v5786_v24 = vunpack.c.l.s8.bf16 %v3930_v22  ;;  %v3960_v38 = vld [vmem:[%s11198_s0 + $0x1b00] sm:$0xff] }
 0x4a0   : > { %v3093_v49 = vmax.f32 %v9997_v36, 0.0  ;;  %v3086_v52 = vpop.f32.mrb[15].mxu0  ;;  %v5817_v25 = vunpack.c.h.s8.bf16 %v3929_v14  ;;  %v5816_v56 = vunpack.c.h.s8.bf16 %v3928_v21  ;;  %v5818_v35 = vunpack.c.h.s8.bf16 %v3930_v22  ;;  %v3993_v43 = vld [vmem:[%s11198_s0 + $0x1c08] sm:$0xff]  ;;  %v4056_v21 = vld [vmem:[%s11198_s0 + $0x1e00] sm:$0xff]  ;;  %v4058_v22 = vld [vmem:[%s11198_s0 + $0x1e10] sm:$0xff] }
 0x4a1   : > { %v3095_v53 = vmax.f32 %v9999_v33, 0.0  ;;  %v11408_v9 = vpack.c.bf16 %v3092_v42, %v3092_v42  ;;  %v5849_v36 = vunpack.c.l.s8.bf16 %v3961_v27  ;;  %v5851_v37 = vunpack.c.l.s8.bf16 %v3963_v30  ;;  %v3992_v52 = vld [vmem:[%s11198_s0 + $0x1c00] sm:$0xff]  ;;  %v4057_v14 = vld [vmem:[%s11198_s0 + $0x1e08] sm:$0xff] }
 0x4a2   : > { %v11406_v54 = vpack.c.bf16 %v3093_v49, %v3093_v49  ;;  %6289 = vmatpush1.bf16.msra.mxu1 %v5624_v40  ;;  %6453 = vmatpush1.bf16.msra.mxu0 %v5626_v41  ;;  %v3962_v40 = vld [vmem:[%s11198_s0 + $0x1b10] sm:$0xff]  ;;  %v5848_v41 = vunpack.c.l.s8.bf16 %v3960_v38  ;;  %v5881_v33 = vunpack.c.h.s8.bf16 %v3961_v27  ;;  %v5883_v39 = vunpack.c.h.s8.bf16 %v3963_v30  ;;  %v4089_v30 = vld [vmem:[%s11198_s0 + $0x1f08] sm:$0xff] }
 0x4a3   : > { %6299 = vmatprep.subr.bf16.mxu1 %v5657_v44  ;;  %6463 = vmatprep.subr.bf16.mxu0 %v5659_v45  ;;  %v11414_v2 = vpack.c.bf16 %v3095_v53, %v3095_v53  ;;  %v5850_v42 = vunpack.c.l.s8.bf16 %v3962_v40  ;;  %v3995_v44 = vld [vmem:[%s11198_s0 + $0x1c18] sm:$0xff]  ;;  %v5880_v45 = vunpack.c.h.s8.bf16 %v3960_v38  ;;  %v5882_v47 = vunpack.c.h.s8.bf16 %v3962_v40  ;;  %v3994_v53 = vld [vmem:[%s11198_s0 + $0x1c10] sm:$0xff] }
 0x4a4   : > { %6290 = vmatprep.mubr.bf16.mxu1 %v11406_v54  ;;  %6454 = vmatprep.mubr.bf16.mxu0 %v11406_v54  ;;  %v5913_v48 = vunpack.c.l.s8.bf16 %v3993_v43  ;;  %v5915_v49 = vunpack.c.l.s8.bf16 %v3995_v44  ;;  %v6075_v27 = vunpack.c.h.s8.bf16 %v4059_v15  ;;  %v6105_v40 = vunpack.c.l.s8.bf16 %v4089_v30 }
 0x4a5   : > { %6291 = vmatmul.mubr.bf16.vlgmr.msra.gmra.mrb[12].mxu1 %v11408_v9  ;;  %6455 = vmatmul.mubr.bf16.vlgmr.msra.gmra.mrb[16].mxu0 %v11408_v9 }
 0x4a6   : > { %6300 = vmatpush1.bf16.msra.mxu1 %v5656_v55  ;;  %6464 = vmatpush1.bf16.msra.mxu0 %v5658_v58  ;;  %v5912_v55 = vunpack.c.l.s8.bf16 %v3992_v52  ;;  %v5914_v58 = vunpack.c.l.s8.bf16 %v3994_v53 }
 0x4a7   : > { %6331 = vmatprep.mubr.bf16.mxu1 %v11414_v2  ;;  %6495 = vmatprep.mubr.bf16.mxu0 %v11414_v2 }
 0x4a8   : > { %6301 = vmatprep.subr.bf16.mxu1 %v5689_v61  ;;  %6465 = vmatprep.subr.bf16.mxu0 %v5691_v62  ;;  %v5945_v61 = vunpack.c.h.s8.bf16 %v3993_v43  ;;  %v5947_v62 = vunpack.c.h.s8.bf16 %v3995_v44 }
 0x4aa   : > { %6302 = vmatpush1.bf16.msra.mxu1 %v5688_v3  ;;  %6466 = vmatpush1.bf16.msra.mxu0 %v5690_v4  ;;  %v5944_v3 = vunpack.c.h.s8.bf16 %v3992_v52  ;;  %v5946_v4 = vunpack.c.h.s8.bf16 %v3994_v53 }
 0x4ab   : > { %6303 = vmatprep.subr.bf16.mxu1 %v5721_v5  ;;  %6467 = vmatprep.subr.bf16.mxu0 %v5723_v10  ;;  %v5977_v5 = vunpack.c.l.s8.bf16 %v4025_v63  ;;  %v5979_v10 = vunpack.c.l.s8.bf16 %v4027_v0 }
 0x4ae   : > { %6304 = vmatpush1.bf16.msra.mxu1 %v5720_v8  ;;  %6468 = vmatpush1.bf16.msra.mxu0 %v5722_v11  ;;  %v5976_v8 = vunpack.c.l.s8.bf16 %v4024_v6  ;;  %v5978_v11 = vunpack.c.l.s8.bf16 %v4026_v7 }
 0x4af   : > { %6305 = vmatprep.subr.bf16.mxu1 %v5753_v12  ;;  %6469 = vmatprep.subr.bf16.mxu0 %v5755_v13  ;;  %v6009_v12 = vunpack.c.h.s8.bf16 %v4025_v63  ;;  %v6011_v13 = vunpack.c.h.s8.bf16 %v4027_v0 }
 0x4b2   : > { %6306 = vmatpush1.bf16.msra.mxu1 %v5752_v18  ;;  %6470 = vmatpush1.bf16.msra.mxu0 %v5754_v19  ;;  %v6008_v18 = vunpack.c.h.s8.bf16 %v4024_v6  ;;  %v6010_v19 = vunpack.c.h.s8.bf16 %v4026_v7  ;;  %v3135_v6 = vld [vmem:[%s11198_s0 + $0x138] sm:$0xff] }
 0x4b3   : > { %6307 = vmatprep.subr.bf16.mxu1 %v5785_v50  ;;  %6471 = vmatprep.subr.bf16.mxu0 %v5787_v20  ;;  %v6041_v50 = vunpack.c.l.s8.bf16 %v4057_v14  ;;  %v6043_v20 = vunpack.c.l.s8.bf16 %v4059_v15 }
 0x4b6   : > { %6308 = vmatpush1.bf16.msra.mxu1 %v5784_v23  ;;  %6472 = vmatpush1.bf16.msra.mxu0 %v5786_v24  ;;  %v6040_v23 = vunpack.c.l.s8.bf16 %v4056_v21  ;;  %v6042_v24 = vunpack.c.l.s8.bf16 %v4058_v22 }
 0x4b7   : > { %6309 = vmatprep.subr.bf16.mxu1 %v5817_v25  ;;  %6473 = vmatprep.subr.bf16.mxu0 %v5819_v26  ;;  %v11443_v25 = vsub.s32 6, %v11207_v28  ;;  %v6073_v26 = vunpack.c.h.s8.bf16 %v4057_v14  ;;  %v3134_v14 = vld [vmem:[%s11198_s0 + $0x130] sm:$0xff] }
 0x4ba   : > { %6310 = vmatpush1.bf16.msra.mxu1 %v5816_v56  ;;  %6474 = vmatpush1.bf16.msra.mxu0 %v5818_v35  ;;  %v4091_v56 = vld [vmem:[%s11198_s0 + $0x1f18] sm:$0xff]  ;;  %v6072_v35 = vunpack.c.h.s8.bf16 %v4056_v21 }
 0x4bb   : > { %6311 = vmatprep.subr.bf16.mxu1 %v5849_v36  ;;  %6475 = vmatprep.subr.bf16.mxu0 %v5851_v37  ;;  %v6074_v36 = vunpack.c.h.s8.bf16 %v4058_v22  ;;  %v10454_v37 = vld [vmem:[#allocation11] sm:$0xff] }
 0x4bc   : > { %v2747_v38 = vrot.slane %v10454_v37, %v11443_v25  ;;  %v3167_v21 = vld [vmem:[%s11198_s0 + $0x238] sm:$0xff] }
 0x4bd   : > { %v4287_v37 = vunpack.c.h.s8.bf16 %v3167_v21 }
 0x4be   : > { %6312 = vmatpush1.bf16.msra.mxu1 %v5848_v41  ;;  %6476 = vmatpush1.bf16.msra.mxu0 %v5850_v42  ;;  %v6107_v41 = vunpack.c.l.s8.bf16 %v4091_v56  ;;  %v4088_v42 = vld [vmem:[%s11198_s0 + $0x1f00] sm:$0xff]  ;;  %v9998_v44 = vadd.f32 %v11402_v32, %v2747_v38  ;;  %v3197_v38 = vld [vmem:[%s11198_s0 + $0x328] sm:$0xff] }
 0x4bf   : > { %6313 = vmatprep.subr.bf16.mxu1 %v5881_v33  ;;  %6477 = vmatprep.subr.bf16.mxu0 %v5883_v39  ;;  %v4090_v33 = vld [vmem:[%s11198_s0 + $0x1f10] sm:$0xff]  ;;  %v6104_v39 = vunpack.c.l.s8.bf16 %v4088_v42  ;;  %v6136_v52 = vunpack.c.h.s8.bf16 %v4088_v42  ;;  %v3100_v32 = vld [vmem:[%s11198_s0 + $0x20] sm:$0xff] }
 0x4c0   : > { %v6106_v43 = vunpack.c.l.s8.bf16 %v4090_v33  ;;  %v6138_v53 = vunpack.c.h.s8.bf16 %v4090_v33  ;;  %v4124_v63 = vunpack.c.l.s8.bf16 %v3100_v32  ;;  %v4156_v7 = vunpack.c.h.s8.bf16 %v3100_v32  ;;  %v3228_v32 = vld [vmem:[%s11198_s0 + $0x420] sm:$0xff] }
 0x4c1   : > { %v4317_v33 = vunpack.c.l.s8.bf16 %v3197_v38 }
 0x4c2   : > { %6314 = vmatpush1.bf16.msra.mxu1 %v5880_v45  ;;  %6478 = vmatpush1.bf16.msra.mxu0 %v5882_v47  ;;  %v6137_v45 = vunpack.c.h.s8.bf16 %v4089_v30  ;;  %v6139_v47 = vunpack.c.h.s8.bf16 %v4091_v56  ;;  %v3166_v30 = vld [vmem:[%s11198_s0 + $0x230] sm:$0xff] }
 0x4c3   : > { %6315 = vmatprep.subr.bf16.mxu1 %v5913_v48  ;;  %6479 = vmatprep.subr.bf16.mxu0 %v5915_v49  ;;  %v3101_v48 = vld [vmem:[%s11198_s0 + $0x28] sm:$0xff]  ;;  %v3103_v49 = vld [vmem:[%s11198_s0 + $0x38] sm:$0xff]  ;;  %v4286_v42 = vunpack.c.h.s8.bf16 %v3166_v30 }
 0x4c6   : > { %6316 = vmatpush1.bf16.msra.mxu1 %v5912_v55  ;;  %6480 = vmatpush1.bf16.msra.mxu0 %v5914_v58  ;;  %v3094_v55 = vmax.f32 %v9998_v44, 0.0  ;;  %v4125_v58 = vunpack.c.l.s8.bf16 %v3101_v48  ;;  %v3198_v44 = vld [vmem:[%s11198_s0 + $0x330] sm:$0xff] }
 0x4c7   : > { %6317 = vmatprep.subr.bf16.mxu1 %v5945_v61  ;;  %6481 = vmatprep.subr.bf16.mxu0 %v5947_v62  ;;  %v4127_v61 = vunpack.c.l.s8.bf16 %v3103_v49  ;;  %v3102_v62 = vld [vmem:[%s11198_s0 + $0x30] sm:$0xff] }
 0x4c8   : > { %v11455_v0 = vpack.c.bf16 %v3094_v55, %v3094_v55 }
 0x4ca   : > { %6318 = vmatpush1.bf16.msra.mxu1 %v5944_v3  ;;  %6482 = vmatpush1.bf16.msra.mxu0 %v5946_v4  ;;  %v4126_v3 = vunpack.c.l.s8.bf16 %v3102_v62  ;;  %v4157_v4 = vunpack.c.h.s8.bf16 %v3101_v48  ;;  %v4349_v48 = vunpack.c.h.s8.bf16 %v3197_v38 }
 0x4cb   : > { %6319 = vmatprep.subr.bf16.mxu1 %v5977_v5  ;;  %6483 = vmatprep.subr.bf16.mxu0 %v5979_v10  ;;  %v4159_v5 = vunpack.c.h.s8.bf16 %v3103_v49  ;;  %v3133_v10 = vld [vmem:[%s11198_s0 + $0x128] sm:$0xff] }
 0x4ce   : > { %6320 = vmatpush1.bf16.msra.mxu1 %v5976_v8  ;;  %6484 = vmatpush1.bf16.msra.mxu0 %v5978_v11  ;;  %v4158_v8 = vunpack.c.h.s8.bf16 %v3102_v62  ;;  %v4189_v11 = vunpack.c.l.s8.bf16 %v3133_v10 }
 0x4cf   : > { %6321 = vmatprep.subr.bf16.mxu1 %v6009_v12  ;;  %6485 = vmatprep.subr.bf16.mxu0 %v6011_v13  ;;  %v3132_v12 = vld [vmem:[%s11198_s0 + $0x120] sm:$0xff]  ;;  %v4191_v13 = vunpack.c.l.s8.bf16 %v3135_v6 }
 0x4d0   : > { %v4188_v15 = vunpack.c.l.s8.bf16 %v3132_v12  ;;  %v4220_v22 = vunpack.c.h.s8.bf16 %v3132_v12 }
 0x4d2   : > { %6322 = vmatpush1.bf16.msra.mxu1 %v6008_v18  ;;  %6486 = vmatpush1.bf16.msra.mxu0 %v6010_v19  ;;  %v4190_v18 = vunpack.c.l.s8.bf16 %v3134_v14  ;;  %v4221_v19 = vunpack.c.h.s8.bf16 %v3133_v10 }
 0x4d3   : > { %6323 = vmatprep.subr.bf16.mxu1 %v6041_v50  ;;  %6487 = vmatprep.subr.bf16.mxu0 %v6043_v20  ;;  %v4223_v50 = vunpack.c.h.s8.bf16 %v3135_v6  ;;  %v3165_v20 = vld [vmem:[%s11198_s0 + $0x228] sm:$0xff] }
 0x4d4   : > { %v3261_v6 = vld [vmem:[%s11198_s0 + $0x528] sm:$0xff] }
 0x4d5   : > { %v4445_v12 = vunpack.c.l.s8.bf16 %v3261_v6 }
 0x4d6   : > { %6324 = vmatpush1.bf16.msra.mxu1 %v6040_v23  ;;  %6488 = vmatpush1.bf16.msra.mxu0 %v6042_v24  ;;  %v4222_v23 = vunpack.c.h.s8.bf16 %v3134_v14  ;;  %v4253_v24 = vunpack.c.l.s8.bf16 %v3165_v20 }
 0x4d7   : > { %6325 = vmatprep.subr.bf16.mxu1 %v6073_v26  ;;  %6489 = vmatprep.subr.bf16.mxu0 %v6075_v27  ;;  %v3164_v26 = vld [vmem:[%s11198_s0 + $0x220] sm:$0xff]  ;;  %v4255_v27 = vunpack.c.l.s8.bf16 %v3167_v21  ;;  %v3293_v21 = vld [vmem:[%s11198_s0 + $0x628] sm:$0xff] }
 0x4d8   : > { %v4252_v56 = vunpack.c.l.s8.bf16 %v3164_v26 }
 0x4da   : > { %6326 = vmatpush1.bf16.msra.mxu1 %v6072_v35  ;;  %6490 = vmatpush1.bf16.msra.mxu0 %v6074_v36  ;;  %v4254_v35 = vunpack.c.l.s8.bf16 %v3166_v30  ;;  %v4285_v36 = vunpack.c.h.s8.bf16 %v3165_v20 }
 0x4db   : > { %6327 = vmatprep.subr.bf16.mxu1 %v6105_v40  ;;  %6491 = vmatprep.subr.bf16.mxu0 %v6107_v41  ;;  %v3199_v40 = vld [vmem:[%s11198_s0 + $0x338] sm:$0xff]  ;;  %v4284_v41 = vunpack.c.h.s8.bf16 %v3164_v26  ;;  %v4509_v26 = vunpack.c.l.s8.bf16 %v3293_v21 }
 0x4dc   : > { %v4351_v49 = vunpack.c.h.s8.bf16 %v3199_v40 }
 0x4de   : > { %6328 = vmatpush1.bf16.msra.mxu1 %v6104_v39  ;;  %6492 = vmatpush1.bf16.msra.mxu0 %v6106_v43  ;;  %v3196_v39 = vld [vmem:[%s11198_s0 + $0x320] sm:$0xff]  ;;  %v4319_v43 = vunpack.c.l.s8.bf16 %v3199_v40  ;;  %v3325_v40 = vld [vmem:[%s11198_s0 + $0x728] sm:$0xff] }
 0x4df   : > { %6329 = vmatprep.subr.bf16.mxu1 %v6137_v45  ;;  %6493 = vmatprep.subr.bf16.mxu0 %v6139_v47  ;;  %v4316_v45 = vunpack.c.l.s8.bf16 %v3196_v39  ;;  %v4318_v47 = vunpack.c.l.s8.bf16 %v3198_v44  ;;  %v4348_v55 = vunpack.c.h.s8.bf16 %v3196_v39  ;;  %v4573_v39 = vunpack.c.l.s8.bf16 %v3325_v40 }
 0x4e2   : > { %6330 = vmatpush1.bf16.msra.mxu1 %v6136_v52  ;;  %6494 = vmatpush1.bf16.msra.mxu0 %v6138_v53  ;;  %v3229_v52 = vld [vmem:[%s11198_s0 + $0x428] sm:$0xff]  ;;  %v3231_v53 = vld [vmem:[%s11198_s0 + $0x438] sm:$0xff] }
 0x4e3   : > { %6504 = vmatprep.subr.bf16.mxu1 %v4125_v58  ;;  %6668 = vmatprep.subr.bf16.mxu0 %v4127_v61  ;;  %v4350_v58 = vunpack.c.h.s8.bf16 %v3198_v44  ;;  %v4381_v61 = vunpack.c.l.s8.bf16 %v3229_v52  ;;  %v4383_v62 = vunpack.c.l.s8.bf16 %v3231_v53  ;;  %v4415_v10 = vunpack.c.h.s8.bf16 %v3231_v53  ;;  %v3357_v53 = vld [vmem:[%s11198_s0 + $0x828] sm:$0xff] }
 0x4e5   : > { %6332 = vmatmul.mubr.bf16.vlgmr.msra.gmra.mrb[12].mxu1 %v11455_v0  ;;  %6496 = vmatmul.mubr.bf16.vlgmr.msra.gmra.mrb[16].mxu0 %v11455_v0 }
 0x4e6   : > { %6505 = vmatpush1.bf16.msra.mxu1 %v4124_v63  ;;  %6536 = vmatprep.mubr.bf16.mxu1 %v11306_v57  ;;  %v3230_v63 = vld [vmem:[%s11198_s0 + $0x430] sm:$0xff] }
 0x4e7   : > { %6669 = vmatpush1.bf16.msra.mxu0 %v4126_v3  ;;  %6700 = vmatprep.mubr.bf16.mxu0 %v11306_v57  ;;  %v4380_v3 = vunpack.c.l.s8.bf16 %v3228_v32 }
 0x4e8   : > { %6506 = vmatprep.subr.bf16.mxu1 %v4157_v4  ;;  %6670 = vmatprep.subr.bf16.mxu0 %v4159_v5  ;;  %v4382_v4 = vunpack.c.l.s8.bf16 %v3230_v63  ;;  %v4413_v5 = vunpack.c.h.s8.bf16 %v3229_v52 }
 0x4ea   : > { %6507 = vmatpush1.bf16.msra.mxu1 %v4156_v7  ;;  %v3263_v7 = vld [vmem:[%s11198_s0 + $0x538] sm:$0xff] }
 0x4eb   : > { %6671 = vmatpush1.bf16.msra.mxu0 %v4158_v8  ;;  %6508 = vmatprep.subr.bf16.mxu1 %v4189_v11  ;;  %v4412_v8 = vunpack.c.h.s8.bf16 %v3228_v32  ;;  %v4414_v11 = vunpack.c.h.s8.bf16 %v3230_v63  ;;  %v4447_v14 = vunpack.c.l.s8.bf16 %v3263_v7  ;;  %v4479_v20 = vunpack.c.h.s8.bf16 %v3263_v7 }
 0x4ec   : > { %6672 = vmatprep.subr.bf16.mxu0 %v4191_v13  ;;  %v3260_v13 = vld [vmem:[%s11198_s0 + $0x520] sm:$0xff]  ;;  %v4637_v32 = vunpack.c.l.s8.bf16 %v3357_v53 }
 0x4ee   : > { %6509 = vmatpush1.bf16.msra.mxu1 %v4188_v15  ;;  %v3262_v15 = vld [vmem:[%s11198_s0 + $0x530] sm:$0xff] }
 0x4ef   : > { %6673 = vmatpush1.bf16.msra.mxu0 %v4190_v18  ;;  %6510 = vmatprep.subr.bf16.mxu1 %v4221_v19  ;;  %v4444_v18 = vunpack.c.l.s8.bf16 %v3260_v13  ;;  %v4446_v19 = vunpack.c.l.s8.bf16 %v3262_v15 }
 0x4f0   : > { %6674 = vmatprep.subr.bf16.mxu0 %v4223_v50  ;;  %v4477_v50 = vunpack.c.h.s8.bf16 %v3261_v6  ;;  %v3389_v6 = vld [vmem:[%s11198_s0 + $0x928] sm:$0xff] }
 0x4f2   : > { %6511 = vmatpush1.bf16.msra.mxu1 %v4220_v22  ;;  %v3295_v22 = vld [vmem:[%s11198_s0 + $0x638] sm:$0xff] }
 0x4f3   : > { %6675 = vmatpush1.bf16.msra.mxu0 %v4222_v23  ;;  %6512 = vmatprep.subr.bf16.mxu1 %v4253_v24  ;;  %v4476_v23 = vunpack.c.h.s8.bf16 %v3260_v13  ;;  %v4478_v24 = vunpack.c.h.s8.bf16 %v3262_v15  ;;  %v4511_v30 = vunpack.c.l.s8.bf16 %v3295_v22  ;;  %v4543_v38 = vunpack.c.h.s8.bf16 %v3295_v22  ;;  %v3421_v22 = vld [vmem:[%s11198_s0 + $0xa28] sm:$0xff] }
 0x4f4   : > { %6676 = vmatprep.subr.bf16.mxu0 %v4255_v27  ;;  %v3292_v27 = vld [vmem:[%s11198_s0 + $0x620] sm:$0xff]  ;;  %v4701_v13 = vunpack.c.l.s8.bf16 %v3389_v6 }
 0x4f6   : > { %6513 = vmatpush1.bf16.msra.mxu1 %v4252_v56  ;;  %v3294_v56 = vld [vmem:[%s11198_s0 + $0x630] sm:$0xff] }
 0x4f7   : > { %6677 = vmatpush1.bf16.msra.mxu0 %v4254_v35  ;;  %6514 = vmatprep.subr.bf16.mxu1 %v4285_v36  ;;  %v4508_v35 = vunpack.c.l.s8.bf16 %v3292_v27  ;;  %v4510_v36 = vunpack.c.l.s8.bf16 %v3294_v56 }
 0x4f8   : > { %6678 = vmatprep.subr.bf16.mxu0 %v4287_v37  ;;  %v4541_v37 = vunpack.c.h.s8.bf16 %v3293_v21 }
 0x4fa   : > { %6515 = vmatpush1.bf16.msra.mxu1 %v4284_v41  ;;  %v3327_v41 = vld [vmem:[%s11198_s0 + $0x738] sm:$0xff] }
 0x4fb   : > { %6679 = vmatpush1.bf16.msra.mxu0 %v4286_v42  ;;  %6516 = vmatprep.subr.bf16.mxu1 %v4317_v33  ;;  %v4540_v42 = vunpack.c.h.s8.bf16 %v3292_v27  ;;  %v4542_v33 = vunpack.c.h.s8.bf16 %v3294_v56  ;;  %v4575_v44 = vunpack.c.l.s8.bf16 %v3327_v41  ;;  %v4607_v52 = vunpack.c.h.s8.bf16 %v3327_v41  ;;  %v3453_v41 = vld [vmem:[%s11198_s0 + $0xb28] sm:$0xff] }
 0x4fc   : > { %6680 = vmatprep.subr.bf16.mxu0 %v4319_v43  ;;  %v3324_v43 = vld [vmem:[%s11198_s0 + $0x720] sm:$0xff]  ;;  %v4765_v27 = vunpack.c.l.s8.bf16 %v3421_v22 }
 0x4fe   : > { %6517 = vmatpush1.bf16.msra.mxu1 %v4316_v45  ;;  %v3326_v45 = vld [vmem:[%s11198_s0 + $0x730] sm:$0xff] }
 0x4ff   : > { %6681 = vmatpush1.bf16.msra.mxu0 %v4318_v47  ;;  %6518 = vmatprep.subr.bf16.mxu1 %v4349_v48  ;;  %v4572_v47 = vunpack.c.l.s8.bf16 %v3324_v43  ;;  %v4574_v48 = vunpack.c.l.s8.bf16 %v3326_v45 }
 0x500   : > { %6682 = vmatprep.subr.bf16.mxu0 %v4351_v49  ;;  %v4605_v49 = vunpack.c.h.s8.bf16 %v3325_v40 }
 0x502   : > { %6519 = vmatpush1.bf16.msra.mxu1 %v4348_v55  ;;  %v3359_v55 = vld [vmem:[%s11198_s0 + $0x838] sm:$0xff] }
 0x503   : > { %6683 = vmatpush1.bf16.msra.mxu0 %v4350_v58  ;;  %6520 = vmatprep.subr.bf16.mxu1 %v4381_v61  ;;  %v4604_v58 = vunpack.c.h.s8.bf16 %v3324_v43  ;;  %v4606_v61 = vunpack.c.h.s8.bf16 %v3326_v45  ;;  %v4639_v63 = vunpack.c.l.s8.bf16 %v3359_v55  ;;  %v4671_v7 = vunpack.c.h.s8.bf16 %v3359_v55  ;;  %v3485_v55 = vld [vmem:[%s11198_s0 + $0xc28] sm:$0xff] }
 0x504   : > { %6684 = vmatprep.subr.bf16.mxu0 %v4383_v62  ;;  %v3356_v62 = vld [vmem:[%s11198_s0 + $0x820] sm:$0xff]  ;;  %v4829_v43 = vunpack.c.l.s8.bf16 %v3453_v41 }
 0x506   : > { %6521 = vmatpush1.bf16.msra.mxu1 %v4380_v3  ;;  %v3358_v3 = vld [vmem:[%s11198_s0 + $0x830] sm:$0xff] }
 0x507   : > { %6685 = vmatpush1.bf16.msra.mxu0 %v4382_v4  ;;  %6522 = vmatprep.subr.bf16.mxu1 %v4413_v5  ;;  %v4636_v4 = vunpack.c.l.s8.bf16 %v3356_v62  ;;  %v4638_v5 = vunpack.c.l.s8.bf16 %v3358_v3 }
 0x508   : > { %6686 = vmatprep.subr.bf16.mxu0 %v4415_v10  ;;  %v4669_v10 = vunpack.c.h.s8.bf16 %v3357_v53 }
 0x50a   : > { %6523 = vmatpush1.bf16.msra.mxu1 %v4412_v8  ;;  %v3391_v8 = vld [vmem:[%s11198_s0 + $0x938] sm:$0xff] }
 0x50b   : > { %6687 = vmatpush1.bf16.msra.mxu0 %v4414_v11  ;;  %6524 = vmatprep.subr.bf16.mxu1 %v4445_v12  ;;  %v4668_v11 = vunpack.c.h.s8.bf16 %v3356_v62  ;;  %v4670_v12 = vunpack.c.h.s8.bf16 %v3358_v3  ;;  %v4703_v15 = vunpack.c.l.s8.bf16 %v3391_v8  ;;  %v4735_v21 = vunpack.c.h.s8.bf16 %v3391_v8  ;;  %v3517_v8 = vld [vmem:[%s11198_s0 + $0xd28] sm:$0xff] }
 0x50c   : > { %6688 = vmatprep.subr.bf16.mxu0 %v4447_v14  ;;  %v3388_v14 = vld [vmem:[%s11198_s0 + $0x920] sm:$0xff]  ;;  %v4893_v62 = vunpack.c.l.s8.bf16 %v3485_v55 }
 0x50e   : > { %6525 = vmatpush1.bf16.msra.mxu1 %v4444_v18  ;;  %v3390_v18 = vld [vmem:[%s11198_s0 + $0x930] sm:$0xff] }
 0x50f   : > { %6689 = vmatpush1.bf16.msra.mxu0 %v4446_v19  ;;  %6526 = vmatprep.subr.bf16.mxu1 %v4477_v50  ;;  %v4700_v19 = vunpack.c.l.s8.bf16 %v3388_v14  ;;  %v4702_v50 = vunpack.c.l.s8.bf16 %v3390_v18 }
 0x510   : > { %6690 = vmatprep.subr.bf16.mxu0 %v4479_v20  ;;  %v4733_v20 = vunpack.c.h.s8.bf16 %v3389_v6  ;;  %v4925_v6 = vunpack.c.h.s8.bf16 %v3485_v55 }
 0x512   : > { %6527 = vmatpush1.bf16.msra.mxu1 %v4476_v23  ;;  %v3423_v23 = vld [vmem:[%s11198_s0 + $0xa38] sm:$0xff] }
 0x513   : > { %6691 = vmatpush1.bf16.msra.mxu0 %v4478_v24  ;;  %6528 = vmatprep.subr.bf16.mxu1 %v4509_v26  ;;  %v4732_v24 = vunpack.c.h.s8.bf16 %v3388_v14  ;;  %v4734_v26 = vunpack.c.h.s8.bf16 %v3390_v18  ;;  %v4767_v56 = vunpack.c.l.s8.bf16 %v3423_v23  ;;  %v4799_v40 = vunpack.c.h.s8.bf16 %v3423_v23  ;;  %v3549_v23 = vld [vmem:[%s11198_s0 + $0xe28] sm:$0xff] }
 0x514   : > { %6692 = vmatprep.subr.bf16.mxu0 %v4511_v30  ;;  %v3420_v30 = vld [vmem:[%s11198_s0 + $0xa20] sm:$0xff]  ;;  %v4957_v14 = vunpack.c.l.s8.bf16 %v3517_v8 }
 0x516   : > { %6529 = vmatpush1.bf16.msra.mxu1 %v4508_v35  ;;  %v3422_v35 = vld [vmem:[%s11198_s0 + $0xa30] sm:$0xff] }
 0x517   : > { %6693 = vmatpush1.bf16.msra.mxu0 %v4510_v36  ;;  %6530 = vmatprep.subr.bf16.mxu1 %v4541_v37  ;;  %v4764_v36 = vunpack.c.l.s8.bf16 %v3420_v30  ;;  %v4766_v37 = vunpack.c.l.s8.bf16 %v3422_v35 }
 0x518   : > { %6694 = vmatprep.subr.bf16.mxu0 %v4543_v38  ;;  %v4797_v38 = vunpack.c.h.s8.bf16 %v3421_v22 }
 0x51a   : > { %6531 = vmatpush1.bf16.msra.mxu1 %v4540_v42  ;;  %v3455_v42 = vld [vmem:[%s11198_s0 + $0xb38] sm:$0xff] }
 0x51b   : > { %6695 = vmatpush1.bf16.msra.mxu0 %v4542_v33  ;;  %6532 = vmatprep.subr.bf16.mxu1 %v4573_v39  ;;  %v4796_v33 = vunpack.c.h.s8.bf16 %v3420_v30  ;;  %v4798_v39 = vunpack.c.h.s8.bf16 %v3422_v35  ;;  %v4831_v45 = vunpack.c.l.s8.bf16 %v3455_v42  ;;  %v4863_v53 = vunpack.c.h.s8.bf16 %v3455_v42  ;;  %v3581_v42 = vld [vmem:[%s11198_s0 + $0xf28] sm:$0xff] }
 0x51c   : > { %6696 = vmatprep.subr.bf16.mxu0 %v4575_v44  ;;  %v3452_v44 = vld [vmem:[%s11198_s0 + $0xb20] sm:$0xff]  ;;  %v5021_v30 = vunpack.c.l.s8.bf16 %v3549_v23 }
 0x51e   : > { %6533 = vmatpush1.bf16.msra.mxu1 %v4572_v47  ;;  %v3454_v47 = vld [vmem:[%s11198_s0 + $0xb30] sm:$0xff] }
 0x51f   : > { %6697 = vmatpush1.bf16.msra.mxu0 %v4574_v48  ;;  %6534 = vmatprep.subr.bf16.mxu1 %v4605_v49  ;;  %v4828_v48 = vunpack.c.l.s8.bf16 %v3452_v44  ;;  %v4830_v49 = vunpack.c.l.s8.bf16 %v3454_v47 }
 0x520   : > { %6698 = vmatprep.subr.bf16.mxu0 %v4607_v52  ;;  %v4861_v52 = vunpack.c.h.s8.bf16 %v3453_v41 }
 0x522   : > { %6535 = vmatpush1.bf16.msra.mxu1 %v4604_v58  ;;  %v3487_v58 = vld [vmem:[%s11198_s0 + $0xc38] sm:$0xff] }
 0x523   : > { %6699 = vmatpush1.bf16.msra.mxu0 %v4606_v61  ;;  %6545 = vmatprep.subr.bf16.mxu1 %v4637_v32  ;;  %v4860_v61 = vunpack.c.h.s8.bf16 %v3452_v44  ;;  %v4862_v32 = vunpack.c.h.s8.bf16 %v3454_v47  ;;  %v4895_v3 = vunpack.c.l.s8.bf16 %v3487_v58  ;;  %v5085_v44 = vunpack.c.l.s8.bf16 %v3581_v42 }
 0x524   : > { %6709 = vmatprep.subr.bf16.mxu0 %v4639_v63  ;;  %v3484_v63 = vld [vmem:[%s11198_s0 + $0xc20] sm:$0xff] }
 0x525   : > { %6537 = vmatmul.mubr.bf16.vlgmr.msra.gmra.mrb[16].mxu1 %v11308_v60 }
 0x526   : > { %6701 = vmatmul.mubr.bf16.vlgmr.msra.gmra.mrb[20].mxu0 %v11308_v60  ;;  %6546 = vmatpush1.bf16.msra.mxu1 %v4636_v4  ;;  %v3486_v4 = vld [vmem:[%s11198_s0 + $0xc30] sm:$0xff] }
 0x527   : > { %6577 = vmatprep.mubr.bf16.mxu1 %v11314_v1  ;;  %6710 = vmatpush1.bf16.msra.mxu0 %v4638_v5  ;;  %v4892_v5 = vunpack.c.l.s8.bf16 %v3484_v63 }
 0x528   : > { %6741 = vmatprep.mubr.bf16.mxu0 %v11314_v1  ;;  %6547 = vmatprep.subr.bf16.mxu1 %v4669_v10  ;;  %v4894_v10 = vunpack.c.l.s8.bf16 %v3486_v4 }
 0x529   : > { %6711 = vmatprep.subr.bf16.mxu0 %v4671_v7  ;;  %v4927_v7 = vunpack.c.h.s8.bf16 %v3487_v58  ;;  %v3613_v58 = vld [vmem:[%s11198_s0 + $0x1028] sm:$0xff] }
 0x52a   : > { %6548 = vmatpush1.bf16.msra.mxu1 %v4668_v11  ;;  %v3519_v11 = vld [vmem:[%s11198_s0 + $0xd38] sm:$0xff] }
 0x52b   : > { %6712 = vmatpush1.bf16.msra.mxu0 %v4670_v12  ;;  %6549 = vmatprep.subr.bf16.mxu1 %v4701_v13  ;;  %v4924_v12 = vunpack.c.h.s8.bf16 %v3484_v63  ;;  %v4926_v13 = vunpack.c.h.s8.bf16 %v3486_v4  ;;  %v4959_v18 = vunpack.c.l.s8.bf16 %v3519_v11  ;;  %v4991_v22 = vunpack.c.h.s8.bf16 %v3519_v11 }
 0x52c   : > { %6713 = vmatprep.subr.bf16.mxu0 %v4703_v15  ;;  %v3516_v15 = vld [vmem:[%s11198_s0 + $0xd20] sm:$0xff]  ;;  %v5149_v63 = vunpack.c.l.s8.bf16 %v3613_v58 }
 0x52e   : > { %6550 = vmatpush1.bf16.msra.mxu1 %v4700_v19  ;;  %v3518_v19 = vld [vmem:[%s11198_s0 + $0xd30] sm:$0xff] }
 0x52f   : > { %6714 = vmatpush1.bf16.msra.mxu0 %v4702_v50  ;;  %6551 = vmatprep.subr.bf16.mxu1 %v4733_v20  ;;  %v4956_v50 = vunpack.c.l.s8.bf16 %v3516_v15  ;;  %v4958_v20 = vunpack.c.l.s8.bf16 %v3518_v19 }
 0x530   : > { %6715 = vmatprep.subr.bf16.mxu0 %v4735_v21  ;;  %v4989_v21 = vunpack.c.h.s8.bf16 %v3517_v8  ;;  %v3645_v8 = vld [vmem:[%s11198_s0 + $0x1128] sm:$0xff] }
 0x532   : > { %6552 = vmatpush1.bf16.msra.mxu1 %v4732_v24  ;;  %v3551_v24 = vld [vmem:[%s11198_s0 + $0xe38] sm:$0xff] }
 0x533   : > { %6716 = vmatpush1.bf16.msra.mxu0 %v4734_v26  ;;  %6553 = vmatprep.subr.bf16.mxu1 %v4765_v27  ;;  %v4988_v26 = vunpack.c.h.s8.bf16 %v3516_v15  ;;  %v4990_v27 = vunpack.c.h.s8.bf16 %v3518_v19  ;;  %v5023_v35 = vunpack.c.l.s8.bf16 %v3551_v24  ;;  %v5055_v41 = vunpack.c.h.s8.bf16 %v3551_v24  ;;  %v3677_v24 = vld [vmem:[%s11198_s0 + $0x1228] sm:$0xff] }
 0x534   : > { %6717 = vmatprep.subr.bf16.mxu0 %v4767_v56  ;;  %v3548_v56 = vld [vmem:[%s11198_s0 + $0xe20] sm:$0xff]  ;;  %v5213_v15 = vunpack.c.l.s8.bf16 %v3645_v8 }
 0x536   : > { %6554 = vmatpush1.bf16.msra.mxu1 %v4764_v36  ;;  %v3550_v36 = vld [vmem:[%s11198_s0 + $0xe30] sm:$0xff] }
 0x537   : > { %6718 = vmatpush1.bf16.msra.mxu0 %v4766_v37  ;;  %6555 = vmatprep.subr.bf16.mxu1 %v4797_v38  ;;  %v5020_v37 = vunpack.c.l.s8.bf16 %v3548_v56  ;;  %v5022_v38 = vunpack.c.l.s8.bf16 %v3550_v36 }
 0x538   : > { %6719 = vmatprep.subr.bf16.mxu0 %v4799_v40  ;;  %v5053_v40 = vunpack.c.h.s8.bf16 %v3549_v23 }
 0x53a   : > { %6556 = vmatpush1.bf16.msra.mxu1 %v4796_v33  ;;  %v3583_v33 = vld [vmem:[%s11198_s0 + $0xf38] sm:$0xff] }
 0x53b   : > { %6720 = vmatpush1.bf16.msra.mxu0 %v4798_v39  ;;  %6557 = vmatprep.subr.bf16.mxu1 %v4829_v43  ;;  %v5052_v39 = vunpack.c.h.s8.bf16 %v3548_v56  ;;  %v5054_v43 = vunpack.c.h.s8.bf16 %v3550_v36  ;;  %v5087_v47 = vunpack.c.l.s8.bf16 %v3583_v33  ;;  %v5119_v55 = vunpack.c.h.s8.bf16 %v3583_v33  ;;  %v3709_v33 = vld [vmem:[%s11198_s0 + $0x1328] sm:$0xff] }
 0x53c   : > { %6721 = vmatprep.subr.bf16.mxu0 %v4831_v45  ;;  %v3580_v45 = vld [vmem:[%s11198_s0 + $0xf20] sm:$0xff]  ;;  %v5277_v56 = vunpack.c.l.s8.bf16 %v3677_v24 }
 0x53e   : > { %6558 = vmatpush1.bf16.msra.mxu1 %v4828_v48  ;;  %v3582_v48 = vld [vmem:[%s11198_s0 + $0xf30] sm:$0xff] }
 0x53f   : > { %6722 = vmatpush1.bf16.msra.mxu0 %v4830_v49  ;;  %6559 = vmatprep.subr.bf16.mxu1 %v4861_v52  ;;  %v5084_v49 = vunpack.c.l.s8.bf16 %v3580_v45  ;;  %v5086_v52 = vunpack.c.l.s8.bf16 %v3582_v48 }
 0x540   : > { %6723 = vmatprep.subr.bf16.mxu0 %v4863_v53  ;;  %v5117_v53 = vunpack.c.h.s8.bf16 %v3581_v42 }
 0x542   : > { %6560 = vmatpush1.bf16.msra.mxu1 %v4860_v61  ;;  %v3615_v61 = vld [vmem:[%s11198_s0 + $0x1038] sm:$0xff] }
 0x543   : > { %6724 = vmatpush1.bf16.msra.mxu0 %v4862_v32  ;;  %6561 = vmatprep.subr.bf16.mxu1 %v4893_v62  ;;  %v5116_v32 = vunpack.c.h.s8.bf16 %v3580_v45  ;;  %v5118_v62 = vunpack.c.h.s8.bf16 %v3582_v48  ;;  %v5151_v4 = vunpack.c.l.s8.bf16 %v3615_v61  ;;  %v5183_v11 = vunpack.c.h.s8.bf16 %v3615_v61  ;;  %v3741_v61 = vld [vmem:[%s11198_s0 + $0x1428] sm:$0xff] }
 0x544   : > { %6725 = vmatprep.subr.bf16.mxu0 %v4895_v3  ;;  %v3612_v3 = vld [vmem:[%s11198_s0 + $0x1020] sm:$0xff]  ;;  %v5341_v45 = vunpack.c.l.s8.bf16 %v3709_v33 }
 0x546   : > { %6562 = vmatpush1.bf16.msra.mxu1 %v4892_v5  ;;  %v3614_v5 = vld [vmem:[%s11198_s0 + $0x1030] sm:$0xff] }
 0x547   : > { %6726 = vmatpush1.bf16.msra.mxu0 %v4894_v10  ;;  %6563 = vmatprep.subr.bf16.mxu1 %v4925_v6  ;;  %v5148_v10 = vunpack.c.l.s8.bf16 %v3612_v3  ;;  %v5150_v6 = vunpack.c.l.s8.bf16 %v3614_v5 }
 0x548   : > { %6727 = vmatprep.subr.bf16.mxu0 %v4927_v7  ;;  %v5181_v7 = vunpack.c.h.s8.bf16 %v3613_v58 }
 0x54a   : > { %6564 = vmatpush1.bf16.msra.mxu1 %v4924_v12  ;;  %v3647_v12 = vld [vmem:[%s11198_s0 + $0x1138] sm:$0xff] }
 0x54b   : > { %6728 = vmatpush1.bf16.msra.mxu0 %v4926_v13  ;;  %6565 = vmatprep.subr.bf16.mxu1 %v4957_v14  ;;  %v5180_v13 = vunpack.c.h.s8.bf16 %v3612_v3  ;;  %v5182_v14 = vunpack.c.h.s8.bf16 %v3614_v5  ;;  %v5215_v19 = vunpack.c.l.s8.bf16 %v3647_v12  ;;  %v5247_v23 = vunpack.c.h.s8.bf16 %v3647_v12  ;;  %v3773_v12 = vld [vmem:[%s11198_s0 + $0x1528] sm:$0xff] }
 0x54c   : > { %6729 = vmatprep.subr.bf16.mxu0 %v4959_v18  ;;  %v3644_v18 = vld [vmem:[%s11198_s0 + $0x1120] sm:$0xff]  ;;  %v5405_v3 = vunpack.c.l.s8.bf16 %v3741_v61 }
 0x54e   : > { %6566 = vmatpush1.bf16.msra.mxu1 %v4956_v50  ;;  %v3646_v50 = vld [vmem:[%s11198_s0 + $0x1130] sm:$0xff] }
 0x54f   : > { %6730 = vmatpush1.bf16.msra.mxu0 %v4958_v20  ;;  %6567 = vmatprep.subr.bf16.mxu1 %v4989_v21  ;;  %v5212_v20 = vunpack.c.l.s8.bf16 %v3644_v18  ;;  %v5214_v21 = vunpack.c.l.s8.bf16 %v3646_v50 }
 0x550   : > { %6731 = vmatprep.subr.bf16.mxu0 %v4991_v22  ;;  %v5245_v22 = vunpack.c.h.s8.bf16 %v3645_v8  ;;  %v5437_v8 = vunpack.c.h.s8.bf16 %v3741_v61 }
 0x552   : > { %6568 = vmatpush1.bf16.msra.mxu1 %v4988_v26  ;;  %v3679_v26 = vld [vmem:[%s11198_s0 + $0x1238] sm:$0xff] }
 0x553   : > { %6732 = vmatpush1.bf16.msra.mxu0 %v4990_v27  ;;  %6569 = vmatprep.subr.bf16.mxu1 %v5021_v30  ;;  %v5244_v27 = vunpack.c.h.s8.bf16 %v3644_v18  ;;  %v5246_v30 = vunpack.c.h.s8.bf16 %v3646_v50  ;;  %v5279_v36 = vunpack.c.l.s8.bf16 %v3679_v26  ;;  %v5311_v42 = vunpack.c.h.s8.bf16 %v3679_v26  ;;  %v3805_v26 = vld [vmem:[%s11198_s0 + $0x1628] sm:$0xff] }
 0x554   : > { %6733 = vmatprep.subr.bf16.mxu0 %v5023_v35  ;;  %v3676_v35 = vld [vmem:[%s11198_s0 + $0x1220] sm:$0xff]  ;;  %v5469_v18 = vunpack.c.l.s8.bf16 %v3773_v12 }
 0x556   : > { %6570 = vmatpush1.bf16.msra.mxu1 %v5020_v37  ;;  %v3678_v37 = vld [vmem:[%s11198_s0 + $0x1230] sm:$0xff] }
 0x557   : > { %6734 = vmatpush1.bf16.msra.mxu0 %v5022_v38  ;;  %6571 = vmatprep.subr.bf16.mxu1 %v5053_v40  ;;  %v5276_v38 = vunpack.c.l.s8.bf16 %v3676_v35  ;;  %v5278_v40 = vunpack.c.l.s8.bf16 %v3678_v37 }
 0x558   : > { %6735 = vmatprep.subr.bf16.mxu0 %v5055_v41  ;;  %v5309_v41 = vunpack.c.h.s8.bf16 %v3677_v24 }
 0x55a   : > { %6572 = vmatpush1.bf16.msra.mxu1 %v5052_v39  ;;  %v3711_v39 = vld [vmem:[%s11198_s0 + $0x1338] sm:$0xff] }
 0x55b   : > { %6736 = vmatpush1.bf16.msra.mxu0 %v5054_v43  ;;  %6573 = vmatprep.subr.bf16.mxu1 %v5085_v44  ;;  %v5308_v43 = vunpack.c.h.s8.bf16 %v3676_v35  ;;  %v5310_v44 = vunpack.c.h.s8.bf16 %v3678_v37  ;;  %v5343_v48 = vunpack.c.l.s8.bf16 %v3711_v39  ;;  %v5375_v58 = vunpack.c.h.s8.bf16 %v3711_v39  ;;  %v3837_v39 = vld [vmem:[%s11198_s0 + $0x1728] sm:$0xff] }
 0x55c   : > { %6737 = vmatprep.subr.bf16.mxu0 %v5087_v47  ;;  %v3708_v47 = vld [vmem:[%s11198_s0 + $0x1320] sm:$0xff]  ;;  %v5533_v35 = vunpack.c.l.s8.bf16 %v3805_v26 }
 0x55e   : > { %6574 = vmatpush1.bf16.msra.mxu1 %v5084_v49  ;;  %v3710_v49 = vld [vmem:[%s11198_s0 + $0x1330] sm:$0xff] }
 0x55f   : > { %6738 = vmatpush1.bf16.msra.mxu0 %v5086_v52  ;;  %6575 = vmatprep.subr.bf16.mxu1 %v5117_v53  ;;  %v5340_v52 = vunpack.c.l.s8.bf16 %v3708_v47  ;;  %v5342_v53 = vunpack.c.l.s8.bf16 %v3710_v49 }
 0x560   : > { %6739 = vmatprep.subr.bf16.mxu0 %v5119_v55  ;;  %v5373_v55 = vunpack.c.h.s8.bf16 %v3709_v33 }
 0x562   : > { %6576 = vmatpush1.bf16.msra.mxu1 %v5116_v32  ;;  %v3743_v32 = vld [vmem:[%s11198_s0 + $0x1438] sm:$0xff] }
 0x563   : > { %6740 = vmatpush1.bf16.msra.mxu0 %v5118_v62  ;;  %6586 = vmatprep.subr.bf16.mxu1 %v5149_v63  ;;  %v5372_v62 = vunpack.c.h.s8.bf16 %v3708_v47  ;;  %v5374_v63 = vunpack.c.h.s8.bf16 %v3710_v49  ;;  %v5407_v5 = vunpack.c.l.s8.bf16 %v3743_v32  ;;  %v5597_v47 = vunpack.c.l.s8.bf16 %v3837_v39 }
 0x564   : > { %6750 = vmatprep.subr.bf16.mxu0 %v5151_v4  ;;  %v3740_v4 = vld [vmem:[%s11198_s0 + $0x1420] sm:$0xff] }
 0x565   : > { %6578 = vmatmul.mubr.bf16.vlgmr.msra.gmra.mrb[16].mxu1 %v11353_v46 }
 0x566   : > { %6742 = vmatmul.mubr.bf16.vlgmr.msra.gmra.mrb[20].mxu0 %v11353_v46  ;;  %6587 = vmatpush1.bf16.msra.mxu1 %v5148_v10  ;;  %v3742_v10 = vld [vmem:[%s11198_s0 + $0x1430] sm:$0xff] }
 0x567   : > { %6618 = vmatprep.mubr.bf16.mxu1 %v11406_v54  ;;  %6751 = vmatpush1.bf16.msra.mxu0 %v5150_v6  ;;  %v5404_v6 = vunpack.c.l.s8.bf16 %v3740_v4 }
 0x568   : > { %6782 = vmatprep.mubr.bf16.mxu0 %v11406_v54  ;;  %6588 = vmatprep.subr.bf16.mxu1 %v5181_v7  ;;  %v5406_v7 = vunpack.c.l.s8.bf16 %v3742_v10 }
 0x569   : > { %6752 = vmatprep.subr.bf16.mxu0 %v5183_v11  ;;  %v5439_v11 = vunpack.c.h.s8.bf16 %v3743_v32  ;;  %v3869_v32 = vld [vmem:[%s11198_s0 + $0x1828] sm:$0xff] }
 0x56a   : > { %6589 = vmatpush1.bf16.msra.mxu1 %v5180_v13  ;;  %v3775_v13 = vld [vmem:[%s11198_s0 + $0x1538] sm:$0xff] }
 0x56b   : > { %6753 = vmatpush1.bf16.msra.mxu0 %v5182_v14  ;;  %6590 = vmatprep.subr.bf16.mxu1 %v5213_v15  ;;  %v5436_v14 = vunpack.c.h.s8.bf16 %v3740_v4  ;;  %v5438_v15 = vunpack.c.h.s8.bf16 %v3742_v10  ;;  %v5471_v50 = vunpack.c.l.s8.bf16 %v3775_v13  ;;  %v5503_v24 = vunpack.c.h.s8.bf16 %v3775_v13 }
 0x56c   : > { %6754 = vmatprep.subr.bf16.mxu0 %v5215_v19  ;;  %v3772_v19 = vld [vmem:[%s11198_s0 + $0x1520] sm:$0xff]  ;;  %v5661_v4 = vunpack.c.l.s8.bf16 %v3869_v32 }
 0x56e   : > { %6591 = vmatpush1.bf16.msra.mxu1 %v5212_v20  ;;  %v3774_v20 = vld [vmem:[%s11198_s0 + $0x1530] sm:$0xff] }
 0x56f   : > { %6755 = vmatpush1.bf16.msra.mxu0 %v5214_v21  ;;  %6592 = vmatprep.subr.bf16.mxu1 %v5245_v22  ;;  %v5468_v21 = vunpack.c.l.s8.bf16 %v3772_v19  ;;  %v5470_v22 = vunpack.c.l.s8.bf16 %v3774_v20 }
 0x570   : > { %6756 = vmatprep.subr.bf16.mxu0 %v5247_v23  ;;  %v5501_v23 = vunpack.c.h.s8.bf16 %v3773_v12  ;;  %v3901_v12 = vld [vmem:[%s11198_s0 + $0x1928] sm:$0xff] }
 0x572   : > { %6593 = vmatpush1.bf16.msra.mxu1 %v5244_v27  ;;  %v3807_v27 = vld [vmem:[%s11198_s0 + $0x1638] sm:$0xff] }
 0x573   : > { %6757 = vmatpush1.bf16.msra.mxu0 %v5246_v30  ;;  %6594 = vmatprep.subr.bf16.mxu1 %v5277_v56  ;;  %v5500_v30 = vunpack.c.h.s8.bf16 %v3772_v19  ;;  %v5502_v56 = vunpack.c.h.s8.bf16 %v3774_v20  ;;  %v5535_v37 = vunpack.c.l.s8.bf16 %v3807_v27  ;;  %v5567_v33 = vunpack.c.h.s8.bf16 %v3807_v27  ;;  %v3933_v27 = vld [vmem:[%s11198_s0 + $0x1a28] sm:$0xff] }
 0x574   : > { %6758 = vmatprep.subr.bf16.mxu0 %v5279_v36  ;;  %v3804_v36 = vld [vmem:[%s11198_s0 + $0x1620] sm:$0xff]  ;;  %v5725_v19 = vunpack.c.l.s8.bf16 %v3901_v12 }
 0x576   : > { %6595 = vmatpush1.bf16.msra.mxu1 %v5276_v38  ;;  %v3806_v38 = vld [vmem:[%s11198_s0 + $0x1630] sm:$0xff] }
 0x577   : > { %6759 = vmatpush1.bf16.msra.mxu0 %v5278_v40  ;;  %6596 = vmatprep.subr.bf16.mxu1 %v5309_v41  ;;  %v5532_v40 = vunpack.c.l.s8.bf16 %v3804_v36  ;;  %v5534_v41 = vunpack.c.l.s8.bf16 %v3806_v38 }
 0x578   : > { %6760 = vmatprep.subr.bf16.mxu0 %v5311_v42  ;;  %v5565_v42 = vunpack.c.h.s8.bf16 %v3805_v26 }
 0x57a   : > { %6597 = vmatpush1.bf16.msra.mxu1 %v5308_v43  ;;  %v3839_v43 = vld [vmem:[%s11198_s0 + $0x1738] sm:$0xff] }
 0x57b   : > { %6761 = vmatpush1.bf16.msra.mxu0 %v5310_v44  ;;  %6598 = vmatprep.subr.bf16.mxu1 %v5341_v45  ;;  %v5564_v44 = vunpack.c.h.s8.bf16 %v3804_v36  ;;  %v5566_v45 = vunpack.c.h.s8.bf16 %v3806_v38  ;;  %v5599_v49 = vunpack.c.l.s8.bf16 %v3839_v43  ;;  %v5631_v61 = vunpack.c.h.s8.bf16 %v3839_v43 }
 0x57c   : > { %6762 = vmatprep.subr.bf16.mxu0 %v5343_v48  ;;  %v3836_v48 = vld [vmem:[%s11198_s0 + $0x1720] sm:$0xff]  ;;  %v5789_v36 = vunpack.c.l.s8.bf16 %v3933_v27  ;;  %v10820_v43 = vmov 1966171168  }
 0x57e   : > { %6599 = vmatpush1.bf16.msra.mxu1 %v5340_v52  ;;  %v3838_v52 = vld [vmem:[%s11198_s0 + $0x1730] sm:$0xff] }
 0x57f   : > { %6763 = vmatpush1.bf16.msra.mxu0 %v5342_v53  ;;  %6600 = vmatprep.subr.bf16.mxu1 %v5373_v55  ;;  %v5596_v53 = vunpack.c.l.s8.bf16 %v3836_v48  ;;  %v5598_v55 = vunpack.c.l.s8.bf16 %v3838_v52 }
 0x580   : > { %6764 = vmatprep.subr.bf16.mxu0 %v5375_v58  ;;  %v5629_v58 = vunpack.c.h.s8.bf16 %v3837_v39  ;;  %v5821_v39 = vunpack.c.h.s8.bf16 %v3933_v27 }
 0x582   : > { %6601 = vmatpush1.bf16.msra.mxu1 %v5372_v62  ;;  %v3871_v62 = vld [vmem:[%s11198_s0 + $0x1838] sm:$0xff] }
 0x583   : > { %6765 = vmatpush1.bf16.msra.mxu0 %v5374_v63  ;;  %6602 = vmatprep.subr.bf16.mxu1 %v5405_v3  ;;  %v5628_v63 = vunpack.c.h.s8.bf16 %v3836_v48  ;;  %v5630_v3 = vunpack.c.h.s8.bf16 %v3838_v52  ;;  %v5663_v10 = vunpack.c.l.s8.bf16 %v3871_v62  ;;  %v5695_v13 = vunpack.c.h.s8.bf16 %v3871_v62  ;;  %v3965_v48 = vld [vmem:[%s11198_s0 + $0x1b28] sm:$0xff] }
 0x584   : > { %6766 = vmatprep.subr.bf16.mxu0 %v5407_v5  ;;  %v3868_v5 = vld [vmem:[%s11198_s0 + $0x1820] sm:$0xff] }
 0x586   : > { %6603 = vmatpush1.bf16.msra.mxu1 %v5404_v6  ;;  %v3870_v6 = vld [vmem:[%s11198_s0 + $0x1830] sm:$0xff] }
 0x587   : > { %6767 = vmatpush1.bf16.msra.mxu0 %v5406_v7  ;;  %6604 = vmatprep.subr.bf16.mxu1 %v5437_v8  ;;  %v5660_v7 = vunpack.c.l.s8.bf16 %v3868_v5  ;;  %v5662_v8 = vunpack.c.l.s8.bf16 %v3870_v6 }
 0x588   : > { %6768 = vmatprep.subr.bf16.mxu0 %v5439_v11  ;;  %v5693_v11 = vunpack.c.h.s8.bf16 %v3869_v32 }
 0x58a   : > { %6605 = vmatpush1.bf16.msra.mxu1 %v5436_v14  ;;  %v3903_v14 = vld [vmem:[%s11198_s0 + $0x1938] sm:$0xff] }
 0x58b   : > { %6769 = vmatpush1.bf16.msra.mxu0 %v5438_v15  ;;  %6606 = vmatprep.subr.bf16.mxu1 %v5469_v18  ;;  %v5692_v15 = vunpack.c.h.s8.bf16 %v3868_v5  ;;  %v5694_v18 = vunpack.c.h.s8.bf16 %v3870_v6  ;;  %v5727_v20 = vunpack.c.l.s8.bf16 %v3903_v14  ;;  %v5759_v26 = vunpack.c.h.s8.bf16 %v3903_v14 }
 0x58c   : > { %6770 = vmatprep.subr.bf16.mxu0 %v5471_v50  ;;  %v3900_v50 = vld [vmem:[%s11198_s0 + $0x1920] sm:$0xff] }
 0x58e   : > { %6607 = vmatpush1.bf16.msra.mxu1 %v5468_v21  ;;  %v3902_v21 = vld [vmem:[%s11198_s0 + $0x1930] sm:$0xff] }
 0x58f   : > { %6771 = vmatpush1.bf16.msra.mxu0 %v5470_v22  ;;  %6608 = vmatprep.subr.bf16.mxu1 %v5501_v23  ;;  %v5724_v22 = vunpack.c.l.s8.bf16 %v3900_v50  ;;  %v5726_v23 = vunpack.c.l.s8.bf16 %v3902_v21 }
 0x590   : > { %6772 = vmatprep.subr.bf16.mxu0 %v5503_v24  ;;  %v5757_v24 = vunpack.c.h.s8.bf16 %v3901_v12  ;;  %v3966_v12 = vld [vmem:[%s11198_s0 + $0x1b30] sm:$0xff] }
 0x592   : > { %6609 = vmatpush1.bf16.msra.mxu1 %v5500_v30  ;;  %v3935_v30 = vld [vmem:[%s11198_s0 + $0x1a38] sm:$0xff] }
 0x593   : > { %6773 = vmatpush1.bf16.msra.mxu0 %v5502_v56  ;;  %6610 = vmatprep.subr.bf16.mxu1 %v5533_v35  ;;  %v5756_v56 = vunpack.c.h.s8.bf16 %v3900_v50  ;;  %v5758_v35 = vunpack.c.h.s8.bf16 %v3902_v21  ;;  %v5791_v38 = vunpack.c.l.s8.bf16 %v3935_v30 }
 0x594   : > { %6774 = vmatprep.subr.bf16.mxu0 %v5535_v37  ;;  %v3932_v37 = vld [vmem:[%s11198_s0 + $0x1a20] sm:$0xff] }
 0x596   : > { %6611 = vmatpush1.bf16.msra.mxu1 %v5532_v40  ;;  %v3934_v40 = vld [vmem:[%s11198_s0 + $0x1a30] sm:$0xff] }
 0x597   : > { %6775 = vmatpush1.bf16.msra.mxu0 %v5534_v41  ;;  %6612 = vmatprep.subr.bf16.mxu1 %v5565_v42  ;;  %v5788_v41 = vunpack.c.l.s8.bf16 %v3932_v37  ;;  %v8800_v42 = vld [vmem:[%s11581_s10] sm:$0xff] }
 0x598   : > { %6776 = vmatprep.subr.bf16.mxu0 %v5567_v33  ;;  %v5790_v33 = vunpack.c.l.s8.bf16 %v3934_v40  ;;  %v8819_v52 = vrot.slane %v8800_v42, %v11243_v59 }
 0x59a   : > { %6613 = vmatpush1.bf16.msra.mxu1 %v5564_v44  ;;  %v9237_v44 = vunpack.c.l.s4 %v10820_v43  ;;  %v5886_v43 = vunpack.c.h.s8.bf16 %v3966_v12 }
 0x59b   : > { %6777 = vmatpush1.bf16.msra.mxu0 %v5566_v45  ;;  %6614 = vmatprep.subr.bf16.mxu1 %v5597_v47  ;;  %v9000_v45 = vld [vmem:[%s11585_s29] sm:$0xff]  ;;  %v5823_v47 = vunpack.c.h.s8.bf16 %v3935_v30  ;;  %v5854_v30 = vunpack.c.l.s8.bf16 %v3966_v12 }
 0x59c   : > { %6778 = vmatprep.subr.bf16.mxu0 %v5599_v49  ;;  %v8811_v49 = vrot.slane %v8800_v42, %v11210_v29  ;;  %v9011_v32 = vrot.slane %v9000_v45, %v11210_v29  ;;  %v9019_v62 = vrot.slane %v9000_v45, %v11243_v59  ;;  %v9238_v5 = vunpack.c.0.s8 %v9237_v44 }
 0x59e   : > { %6615 = vmatpush1.bf16.msra.mxu1 %v5596_v53  ;;  %v3967_v53 = vld [vmem:[%s11198_s0 + $0x1b38] sm:$0xff] }
 0x59f   : > { %6779 = vmatpush1.bf16.msra.mxu0 %v5598_v55  ;;  %6616 = vmatprep.subr.bf16.mxu1 %v5629_v58  ;;  %v8815_v55 = vrot.slane %v8800_v42, %v11213_v31  ;;  %v8823_v58 = vrot.slane %v8800_v42, %v11220_v51 }
 0x5a0   : > { %6780 = vmatprep.subr.bf16.mxu0 %v5631_v61  ;;  %v5820_v61 = vunpack.c.h.s8.bf16 %v3932_v37 }
 0x5a2   : > { %6617 = vmatpush1.bf16.msra.mxu1 %v5628_v63  ;;  %v5822_v63 = vunpack.c.h.s8.bf16 %v3934_v40  ;;  %v3997_v40 = vld [vmem:[%s11198_s0 + $0x1c28] sm:$0xff] }
 0x5a3   : > { %6781 = vmatpush1.bf16.msra.mxu0 %v5630_v3  ;;  %6627 = vmatprep.subr.bf16.mxu1 %v5661_v4  ;;  %v5853_v3 = vunpack.c.l.s8.bf16 %v3965_v48  ;;  %v3964_v4 = vld [vmem:[%s11198_s0 + $0x1b20] sm:$0xff]  ;;  %v5917_v44 = vunpack.c.l.s8.bf16 %v3997_v40 }
 0x5a4   : > { %6791 = vmatprep.subr.bf16.mxu0 %v5663_v10 }
 0x5a5   : > { %6619 = vmatmul.mubr.bf16.vlgmr.msra.gmra.mrb[16].mxu1 %v11408_v9 }
 0x5a6   : > { %6783 = vmatmul.mubr.bf16.vlgmr.msra.gmra.mrb[20].mxu0 %v11408_v9  ;;  %6628 = vmatpush1.bf16.msra.mxu1 %v5660_v7  ;;  %v9015_v7 = vrot.slane %v9000_v45, %v11213_v31 }
 0x5a7   : > { %6659 = vmatprep.mubr.bf16.mxu1 %v11414_v2  ;;  %6792 = vmatpush1.bf16.msra.mxu0 %v5662_v8  ;;  %v9023_v8 = vrot.slane %v9000_v45, %v11220_v51  ;;  %v3996_v45 = vld [vmem:[%s11198_s0 + $0x1c20] sm:$0xff] }
 0x5a8   : > { %6823 = vmatprep.mubr.bf16.mxu0 %v11414_v2  ;;  %6629 = vmatprep.subr.bf16.mxu1 %v5693_v11  ;;  %v5855_v11 = vunpack.c.l.s8.bf16 %v3967_v53 }
 0x5a9   : > { %6793 = vmatprep.subr.bf16.mxu0 %v5695_v13 }
 0x5aa   : > { %6630 = vmatpush1.bf16.msra.mxu1 %v5692_v15 }
 0x5ab   : > { %6794 = vmatpush1.bf16.msra.mxu0 %v5694_v18  ;;  %6631 = vmatprep.subr.bf16.mxu1 %v5725_v19 }
 0x5ac   : > { %6795 = vmatprep.subr.bf16.mxu0 %v5727_v20 }
 0x5ae   : > { %6632 = vmatpush1.bf16.msra.mxu1 %v5724_v22  ;;  %v5852_v22 = vunpack.c.l.s8.bf16 %v3964_v4 }
 0x5af   : > { %6796 = vmatpush1.bf16.msra.mxu0 %v5726_v23  ;;  %6633 = vmatprep.subr.bf16.mxu1 %v5757_v24 }
 0x5b0   : > { %6797 = vmatprep.subr.bf16.mxu0 %v5759_v26 }
 0x5b2   : > { %6634 = vmatpush1.bf16.msra.mxu1 %v5756_v56  ;;  %v5885_v56 = vunpack.c.h.s8.bf16 %v3965_v48 }
 0x5b3   : > { %6798 = vmatpush1.bf16.msra.mxu0 %v5758_v35  ;;  %6635 = vmatprep.subr.bf16.mxu1 %v5789_v36  ;;  %v11601_v35 = vsub.s32 %v9238_v5, %v11207_v28  ;;  %v4028_v5 = vld [vmem:[%s11198_s0 + $0x1d20] sm:$0xff] }
 0x5b4   : > { %6799 = vmatprep.subr.bf16.mxu0 %v5791_v38  ;;  %v5887_v38 = vunpack.c.h.s8.bf16 %v3967_v53  ;;  %v5916_v53 = vunpack.c.l.s8.bf16 %v3996_v45 }
 0x5b6   : > { %6636 = vmatpush1.bf16.msra.mxu1 %v5788_v41  ;;  %v3999_v41 = vld [vmem:[%s11198_s0 + $0x1c38] sm:$0xff] }
 0x5b7   : > { %6800 = vmatpush1.bf16.msra.mxu0 %v5790_v33  ;;  %6637 = vmatprep.subr.bf16.mxu1 %v5821_v39  ;;  %v5884_v39 = vunpack.c.h.s8.bf16 %v3964_v4  ;;  %v5919_v48 = vunpack.c.l.s8.bf16 %v3999_v41 }
 0x5b8   : > { %v6333_v10 = vpop.f32.mrb[12].mxu1  ;;  %v6497_v6 = vpop.f32.mrb[16].mxu0  ;;  %6801 = vmatprep.subr.bf16.mxu0 %v5823_v47 }
 0x5b9   : > { %v8968_v13 = vmul.f32 %v8811_v49, %v6333_v10  ;;  %v8970_v14 = vmul.f32 %v8819_v52, %v6497_v6  ;;  %v6335_v15 = vpop.f32.mrb[13].mxu1  ;;  %v6499_v18 = vpop.f32.mrb[17].mxu0  ;;  %v3998_v49 = vld [vmem:[%s11198_s0 + $0x1c30] sm:$0xff] }
 0x5ba   : > { %v8969_v19 = vmul.f32 %v8815_v55, %v6335_v15  ;;  %v8971_v50 = vmul.f32 %v8823_v58, %v6499_v18  ;;  %v6337_v20 = vpop.f32.mrb[14].mxu1  ;;  %v6501_v21 = vpop.f32.mrb[18].mxu0  ;;  %6638 = vmatpush1.bf16.msra.mxu1 %v5820_v61  ;;  %v5918_v55 = vunpack.c.l.s8.bf16 %v3998_v49  ;;  %v5949_v58 = vunpack.c.h.s8.bf16 %v3997_v40  ;;  %v4030_v6 = vld [vmem:[%s11198_s0 + $0x1d30] sm:$0xff] }
 0x5bb   : > { %v9168_v23 = vadd.f32 %v9011_v32, %v8968_v13  ;;  %v9170_v24 = vadd.f32 %v9019_v62, %v8970_v14  ;;  %6802 = vmatpush1.bf16.msra.mxu0 %v5822_v63  ;;  %v6338_v26 = vpop.f32.mrb[15].mxu1  ;;  %v6502_v27 = vpop.f32.mrb[19].mxu0  ;;  %6639 = vmatprep.subr.bf16.mxu1 %v5853_v3  ;;  %v5951_v61 = vunpack.c.h.s8.bf16 %v3999_v41  ;;  %v4029_v32 = vld [vmem:[%s11198_s0 + $0x1d28] sm:$0xff]  ;;  %v4031_v62 = vld [vmem:[%s11198_s0 + $0x1d38] sm:$0xff]  ;;  %v5948_v63 = vunpack.c.h.s8.bf16 %v3996_v45  ;;  %v4062_v21 = vld [vmem:[%s11198_s0 + $0x1e30] sm:$0xff] }
 0x5bc   : > { %v9169_v36 = vadd.f32 %v9015_v7, %v8969_v19  ;;  %v9171_v37 = vadd.f32 %v9023_v8, %v8971_v50  ;;  %6803 = vmatprep.subr.bf16.mxu0 %v5855_v11  ;;  %v5950_v3 = vunpack.c.h.s8.bf16 %v3998_v49  ;;  %v5981_v4 = vunpack.c.l.s8.bf16 %v4029_v32  ;;  %v4061_v13 = vld [vmem:[%s11198_s0 + $0x1e28] sm:$0xff]  ;;  %v4063_v14 = vld [vmem:[%s11198_s0 + $0x1e38] sm:$0xff]  ;;  %v4060_v50 = vld [vmem:[%s11198_s0 + $0x1e20] sm:$0xff] }
 0x5bd   : > { %v5983_v10 = vunpack.c.l.s8.bf16 %v4031_v62  ;;  %v5980_v7 = vunpack.c.l.s8.bf16 %v4028_v5  ;;  %v5982_v8 = vunpack.c.l.s8.bf16 %v4030_v6  ;;  %v6013_v11 = vunpack.c.h.s8.bf16 %v4029_v32  ;;  %v4093_v27 = vld [vmem:[%s11198_s0 + $0x1f28] sm:$0xff]  ;;  %v4094_v41 = vld [vmem:[%s11198_s0 + $0x1f30] sm:$0xff]  ;;  %v3107_v45 = vld [vmem:[%s11198_s0 + $0x58] sm:$0xff] }
 0x5be   : > { %v9232_v42 = vcombine.low %v9168_v23, %v9169_v36  ;;  %v9233_v33 = vcombine.low %v9170_v24, %v9171_v37  ;;  %6640 = vmatpush1.bf16.msra.mxu1 %v5852_v22  ;;  %v6015_v12 = vunpack.c.h.s8.bf16 %v4031_v62  ;;  %v6012_v15 = vunpack.c.h.s8.bf16 %v4028_v5  ;;  %v3139_v5 = vld [vmem:[%s11198_s0 + $0x158] sm:$0xff] }
 0x5bf   : > { %6804 = vmatpush1.bf16.msra.mxu0 %v5854_v30  ;;  %6641 = vmatprep.subr.bf16.mxu1 %v5885_v56  ;;  %v6014_v18 = vunpack.c.h.s8.bf16 %v4030_v6  ;;  %v6045_v19 = vunpack.c.l.s8.bf16 %v4061_v13  ;;  %v6047_v20 = vunpack.c.l.s8.bf16 %v4063_v14  ;;  %v6044_v22 = vunpack.c.l.s8.bf16 %v4060_v50  ;;  %v4095_v30 = vld [vmem:[%s11198_s0 + $0x1f38] sm:$0xff] }
 0x5c0   : > { %v11607_v28 = vrot.slane %v9232_v42, %v11601_v35  ;;  %v11610_v47 = vrot.slane %v9233_v33, %v11601_v35  ;;  %6805 = vmatprep.subr.bf16.mxu0 %v5887_v38  ;;  %v6046_v23 = vunpack.c.l.s8.bf16 %v4062_v21  ;;  %v6077_v24 = vunpack.c.h.s8.bf16 %v4061_v13  ;;  %v4092_v38 = vld [vmem:[%s11198_s0 + $0x1f20] sm:$0xff] }
 0x5c1   : > { %v6079_v26 = vunpack.c.h.s8.bf16 %v4063_v14  ;;  %v6076_v56 = vunpack.c.h.s8.bf16 %v4060_v50  ;;  %v6078_v36 = vunpack.c.h.s8.bf16 %v4062_v21  ;;  %v6109_v37 = vunpack.c.l.s8.bf16 %v4093_v27  ;;  %v3171_v50 = vld [vmem:[%s11198_s0 + $0x258] sm:$0xff] }
 0x5c2   : > { %v9264_v52 = vcombine.low %v11607_v28, %v11610_v47  ;;  %6642 = vmatpush1.bf16.msra.mxu1 %v5884_v39  ;;  %v6111_v40 = vunpack.c.l.s8.bf16 %v4095_v30  ;;  %v6108_v42 = vunpack.c.l.s8.bf16 %v4092_v38  ;;  %v6110_v33 = vunpack.c.l.s8.bf16 %v4094_v41 }
 0x5c3   : > { %6806 = vmatpush1.bf16.msra.mxu0 %v5886_v43  ;;  %6643 = vmatprep.subr.bf16.mxu1 %v5917_v44  ;;  %v6141_v39 = vunpack.c.h.s8.bf16 %v4093_v27  ;;  %v6143_v43 = vunpack.c.h.s8.bf16 %v4095_v30  ;;  %v3105_v44 = vld [vmem:[%s11198_s0 + $0x48] sm:$0xff]  ;;  %v6142_v49 = vunpack.c.h.s8.bf16 %v4094_v41 }
 0x5c4   : > { %6807 = vmatprep.subr.bf16.mxu0 %v5919_v48  ;;  %v6140_v48 = vunpack.c.h.s8.bf16 %v4092_v38  ;;  %v3203_v38 = vld [vmem:[%s11198_s0 + $0x358] sm:$0xff] }
 0x5c6   : > { %6644 = vmatpush1.bf16.msra.mxu1 %v5916_v53  ;;  %v4129_v53 = vunpack.c.l.s8.bf16 %v3105_v44 }
 0x5c7   : > { %6808 = vmatpush1.bf16.msra.mxu0 %v5918_v55  ;;  %6645 = vmatprep.subr.bf16.mxu1 %v5949_v58  ;;  %v3104_v55 = vld [vmem:[%s11198_s0 + $0x40] sm:$0xff]  ;;  %v4131_v58 = vunpack.c.l.s8.bf16 %v3107_v45 }
 0x5c8   : > { %6809 = vmatprep.subr.bf16.mxu0 %v5951_v61  ;;  %v3106_v61 = vld [vmem:[%s11198_s0 + $0x50] sm:$0xff]  ;;  %v4128_v32 = vunpack.c.l.s8.bf16 %v3104_v55 }
 0x5c9   : > { %v4130_v62 = vunpack.c.l.s8.bf16 %v3106_v61  ;;  %v4162_v6 = vunpack.c.h.s8.bf16 %v3106_v61 }
 0x5ca   : > { %6646 = vmatpush1.bf16.msra.mxu1 %v5948_v63  ;;  %v4161_v63 = vunpack.c.h.s8.bf16 %v3105_v44 }
 0x5cb   : > { %6810 = vmatpush1.bf16.msra.mxu0 %v5950_v3  ;;  %6647 = vmatprep.subr.bf16.mxu1 %v5981_v4  ;;  %v3137_v3 = vld [vmem:[%s11198_s0 + $0x148] sm:$0xff]  ;;  %v4163_v4 = vunpack.c.h.s8.bf16 %v3107_v45 }
 0x5cc   : > { %6811 = vmatprep.subr.bf16.mxu0 %v5983_v10  ;;  %v4160_v10 = vunpack.c.h.s8.bf16 %v3104_v55  ;;  %v3235_v55 = vld [vmem:[%s11198_s0 + $0x458] sm:$0xff] }
 0x5ce   : > { %6648 = vmatpush1.bf16.msra.mxu1 %v5980_v7  ;;  %v4193_v7 = vunpack.c.l.s8.bf16 %v3137_v3 }
 0x5cf   : > { %6812 = vmatpush1.bf16.msra.mxu0 %v5982_v8  ;;  %6649 = vmatprep.subr.bf16.mxu1 %v6013_v11  ;;  %v3136_v8 = vld [vmem:[%s11198_s0 + $0x140] sm:$0xff]  ;;  %v4195_v11 = vunpack.c.l.s8.bf16 %v3139_v5 }
 0x5d0   : > { %6813 = vmatprep.subr.bf16.mxu0 %v6015_v12  ;;  %v3138_v12 = vld [vmem:[%s11198_s0 + $0x150] sm:$0xff]  ;;  %v4192_v13 = vunpack.c.l.s8.bf16 %v3136_v8 }
 0x5d1   : > { %v4194_v14 = vunpack.c.l.s8.bf16 %v3138_v12  ;;  %v4226_v21 = vunpack.c.h.s8.bf16 %v3138_v12 }
 0x5d2   : > { %6650 = vmatpush1.bf16.msra.mxu1 %v6012_v15  ;;  %v4225_v15 = vunpack.c.h.s8.bf16 %v3137_v3  ;;  %v3234_v3 = vld [vmem:[%s11198_s0 + $0x450] sm:$0xff] }
 0x5d3   : > { %6814 = vmatpush1.bf16.msra.mxu0 %v6014_v18  ;;  %6651 = vmatprep.subr.bf16.mxu1 %v6045_v19  ;;  %v4227_v18 = vunpack.c.h.s8.bf16 %v3139_v5  ;;  %v3169_v19 = vld [vmem:[%s11198_s0 + $0x248] sm:$0xff]  ;;  %v4386_v5 = vunpack.c.l.s8.bf16 %v3234_v3  ;;  %v4418_v12 = vunpack.c.h.s8.bf16 %v3234_v3 }
 0x5d4   : > { %6815 = vmatprep.subr.bf16.mxu0 %v6047_v20  ;;  %v4224_v20 = vunpack.c.h.s8.bf16 %v3136_v8  ;;  %v3267_v8 = vld [vmem:[%s11198_s0 + $0x558] sm:$0xff] }
 0x5d6   : > { %6652 = vmatpush1.bf16.msra.mxu1 %v6044_v22  ;;  %v4257_v22 = vunpack.c.l.s8.bf16 %v3169_v19 }
 0x5d7   : > { %6816 = vmatpush1.bf16.msra.mxu0 %v6046_v23  ;;  %6653 = vmatprep.subr.bf16.mxu1 %v6077_v24  ;;  %v3168_v23 = vld [vmem:[%s11198_s0 + $0x240] sm:$0xff]  ;;  %v4259_v24 = vunpack.c.l.s8.bf16 %v3171_v50 }
 0x5d8   : > { %6817 = vmatprep.subr.bf16.mxu0 %v6079_v26  ;;  %v3170_v26 = vld [vmem:[%s11198_s0 + $0x250] sm:$0xff]  ;;  %v4256_v27 = vunpack.c.l.s8.bf16 %v3168_v23 }
 0x5d9   : > { %v4258_v30 = vunpack.c.l.s8.bf16 %v3170_v26  ;;  %v4290_v41 = vunpack.c.h.s8.bf16 %v3170_v26 }
 0x5da   : > { %6654 = vmatpush1.bf16.msra.mxu1 %v6076_v56  ;;  %v4289_v56 = vunpack.c.h.s8.bf16 %v3169_v19 }
 0x5db   : > { %6818 = vmatpush1.bf16.msra.mxu0 %v6078_v36  ;;  %6655 = vmatprep.subr.bf16.mxu1 %v6109_v37  ;;  %v4291_v36 = vunpack.c.h.s8.bf16 %v3171_v50  ;;  %v3201_v37 = vld [vmem:[%s11198_s0 + $0x348] sm:$0xff] }
 0x5dc   : > { %6819 = vmatprep.subr.bf16.mxu0 %v6111_v40  ;;  %v4288_v40 = vunpack.c.h.s8.bf16 %v3168_v23  ;;  %v3299_v23 = vld [vmem:[%s11198_s0 + $0x658] sm:$0xff] }
 0x5de   : > { %6656 = vmatpush1.bf16.msra.mxu1 %v6108_v42  ;;  %v4321_v42 = vunpack.c.l.s8.bf16 %v3201_v37 }
 0x5df   : > { %6820 = vmatpush1.bf16.msra.mxu0 %v6110_v33  ;;  %6657 = vmatprep.subr.bf16.mxu1 %v6141_v39  ;;  %v3200_v33 = vld [vmem:[%s11198_s0 + $0x340] sm:$0xff]  ;;  %v4323_v39 = vunpack.c.l.s8.bf16 %v3203_v38 }
 0x5e0   : > { %6821 = vmatprep.subr.bf16.mxu0 %v6143_v43  ;;  %v3202_v43 = vld [vmem:[%s11198_s0 + $0x350] sm:$0xff]  ;;  %v4320_v44 = vunpack.c.l.s8.bf16 %v3200_v33 }
 0x5e1   : > { %v4322_v45 = vunpack.c.l.s8.bf16 %v3202_v43  ;;  %v4354_v61 = vunpack.c.h.s8.bf16 %v3202_v43 }
 0x5e2   : > { %6658 = vmatpush1.bf16.msra.mxu1 %v6140_v48  ;;  %v4353_v48 = vunpack.c.h.s8.bf16 %v3201_v37 }
 0x5e3   : > { %6822 = vmatpush1.bf16.msra.mxu0 %v6142_v49  ;;  %6832 = vmatprep.subr.bf16.mxu1 %v4129_v53  ;;  %v4355_v49 = vunpack.c.h.s8.bf16 %v3203_v38  ;;  %v3233_v53 = vld [vmem:[%s11198_s0 + $0x448] sm:$0xff] }
 0x5e4   : > { %6996 = vmatprep.subr.bf16.mxu0 %v4131_v58  ;;  %v4352_v58 = vunpack.c.h.s8.bf16 %v3200_v33  ;;  %v3331_v33 = vld [vmem:[%s11198_s0 + $0x758] sm:$0xff] }
 0x5e5   : > { %6660 = vmatmul.mubr.bf16.vlgmr.msra.gmra.mrb[16].mxu1 %v11455_v0 }
 0x5e6   : > { %6824 = vmatmul.mubr.bf16.vlgmr.msra.gmra.mrb[20].mxu0 %v11455_v0  ;;  %6833 = vmatpush1.bf16.msra.mxu1 %v4128_v32  ;;  %v4385_v32 = vunpack.c.l.s8.bf16 %v3233_v53 }
 0x5e7   : > { %6864 = vmatprep.mubr.bf16.mxu1 %v11306_v57  ;;  %6997 = vmatpush1.bf16.msra.mxu0 %v4130_v62  ;;  %v3232_v62 = vld [vmem:[%s11198_s0 + $0x440] sm:$0xff] }
 0x5e8   : > { %7028 = vmatprep.mubr.bf16.mxu0 %v11306_v57  ;;  %6834 = vmatprep.subr.bf16.mxu1 %v4161_v63  ;;  %v4387_v63 = vunpack.c.l.s8.bf16 %v3235_v55 }
 0x5e9   : > { %6998 = vmatprep.subr.bf16.mxu0 %v4163_v4  ;;  %v4384_v4 = vunpack.c.l.s8.bf16 %v3232_v62 }
 0x5ea   : > { %6835 = vmatpush1.bf16.msra.mxu1 %v4160_v10  ;;  %v4417_v10 = vunpack.c.h.s8.bf16 %v3233_v53 }
 0x5eb   : > { %6999 = vmatpush1.bf16.msra.mxu0 %v4162_v6  ;;  %6836 = vmatprep.subr.bf16.mxu1 %v4193_v7  ;;  %v4419_v6 = vunpack.c.h.s8.bf16 %v3235_v55  ;;  %v3265_v7 = vld [vmem:[%s11198_s0 + $0x548] sm:$0xff] }
 0x5ec   : > { %7000 = vmatprep.subr.bf16.mxu0 %v4195_v11  ;;  %v4416_v11 = vunpack.c.h.s8.bf16 %v3232_v62  ;;  %v3363_v62 = vld [vmem:[%s11198_s0 + $0x858] sm:$0xff] }
 0x5ee   : > { %6837 = vmatpush1.bf16.msra.mxu1 %v4192_v13  ;;  %v4449_v13 = vunpack.c.l.s8.bf16 %v3265_v7 }
 0x5ef   : > { %7001 = vmatpush1.bf16.msra.mxu0 %v4194_v14  ;;  %6838 = vmatprep.subr.bf16.mxu1 %v4225_v15  ;;  %v3264_v14 = vld [vmem:[%s11198_s0 + $0x540] sm:$0xff]  ;;  %v4451_v15 = vunpack.c.l.s8.bf16 %v3267_v8 }
 0x5f0   : > { %7002 = vmatprep.subr.bf16.mxu0 %v4227_v18  ;;  %v3266_v18 = vld [vmem:[%s11198_s0 + $0x550] sm:$0xff]  ;;  %v4448_v19 = vunpack.c.l.s8.bf16 %v3264_v14 }
 0x5f1   : > { %v4450_v50 = vunpack.c.l.s8.bf16 %v3266_v18  ;;  %v4482_v26 = vunpack.c.h.s8.bf16 %v3266_v18 }
 0x5f2   : > { %6839 = vmatpush1.bf16.msra.mxu1 %v4224_v20  ;;  %v4481_v20 = vunpack.c.h.s8.bf16 %v3265_v7 }
 0x5f3   : > { %7003 = vmatpush1.bf16.msra.mxu0 %v4226_v21  ;;  %6840 = vmatprep.subr.bf16.mxu1 %v4257_v22  ;;  %v4483_v21 = vunpack.c.h.s8.bf16 %v3267_v8  ;;  %v3297_v22 = vld [vmem:[%s11198_s0 + $0x648] sm:$0xff] }
 0x5f4   : > { %7004 = vmatprep.subr.bf16.mxu0 %v4259_v24  ;;  %v4480_v24 = vunpack.c.h.s8.bf16 %v3264_v14  ;;  %v3395_v14 = vld [vmem:[%s11198_s0 + $0x958] sm:$0xff] }
 0x5f6   : > { %6841 = vmatpush1.bf16.msra.mxu1 %v4256_v27  ;;  %v4513_v27 = vunpack.c.l.s8.bf16 %v3297_v22 }
 0x5f7   : > { %7005 = vmatpush1.bf16.msra.mxu0 %v4258_v30  ;;  %6842 = vmatprep.subr.bf16.mxu1 %v4289_v56  ;;  %v3296_v30 = vld [vmem:[%s11198_s0 + $0x640] sm:$0xff]  ;;  %v4515_v56 = vunpack.c.l.s8.bf16 %v3299_v23 }
 0x5f8   : > { %7006 = vmatprep.subr.bf16.mxu0 %v4291_v36  ;;  %v3298_v36 = vld [vmem:[%s11198_s0 + $0x650] sm:$0xff]  ;;  %v4512_v37 = vunpack.c.l.s8.bf16 %v3296_v30 }
 0x5f9   : > { %v4514_v38 = vunpack.c.l.s8.bf16 %v3298_v36  ;;  %v4546_v43 = vunpack.c.h.s8.bf16 %v3298_v36 }
 0x5fa   : > { %6843 = vmatpush1.bf16.msra.mxu1 %v4288_v40  ;;  %v4545_v40 = vunpack.c.h.s8.bf16 %v3297_v22 }
 0x5fb   : > { %7007 = vmatpush1.bf16.msra.mxu0 %v4290_v41  ;;  %6844 = vmatprep.subr.bf16.mxu1 %v4321_v42  ;;  %v4547_v41 = vunpack.c.h.s8.bf16 %v3299_v23  ;;  %v3329_v42 = vld [vmem:[%s11198_s0 + $0x748] sm:$0xff] }
 0x5fc   : > { %7008 = vmatprep.subr.bf16.mxu0 %v4323_v39  ;;  %v4544_v39 = vunpack.c.h.s8.bf16 %v3296_v30  ;;  %v3427_v30 = vld [vmem:[%s11198_s0 + $0xa58] sm:$0xff] }
 0x5fe   : > { %6845 = vmatpush1.bf16.msra.mxu1 %v4320_v44  ;;  %v4577_v44 = vunpack.c.l.s8.bf16 %v3329_v42 }
 0x5ff   : > { %7009 = vmatpush1.bf16.msra.mxu0 %v4322_v45  ;;  %6846 = vmatprep.subr.bf16.mxu1 %v4353_v48  ;;  %v3328_v45 = vld [vmem:[%s11198_s0 + $0x740] sm:$0xff]  ;;  %v4579_v48 = vunpack.c.l.s8.bf16 %v3331_v33 }
 0x600   : > { %7010 = vmatprep.subr.bf16.mxu0 %v4355_v49  ;;  %v3330_v49 = vld [vmem:[%s11198_s0 + $0x750] sm:$0xff]  ;;  %v4576_v53 = vunpack.c.l.s8.bf16 %v3328_v45 }
 0x601   : > { %v4578_v55 = vunpack.c.l.s8.bf16 %v3330_v49  ;;  %v4610_v3 = vunpack.c.h.s8.bf16 %v3330_v49 }
 0x602   : > { %6847 = vmatpush1.bf16.msra.mxu1 %v4352_v58  ;;  %v4609_v58 = vunpack.c.h.s8.bf16 %v3329_v42 }
 0x603   : > { %7011 = vmatpush1.bf16.msra.mxu0 %v4354_v61  ;;  %6848 = vmatprep.subr.bf16.mxu1 %v4385_v32  ;;  %v4611_v61 = vunpack.c.h.s8.bf16 %v3331_v33  ;;  %v3361_v32 = vld [vmem:[%s11198_s0 + $0x848] sm:$0xff] }
 0x604   : > { %7012 = vmatprep.subr.bf16.mxu0 %v4387_v63  ;;  %v4608_v63 = vunpack.c.h.s8.bf16 %v3328_v45  ;;  %v3459_v45 = vld [vmem:[%s11198_s0 + $0xb58] sm:$0xff] }
 0x606   : > { %6849 = vmatpush1.bf16.msra.mxu1 %v4384_v4  ;;  %v4641_v4 = vunpack.c.l.s8.bf16 %v3361_v32 }
 0x607   : > { %7013 = vmatpush1.bf16.msra.mxu0 %v4386_v5  ;;  %6850 = vmatprep.subr.bf16.mxu1 %v4417_v10  ;;  %v3360_v5 = vld [vmem:[%s11198_s0 + $0x840] sm:$0xff]  ;;  %v4643_v10 = vunpack.c.l.s8.bf16 %v3363_v62 }
 0x608   : > { %7014 = vmatprep.subr.bf16.mxu0 %v4419_v6  ;;  %v3362_v6 = vld [vmem:[%s11198_s0 + $0x850] sm:$0xff]  ;;  %v4640_v7 = vunpack.c.l.s8.bf16 %v3360_v5 }
 0x609   : > { %v4642_v8 = vunpack.c.l.s8.bf16 %v3362_v6  ;;  %v4674_v18 = vunpack.c.h.s8.bf16 %v3362_v6 }
 0x60a   : > { %6851 = vmatpush1.bf16.msra.mxu1 %v4416_v11  ;;  %v4673_v11 = vunpack.c.h.s8.bf16 %v3361_v32 }
 0x60b   : > { %7015 = vmatpush1.bf16.msra.mxu0 %v4418_v12  ;;  %6852 = vmatprep.subr.bf16.mxu1 %v4449_v13  ;;  %v3393_v12 = vld [vmem:[%s11198_s0 + $0x948] sm:$0xff]  ;;  %v4675_v13 = vunpack.c.h.s8.bf16 %v3363_v62 }
 0x60c   : > { %7016 = vmatprep.subr.bf16.mxu0 %v4451_v15  ;;  %v4672_v15 = vunpack.c.h.s8.bf16 %v3360_v5  ;;  %v3491_v5 = vld [vmem:[%s11198_s0 + $0xc58] sm:$0xff] }
 0x60e   : > { %6853 = vmatpush1.bf16.msra.mxu1 %v4448_v19  ;;  %v4705_v19 = vunpack.c.l.s8.bf16 %v3393_v12 }
 0x60f   : > { %7017 = vmatpush1.bf16.msra.mxu0 %v4450_v50  ;;  %6854 = vmatprep.subr.bf16.mxu1 %v4481_v20  ;;  %v3392_v50 = vld [vmem:[%s11198_s0 + $0x940] sm:$0xff]  ;;  %v4707_v20 = vunpack.c.l.s8.bf16 %v3395_v14 }
 0x610   : > { %7018 = vmatprep.subr.bf16.mxu0 %v4483_v21  ;;  %v3394_v21 = vld [vmem:[%s11198_s0 + $0x950] sm:$0xff]  ;;  %v4704_v22 = vunpack.c.l.s8.bf16 %v3392_v50 }
 0x611   : > { %v4706_v23 = vunpack.c.l.s8.bf16 %v3394_v21  ;;  %v4738_v36 = vunpack.c.h.s8.bf16 %v3394_v21 }
 0x612   : > { %6855 = vmatpush1.bf16.msra.mxu1 %v4480_v24  ;;  %v4737_v24 = vunpack.c.h.s8.bf16 %v3393_v12  ;;  %v3490_v12 = vld [vmem:[%s11198_s0 + $0xc50] sm:$0xff] }
 0x613   : > { %7019 = vmatpush1.bf16.msra.mxu0 %v4482_v26  ;;  %6856 = vmatprep.subr.bf16.mxu1 %v4513_v27  ;;  %v4739_v26 = vunpack.c.h.s8.bf16 %v3395_v14  ;;  %v3425_v27 = vld [vmem:[%s11198_s0 + $0xa48] sm:$0xff]  ;;  %v4898_v14 = vunpack.c.l.s8.bf16 %v3490_v12  ;;  %v4930_v21 = vunpack.c.h.s8.bf16 %v3490_v12 }
 0x614   : > { %7020 = vmatprep.subr.bf16.mxu0 %v4515_v56  ;;  %v4736_v56 = vunpack.c.h.s8.bf16 %v3392_v50  ;;  %v3523_v50 = vld [vmem:[%s11198_s0 + $0xd58] sm:$0xff] }
 0x616   : > { %6857 = vmatpush1.bf16.msra.mxu1 %v4512_v37  ;;  %v4769_v37 = vunpack.c.l.s8.bf16 %v3425_v27 }
 0x617   : > { %7021 = vmatpush1.bf16.msra.mxu0 %v4514_v38  ;;  %6858 = vmatprep.subr.bf16.mxu1 %v4545_v40  ;;  %v3424_v38 = vld [vmem:[%s11198_s0 + $0xa40] sm:$0xff]  ;;  %v4771_v40 = vunpack.c.l.s8.bf16 %v3427_v30 }
 0x618   : > { %7022 = vmatprep.subr.bf16.mxu0 %v4547_v41  ;;  %v3426_v41 = vld [vmem:[%s11198_s0 + $0xa50] sm:$0xff]  ;;  %v4768_v42 = vunpack.c.l.s8.bf16 %v3424_v38 }
 0x619   : > { %v4770_v33 = vunpack.c.l.s8.bf16 %v3426_v41  ;;  %v4802_v49 = vunpack.c.h.s8.bf16 %v3426_v41 }
 0x61a   : > { %6859 = vmatpush1.bf16.msra.mxu1 %v4544_v39  ;;  %v4801_v39 = vunpack.c.h.s8.bf16 %v3425_v27 }
 0x61b   : > { %7023 = vmatpush1.bf16.msra.mxu0 %v4546_v43  ;;  %6860 = vmatprep.subr.bf16.mxu1 %v4577_v44  ;;  %v4803_v43 = vunpack.c.h.s8.bf16 %v3427_v30  ;;  %v3457_v44 = vld [vmem:[%s11198_s0 + $0xb48] sm:$0xff] }
 0x61c   : > { %7024 = vmatprep.subr.bf16.mxu0 %v4579_v48  ;;  %v4800_v48 = vunpack.c.h.s8.bf16 %v3424_v38  ;;  %v3555_v38 = vld [vmem:[%s11198_s0 + $0xe58] sm:$0xff] }
 0x61e   : > { %6861 = vmatpush1.bf16.msra.mxu1 %v4576_v53  ;;  %v4833_v53 = vunpack.c.l.s8.bf16 %v3457_v44 }
 0x61f   : > { %7025 = vmatpush1.bf16.msra.mxu0 %v4578_v55  ;;  %6862 = vmatprep.subr.bf16.mxu1 %v4609_v58  ;;  %v3456_v55 = vld [vmem:[%s11198_s0 + $0xb40] sm:$0xff]  ;;  %v4835_v58 = vunpack.c.l.s8.bf16 %v3459_v45 }
 0x620   : > { %7026 = vmatprep.subr.bf16.mxu0 %v4611_v61  ;;  %v3458_v61 = vld [vmem:[%s11198_s0 + $0xb50] sm:$0xff]  ;;  %v4832_v32 = vunpack.c.l.s8.bf16 %v3456_v55 }
 0x621   : > { %v4834_v62 = vunpack.c.l.s8.bf16 %v3458_v61  ;;  %v4866_v6 = vunpack.c.h.s8.bf16 %v3458_v61 }
 0x622   : > { %6863 = vmatpush1.bf16.msra.mxu1 %v4608_v63  ;;  %v4865_v63 = vunpack.c.h.s8.bf16 %v3457_v44 }
 0x623   : > { %7027 = vmatpush1.bf16.msra.mxu0 %v4610_v3  ;;  %6873 = vmatprep.subr.bf16.mxu1 %v4641_v4  ;;  %v4867_v3 = vunpack.c.h.s8.bf16 %v3459_v45  ;;  %v3489_v4 = vld [vmem:[%s11198_s0 + $0xc48] sm:$0xff] }
 0x624   : > { %7037 = vmatprep.subr.bf16.mxu0 %v4643_v10  ;;  %v4864_v10 = vunpack.c.h.s8.bf16 %v3456_v55  ;;  %v3587_v55 = vld [vmem:[%s11198_s0 + $0xf58] sm:$0xff] }
 0x625   : > { %6865 = vmatmul.mubr.bf16.vlgmr.msra.gmra.mrb[20].mxu1 %v11308_v60 }
 0x626   : > { %7029 = vmatmul.mubr.bf16.vlgmr.msra.gmra.mrb[24].mxu0 %v11308_v60  ;;  %6874 = vmatpush1.bf16.msra.mxu1 %v4640_v7  ;;  %v4897_v7 = vunpack.c.l.s8.bf16 %v3489_v4 }
 0x627   : > { %6905 = vmatprep.mubr.bf16.mxu1 %v11314_v1  ;;  %7038 = vmatpush1.bf16.msra.mxu0 %v4642_v8  ;;  %v3488_v8 = vld [vmem:[%s11198_s0 + $0xc40] sm:$0xff] }
 0x628   : > { %7069 = vmatprep.mubr.bf16.mxu0 %v11314_v1  ;;  %6875 = vmatprep.subr.bf16.mxu1 %v4673_v11  ;;  %v4899_v11 = vunpack.c.l.s8.bf16 %v3491_v5 }
 0x629   : > { %7039 = vmatprep.subr.bf16.mxu0 %v4675_v13  ;;  %v4896_v13 = vunpack.c.l.s8.bf16 %v3488_v8 }
 0x62a   : > { %6876 = vmatpush1.bf16.msra.mxu1 %v4672_v15  ;;  %v4929_v15 = vunpack.c.h.s8.bf16 %v3489_v4 }
 0x62b   : > { %7040 = vmatpush1.bf16.msra.mxu0 %v4674_v18  ;;  %6877 = vmatprep.subr.bf16.mxu1 %v4705_v19  ;;  %v4931_v18 = vunpack.c.h.s8.bf16 %v3491_v5  ;;  %v3521_v19 = vld [vmem:[%s11198_s0 + $0xd48] sm:$0xff] }
 0x62c   : > { %7041 = vmatprep.subr.bf16.mxu0 %v4707_v20  ;;  %v4928_v20 = vunpack.c.h.s8.bf16 %v3488_v8  ;;  %v3619_v8 = vld [vmem:[%s11198_s0 + $0x1058] sm:$0xff] }
 0x62e   : > { %6878 = vmatpush1.bf16.msra.mxu1 %v4704_v22  ;;  %v4961_v22 = vunpack.c.l.s8.bf16 %v3521_v19 }
 0x62f   : > { %7042 = vmatpush1.bf16.msra.mxu0 %v4706_v23  ;;  %6879 = vmatprep.subr.bf16.mxu1 %v4737_v24  ;;  %v3520_v23 = vld [vmem:[%s11198_s0 + $0xd40] sm:$0xff]  ;;  %v4963_v24 = vunpack.c.l.s8.bf16 %v3523_v50 }
 0x630   : > { %7043 = vmatprep.subr.bf16.mxu0 %v4739_v26  ;;  %v3522_v26 = vld [vmem:[%s11198_s0 + $0xd50] sm:$0xff]  ;;  %v4960_v27 = vunpack.c.l.s8.bf16 %v3520_v23 }
 0x631   : > { %v4962_v30 = vunpack.c.l.s8.bf16 %v3522_v26  ;;  %v4994_v41 = vunpack.c.h.s8.bf16 %v3522_v26 }
 0x632   : > { %6880 = vmatpush1.bf16.msra.mxu1 %v4736_v56  ;;  %v4993_v56 = vunpack.c.h.s8.bf16 %v3521_v19 }
 0x633   : > { %7044 = vmatpush1.bf16.msra.mxu0 %v4738_v36  ;;  %6881 = vmatprep.subr.bf16.mxu1 %v4769_v37  ;;  %v4995_v36 = vunpack.c.h.s8.bf16 %v3523_v50  ;;  %v3553_v37 = vld [vmem:[%s11198_s0 + $0xe48] sm:$0xff] }
 0x634   : > { %7045 = vmatprep.subr.bf16.mxu0 %v4771_v40  ;;  %v4992_v40 = vunpack.c.h.s8.bf16 %v3520_v23  ;;  %v3651_v23 = vld [vmem:[%s11198_s0 + $0x1158] sm:$0xff] }
 0x636   : > { %6882 = vmatpush1.bf16.msra.mxu1 %v4768_v42  ;;  %v5025_v42 = vunpack.c.l.s8.bf16 %v3553_v37 }
 0x637   : > { %7046 = vmatpush1.bf16.msra.mxu0 %v4770_v33  ;;  %6883 = vmatprep.subr.bf16.mxu1 %v4801_v39  ;;  %v3552_v33 = vld [vmem:[%s11198_s0 + $0xe40] sm:$0xff]  ;;  %v5027_v39 = vunpack.c.l.s8.bf16 %v3555_v38 }
 0x638   : > { %7047 = vmatprep.subr.bf16.mxu0 %v4803_v43  ;;  %v3554_v43 = vld [vmem:[%s11198_s0 + $0xe50] sm:$0xff]  ;;  %v5024_v44 = vunpack.c.l.s8.bf16 %v3552_v33 }
 0x639   : > { %v5026_v45 = vunpack.c.l.s8.bf16 %v3554_v43  ;;  %v5058_v61 = vunpack.c.h.s8.bf16 %v3554_v43 }
 0x63a   : > { %6884 = vmatpush1.bf16.msra.mxu1 %v4800_v48  ;;  %v5057_v48 = vunpack.c.h.s8.bf16 %v3553_v37 }
 0x63b   : > { %7048 = vmatpush1.bf16.msra.mxu0 %v4802_v49  ;;  %6885 = vmatprep.subr.bf16.mxu1 %v4833_v53  ;;  %v5059_v49 = vunpack.c.h.s8.bf16 %v3555_v38  ;;  %v3585_v53 = vld [vmem:[%s11198_s0 + $0xf48] sm:$0xff] }
 0x63c   : > { %7049 = vmatprep.subr.bf16.mxu0 %v4835_v58  ;;  %v5056_v58 = vunpack.c.h.s8.bf16 %v3552_v33  ;;  %v3683_v33 = vld [vmem:[%s11198_s0 + $0x1258] sm:$0xff] }
 0x63e   : > { %6886 = vmatpush1.bf16.msra.mxu1 %v4832_v32  ;;  %v5089_v32 = vunpack.c.l.s8.bf16 %v3585_v53 }
 0x63f   : > { %7050 = vmatpush1.bf16.msra.mxu0 %v4834_v62  ;;  %6887 = vmatprep.subr.bf16.mxu1 %v4865_v63  ;;  %v3584_v62 = vld [vmem:[%s11198_s0 + $0xf40] sm:$0xff]  ;;  %v5091_v63 = vunpack.c.l.s8.bf16 %v3587_v55 }
 0x640   : > { %7051 = vmatprep.subr.bf16.mxu0 %v4867_v3  ;;  %v3586_v3 = vld [vmem:[%s11198_s0 + $0xf50] sm:$0xff]  ;;  %v5088_v4 = vunpack.c.l.s8.bf16 %v3584_v62 }
 0x641   : > { %v5090_v5 = vunpack.c.l.s8.bf16 %v3586_v3  ;;  %v5122_v12 = vunpack.c.h.s8.bf16 %v3586_v3 }
 0x642   : > { %6888 = vmatpush1.bf16.msra.mxu1 %v4864_v10  ;;  %v5121_v10 = vunpack.c.h.s8.bf16 %v3585_v53 }
 0x643   : > { %7052 = vmatpush1.bf16.msra.mxu0 %v4866_v6  ;;  %6889 = vmatprep.subr.bf16.mxu1 %v4897_v7  ;;  %v5123_v6 = vunpack.c.h.s8.bf16 %v3587_v55  ;;  %v3617_v7 = vld [vmem:[%s11198_s0 + $0x1048] sm:$0xff] }
 0x644   : > { %7053 = vmatprep.subr.bf16.mxu0 %v4899_v11  ;;  %v5120_v11 = vunpack.c.h.s8.bf16 %v3584_v62  ;;  %v3715_v62 = vld [vmem:[%s11198_s0 + $0x1358] sm:$0xff] }
 0x646   : > { %6890 = vmatpush1.bf16.msra.mxu1 %v4896_v13  ;;  %v5153_v13 = vunpack.c.l.s8.bf16 %v3617_v7 }
 0x647   : > { %7054 = vmatpush1.bf16.msra.mxu0 %v4898_v14  ;;  %6891 = vmatprep.subr.bf16.mxu1 %v4929_v15  ;;  %v3616_v14 = vld [vmem:[%s11198_s0 + $0x1040] sm:$0xff]  ;;  %v5155_v15 = vunpack.c.l.s8.bf16 %v3619_v8 }
 0x648   : > { %7055 = vmatprep.subr.bf16.mxu0 %v4931_v18  ;;  %v3618_v18 = vld [vmem:[%s11198_s0 + $0x1050] sm:$0xff]  ;;  %v5152_v19 = vunpack.c.l.s8.bf16 %v3616_v14 }
 0x649   : > { %v5154_v50 = vunpack.c.l.s8.bf16 %v3618_v18  ;;  %v5186_v26 = vunpack.c.h.s8.bf16 %v3618_v18 }
 0x64a   : > { %6892 = vmatpush1.bf16.msra.mxu1 %v4928_v20  ;;  %v5185_v20 = vunpack.c.h.s8.bf16 %v3617_v7 }
 0x64b   : > { %7056 = vmatpush1.bf16.msra.mxu0 %v4930_v21  ;;  %6893 = vmatprep.subr.bf16.mxu1 %v4961_v22  ;;  %v3649_v21 = vld [vmem:[%s11198_s0 + $0x1148] sm:$0xff]  ;;  %v5187_v22 = vunpack.c.h.s8.bf16 %v3619_v8 }
 0x64c   : > { %7057 = vmatprep.subr.bf16.mxu0 %v4963_v24  ;;  %v5184_v24 = vunpack.c.h.s8.bf16 %v3616_v14  ;;  %v3747_v14 = vld [vmem:[%s11198_s0 + $0x1458] sm:$0xff] }
 0x64e   : > { %6894 = vmatpush1.bf16.msra.mxu1 %v4960_v27  ;;  %v5217_v27 = vunpack.c.l.s8.bf16 %v3649_v21 }
 0x64f   : > { %7058 = vmatpush1.bf16.msra.mxu0 %v4962_v30  ;;  %6895 = vmatprep.subr.bf16.mxu1 %v4993_v56  ;;  %v3648_v30 = vld [vmem:[%s11198_s0 + $0x1140] sm:$0xff]  ;;  %v5219_v56 = vunpack.c.l.s8.bf16 %v3651_v23 }
 0x650   : > { %7059 = vmatprep.subr.bf16.mxu0 %v4995_v36  ;;  %v3650_v36 = vld [vmem:[%s11198_s0 + $0x1150] sm:$0xff]  ;;  %v5216_v37 = vunpack.c.l.s8.bf16 %v3648_v30 }
 0x651   : > { %v5218_v38 = vunpack.c.l.s8.bf16 %v3650_v36  ;;  %v5250_v43 = vunpack.c.h.s8.bf16 %v3650_v36 }
 0x652   : > { %6896 = vmatpush1.bf16.msra.mxu1 %v4992_v40  ;;  %v5249_v40 = vunpack.c.h.s8.bf16 %v3649_v21  ;;  %v3746_v21 = vld [vmem:[%s11198_s0 + $0x1450] sm:$0xff] }
 0x653   : > { %7060 = vmatpush1.bf16.msra.mxu0 %v4994_v41  ;;  %6897 = vmatprep.subr.bf16.mxu1 %v5025_v42  ;;  %v5251_v41 = vunpack.c.h.s8.bf16 %v3651_v23  ;;  %v3681_v42 = vld [vmem:[%s11198_s0 + $0x1248] sm:$0xff]  ;;  %v5410_v23 = vunpack.c.l.s8.bf16 %v3746_v21  ;;  %v5442_v36 = vunpack.c.h.s8.bf16 %v3746_v21 }
 0x654   : > { %7061 = vmatprep.subr.bf16.mxu0 %v5027_v39  ;;  %v5248_v39 = vunpack.c.h.s8.bf16 %v3648_v30  ;;  %v3779_v30 = vld [vmem:[%s11198_s0 + $0x1558] sm:$0xff] }
 0x656   : > { %6898 = vmatpush1.bf16.msra.mxu1 %v5024_v44  ;;  %v5281_v44 = vunpack.c.l.s8.bf16 %v3681_v42 }
 0x657   : > { %7062 = vmatpush1.bf16.msra.mxu0 %v5026_v45  ;;  %6899 = vmatprep.subr.bf16.mxu1 %v5057_v48  ;;  %v3680_v45 = vld [vmem:[%s11198_s0 + $0x1240] sm:$0xff]  ;;  %v5283_v48 = vunpack.c.l.s8.bf16 %v3683_v33 }
 0x658   : > { %7063 = vmatprep.subr.bf16.mxu0 %v5059_v49  ;;  %v3682_v49 = vld [vmem:[%s11198_s0 + $0x1250] sm:$0xff]  ;;  %v5280_v53 = vunpack.c.l.s8.bf16 %v3680_v45 }
 0x659   : > { %v5282_v55 = vunpack.c.l.s8.bf16 %v3682_v49  ;;  %v5314_v3 = vunpack.c.h.s8.bf16 %v3682_v49 }
 0x65a   : > { %6900 = vmatpush1.bf16.msra.mxu1 %v5056_v58  ;;  %v5313_v58 = vunpack.c.h.s8.bf16 %v3681_v42 }
 0x65b   : > { %7064 = vmatpush1.bf16.msra.mxu0 %v5058_v61  ;;  %6901 = vmatprep.subr.bf16.mxu1 %v5089_v32  ;;  %v5315_v61 = vunpack.c.h.s8.bf16 %v3683_v33  ;;  %v3713_v32 = vld [vmem:[%s11198_s0 + $0x1348] sm:$0xff] }
 0x65c   : > { %7065 = vmatprep.subr.bf16.mxu0 %v5091_v63  ;;  %v5312_v63 = vunpack.c.h.s8.bf16 %v3680_v45  ;;  %v3811_v45 = vld [vmem:[%s11198_s0 + $0x1658] sm:$0xff] }
 0x65e   : > { %6902 = vmatpush1.bf16.msra.mxu1 %v5088_v4  ;;  %v5345_v4 = vunpack.c.l.s8.bf16 %v3713_v32 }
 0x65f   : > { %7066 = vmatpush1.bf16.msra.mxu0 %v5090_v5  ;;  %6903 = vmatprep.subr.bf16.mxu1 %v5121_v10  ;;  %v3712_v5 = vld [vmem:[%s11198_s0 + $0x1340] sm:$0xff]  ;;  %v5347_v10 = vunpack.c.l.s8.bf16 %v3715_v62 }
 0x660   : > { %7067 = vmatprep.subr.bf16.mxu0 %v5123_v6  ;;  %v3714_v6 = vld [vmem:[%s11198_s0 + $0x1350] sm:$0xff]  ;;  %v5344_v7 = vunpack.c.l.s8.bf16 %v3712_v5 }
 0x661   : > { %v5346_v8 = vunpack.c.l.s8.bf16 %v3714_v6  ;;  %v5378_v18 = vunpack.c.h.s8.bf16 %v3714_v6 }
 0x662   : > { %6904 = vmatpush1.bf16.msra.mxu1 %v5120_v11  ;;  %v5377_v11 = vunpack.c.h.s8.bf16 %v3713_v32 }
 0x663   : > { %7068 = vmatpush1.bf16.msra.mxu0 %v5122_v12  ;;  %6914 = vmatprep.subr.bf16.mxu1 %v5153_v13  ;;  %v5379_v12 = vunpack.c.h.s8.bf16 %v3715_v62  ;;  %v3745_v13 = vld [vmem:[%s11198_s0 + $0x1448] sm:$0xff] }
 0x664   : > { %7078 = vmatprep.subr.bf16.mxu0 %v5155_v15  ;;  %v5376_v15 = vunpack.c.h.s8.bf16 %v3712_v5  ;;  %v3843_v5 = vld [vmem:[%s11198_s0 + $0x1758] sm:$0xff] }
 0x665   : > { %6906 = vmatmul.mubr.bf16.vlgmr.msra.gmra.mrb[20].mxu1 %v11353_v46 }
 0x666   : > { %7070 = vmatmul.mubr.bf16.vlgmr.msra.gmra.mrb[24].mxu0 %v11353_v46  ;;  %6915 = vmatpush1.bf16.msra.mxu1 %v5152_v19  ;;  %v5409_v19 = vunpack.c.l.s8.bf16 %v3745_v13 }
 0x667   : > { %6946 = vmatprep.mubr.bf16.mxu1 %v11406_v54  ;;  %7079 = vmatpush1.bf16.msra.mxu0 %v5154_v50  ;;  %v3744_v50 = vld [vmem:[%s11198_s0 + $0x1440] sm:$0xff] }
 0x668   : > { %7110 = vmatprep.mubr.bf16.mxu0 %v11406_v54  ;;  %6916 = vmatprep.subr.bf16.mxu1 %v5185_v20  ;;  %v5411_v20 = vunpack.c.l.s8.bf16 %v3747_v14 }
 0x669   : > { %7080 = vmatprep.subr.bf16.mxu0 %v5187_v22  ;;  %v5408_v22 = vunpack.c.l.s8.bf16 %v3744_v50 }
 0x66a   : > { %6917 = vmatpush1.bf16.msra.mxu1 %v5184_v24  ;;  %v5441_v24 = vunpack.c.h.s8.bf16 %v3745_v13 }
 0x66b   : > { %7081 = vmatpush1.bf16.msra.mxu0 %v5186_v26  ;;  %6918 = vmatprep.subr.bf16.mxu1 %v5217_v27  ;;  %v5443_v26 = vunpack.c.h.s8.bf16 %v3747_v14  ;;  %v3777_v27 = vld [vmem:[%s11198_s0 + $0x1548] sm:$0xff] }
 0x66c   : > { %7082 = vmatprep.subr.bf16.mxu0 %v5219_v56  ;;  %v5440_v56 = vunpack.c.h.s8.bf16 %v3744_v50  ;;  %v3875_v50 = vld [vmem:[%s11198_s0 + $0x1858] sm:$0xff] }
 0x66e   : > { %6919 = vmatpush1.bf16.msra.mxu1 %v5216_v37  ;;  %v5473_v37 = vunpack.c.l.s8.bf16 %v3777_v27 }
 0x66f   : > { %7083 = vmatpush1.bf16.msra.mxu0 %v5218_v38  ;;  %6920 = vmatprep.subr.bf16.mxu1 %v5249_v40  ;;  %v3776_v38 = vld [vmem:[%s11198_s0 + $0x1540] sm:$0xff]  ;;  %v5475_v40 = vunpack.c.l.s8.bf16 %v3779_v30 }
 0x670   : > { %7084 = vmatprep.subr.bf16.mxu0 %v5251_v41  ;;  %v3778_v41 = vld [vmem:[%s11198_s0 + $0x1550] sm:$0xff]  ;;  %v5472_v42 = vunpack.c.l.s8.bf16 %v3776_v38 }
 0x671   : > { %v5474_v33 = vunpack.c.l.s8.bf16 %v3778_v41  ;;  %v5506_v49 = vunpack.c.h.s8.bf16 %v3778_v41 }
 0x672   : > { %6921 = vmatpush1.bf16.msra.mxu1 %v5248_v39  ;;  %v5505_v39 = vunpack.c.h.s8.bf16 %v3777_v27 }
 0x673   : > { %7085 = vmatpush1.bf16.msra.mxu0 %v5250_v43  ;;  %6922 = vmatprep.subr.bf16.mxu1 %v5281_v44  ;;  %v5507_v43 = vunpack.c.h.s8.bf16 %v3779_v30  ;;  %v3809_v44 = vld [vmem:[%s11198_s0 + $0x1648] sm:$0xff] }
 0x674   : > { %7086 = vmatprep.subr.bf16.mxu0 %v5283_v48  ;;  %v5504_v48 = vunpack.c.h.s8.bf16 %v3776_v38  ;;  %v3907_v38 = vld [vmem:[%s11198_s0 + $0x1958] sm:$0xff] }
 0x676   : > { %6923 = vmatpush1.bf16.msra.mxu1 %v5280_v53  ;;  %v5537_v53 = vunpack.c.l.s8.bf16 %v3809_v44 }
 0x677   : > { %7087 = vmatpush1.bf16.msra.mxu0 %v5282_v55  ;;  %6924 = vmatprep.subr.bf16.mxu1 %v5313_v58  ;;  %v3808_v55 = vld [vmem:[%s11198_s0 + $0x1640] sm:$0xff]  ;;  %v5539_v58 = vunpack.c.l.s8.bf16 %v3811_v45 }
 0x678   : > { %7088 = vmatprep.subr.bf16.mxu0 %v5315_v61  ;;  %v3810_v61 = vld [vmem:[%s11198_s0 + $0x1650] sm:$0xff]  ;;  %v5536_v32 = vunpack.c.l.s8.bf16 %v3808_v55 }
 0x679   : > { %v5538_v62 = vunpack.c.l.s8.bf16 %v3810_v61  ;;  %v5570_v6 = vunpack.c.h.s8.bf16 %v3810_v61 }
 0x67a   : > { %6925 = vmatpush1.bf16.msra.mxu1 %v5312_v63  ;;  %v5569_v63 = vunpack.c.h.s8.bf16 %v3809_v44 }
 0x67b   : > { %7089 = vmatpush1.bf16.msra.mxu0 %v5314_v3  ;;  %6926 = vmatprep.subr.bf16.mxu1 %v5345_v4  ;;  %v5571_v3 = vunpack.c.h.s8.bf16 %v3811_v45  ;;  %v3841_v4 = vld [vmem:[%s11198_s0 + $0x1748] sm:$0xff] }
 0x67c   : > { %7090 = vmatprep.subr.bf16.mxu0 %v5347_v10  ;;  %v5568_v10 = vunpack.c.h.s8.bf16 %v3808_v55  ;;  %v3939_v55 = vld [vmem:[%s11198_s0 + $0x1a58] sm:$0xff] }
 0x67e   : > { %6927 = vmatpush1.bf16.msra.mxu1 %v5344_v7  ;;  %v5601_v7 = vunpack.c.l.s8.bf16 %v3841_v4 }
 0x67f   : > { %7091 = vmatpush1.bf16.msra.mxu0 %v5346_v8  ;;  %6928 = vmatprep.subr.bf16.mxu1 %v5377_v11  ;;  %v3840_v8 = vld [vmem:[%s11198_s0 + $0x1740] sm:$0xff]  ;;  %v5603_v11 = vunpack.c.l.s8.bf16 %v3843_v5 }
 0x680   : > { %7092 = vmatprep.subr.bf16.mxu0 %v5379_v12  ;;  %v3842_v12 = vld [vmem:[%s11198_s0 + $0x1750] sm:$0xff]  ;;  %v5600_v13 = vunpack.c.l.s8.bf16 %v3840_v8 }
 0x681   : > { %v5602_v14 = vunpack.c.l.s8.bf16 %v3842_v12  ;;  %v5634_v21 = vunpack.c.h.s8.bf16 %v3842_v12  ;;  %v3971_v12 = vld [vmem:[%s11198_s0 + $0x1b58] sm:$0xff] }
 0x682   : > { %6929 = vmatpush1.bf16.msra.mxu1 %v5376_v15  ;;  %v5633_v15 = vunpack.c.h.s8.bf16 %v3841_v4 }
 0x683   : > { %7093 = vmatpush1.bf16.msra.mxu0 %v5378_v18  ;;  %6930 = vmatprep.subr.bf16.mxu1 %v5409_v19  ;;  %v5635_v18 = vunpack.c.h.s8.bf16 %v3843_v5  ;;  %v3873_v19 = vld [vmem:[%s11198_s0 + $0x1848] sm:$0xff] }
 0x684   : > { %7094 = vmatprep.subr.bf16.mxu0 %v5411_v20  ;;  %v5632_v20 = vunpack.c.h.s8.bf16 %v3840_v8  ;;  %v10455_v8 = vld [vmem:[%s11581_s10] sm:$0xff] }
 0x686   : > { %6931 = vmatpush1.bf16.msra.mxu1 %v5408_v22  ;;  %v5665_v22 = vunpack.c.l.s8.bf16 %v3873_v19 }
 0x687   : > { %7095 = vmatpush1.bf16.msra.mxu0 %v5410_v23  ;;  %6932 = vmatprep.subr.bf16.mxu1 %v5441_v24  ;;  %v3872_v23 = vld [vmem:[%s11198_s0 + $0x1840] sm:$0xff]  ;;  %v5667_v24 = vunpack.c.l.s8.bf16 %v3875_v50 }
 0x688   : > { %7096 = vmatprep.subr.bf16.mxu0 %v5443_v26  ;;  %v3874_v26 = vld [vmem:[%s11198_s0 + $0x1850] sm:$0xff]  ;;  %v5664_v27 = vunpack.c.l.s8.bf16 %v3872_v23 }
 0x689   : > { %v5666_v30 = vunpack.c.l.s8.bf16 %v3874_v26  ;;  %v5698_v41 = vunpack.c.h.s8.bf16 %v3874_v26 }
 0x68a   : > { %6933 = vmatpush1.bf16.msra.mxu1 %v5440_v56  ;;  %v5697_v56 = vunpack.c.h.s8.bf16 %v3873_v19 }
 0x68b   : > { %7097 = vmatpush1.bf16.msra.mxu0 %v5442_v36  ;;  %6934 = vmatprep.subr.bf16.mxu1 %v5473_v37  ;;  %v3905_v36 = vld [vmem:[%s11198_s0 + $0x1948] sm:$0xff]  ;;  %v5699_v37 = vunpack.c.h.s8.bf16 %v3875_v50  ;;  %v8839_v50 = vrot.slane %v10455_v8, %v11390_v16 }
 0x68c   : > { %7098 = vmatprep.subr.bf16.mxu0 %v5475_v40  ;;  %v5696_v40 = vunpack.c.h.s8.bf16 %v3872_v23 }
 0x68e   : > { %6935 = vmatpush1.bf16.msra.mxu1 %v5472_v42  ;;  %v5729_v42 = vunpack.c.l.s8.bf16 %v3905_v36 }
 0x68f   : > { %7099 = vmatpush1.bf16.msra.mxu0 %v5474_v33  ;;  %6936 = vmatprep.subr.bf16.mxu1 %v5505_v39  ;;  %v3904_v33 = vld [vmem:[%s11198_s0 + $0x1940] sm:$0xff]  ;;  %v5731_v39 = vunpack.c.l.s8.bf16 %v3907_v38 }
 0x690   : > { %7100 = vmatprep.subr.bf16.mxu0 %v5507_v43  ;;  %v3906_v43 = vld [vmem:[%s11198_s0 + $0x1950] sm:$0xff]  ;;  %v5728_v44 = vunpack.c.l.s8.bf16 %v3904_v33 }
 0x691   : > { %v5730_v45 = vunpack.c.l.s8.bf16 %v3906_v43  ;;  %v5762_v61 = vunpack.c.h.s8.bf16 %v3906_v43 }
 0x692   : > { %6937 = vmatpush1.bf16.msra.mxu1 %v5504_v48  ;;  %v5761_v48 = vunpack.c.h.s8.bf16 %v3905_v36 }
 0x693   : > { %7101 = vmatpush1.bf16.msra.mxu0 %v5506_v49  ;;  %6938 = vmatprep.subr.bf16.mxu1 %v5537_v53  ;;  %v5763_v49 = vunpack.c.h.s8.bf16 %v3907_v38  ;;  %v3937_v53 = vld [vmem:[%s11198_s0 + $0x1a48] sm:$0xff] }
 0x694   : > { %7102 = vmatprep.subr.bf16.mxu0 %v5539_v58  ;;  %v5760_v58 = vunpack.c.h.s8.bf16 %v3904_v33 }
 0x696   : > { %6939 = vmatpush1.bf16.msra.mxu1 %v5536_v32  ;;  %v5793_v32 = vunpack.c.l.s8.bf16 %v3937_v53 }
 0x697   : > { %7103 = vmatpush1.bf16.msra.mxu0 %v5538_v62  ;;  %6940 = vmatprep.subr.bf16.mxu1 %v5569_v63  ;;  %v3936_v62 = vld [vmem:[%s11198_s0 + $0x1a40] sm:$0xff]  ;;  %v5795_v63 = vunpack.c.l.s8.bf16 %v3939_v55 }
 0x698   : > { %7104 = vmatprep.subr.bf16.mxu0 %v5571_v3  ;;  %v3938_v3 = vld [vmem:[%s11198_s0 + $0x1a50] sm:$0xff]  ;;  %v5792_v4 = vunpack.c.l.s8.bf16 %v3936_v62 }
 0x699   : > { %v5794_v5 = vunpack.c.l.s8.bf16 %v3938_v3 }
 0x69a   : > { %6941 = vmatpush1.bf16.msra.mxu1 %v5568_v10  ;;  %v5825_v10 = vunpack.c.h.s8.bf16 %v3937_v53 }
 0x69b   : > { %7105 = vmatpush1.bf16.msra.mxu0 %v5570_v6  ;;  %6942 = vmatprep.subr.bf16.mxu1 %v5601_v7  ;;  %v5827_v6 = vunpack.c.h.s8.bf16 %v3939_v55  ;;  %v3969_v7 = vld [vmem:[%s11198_s0 + $0x1b48] sm:$0xff] }
 0x69c   : > { %7106 = vmatprep.subr.bf16.mxu0 %v5603_v11  ;;  %v8827_v11 = vrot.slane %v10455_v8, %v11384_v34  ;;  %v5889_v53 = vunpack.c.h.s8.bf16 %v3969_v7 }
 0x69e   : > { %6943 = vmatpush1.bf16.msra.mxu1 %v5600_v13  ;;  %v8835_v13 = vrot.slane %v10455_v8, %v11443_v25 }
 0x69f   : > { %7107 = vmatpush1.bf16.msra.mxu0 %v5602_v14  ;;  %6944 = vmatprep.subr.bf16.mxu1 %v5633_v15  ;;  %v8831_v14 = vrot.slane %v10455_v8, %v11387_v17  ;;  %v5824_v15 = vunpack.c.h.s8.bf16 %v3936_v62  ;;  %v4001_v62 = vld [vmem:[%s11198_s0 + $0x1c48] sm:$0xff] }
 0x6a0   : > { %7108 = vmatprep.subr.bf16.mxu0 %v5635_v18  ;;  %v10456_v18 = vld [vmem:[%s11585_s29] sm:$0xff]  ;;  %v5921_v8 = vunpack.c.l.s8.bf16 %v4001_v62 }
 0x6a1   : > { %v9027_v19 = vrot.slane %v10456_v18, %v11384_v34  ;;  %v9031_v26 = vrot.slane %v10456_v18, %v11387_v17  ;;  %v9039_v38 = vrot.slane %v10456_v18, %v11390_v16 }
 0x6a2   : > { %6945 = vmatpush1.bf16.msra.mxu1 %v5632_v20  ;;  %v5826_v20 = vunpack.c.h.s8.bf16 %v3938_v3  ;;  %v4003_v3 = vld [vmem:[%s11198_s0 + $0x1c58] sm:$0xff] }
 0x6a3   : > { %7109 = vmatpush1.bf16.msra.mxu0 %v5634_v21  ;;  %6955 = vmatprep.subr.bf16.mxu1 %v5665_v22  ;;  %v5857_v21 = vunpack.c.l.s8.bf16 %v3969_v7  ;;  %v3968_v22 = vld [vmem:[%s11198_s0 + $0x1b40] sm:$0xff] }
 0x6a4   : > { %7119 = vmatprep.subr.bf16.mxu0 %v5667_v24  ;;  %v9035_v24 = vrot.slane %v10456_v18, %v11443_v25  ;;  %v4000_v7 = vld [vmem:[%s11198_s0 + $0x1c40] sm:$0xff] }
 0x6a5   : > { %6947 = vmatmul.mubr.bf16.vlgmr.msra.gmra.mrb[20].mxu1 %v11408_v9 }
 0x6a6   : > { %7111 = vmatmul.mubr.bf16.vlgmr.msra.gmra.mrb[24].mxu0 %v11408_v9  ;;  %6956 = vmatpush1.bf16.msra.mxu1 %v5664_v27  ;;  %v5859_v27 = vunpack.c.l.s8.bf16 %v3971_v12 }
 0x6a7   : > { %6987 = vmatprep.mubr.bf16.mxu1 %v11414_v2  ;;  %7120 = vmatpush1.bf16.msra.mxu0 %v5666_v30  ;;  %v3970_v30 = vld [vmem:[%s11198_s0 + $0x1b50] sm:$0xff] }
 0x6a8   : > { %7151 = vmatprep.mubr.bf16.mxu0 %v11414_v2  ;;  %6957 = vmatprep.subr.bf16.mxu1 %v5697_v56 }
 0x6a9   : > { %7121 = vmatprep.subr.bf16.mxu0 %v5699_v37 }
 0x6aa   : > { %6958 = vmatpush1.bf16.msra.mxu1 %v5696_v40 }
 0x6ab   : > { %7122 = vmatpush1.bf16.msra.mxu0 %v5698_v41  ;;  %6959 = vmatprep.subr.bf16.mxu1 %v5729_v42 }
 0x6ac   : > { %7123 = vmatprep.subr.bf16.mxu0 %v5731_v39  ;;  %v5856_v39 = vunpack.c.l.s8.bf16 %v3968_v22 }
 0x6ae   : > { %6960 = vmatpush1.bf16.msra.mxu1 %v5728_v44 }
 0x6af   : > { %7124 = vmatpush1.bf16.msra.mxu0 %v5730_v45  ;;  %6961 = vmatprep.subr.bf16.mxu1 %v5761_v48 }
 0x6b0   : > { %7125 = vmatprep.subr.bf16.mxu0 %v5763_v49  ;;  %v5858_v49 = vunpack.c.l.s8.bf16 %v3970_v30 }
 0x6b2   : > { %6962 = vmatpush1.bf16.msra.mxu1 %v5760_v58 }
 0x6b3   : > { %7126 = vmatpush1.bf16.msra.mxu0 %v5762_v61  ;;  %6963 = vmatprep.subr.bf16.mxu1 %v5793_v32  ;;  %v5891_v32 = vunpack.c.h.s8.bf16 %v3971_v12  ;;  %v4002_v12 = vld [vmem:[%s11198_s0 + $0x1c50] sm:$0xff] }
 0x6b4   : > { %7127 = vmatprep.subr.bf16.mxu0 %v5795_v63 }
 0x6b6   : > { %6964 = vmatpush1.bf16.msra.mxu1 %v5792_v4 }
 0x6b7   : > { %7128 = vmatpush1.bf16.msra.mxu0 %v5794_v5  ;;  %6965 = vmatprep.subr.bf16.mxu1 %v5825_v10  ;;  %v5888_v5 = vunpack.c.h.s8.bf16 %v3968_v22  ;;  %v9272_v22 = vrot.slane %v9264_v52, %v11601_v35 }
 0x6b8   : > { %v6661_v23 = vpop.f32.mrb[16].mxu1  ;;  %7129 = vmatprep.subr.bf16.mxu0 %v5827_v6  ;;  %v5890_v6 = vunpack.c.h.s8.bf16 %v3970_v30  ;;  %v5954_v30 = vunpack.c.h.s8.bf16 %v4002_v12 }
 0x6b9   : > { %v8972_v56 = vmul.f32 %v8827_v11, %v6661_v23  ;;  %v6825_v36 = vpop.f32.mrb[20].mxu0  ;;  %v6663_v37 = vpop.f32.mrb[17].mxu1 }
 0x6ba   : > { %v8974_v40 = vmul.f32 %v8835_v13, %v6825_v36  ;;  %v8973_v41 = vmul.f32 %v8831_v14, %v6663_v37  ;;  %v6827_v42 = vpop.f32.mrb[21].mxu0  ;;  %v6665_v33 = vpop.f32.mrb[18].mxu1  ;;  %6966 = vmatpush1.bf16.msra.mxu1 %v5824_v15  ;;  %v5923_v13 = vunpack.c.l.s8.bf16 %v4003_v3  ;;  %v5920_v15 = vunpack.c.l.s8.bf16 %v4000_v7  ;;  %v4032_v36 = vld [vmem:[%s11198_s0 + $0x1d40] sm:$0xff] }
 0x6bb   : > { %v9172_v43 = vadd.f32 %v9027_v19, %v8972_v56  ;;  %v8975_v44 = vmul.f32 %v8839_v50, %v6827_v42  ;;  %v6829_v45 = vpop.f32.mrb[22].mxu0  ;;  %7130 = vmatpush1.bf16.msra.mxu0 %v5826_v20  ;;  %v6666_v48 = vpop.f32.mrb[19].mxu1  ;;  %6967 = vmatprep.subr.bf16.mxu1 %v5857_v21  ;;  %v5922_v19 = vunpack.c.l.s8.bf16 %v4002_v12  ;;  %v5953_v50 = vunpack.c.h.s8.bf16 %v4001_v62  ;;  %v4033_v21 = vld [vmem:[%s11198_s0 + $0x1d48] sm:$0xff]  ;;  %v4067_v42 = vld [vmem:[%s11198_s0 + $0x1e58] sm:$0xff] }
 0x6bc   : > { %v9174_v55 = vadd.f32 %v9035_v24, %v8974_v40  ;;  %v9173_v58 = vadd.f32 %v9031_v26, %v8973_v41  ;;  %v6830_v61 = vpop.f32.mrb[23].mxu0  ;;  %7131 = vmatprep.subr.bf16.mxu0 %v5859_v27  ;;  %v5955_v20 = vunpack.c.h.s8.bf16 %v4003_v3  ;;  %v4035_v24 = vld [vmem:[%s11198_s0 + $0x1d58] sm:$0xff]  ;;  %v5952_v26 = vunpack.c.h.s8.bf16 %v4000_v7  ;;  %v4065_v41 = vld [vmem:[%s11198_s0 + $0x1e48] sm:$0xff]  ;;  %v4066_v48 = vld [vmem:[%s11198_s0 + $0x1e50] sm:$0xff] }
 0x6bd   : > { %v9175_v63 = vadd.f32 %v9039_v38, %v8975_v44  ;;  %v5985_v56 = vunpack.c.l.s8.bf16 %v4033_v21  ;;  %v5987_v37 = vunpack.c.l.s8.bf16 %v4035_v24  ;;  %v4034_v38 = vld [vmem:[%s11198_s0 + $0x1d50] sm:$0xff]  ;;  %v5984_v28 = vunpack.c.l.s8.bf16 %v4032_v36  ;;  %v4064_v44 = vld [vmem:[%s11198_s0 + $0x1e40] sm:$0xff]  ;;  %v4097_v61 = vld [vmem:[%s11198_s0 + $0x1f48] sm:$0xff] }
 0x6be   : > { %v9234_v4 = vcombine.low %v9172_v43, %v9173_v58  ;;  %6968 = vmatpush1.bf16.msra.mxu1 %v5856_v39  ;;  %v5986_v47 = vunpack.c.l.s8.bf16 %v4034_v38  ;;  %v6017_v52 = vunpack.c.h.s8.bf16 %v4033_v21  ;;  %v6019_v40 = vunpack.c.h.s8.bf16 %v4035_v24  ;;  %v3111_v12 = vld [vmem:[%s11198_s0 + $0x78] sm:$0xff]  ;;  %v3141_v24 = vld [vmem:[%s11198_s0 + $0x168] sm:$0xff] }
 0x6bf   : > { %v9235_v10 = vcombine.low %v9174_v55, %v9175_v63  ;;  %7132 = vmatpush1.bf16.msra.mxu0 %v5858_v49  ;;  %6969 = vmatprep.subr.bf16.mxu1 %v5889_v53  ;;  %v6016_v33 = vunpack.c.h.s8.bf16 %v4032_v36  ;;  %v6018_v39 = vunpack.c.h.s8.bf16 %v4034_v38  ;;  %v6049_v43 = vunpack.c.l.s8.bf16 %v4065_v41 }
 0x6c0   : > { %v9256_v11 = vrot.slane %v9234_v4, %v11601_v35  ;;  %7133 = vmatprep.subr.bf16.mxu0 %v5891_v32  ;;  %v6051_v45 = vunpack.c.l.s8.bf16 %v4067_v42  ;;  %v6048_v49 = vunpack.c.l.s8.bf16 %v4064_v44  ;;  %v6050_v53 = vunpack.c.l.s8.bf16 %v4066_v48  ;;  %v4099_v32 = vld [vmem:[%s11198_s0 + $0x1f58] sm:$0xff]  ;;  %v4096_v4 = vld [vmem:[%s11198_s0 + $0x1f40] sm:$0xff] }
 0x6c1   : > { %v9263_v14 = vrot.slane %v9235_v10, %v11601_v35  ;;  %v6081_v55 = vunpack.c.h.s8.bf16 %v4065_v41  ;;  %v6083_v58 = vunpack.c.h.s8.bf16 %v4067_v42  ;;  %v6080_v62 = vunpack.c.h.s8.bf16 %v4064_v44  ;;  %v4098_v10 = vld [vmem:[%s11198_s0 + $0x1f50] sm:$0xff]  ;;  %v3173_v42 = vld [vmem:[%s11198_s0 + $0x268] sm:$0xff] }
 0x6c2   : > { %6970 = vmatpush1.bf16.msra.mxu1 %v5888_v5  ;;  %v6082_v63 = vunpack.c.h.s8.bf16 %v4066_v48  ;;  %v6113_v3 = vunpack.c.l.s8.bf16 %v4097_v61  ;;  %v6115_v5 = vunpack.c.l.s8.bf16 %v4099_v32  ;;  %v6145_v7 = vunpack.c.h.s8.bf16 %v4097_v61 }
 0x6c3   : > { %v9265_v18 = vcombine.low %v9256_v11, %v9263_v14  ;;  %7134 = vmatpush1.bf16.msra.mxu0 %v5890_v6  ;;  %6971 = vmatprep.subr.bf16.mxu1 %v5921_v8  ;;  %v6112_v6 = vunpack.c.l.s8.bf16 %v4096_v4  ;;  %v6114_v8 = vunpack.c.l.s8.bf16 %v4098_v10  ;;  %v6147_v11 = vunpack.c.h.s8.bf16 %v4099_v32  ;;  %v3205_v32 = vld [vmem:[%s11198_s0 + $0x368] sm:$0xff] }
 0x6c4   : > { %7135 = vmatprep.subr.bf16.mxu0 %v5923_v13  ;;  %v3109_v13 = vld [vmem:[%s11198_s0 + $0x68] sm:$0xff]  ;;  %v6144_v14 = vunpack.c.h.s8.bf16 %v4096_v4  ;;  %v4197_v36 = vunpack.c.l.s8.bf16 %v3141_v24  ;;  %v4261_v44 = vunpack.c.l.s8.bf16 %v3173_v42  ;;  %v4325_v4 = vunpack.c.l.s8.bf16 %v3205_v32 }
 0x6c5   : > { %v9279_v23 = vrot.slane %v9265_v18, %v11601_v35  ;;  %v4133_v18 = vunpack.c.l.s8.bf16 %v3109_v13 }
 0x6c6   : > { %6972 = vmatpush1.bf16.msra.mxu1 %v5920_v15  ;;  %v6146_v15 = vunpack.c.h.s8.bf16 %v4098_v10 }
 0x6c7   : > { %v9280_v27 = vcombine.low %v9272_v22, %v9279_v23  ;;  %7136 = vmatpush1.bf16.msra.mxu0 %v5922_v19  ;;  %6973 = vmatprep.subr.bf16.mxu1 %v5953_v50  ;;  %v3108_v19 = vld [vmem:[%s11198_s0 + $0x60] sm:$0xff]  ;;  %v4135_v50 = vunpack.c.l.s8.bf16 %v3111_v12  ;;  %v4165_v23 = vunpack.c.h.s8.bf16 %v3109_v13 }
 0x6c8   : > { %7137 = vmatprep.subr.bf16.mxu0 %v5955_v20  ;;  %v3110_v20 = vld [vmem:[%s11198_s0 + $0x70] sm:$0xff]  ;;  %v4132_v21 = vunpack.c.l.s8.bf16 %v3108_v19 }
 0x6c9   : > { %9432 = vst [vmem:[%s11781_s2] sm:$0xff] %v9280_v27  ;;  %v4134_v22 = vunpack.c.l.s8.bf16 %v3110_v20  ;;  %v3143_v27 = vld [vmem:[%s11198_s0 + $0x178] sm:$0xff] }
 0x6ca   : > { %6974 = vmatpush1.bf16.msra.mxu1 %v5952_v26  ;;  %v4167_v26 = vunpack.c.h.s8.bf16 %v3111_v12  ;;  %v4199_v38 = vunpack.c.l.s8.bf16 %v3143_v27  ;;  %v4231_v41 = vunpack.c.h.s8.bf16 %v3143_v27  ;;  %v3237_v12 = vld [vmem:[%s11198_s0 + $0x468] sm:$0xff] }
 0x6cb   : > { %7138 = vmatpush1.bf16.msra.mxu0 %v5954_v30  ;;  %6975 = vmatprep.subr.bf16.mxu1 %v5985_v56  ;;  %v4164_v30 = vunpack.c.h.s8.bf16 %v3108_v19  ;;  %v4166_v56 = vunpack.c.h.s8.bf16 %v3110_v20  ;;  %v4389_v19 = vunpack.c.l.s8.bf16 %v3237_v12  ;;  %v3269_v27 = vld [vmem:[%s11198_s0 + $0x568] sm:$0xff] }
 0x6cc   : > { %7139 = vmatprep.subr.bf16.mxu0 %v5987_v37  ;;  %v3140_v37 = vld [vmem:[%s11198_s0 + $0x160] sm:$0xff] }
 0x6ce   : > { %6976 = vmatpush1.bf16.msra.mxu1 %v5984_v28  ;;  %v3142_v28 = vld [vmem:[%s11198_s0 + $0x170] sm:$0xff] }
 0x6cf   : > { %7140 = vmatpush1.bf16.msra.mxu0 %v5986_v47  ;;  %6977 = vmatprep.subr.bf16.mxu1 %v6017_v52  ;;  %v4196_v47 = vunpack.c.l.s8.bf16 %v3140_v37  ;;  %v4198_v52 = vunpack.c.l.s8.bf16 %v3142_v28 }
 0x6d0   : > { %7141 = vmatprep.subr.bf16.mxu0 %v6019_v40  ;;  %v4229_v40 = vunpack.c.h.s8.bf16 %v3141_v24  ;;  %v4421_v24 = vunpack.c.h.s8.bf16 %v3237_v12 }
 0x6d2   : > { %6978 = vmatpush1.bf16.msra.mxu1 %v6016_v33  ;;  %v3175_v33 = vld [vmem:[%s11198_s0 + $0x278] sm:$0xff] }
 0x6d3   : > { %7142 = vmatpush1.bf16.msra.mxu0 %v6018_v39  ;;  %6979 = vmatprep.subr.bf16.mxu1 %v6049_v43  ;;  %v4228_v39 = vunpack.c.h.s8.bf16 %v3140_v37  ;;  %v4230_v43 = vunpack.c.h.s8.bf16 %v3142_v28  ;;  %v4263_v48 = vunpack.c.l.s8.bf16 %v3175_v33  ;;  %v4295_v61 = vunpack.c.h.s8.bf16 %v3175_v33  ;;  %v3301_v33 = vld [vmem:[%s11198_s0 + $0x668] sm:$0xff] }
 0x6d4   : > { %7143 = vmatprep.subr.bf16.mxu0 %v6051_v45  ;;  %v3172_v45 = vld [vmem:[%s11198_s0 + $0x260] sm:$0xff]  ;;  %v4453_v37 = vunpack.c.l.s8.bf16 %v3269_v27 }
 0x6d6   : > { %6980 = vmatpush1.bf16.msra.mxu1 %v6048_v49  ;;  %v3174_v49 = vld [vmem:[%s11198_s0 + $0x270] sm:$0xff] }
 0x6d7   : > { %7144 = vmatpush1.bf16.msra.mxu0 %v6050_v53  ;;  %6981 = vmatprep.subr.bf16.mxu1 %v6081_v55  ;;  %v4260_v53 = vunpack.c.l.s8.bf16 %v3172_v45  ;;  %v4262_v55 = vunpack.c.l.s8.bf16 %v3174_v49 }
 0x6d8   : > { %7145 = vmatprep.subr.bf16.mxu0 %v6083_v58  ;;  %v4293_v58 = vunpack.c.h.s8.bf16 %v3173_v42 }
 0x6da   : > { %6982 = vmatpush1.bf16.msra.mxu1 %v6080_v62  ;;  %v3207_v62 = vld [vmem:[%s11198_s0 + $0x378] sm:$0xff] }
 0x6db   : > { %7146 = vmatpush1.bf16.msra.mxu0 %v6082_v63  ;;  %6983 = vmatprep.subr.bf16.mxu1 %v6113_v3  ;;  %v4292_v63 = vunpack.c.h.s8.bf16 %v3172_v45  ;;  %v4294_v3 = vunpack.c.h.s8.bf16 %v3174_v49  ;;  %v4327_v10 = vunpack.c.l.s8.bf16 %v3207_v62  ;;  %v4359_v13 = vunpack.c.h.s8.bf16 %v3207_v62  ;;  %v3333_v62 = vld [vmem:[%s11198_s0 + $0x768] sm:$0xff] }
 0x6dc   : > { %7147 = vmatprep.subr.bf16.mxu0 %v6115_v5  ;;  %v3204_v5 = vld [vmem:[%s11198_s0 + $0x360] sm:$0xff]  ;;  %v4517_v45 = vunpack.c.l.s8.bf16 %v3301_v33 }
 0x6de   : > { %6984 = vmatpush1.bf16.msra.mxu1 %v6112_v6  ;;  %v3206_v6 = vld [vmem:[%s11198_s0 + $0x370] sm:$0xff] }
 0x6df   : > { %7148 = vmatpush1.bf16.msra.mxu0 %v6114_v8  ;;  %6985 = vmatprep.subr.bf16.mxu1 %v6145_v7  ;;  %v4324_v8 = vunpack.c.l.s8.bf16 %v3204_v5  ;;  %v4326_v7 = vunpack.c.l.s8.bf16 %v3206_v6 }
 0x6e0   : > { %7149 = vmatprep.subr.bf16.mxu0 %v6147_v11  ;;  %v4357_v11 = vunpack.c.h.s8.bf16 %v3205_v32 }
 0x6e2   : > { %6986 = vmatpush1.bf16.msra.mxu1 %v6144_v14  ;;  %v3239_v14 = vld [vmem:[%s11198_s0 + $0x478] sm:$0xff] }
 0x6e3   : > { %7150 = vmatpush1.bf16.msra.mxu0 %v6146_v15  ;;  %7160 = vmatprep.subr.bf16.mxu1 %v4133_v18  ;;  %v4356_v15 = vunpack.c.h.s8.bf16 %v3204_v5  ;;  %v4358_v18 = vunpack.c.h.s8.bf16 %v3206_v6  ;;  %v4391_v20 = vunpack.c.l.s8.bf16 %v3239_v14  ;;  %v4581_v5 = vunpack.c.l.s8.bf16 %v3333_v62 }
 0x6e4   : > { %7324 = vmatprep.subr.bf16.mxu0 %v4135_v50  ;;  %v3236_v50 = vld [vmem:[%s11198_s0 + $0x460] sm:$0xff] }
 0x6e5   : > { %6988 = vmatmul.mubr.bf16.vlgmr.msra.gmra.mrb[20].mxu1 %v11455_v0 }
 0x6e6   : > { %7152 = vmatmul.mubr.bf16.vlgmr.msra.gmra.mrb[24].mxu0 %v11455_v0  ;;  %7161 = vmatpush1.bf16.msra.mxu1 %v4132_v21  ;;  %v3238_v21 = vld [vmem:[%s11198_s0 + $0x470] sm:$0xff] }
 0x6e7   : > { %7192 = vmatprep.mubr.bf16.mxu1 %v11306_v57  ;;  %7325 = vmatpush1.bf16.msra.mxu0 %v4134_v22  ;;  %v4388_v22 = vunpack.c.l.s8.bf16 %v3236_v50 }
 0x6e8   : > { %7356 = vmatprep.mubr.bf16.mxu0 %v11306_v57  ;;  %7162 = vmatprep.subr.bf16.mxu1 %v4165_v23  ;;  %v4390_v23 = vunpack.c.l.s8.bf16 %v3238_v21 }
 0x6e9   : > { %7326 = vmatprep.subr.bf16.mxu0 %v4167_v26  ;;  %v4423_v26 = vunpack.c.h.s8.bf16 %v3239_v14  ;;  %v3365_v14 = vld [vmem:[%s11198_s0 + $0x868] sm:$0xff] }
 0x6ea   : > { %7163 = vmatpush1.bf16.msra.mxu1 %v4164_v30  ;;  %v3271_v30 = vld [vmem:[%s11198_s0 + $0x578] sm:$0xff] }
 0x6eb   : > { %7327 = vmatpush1.bf16.msra.mxu0 %v4166_v56  ;;  %7164 = vmatprep.subr.bf16.mxu1 %v4197_v36  ;;  %v4420_v56 = vunpack.c.h.s8.bf16 %v3236_v50  ;;  %v4422_v36 = vunpack.c.h.s8.bf16 %v3238_v21  ;;  %v4455_v28 = vunpack.c.l.s8.bf16 %v3271_v30  ;;  %v4487_v42 = vunpack.c.h.s8.bf16 %v3271_v30 }
 0x6ec   : > { %7328 = vmatprep.subr.bf16.mxu0 %v4199_v38  ;;  %v3268_v38 = vld [vmem:[%s11198_s0 + $0x560] sm:$0xff]  ;;  %v4645_v50 = vunpack.c.l.s8.bf16 %v3365_v14 }
 0x6ee   : > { %7165 = vmatpush1.bf16.msra.mxu1 %v4196_v47  ;;  %v3270_v47 = vld [vmem:[%s11198_s0 + $0x570] sm:$0xff] }
 0x6ef   : > { %7329 = vmatpush1.bf16.msra.mxu0 %v4198_v52  ;;  %7166 = vmatprep.subr.bf16.mxu1 %v4229_v40  ;;  %v4452_v52 = vunpack.c.l.s8.bf16 %v3268_v38  ;;  %v4454_v40 = vunpack.c.l.s8.bf16 %v3270_v47 }
 0x6f0   : > { %7330 = vmatprep.subr.bf16.mxu0 %v4231_v41  ;;  %v4485_v41 = vunpack.c.h.s8.bf16 %v3269_v27  ;;  %v3397_v27 = vld [vmem:[%s11198_s0 + $0x968] sm:$0xff] }
 0x6f2   : > { %7167 = vmatpush1.bf16.msra.mxu1 %v4228_v39  ;;  %v3303_v39 = vld [vmem:[%s11198_s0 + $0x678] sm:$0xff] }
 0x6f3   : > { %7331 = vmatpush1.bf16.msra.mxu0 %v4230_v43  ;;  %7168 = vmatprep.subr.bf16.mxu1 %v4261_v44  ;;  %v4484_v43 = vunpack.c.h.s8.bf16 %v3268_v38  ;;  %v4486_v44 = vunpack.c.h.s8.bf16 %v3270_v47  ;;  %v4519_v49 = vunpack.c.l.s8.bf16 %v3303_v39  ;;  %v4551_v32 = vunpack.c.h.s8.bf16 %v3303_v39  ;;  %v3429_v39 = vld [vmem:[%s11198_s0 + $0xa68] sm:$0xff] }
 0x6f4   : > { %7332 = vmatprep.subr.bf16.mxu0 %v4263_v48  ;;  %v3300_v48 = vld [vmem:[%s11198_s0 + $0x660] sm:$0xff]  ;;  %v4709_v38 = vunpack.c.l.s8.bf16 %v3397_v27 }
 0x6f6   : > { %7169 = vmatpush1.bf16.msra.mxu1 %v4260_v53  ;;  %v3302_v53 = vld [vmem:[%s11198_s0 + $0x670] sm:$0xff] }
 0x6f7   : > { %7333 = vmatpush1.bf16.msra.mxu0 %v4262_v55  ;;  %7170 = vmatprep.subr.bf16.mxu1 %v4293_v58  ;;  %v4516_v55 = vunpack.c.l.s8.bf16 %v3300_v48  ;;  %v4518_v58 = vunpack.c.l.s8.bf16 %v3302_v53 }
 0x6f8   : > { %7334 = vmatprep.subr.bf16.mxu0 %v4295_v61  ;;  %v4549_v61 = vunpack.c.h.s8.bf16 %v3301_v33 }
 0x6fa   : > { %7171 = vmatpush1.bf16.msra.mxu1 %v4292_v63  ;;  %v3335_v63 = vld [vmem:[%s11198_s0 + $0x778] sm:$0xff] }
 0x6fb   : > { %7335 = vmatpush1.bf16.msra.mxu0 %v4294_v3  ;;  %7172 = vmatprep.subr.bf16.mxu1 %v4325_v4  ;;  %v4548_v3 = vunpack.c.h.s8.bf16 %v3300_v48  ;;  %v4550_v4 = vunpack.c.h.s8.bf16 %v3302_v53  ;;  %v4583_v6 = vunpack.c.l.s8.bf16 %v3335_v63  ;;  %v4615_v12 = vunpack.c.h.s8.bf16 %v3335_v63  ;;  %v3461_v63 = vld [vmem:[%s11198_s0 + $0xb68] sm:$0xff] }
 0x6fc   : > { %7336 = vmatprep.subr.bf16.mxu0 %v4327_v10  ;;  %v3332_v10 = vld [vmem:[%s11198_s0 + $0x760] sm:$0xff]  ;;  %v4773_v48 = vunpack.c.l.s8.bf16 %v3429_v39 }
 0x6fe   : > { %7173 = vmatpush1.bf16.msra.mxu1 %v4324_v8  ;;  %v3334_v8 = vld [vmem:[%s11198_s0 + $0x770] sm:$0xff] }
 0x6ff   : > { %7337 = vmatpush1.bf16.msra.mxu0 %v4326_v7  ;;  %7174 = vmatprep.subr.bf16.mxu1 %v4357_v11  ;;  %v4580_v7 = vunpack.c.l.s8.bf16 %v3332_v10  ;;  %v4582_v11 = vunpack.c.l.s8.bf16 %v3334_v8 }
 0x700   : > { %7338 = vmatprep.subr.bf16.mxu0 %v4359_v13  ;;  %v4613_v13 = vunpack.c.h.s8.bf16 %v3333_v62 }
 0x702   : > { %7175 = vmatpush1.bf16.msra.mxu1 %v4356_v15  ;;  %v3367_v15 = vld [vmem:[%s11198_s0 + $0x878] sm:$0xff] }
 0x703   : > { %7339 = vmatpush1.bf16.msra.mxu0 %v4358_v18  ;;  %7176 = vmatprep.subr.bf16.mxu1 %v4389_v19  ;;  %v4612_v18 = vunpack.c.h.s8.bf16 %v3332_v10  ;;  %v4614_v19 = vunpack.c.h.s8.bf16 %v3334_v8  ;;  %v4647_v21 = vunpack.c.l.s8.bf16 %v3367_v15  ;;  %v4679_v30 = vunpack.c.h.s8.bf16 %v3367_v15  ;;  %v3493_v15 = vld [vmem:[%s11198_s0 + $0xc68] sm:$0xff] }
 0x704   : > { %7340 = vmatprep.subr.bf16.mxu0 %v4391_v20  ;;  %v3364_v20 = vld [vmem:[%s11198_s0 + $0x860] sm:$0xff]  ;;  %v4837_v10 = vunpack.c.l.s8.bf16 %v3461_v63 }
 0x706   : > { %7177 = vmatpush1.bf16.msra.mxu1 %v4388_v22  ;;  %v3366_v22 = vld [vmem:[%s11198_s0 + $0x870] sm:$0xff] }
 0x707   : > { %7341 = vmatpush1.bf16.msra.mxu0 %v4390_v23  ;;  %7178 = vmatprep.subr.bf16.mxu1 %v4421_v24  ;;  %v4644_v23 = vunpack.c.l.s8.bf16 %v3364_v20  ;;  %v4646_v24 = vunpack.c.l.s8.bf16 %v3366_v22 }
 0x708   : > { %7342 = vmatprep.subr.bf16.mxu0 %v4423_v26  ;;  %v4677_v26 = vunpack.c.h.s8.bf16 %v3365_v14 }
 0x70a   : > { %7179 = vmatpush1.bf16.msra.mxu1 %v4420_v56  ;;  %v3399_v56 = vld [vmem:[%s11198_s0 + $0x978] sm:$0xff] }
 0x70b   : > { %7343 = vmatpush1.bf16.msra.mxu0 %v4422_v36  ;;  %7180 = vmatprep.subr.bf16.mxu1 %v4453_v37  ;;  %v4676_v36 = vunpack.c.h.s8.bf16 %v3364_v20  ;;  %v4678_v37 = vunpack.c.h.s8.bf16 %v3366_v22  ;;  %v4711_v47 = vunpack.c.l.s8.bf16 %v3399_v56  ;;  %v4743_v33 = vunpack.c.h.s8.bf16 %v3399_v56  ;;  %v3525_v56 = vld [vmem:[%s11198_s0 + $0xd68] sm:$0xff] }
 0x70c   : > { %7344 = vmatprep.subr.bf16.mxu0 %v4455_v28  ;;  %v3396_v28 = vld [vmem:[%s11198_s0 + $0x960] sm:$0xff]  ;;  %v4901_v20 = vunpack.c.l.s8.bf16 %v3493_v15 }
 0x70e   : > { %7181 = vmatpush1.bf16.msra.mxu1 %v4452_v52  ;;  %v3398_v52 = vld [vmem:[%s11198_s0 + $0x970] sm:$0xff] }
 0x70f   : > { %7345 = vmatpush1.bf16.msra.mxu0 %v4454_v40  ;;  %7182 = vmatprep.subr.bf16.mxu1 %v4485_v41  ;;  %v4708_v40 = vunpack.c.l.s8.bf16 %v3396_v28  ;;  %v4710_v41 = vunpack.c.l.s8.bf16 %v3398_v52 }
 0x710   : > { %7346 = vmatprep.subr.bf16.mxu0 %v4487_v42  ;;  %v4741_v42 = vunpack.c.h.s8.bf16 %v3397_v27  ;;  %v4933_v27 = vunpack.c.h.s8.bf16 %v3493_v15 }
 0x712   : > { %7183 = vmatpush1.bf16.msra.mxu1 %v4484_v43  ;;  %v3431_v43 = vld [vmem:[%s11198_s0 + $0xa78] sm:$0xff] }
 0x713   : > { %7347 = vmatpush1.bf16.msra.mxu0 %v4486_v44  ;;  %7184 = vmatprep.subr.bf16.mxu1 %v4517_v45  ;;  %v4740_v44 = vunpack.c.h.s8.bf16 %v3396_v28  ;;  %v4742_v45 = vunpack.c.h.s8.bf16 %v3398_v52  ;;  %v4775_v53 = vunpack.c.l.s8.bf16 %v3431_v43  ;;  %v4807_v62 = vunpack.c.h.s8.bf16 %v3431_v43  ;;  %v3557_v43 = vld [vmem:[%s11198_s0 + $0xe68] sm:$0xff] }
 0x714   : > { %7348 = vmatprep.subr.bf16.mxu0 %v4519_v49  ;;  %v3428_v49 = vld [vmem:[%s11198_s0 + $0xa60] sm:$0xff]  ;;  %v4965_v28 = vunpack.c.l.s8.bf16 %v3525_v56 }
 0x716   : > { %7185 = vmatpush1.bf16.msra.mxu1 %v4516_v55  ;;  %v3430_v55 = vld [vmem:[%s11198_s0 + $0xa70] sm:$0xff] }
 0x717   : > { %7349 = vmatpush1.bf16.msra.mxu0 %v4518_v58  ;;  %7186 = vmatprep.subr.bf16.mxu1 %v4549_v61  ;;  %v4772_v58 = vunpack.c.l.s8.bf16 %v3428_v49  ;;  %v4774_v61 = vunpack.c.l.s8.bf16 %v3430_v55 }
 0x718   : > { %7350 = vmatprep.subr.bf16.mxu0 %v4551_v32  ;;  %v4805_v32 = vunpack.c.h.s8.bf16 %v3429_v39 }
 0x71a   : > { %7187 = vmatpush1.bf16.msra.mxu1 %v4548_v3  ;;  %v3463_v3 = vld [vmem:[%s11198_s0 + $0xb78] sm:$0xff] }
 0x71b   : > { %7351 = vmatpush1.bf16.msra.mxu0 %v4550_v4  ;;  %7188 = vmatprep.subr.bf16.mxu1 %v4581_v5  ;;  %v4804_v4 = vunpack.c.h.s8.bf16 %v3428_v49  ;;  %v4806_v5 = vunpack.c.h.s8.bf16 %v3430_v55  ;;  %v4839_v8 = vunpack.c.l.s8.bf16 %v3463_v3  ;;  %v4871_v14 = vunpack.c.h.s8.bf16 %v3463_v3  ;;  %v3589_v3 = vld [vmem:[%s11198_s0 + $0xf68] sm:$0xff] }
 0x71c   : > { %7352 = vmatprep.subr.bf16.mxu0 %v4583_v6  ;;  %v3460_v6 = vld [vmem:[%s11198_s0 + $0xb60] sm:$0xff]  ;;  %v5029_v49 = vunpack.c.l.s8.bf16 %v3557_v43 }
 0x71e   : > { %7189 = vmatpush1.bf16.msra.mxu1 %v4580_v7  ;;  %v3462_v7 = vld [vmem:[%s11198_s0 + $0xb70] sm:$0xff] }
 0x71f   : > { %7353 = vmatpush1.bf16.msra.mxu0 %v4582_v11  ;;  %7190 = vmatprep.subr.bf16.mxu1 %v4613_v13  ;;  %v4836_v11 = vunpack.c.l.s8.bf16 %v3460_v6  ;;  %v4838_v13 = vunpack.c.l.s8.bf16 %v3462_v7 }
 0x720   : > { %7354 = vmatprep.subr.bf16.mxu0 %v4615_v12  ;;  %v4869_v12 = vunpack.c.h.s8.bf16 %v3461_v63 }
 0x722   : > { %7191 = vmatpush1.bf16.msra.mxu1 %v4612_v18  ;;  %v3495_v18 = vld [vmem:[%s11198_s0 + $0xc78] sm:$0xff] }
 0x723   : > { %7355 = vmatpush1.bf16.msra.mxu0 %v4614_v19  ;;  %7201 = vmatprep.subr.bf16.mxu1 %v4645_v50  ;;  %v4868_v19 = vunpack.c.h.s8.bf16 %v3460_v6  ;;  %v4870_v50 = vunpack.c.h.s8.bf16 %v3462_v7  ;;  %v4903_v22 = vunpack.c.l.s8.bf16 %v3495_v18  ;;  %v5093_v6 = vunpack.c.l.s8.bf16 %v3589_v3 }
 0x724   : > { %7365 = vmatprep.subr.bf16.mxu0 %v4647_v21  ;;  %v3492_v21 = vld [vmem:[%s11198_s0 + $0xc60] sm:$0xff] }
 0x725   : > { %7193 = vmatmul.mubr.bf16.vlgmr.msra.gmra.mrb[24].mxu1 %v11308_v60 }
 0x726   : > { %7357 = vmatmul.mubr.bf16.vlgmr.msra.gmra.mrb[28].mxu0 %v11308_v60  ;;  %7202 = vmatpush1.bf16.msra.mxu1 %v4644_v23  ;;  %v3494_v23 = vld [vmem:[%s11198_s0 + $0xc70] sm:$0xff] }
 0x727   : > { %7233 = vmatprep.mubr.bf16.mxu1 %v11314_v1  ;;  %7366 = vmatpush1.bf16.msra.mxu0 %v4646_v24  ;;  %v4900_v24 = vunpack.c.l.s8.bf16 %v3492_v21 }
 0x728   : > { %7397 = vmatprep.mubr.bf16.mxu0 %v11314_v1  ;;  %7203 = vmatprep.subr.bf16.mxu1 %v4677_v26  ;;  %v4902_v26 = vunpack.c.l.s8.bf16 %v3494_v23 }
 0x729   : > { %7367 = vmatprep.subr.bf16.mxu0 %v4679_v30  ;;  %v4935_v30 = vunpack.c.h.s8.bf16 %v3495_v18  ;;  %v3621_v18 = vld [vmem:[%s11198_s0 + $0x1068] sm:$0xff] }
 0x72a   : > { %7204 = vmatpush1.bf16.msra.mxu1 %v4676_v36  ;;  %v3527_v36 = vld [vmem:[%s11198_s0 + $0xd78] sm:$0xff] }
 0x72b   : > { %7368 = vmatpush1.bf16.msra.mxu0 %v4678_v37  ;;  %7205 = vmatprep.subr.bf16.mxu1 %v4709_v38  ;;  %v4932_v37 = vunpack.c.h.s8.bf16 %v3492_v21  ;;  %v4934_v38 = vunpack.c.h.s8.bf16 %v3494_v23  ;;  %v4967_v52 = vunpack.c.l.s8.bf16 %v3527_v36  ;;  %v4999_v39 = vunpack.c.h.s8.bf16 %v3527_v36 }
 0x72c   : > { %7369 = vmatprep.subr.bf16.mxu0 %v4711_v47  ;;  %v3524_v47 = vld [vmem:[%s11198_s0 + $0xd60] sm:$0xff]  ;;  %v5157_v21 = vunpack.c.l.s8.bf16 %v3621_v18 }
 0x72e   : > { %7206 = vmatpush1.bf16.msra.mxu1 %v4708_v40  ;;  %v3526_v40 = vld [vmem:[%s11198_s0 + $0xd70] sm:$0xff] }
 0x72f   : > { %7370 = vmatpush1.bf16.msra.mxu0 %v4710_v41  ;;  %7207 = vmatprep.subr.bf16.mxu1 %v4741_v42  ;;  %v4964_v41 = vunpack.c.l.s8.bf16 %v3524_v47  ;;  %v4966_v42 = vunpack.c.l.s8.bf16 %v3526_v40 }
 0x730   : > { %7371 = vmatprep.subr.bf16.mxu0 %v4743_v33  ;;  %v4997_v33 = vunpack.c.h.s8.bf16 %v3525_v56  ;;  %v3653_v56 = vld [vmem:[%s11198_s0 + $0x1168] sm:$0xff] }
 0x732   : > { %7208 = vmatpush1.bf16.msra.mxu1 %v4740_v44  ;;  %v3559_v44 = vld [vmem:[%s11198_s0 + $0xe78] sm:$0xff] }
 0x733   : > { %7372 = vmatpush1.bf16.msra.mxu0 %v4742_v45  ;;  %7209 = vmatprep.subr.bf16.mxu1 %v4773_v48  ;;  %v4996_v45 = vunpack.c.h.s8.bf16 %v3524_v47  ;;  %v4998_v48 = vunpack.c.h.s8.bf16 %v3526_v40  ;;  %v5031_v55 = vunpack.c.l.s8.bf16 %v3559_v44  ;;  %v5063_v63 = vunpack.c.h.s8.bf16 %v3559_v44  ;;  %v3685_v44 = vld [vmem:[%s11198_s0 + $0x1268] sm:$0xff] }
 0x734   : > { %7373 = vmatprep.subr.bf16.mxu0 %v4775_v53  ;;  %v3556_v53 = vld [vmem:[%s11198_s0 + $0xe60] sm:$0xff]  ;;  %v5221_v47 = vunpack.c.l.s8.bf16 %v3653_v56 }
 0x736   : > { %7210 = vmatpush1.bf16.msra.mxu1 %v4772_v58  ;;  %v3558_v58 = vld [vmem:[%s11198_s0 + $0xe70] sm:$0xff] }
 0x737   : > { %7374 = vmatpush1.bf16.msra.mxu0 %v4774_v61  ;;  %7211 = vmatprep.subr.bf16.mxu1 %v4805_v32  ;;  %v5028_v61 = vunpack.c.l.s8.bf16 %v3556_v53  ;;  %v5030_v32 = vunpack.c.l.s8.bf16 %v3558_v58 }
 0x738   : > { %7375 = vmatprep.subr.bf16.mxu0 %v4807_v62  ;;  %v5061_v62 = vunpack.c.h.s8.bf16 %v3557_v43 }
 0x73a   : > { %7212 = vmatpush1.bf16.msra.mxu1 %v4804_v4  ;;  %v3591_v4 = vld [vmem:[%s11198_s0 + $0xf78] sm:$0xff] }
 0x73b   : > { %7376 = vmatpush1.bf16.msra.mxu0 %v4806_v5  ;;  %7213 = vmatprep.subr.bf16.mxu1 %v4837_v10  ;;  %v5060_v5 = vunpack.c.h.s8.bf16 %v3556_v53  ;;  %v5062_v10 = vunpack.c.h.s8.bf16 %v3558_v58  ;;  %v5095_v7 = vunpack.c.l.s8.bf16 %v3591_v4  ;;  %v5127_v15 = vunpack.c.h.s8.bf16 %v3591_v4  ;;  %v3717_v4 = vld [vmem:[%s11198_s0 + $0x1368] sm:$0xff] }
 0x73c   : > { %7377 = vmatprep.subr.bf16.mxu0 %v4839_v8  ;;  %v3588_v8 = vld [vmem:[%s11198_s0 + $0xf60] sm:$0xff]  ;;  %v5285_v53 = vunpack.c.l.s8.bf16 %v3685_v44 }
 0x73e   : > { %7214 = vmatpush1.bf16.msra.mxu1 %v4836_v11  ;;  %v3590_v11 = vld [vmem:[%s11198_s0 + $0xf70] sm:$0xff] }
 0x73f   : > { %7378 = vmatpush1.bf16.msra.mxu0 %v4838_v13  ;;  %7215 = vmatprep.subr.bf16.mxu1 %v4869_v12  ;;  %v5092_v13 = vunpack.c.l.s8.bf16 %v3588_v8  ;;  %v5094_v12 = vunpack.c.l.s8.bf16 %v3590_v11 }
 0x740   : > { %7379 = vmatprep.subr.bf16.mxu0 %v4871_v14  ;;  %v5125_v14 = vunpack.c.h.s8.bf16 %v3589_v3 }
 0x742   : > { %7216 = vmatpush1.bf16.msra.mxu1 %v4868_v19  ;;  %v3623_v19 = vld [vmem:[%s11198_s0 + $0x1078] sm:$0xff] }
 0x743   : > { %7380 = vmatpush1.bf16.msra.mxu0 %v4870_v50  ;;  %7217 = vmatprep.subr.bf16.mxu1 %v4901_v20  ;;  %v5124_v50 = vunpack.c.h.s8.bf16 %v3588_v8  ;;  %v5126_v20 = vunpack.c.h.s8.bf16 %v3590_v11  ;;  %v5159_v23 = vunpack.c.l.s8.bf16 %v3623_v19  ;;  %v5191_v36 = vunpack.c.h.s8.bf16 %v3623_v19  ;;  %v3749_v19 = vld [vmem:[%s11198_s0 + $0x1468] sm:$0xff] }
 0x744   : > { %7381 = vmatprep.subr.bf16.mxu0 %v4903_v22  ;;  %v3620_v22 = vld [vmem:[%s11198_s0 + $0x1060] sm:$0xff]  ;;  %v5349_v8 = vunpack.c.l.s8.bf16 %v3717_v4 }
 0x746   : > { %7218 = vmatpush1.bf16.msra.mxu1 %v4900_v24  ;;  %v3622_v24 = vld [vmem:[%s11198_s0 + $0x1070] sm:$0xff] }
 0x747   : > { %7382 = vmatpush1.bf16.msra.mxu0 %v4902_v26  ;;  %7219 = vmatprep.subr.bf16.mxu1 %v4933_v27  ;;  %v5156_v26 = vunpack.c.l.s8.bf16 %v3620_v22  ;;  %v5158_v27 = vunpack.c.l.s8.bf16 %v3622_v24 }
 0x748   : > { %7383 = vmatprep.subr.bf16.mxu0 %v4935_v30  ;;  %v5189_v30 = vunpack.c.h.s8.bf16 %v3621_v18 }
 0x74a   : > { %7220 = vmatpush1.bf16.msra.mxu1 %v4932_v37  ;;  %v3655_v37 = vld [vmem:[%s11198_s0 + $0x1178] sm:$0xff] }
 0x74b   : > { %7384 = vmatpush1.bf16.msra.mxu0 %v4934_v38  ;;  %7221 = vmatprep.subr.bf16.mxu1 %v4965_v28  ;;  %v5188_v38 = vunpack.c.h.s8.bf16 %v3620_v22  ;;  %v5190_v28 = vunpack.c.h.s8.bf16 %v3622_v24  ;;  %v5223_v40 = vunpack.c.l.s8.bf16 %v3655_v37  ;;  %v5255_v43 = vunpack.c.h.s8.bf16 %v3655_v37  ;;  %v3781_v37 = vld [vmem:[%s11198_s0 + $0x1568] sm:$0xff] }
 0x74c   : > { %7385 = vmatprep.subr.bf16.mxu0 %v4967_v52  ;;  %v3652_v52 = vld [vmem:[%s11198_s0 + $0x1160] sm:$0xff]  ;;  %v5413_v22 = vunpack.c.l.s8.bf16 %v3749_v19 }
 0x74e   : > { %7222 = vmatpush1.bf16.msra.mxu1 %v4964_v41  ;;  %v3654_v41 = vld [vmem:[%s11198_s0 + $0x1170] sm:$0xff] }
 0x74f   : > { %7386 = vmatpush1.bf16.msra.mxu0 %v4966_v42  ;;  %7223 = vmatprep.subr.bf16.mxu1 %v4997_v33  ;;  %v5220_v42 = vunpack.c.l.s8.bf16 %v3652_v52  ;;  %v5222_v33 = vunpack.c.l.s8.bf16 %v3654_v41 }
 0x750   : > { %7387 = vmatprep.subr.bf16.mxu0 %v4999_v39  ;;  %v5253_v39 = vunpack.c.h.s8.bf16 %v3653_v56  ;;  %v5445_v56 = vunpack.c.h.s8.bf16 %v3749_v19 }
 0x752   : > { %7224 = vmatpush1.bf16.msra.mxu1 %v4996_v45  ;;  %v3687_v45 = vld [vmem:[%s11198_s0 + $0x1278] sm:$0xff] }
 0x753   : > { %7388 = vmatpush1.bf16.msra.mxu0 %v4998_v48  ;;  %7225 = vmatprep.subr.bf16.mxu1 %v5029_v49  ;;  %v5252_v48 = vunpack.c.h.s8.bf16 %v3652_v52  ;;  %v5254_v49 = vunpack.c.h.s8.bf16 %v3654_v41  ;;  %v5287_v58 = vunpack.c.l.s8.bf16 %v3687_v45  ;;  %v5319_v3 = vunpack.c.h.s8.bf16 %v3687_v45  ;;  %v3813_v45 = vld [vmem:[%s11198_s0 + $0x1668] sm:$0xff] }
 0x754   : > { %7389 = vmatprep.subr.bf16.mxu0 %v5031_v55  ;;  %v3684_v55 = vld [vmem:[%s11198_s0 + $0x1260] sm:$0xff]  ;;  %v5477_v52 = vunpack.c.l.s8.bf16 %v3781_v37 }
 0x756   : > { %7226 = vmatpush1.bf16.msra.mxu1 %v5028_v61  ;;  %v3686_v61 = vld [vmem:[%s11198_s0 + $0x1270] sm:$0xff] }
 0x757   : > { %7390 = vmatpush1.bf16.msra.mxu0 %v5030_v32  ;;  %7227 = vmatprep.subr.bf16.mxu1 %v5061_v62  ;;  %v5284_v32 = vunpack.c.l.s8.bf16 %v3684_v55  ;;  %v5286_v62 = vunpack.c.l.s8.bf16 %v3686_v61 }
 0x758   : > { %7391 = vmatprep.subr.bf16.mxu0 %v5063_v63  ;;  %v5317_v63 = vunpack.c.h.s8.bf16 %v3685_v44 }
 0x75a   : > { %7228 = vmatpush1.bf16.msra.mxu1 %v5060_v5  ;;  %v3719_v5 = vld [vmem:[%s11198_s0 + $0x1378] sm:$0xff] }
 0x75b   : > { %7392 = vmatpush1.bf16.msra.mxu0 %v5062_v10  ;;  %7229 = vmatprep.subr.bf16.mxu1 %v5093_v6  ;;  %v5316_v10 = vunpack.c.h.s8.bf16 %v3684_v55  ;;  %v5318_v6 = vunpack.c.h.s8.bf16 %v3686_v61  ;;  %v5351_v11 = vunpack.c.l.s8.bf16 %v3719_v5  ;;  %v5383_v18 = vunpack.c.h.s8.bf16 %v3719_v5  ;;  %v3845_v5 = vld [vmem:[%s11198_s0 + $0x1768] sm:$0xff] }
 0x75c   : > { %7393 = vmatprep.subr.bf16.mxu0 %v5095_v7  ;;  %v3716_v7 = vld [vmem:[%s11198_s0 + $0x1360] sm:$0xff]  ;;  %v5541_v55 = vunpack.c.l.s8.bf16 %v3813_v45 }
 0x75e   : > { %7230 = vmatpush1.bf16.msra.mxu1 %v5092_v13  ;;  %v3718_v13 = vld [vmem:[%s11198_s0 + $0x1370] sm:$0xff] }
 0x75f   : > { %7394 = vmatpush1.bf16.msra.mxu0 %v5094_v12  ;;  %7231 = vmatprep.subr.bf16.mxu1 %v5125_v14  ;;  %v5348_v12 = vunpack.c.l.s8.bf16 %v3716_v7  ;;  %v5350_v14 = vunpack.c.l.s8.bf16 %v3718_v13 }
 0x760   : > { %7395 = vmatprep.subr.bf16.mxu0 %v5127_v15  ;;  %v5381_v15 = vunpack.c.h.s8.bf16 %v3717_v4 }
 0x762   : > { %7232 = vmatpush1.bf16.msra.mxu1 %v5124_v50  ;;  %v3751_v50 = vld [vmem:[%s11198_s0 + $0x1478] sm:$0xff] }
 0x763   : > { %7396 = vmatpush1.bf16.msra.mxu0 %v5126_v20  ;;  %7242 = vmatprep.subr.bf16.mxu1 %v5157_v21  ;;  %v5380_v20 = vunpack.c.h.s8.bf16 %v3716_v7  ;;  %v5382_v21 = vunpack.c.h.s8.bf16 %v3718_v13  ;;  %v5415_v24 = vunpack.c.l.s8.bf16 %v3751_v50  ;;  %v5605_v7 = vunpack.c.l.s8.bf16 %v3845_v5 }
 0x764   : > { %7406 = vmatprep.subr.bf16.mxu0 %v5159_v23  ;;  %v3748_v23 = vld [vmem:[%s11198_s0 + $0x1460] sm:$0xff] }
 0x765   : > { %7234 = vmatmul.mubr.bf16.vlgmr.msra.gmra.mrb[24].mxu1 %v11353_v46 }
 0x766   : > { %7398 = vmatmul.mubr.bf16.vlgmr.msra.gmra.mrb[28].mxu0 %v11353_v46  ;;  %7243 = vmatpush1.bf16.msra.mxu1 %v5156_v26  ;;  %v3750_v26 = vld [vmem:[%s11198_s0 + $0x1470] sm:$0xff] }
 0x767   : > { %7274 = vmatprep.mubr.bf16.mxu1 %v11406_v54  ;;  %7407 = vmatpush1.bf16.msra.mxu0 %v5158_v27  ;;  %v5412_v27 = vunpack.c.l.s8.bf16 %v3748_v23 }
 0x768   : > { %7438 = vmatprep.mubr.bf16.mxu0 %v11406_v54  ;;  %7244 = vmatprep.subr.bf16.mxu1 %v5189_v30  ;;  %v5414_v30 = vunpack.c.l.s8.bf16 %v3750_v26 }
 0x769   : > { %7408 = vmatprep.subr.bf16.mxu0 %v5191_v36  ;;  %v5447_v36 = vunpack.c.h.s8.bf16 %v3751_v50  ;;  %v3877_v50 = vld [vmem:[%s11198_s0 + $0x1868] sm:$0xff] }
 0x76a   : > { %7245 = vmatpush1.bf16.msra.mxu1 %v5188_v38  ;;  %v3783_v38 = vld [vmem:[%s11198_s0 + $0x1578] sm:$0xff] }
 0x76b   : > { %7409 = vmatpush1.bf16.msra.mxu0 %v5190_v28  ;;  %7246 = vmatprep.subr.bf16.mxu1 %v5221_v47  ;;  %v5444_v28 = vunpack.c.h.s8.bf16 %v3748_v23  ;;  %v5446_v47 = vunpack.c.h.s8.bf16 %v3750_v26  ;;  %v5479_v41 = vunpack.c.l.s8.bf16 %v3783_v38  ;;  %v5511_v44 = vunpack.c.h.s8.bf16 %v3783_v38 }
 0x76c   : > { %7410 = vmatprep.subr.bf16.mxu0 %v5223_v40  ;;  %v3780_v40 = vld [vmem:[%s11198_s0 + $0x1560] sm:$0xff]  ;;  %v5669_v23 = vunpack.c.l.s8.bf16 %v3877_v50 }
 0x76e   : > { %7247 = vmatpush1.bf16.msra.mxu1 %v5220_v42  ;;  %v3782_v42 = vld [vmem:[%s11198_s0 + $0x1570] sm:$0xff] }
 0x76f   : > { %7411 = vmatpush1.bf16.msra.mxu0 %v5222_v33  ;;  %7248 = vmatprep.subr.bf16.mxu1 %v5253_v39  ;;  %v5476_v33 = vunpack.c.l.s8.bf16 %v3780_v40  ;;  %v5478_v39 = vunpack.c.l.s8.bf16 %v3782_v42 }
 0x770   : > { %7412 = vmatprep.subr.bf16.mxu0 %v5255_v43  ;;  %v5509_v43 = vunpack.c.h.s8.bf16 %v3781_v37  ;;  %v3909_v37 = vld [vmem:[%s11198_s0 + $0x1968] sm:$0xff] }
 0x772   : > { %7249 = vmatpush1.bf16.msra.mxu1 %v5252_v48  ;;  %v3815_v48 = vld [vmem:[%s11198_s0 + $0x1678] sm:$0xff] }
 0x773   : > { %7413 = vmatpush1.bf16.msra.mxu0 %v5254_v49  ;;  %7250 = vmatprep.subr.bf16.mxu1 %v5285_v53  ;;  %v5508_v49 = vunpack.c.h.s8.bf16 %v3780_v40  ;;  %v5510_v53 = vunpack.c.h.s8.bf16 %v3782_v42  ;;  %v5543_v61 = vunpack.c.l.s8.bf16 %v3815_v48  ;;  %v5575_v4 = vunpack.c.h.s8.bf16 %v3815_v48  ;;  %v3941_v48 = vld [vmem:[%s11198_s0 + $0x1a68] sm:$0xff] }
 0x774   : > { %7414 = vmatprep.subr.bf16.mxu0 %v5287_v58  ;;  %v3812_v58 = vld [vmem:[%s11198_s0 + $0x1660] sm:$0xff]  ;;  %v5733_v40 = vunpack.c.l.s8.bf16 %v3909_v37 }
 0x776   : > { %7251 = vmatpush1.bf16.msra.mxu1 %v5284_v32  ;;  %v3814_v32 = vld [vmem:[%s11198_s0 + $0x1670] sm:$0xff] }
 0x777   : > { %7415 = vmatpush1.bf16.msra.mxu0 %v5286_v62  ;;  %7252 = vmatprep.subr.bf16.mxu1 %v5317_v63  ;;  %v5540_v62 = vunpack.c.l.s8.bf16 %v3812_v58  ;;  %v5542_v63 = vunpack.c.l.s8.bf16 %v3814_v32 }
 0x778   : > { %7416 = vmatprep.subr.bf16.mxu0 %v5319_v3  ;;  %v5573_v3 = vunpack.c.h.s8.bf16 %v3813_v45 }
 0x77a   : > { %7253 = vmatpush1.bf16.msra.mxu1 %v5316_v10  ;;  %v3847_v10 = vld [vmem:[%s11198_s0 + $0x1778] sm:$0xff] }
 0x77b   : > { %7417 = vmatpush1.bf16.msra.mxu0 %v5318_v6  ;;  %7254 = vmatprep.subr.bf16.mxu1 %v5349_v8  ;;  %v5572_v6 = vunpack.c.h.s8.bf16 %v3812_v58  ;;  %v5574_v8 = vunpack.c.h.s8.bf16 %v3814_v32  ;;  %v5607_v13 = vunpack.c.l.s8.bf16 %v3847_v10  ;;  %v5639_v19 = vunpack.c.h.s8.bf16 %v3847_v10  ;;  %v9001_v10 = vld [vmem:[%s11585_s29 + $0x8] sm:$0xff] }
 0x77c   : > { %7418 = vmatprep.subr.bf16.mxu0 %v5351_v11  ;;  %v3844_v11 = vld [vmem:[%s11198_s0 + $0x1760] sm:$0xff]  ;;  %v5797_v58 = vunpack.c.l.s8.bf16 %v3941_v48 }
 0x77e   : > { %7255 = vmatpush1.bf16.msra.mxu1 %v5348_v12  ;;  %v3846_v12 = vld [vmem:[%s11198_s0 + $0x1770] sm:$0xff] }
 0x77f   : > { %7419 = vmatpush1.bf16.msra.mxu0 %v5350_v14  ;;  %7256 = vmatprep.subr.bf16.mxu1 %v5381_v15  ;;  %v5604_v14 = vunpack.c.l.s8.bf16 %v3844_v11  ;;  %v5606_v15 = vunpack.c.l.s8.bf16 %v3846_v12 }
 0x780   : > { %7420 = vmatprep.subr.bf16.mxu0 %v5383_v18  ;;  %v5637_v18 = vunpack.c.h.s8.bf16 %v3845_v5  ;;  %v5829_v5 = vunpack.c.h.s8.bf16 %v3941_v48 }
 0x782   : > { %7257 = vmatpush1.bf16.msra.mxu1 %v5380_v20  ;;  %v3879_v20 = vld [vmem:[%s11198_s0 + $0x1878] sm:$0xff] }
 0x783   : > { %7421 = vmatpush1.bf16.msra.mxu0 %v5382_v21  ;;  %7258 = vmatprep.subr.bf16.mxu1 %v5413_v22  ;;  %v5636_v21 = vunpack.c.h.s8.bf16 %v3844_v11  ;;  %v5638_v22 = vunpack.c.h.s8.bf16 %v3846_v12  ;;  %v5671_v26 = vunpack.c.l.s8.bf16 %v3879_v20  ;;  %v5703_v38 = vunpack.c.h.s8.bf16 %v3879_v20  ;;  %v3975_v11 = vld [vmem:[%s11198_s0 + $0x1b78] sm:$0xff]  ;;  %v3972_v20 = vld [vmem:[%s11198_s0 + $0x1b60] sm:$0xff] }
 0x784   : > { %7422 = vmatprep.subr.bf16.mxu0 %v5415_v24  ;;  %v3876_v24 = vld [vmem:[%s11198_s0 + $0x1860] sm:$0xff] }
 0x786   : > { %7259 = vmatpush1.bf16.msra.mxu1 %v5412_v27  ;;  %v3878_v27 = vld [vmem:[%s11198_s0 + $0x1870] sm:$0xff] }
 0x787   : > { %7423 = vmatpush1.bf16.msra.mxu0 %v5414_v30  ;;  %7260 = vmatprep.subr.bf16.mxu1 %v5445_v56  ;;  %v5668_v30 = vunpack.c.l.s8.bf16 %v3876_v24  ;;  %v5670_v56 = vunpack.c.l.s8.bf16 %v3878_v27 }
 0x788   : > { %7424 = vmatprep.subr.bf16.mxu0 %v5447_v36  ;;  %v5701_v36 = vunpack.c.h.s8.bf16 %v3877_v50 }
 0x78a   : > { %7261 = vmatpush1.bf16.msra.mxu1 %v5444_v28  ;;  %v3911_v28 = vld [vmem:[%s11198_s0 + $0x1978] sm:$0xff] }
 0x78b   : > { %7425 = vmatpush1.bf16.msra.mxu0 %v5446_v47  ;;  %7262 = vmatprep.subr.bf16.mxu1 %v5477_v52  ;;  %v5700_v47 = vunpack.c.h.s8.bf16 %v3876_v24  ;;  %v5702_v52 = vunpack.c.h.s8.bf16 %v3878_v27  ;;  %v5735_v42 = vunpack.c.l.s8.bf16 %v3911_v28  ;;  %v5767_v45 = vunpack.c.h.s8.bf16 %v3911_v28 }
 0x78c   : > { %7426 = vmatprep.subr.bf16.mxu0 %v5479_v41  ;;  %v3908_v41 = vld [vmem:[%s11198_s0 + $0x1960] sm:$0xff]  ;;  %v5863_v24 = vunpack.c.l.s8.bf16 %v3975_v11 }
 0x78e   : > { %7263 = vmatpush1.bf16.msra.mxu1 %v5476_v33  ;;  %v3910_v33 = vld [vmem:[%s11198_s0 + $0x1970] sm:$0xff] }
 0x78f   : > { %7427 = vmatpush1.bf16.msra.mxu0 %v5478_v39  ;;  %7264 = vmatprep.subr.bf16.mxu1 %v5509_v43  ;;  %v5732_v39 = vunpack.c.l.s8.bf16 %v3908_v41  ;;  %v5734_v43 = vunpack.c.l.s8.bf16 %v3910_v33 }
 0x790   : > { %7428 = vmatprep.subr.bf16.mxu0 %v5511_v44  ;;  %v5765_v44 = vunpack.c.h.s8.bf16 %v3909_v37 }
 0x792   : > { %7265 = vmatpush1.bf16.msra.mxu1 %v5508_v49  ;;  %v3943_v49 = vld [vmem:[%s11198_s0 + $0x1a78] sm:$0xff] }
 0x793   : > { %7429 = vmatpush1.bf16.msra.mxu0 %v5510_v53  ;;  %7266 = vmatprep.subr.bf16.mxu1 %v5541_v55  ;;  %v5764_v53 = vunpack.c.h.s8.bf16 %v3908_v41  ;;  %v5766_v55 = vunpack.c.h.s8.bf16 %v3910_v33  ;;  %v5799_v32 = vunpack.c.l.s8.bf16 %v3943_v49 }
 0x794   : > { %7430 = vmatprep.subr.bf16.mxu0 %v5543_v61  ;;  %v3940_v61 = vld [vmem:[%s11198_s0 + $0x1a60] sm:$0xff] }
 0x796   : > { %7267 = vmatpush1.bf16.msra.mxu1 %v5540_v62  ;;  %v3942_v62 = vld [vmem:[%s11198_s0 + $0x1a70] sm:$0xff] }
 0x797   : > { %7431 = vmatpush1.bf16.msra.mxu0 %v5542_v63  ;;  %7268 = vmatprep.subr.bf16.mxu1 %v5573_v3  ;;  %v5796_v63 = vunpack.c.l.s8.bf16 %v3940_v61  ;;  %v8801_v3 = vld [vmem:[%s11581_s10 + $0x8] sm:$0xff] }
 0x798   : > { %7432 = vmatprep.subr.bf16.mxu0 %v5575_v4  ;;  %v5798_v4 = vunpack.c.l.s8.bf16 %v3942_v62  ;;  %v8847_v12 = vrot.slane %v8801_v3, %v11213_v31 }
 0x79a   : > { %7269 = vmatpush1.bf16.msra.mxu1 %v5572_v6  ;;  %v5831_v6 = vunpack.c.h.s8.bf16 %v3943_v49  ;;  %v5895_v49 = vunpack.c.h.s8.bf16 %v3975_v11 }
 0x79b   : > { %7433 = vmatpush1.bf16.msra.mxu0 %v5574_v8  ;;  %7270 = vmatprep.subr.bf16.mxu1 %v5605_v7  ;;  %v3973_v8 = vld [vmem:[%s11198_s0 + $0x1b68] sm:$0xff]  ;;  %v8843_v7 = vrot.slane %v8801_v3, %v11210_v29 }
 0x79c   : > { %7434 = vmatprep.subr.bf16.mxu0 %v5607_v13  ;;  %v8851_v13 = vrot.slane %v8801_v3, %v11243_v59  ;;  %v5861_v50 = vunpack.c.l.s8.bf16 %v3973_v8 }
 0x79e   : > { %7271 = vmatpush1.bf16.msra.mxu1 %v5604_v14  ;;  %v5828_v14 = vunpack.c.h.s8.bf16 %v3940_v61 }
 0x79f   : > { %7435 = vmatpush1.bf16.msra.mxu0 %v5606_v15  ;;  %7272 = vmatprep.subr.bf16.mxu1 %v5637_v18  ;;  %v9043_v15 = vrot.slane %v9001_v10, %v11210_v29  ;;  %v8855_v18 = vrot.slane %v8801_v3, %v11220_v51 }
 0x7a0   : > { %7436 = vmatprep.subr.bf16.mxu0 %v5639_v19  ;;  %v5830_v19 = vunpack.c.h.s8.bf16 %v3942_v62 }
 0x7a2   : > { %7273 = vmatpush1.bf16.msra.mxu1 %v5636_v21 }
 0x7a3   : > { %7437 = vmatpush1.bf16.msra.mxu0 %v5638_v22  ;;  %7283 = vmatprep.subr.bf16.mxu1 %v5669_v23  ;;  %v9051_v22 = vrot.slane %v9001_v10, %v11243_v59  ;;  %v9047_v23 = vrot.slane %v9001_v10, %v11213_v31 }
 0x7a4   : > { %7447 = vmatprep.subr.bf16.mxu0 %v5671_v26  ;;  %v3974_v26 = vld [vmem:[%s11198_s0 + $0x1b70] sm:$0xff] }
 0x7a5   : > { %7275 = vmatmul.mubr.bf16.vlgmr.msra.gmra.mrb[24].mxu1 %v11408_v9 }
 0x7a6   : > { %7439 = vmatmul.mubr.bf16.vlgmr.msra.gmra.mrb[28].mxu0 %v11408_v9  ;;  %7284 = vmatpush1.bf16.msra.mxu1 %v5668_v30 }
 0x7a7   : > { %7315 = vmatprep.mubr.bf16.mxu1 %v11414_v2  ;;  %7448 = vmatpush1.bf16.msra.mxu0 %v5670_v56 }
 0x7a8   : > { %7479 = vmatprep.mubr.bf16.mxu0 %v11414_v2  ;;  %7285 = vmatprep.subr.bf16.mxu1 %v5701_v36  ;;  %v9055_v36 = vrot.slane %v9001_v10, %v11220_v51 }
 0x7a9   : > { %7449 = vmatprep.subr.bf16.mxu0 %v5703_v38 }
 0x7aa   : > { %7286 = vmatpush1.bf16.msra.mxu1 %v5700_v47 }
 0x7ab   : > { %7450 = vmatpush1.bf16.msra.mxu0 %v5702_v52  ;;  %7287 = vmatprep.subr.bf16.mxu1 %v5733_v40  ;;  %v5860_v52 = vunpack.c.l.s8.bf16 %v3972_v20 }
 0x7ac   : > { %7451 = vmatprep.subr.bf16.mxu0 %v5735_v42 }
 0x7ae   : > { %7288 = vmatpush1.bf16.msra.mxu1 %v5732_v39  ;;  %v5862_v39 = vunpack.c.l.s8.bf16 %v3974_v26 }
 0x7af   : > { %7452 = vmatpush1.bf16.msra.mxu0 %v5734_v43  ;;  %7289 = vmatprep.subr.bf16.mxu1 %v5765_v44  ;;  %v5893_v43 = vunpack.c.h.s8.bf16 %v3973_v8 }
 0x7b0   : > { %7453 = vmatprep.subr.bf16.mxu0 %v5767_v45 }
 0x7b2   : > { %7290 = vmatpush1.bf16.msra.mxu1 %v5764_v53  ;;  %v4005_v53 = vld [vmem:[%s11198_s0 + $0x1c68] sm:$0xff] }
 0x7b3   : > { %7454 = vmatpush1.bf16.msra.mxu0 %v5766_v55  ;;  %7291 = vmatprep.subr.bf16.mxu1 %v5797_v58  ;;  %v4007_v58 = vld [vmem:[%s11198_s0 + $0x1c78] sm:$0xff]  ;;  %v5925_v3 = vunpack.c.l.s8.bf16 %v4005_v53 }
 0x7b4   : > { %7455 = vmatprep.subr.bf16.mxu0 %v5799_v32  ;;  %v5892_v32 = vunpack.c.h.s8.bf16 %v3972_v20  ;;  %v5927_v10 = vunpack.c.l.s8.bf16 %v4007_v58 }
 0x7b6   : > { %7292 = vmatpush1.bf16.msra.mxu1 %v5796_v63  ;;  %v5894_v63 = vunpack.c.h.s8.bf16 %v3974_v26 }
 0x7b7   : > { %7456 = vmatpush1.bf16.msra.mxu0 %v5798_v4  ;;  %7293 = vmatprep.subr.bf16.mxu1 %v5829_v5  ;;  %v4004_v4 = vld [vmem:[%s11198_s0 + $0x1c60] sm:$0xff] }
 0x7b8   : > { %v6989_v21 = vpop.f32.mrb[20].mxu1  ;;  %7457 = vmatprep.subr.bf16.mxu0 %v5831_v6  ;;  %v4006_v6 = vld [vmem:[%s11198_s0 + $0x1c70] sm:$0xff] }
 0x7b9   : > { %v8976_v27 = vmul.f32 %v8843_v7, %v6989_v21  ;;  %v7153_v30 = vpop.f32.mrb[24].mxu0  ;;  %v6991_v56 = vpop.f32.mrb[21].mxu1  ;;  %v5924_v7 = vunpack.c.l.s8.bf16 %v4004_v4  ;;  %v4036_v21 = vld [vmem:[%s11198_s0 + $0x1d60] sm:$0xff] }
 0x7ba   : > { %v8978_v37 = vmul.f32 %v8851_v13, %v7153_v30  ;;  %v8977_v38 = vmul.f32 %v8847_v12, %v6991_v56  ;;  %v7155_v28 = vpop.f32.mrb[25].mxu0  ;;  %v6993_v47 = vpop.f32.mrb[22].mxu1  ;;  %7294 = vmatpush1.bf16.msra.mxu1 %v5828_v14  ;;  %v5926_v13 = vunpack.c.l.s8.bf16 %v4006_v6  ;;  %v5957_v12 = vunpack.c.h.s8.bf16 %v4005_v53  ;;  %v4069_v56 = vld [vmem:[%s11198_s0 + $0x1e68] sm:$0xff]  ;;  %v4100_v53 = vld [vmem:[%s11198_s0 + $0x1f60] sm:$0xff] }
 0x7bb   : > { %v9176_v40 = vadd.f32 %v9043_v15, %v8976_v27  ;;  %v8979_v41 = vmul.f32 %v8855_v18, %v7155_v28  ;;  %v7157_v42 = vpop.f32.mrb[26].mxu0  ;;  %7458 = vmatpush1.bf16.msra.mxu0 %v5830_v19  ;;  %v6994_v33 = vpop.f32.mrb[23].mxu1  ;;  %7295 = vmatprep.subr.bf16.mxu1 %v5861_v50  ;;  %v5959_v14 = vunpack.c.h.s8.bf16 %v4007_v58  ;;  %v4037_v15 = vld [vmem:[%s11198_s0 + $0x1d68] sm:$0xff]  ;;  %v4039_v18 = vld [vmem:[%s11198_s0 + $0x1d78] sm:$0xff]  ;;  %v5956_v19 = vunpack.c.h.s8.bf16 %v4004_v4  ;;  %v4068_v47 = vld [vmem:[%s11198_s0 + $0x1e60] sm:$0xff] }
 0x7bc   : > { %v9178_v44 = vadd.f32 %v9051_v22, %v8978_v37  ;;  %v9177_v45 = vadd.f32 %v9047_v23, %v8977_v38  ;;  %v7158_v48 = vpop.f32.mrb[27].mxu0  ;;  %7459 = vmatprep.subr.bf16.mxu0 %v5863_v24  ;;  %v5958_v50 = vunpack.c.h.s8.bf16 %v4006_v6  ;;  %v5989_v20 = vunpack.c.l.s8.bf16 %v4037_v15  ;;  %v4038_v23 = vld [vmem:[%s11198_s0 + $0x1d70] sm:$0xff]  ;;  %v3115_v4 = vld [vmem:[%s11198_s0 + $0x98] sm:$0xff] }
 0x7bd   : > { %v9179_v55 = vadd.f32 %v9055_v36, %v8979_v41  ;;  %v5991_v22 = vunpack.c.l.s8.bf16 %v4039_v18  ;;  %v5988_v24 = vunpack.c.l.s8.bf16 %v4036_v21  ;;  %v5990_v26 = vunpack.c.l.s8.bf16 %v4038_v23  ;;  %v4071_v36 = vld [vmem:[%s11198_s0 + $0x1e78] sm:$0xff]  ;;  %v4102_v58 = vld [vmem:[%s11198_s0 + $0x1f70] sm:$0xff] }
 0x7be   : > { %v9281_v61 = vcombine.low %v9176_v40, %v9177_v45  ;;  %7296 = vmatpush1.bf16.msra.mxu1 %v5860_v52  ;;  %v6021_v27 = vunpack.c.h.s8.bf16 %v4037_v15  ;;  %v6023_v30 = vunpack.c.h.s8.bf16 %v4039_v18  ;;  %v6020_v37 = vunpack.c.h.s8.bf16 %v4036_v21  ;;  %v4070_v40 = vld [vmem:[%s11198_s0 + $0x1e70] sm:$0xff]  ;;  %v3147_v21 = vld [vmem:[%s11198_s0 + $0x198] sm:$0xff] }
 0x7bf   : > { %v9282_v62 = vcombine.low %v9178_v44, %v9179_v55  ;;  %7460 = vmatpush1.bf16.msra.mxu0 %v5862_v39  ;;  %7297 = vmatprep.subr.bf16.mxu1 %v5893_v43  ;;  %v6022_v38 = vunpack.c.h.s8.bf16 %v4038_v23  ;;  %v6053_v28 = vunpack.c.l.s8.bf16 %v4069_v56  ;;  %v6055_v52 = vunpack.c.l.s8.bf16 %v4071_v36  ;;  %v4101_v43 = vld [vmem:[%s11198_s0 + $0x1f68] sm:$0xff]  ;;  %v4103_v44 = vld [vmem:[%s11198_s0 + $0x1f78] sm:$0xff] }
 0x7c0   : > { %v11934_v5 = vrot.slane %v9281_v61, %v11601_v35  ;;  %7461 = vmatprep.subr.bf16.mxu0 %v5895_v49  ;;  %v6052_v41 = vunpack.c.l.s8.bf16 %v4068_v47  ;;  %v6054_v42 = vunpack.c.l.s8.bf16 %v4070_v40  ;;  %v6085_v33 = vunpack.c.h.s8.bf16 %v4069_v56 }
 0x7c1   : > { %v11938_v8 = vrot.slane %v9282_v62, %v11601_v35  ;;  %v6087_v39 = vunpack.c.h.s8.bf16 %v4071_v36  ;;  %v6084_v45 = vunpack.c.h.s8.bf16 %v4068_v47  ;;  %v6086_v48 = vunpack.c.h.s8.bf16 %v4070_v40  ;;  %v3179_v47 = vld [vmem:[%s11198_s0 + $0x298] sm:$0xff] }
 0x7c2   : > { %7298 = vmatpush1.bf16.msra.mxu1 %v5892_v32  ;;  %v6117_v49 = vunpack.c.l.s8.bf16 %v4101_v43  ;;  %v6119_v55 = vunpack.c.l.s8.bf16 %v4103_v44  ;;  %v6116_v61 = vunpack.c.l.s8.bf16 %v4100_v53  ;;  %v6118_v32 = vunpack.c.l.s8.bf16 %v4102_v58 }
 0x7c3   : > { %v9313_v11 = vcombine.low %v11934_v5, %v11938_v8  ;;  %7462 = vmatpush1.bf16.msra.mxu0 %v5894_v63  ;;  %7299 = vmatprep.subr.bf16.mxu1 %v5925_v3  ;;  %v6149_v62 = vunpack.c.h.s8.bf16 %v4101_v43  ;;  %v6151_v63 = vunpack.c.h.s8.bf16 %v4103_v44  ;;  %v3113_v3 = vld [vmem:[%s11198_s0 + $0x88] sm:$0xff]  ;;  %v6150_v6 = vunpack.c.h.s8.bf16 %v4102_v58 }
 0x7c4   : > { %7463 = vmatprep.subr.bf16.mxu0 %v5927_v10  ;;  %v6148_v10 = vunpack.c.h.s8.bf16 %v4100_v53  ;;  %v3211_v53 = vld [vmem:[%s11198_s0 + $0x398] sm:$0xff] }
 0x7c6   : > { %7300 = vmatpush1.bf16.msra.mxu1 %v5924_v7  ;;  %v4137_v7 = vunpack.c.l.s8.bf16 %v3113_v3 }
 0x7c7   : > { %7464 = vmatpush1.bf16.msra.mxu0 %v5926_v13  ;;  %7301 = vmatprep.subr.bf16.mxu1 %v5957_v12  ;;  %v3112_v13 = vld [vmem:[%s11198_s0 + $0x80] sm:$0xff]  ;;  %v4139_v12 = vunpack.c.l.s8.bf16 %v3115_v4 }
 0x7c8   : > { %7465 = vmatprep.subr.bf16.mxu0 %v5959_v14  ;;  %v3114_v14 = vld [vmem:[%s11198_s0 + $0x90] sm:$0xff]  ;;  %v4136_v15 = vunpack.c.l.s8.bf16 %v3112_v13 }
 0x7c9   : > { %v4138_v18 = vunpack.c.l.s8.bf16 %v3114_v14  ;;  %v4170_v23 = vunpack.c.h.s8.bf16 %v3114_v14 }
 0x7ca   : > { %7302 = vmatpush1.bf16.msra.mxu1 %v5956_v19  ;;  %v4169_v19 = vunpack.c.h.s8.bf16 %v3113_v3 }
 0x7cb   : > { %7466 = vmatpush1.bf16.msra.mxu0 %v5958_v50  ;;  %7303 = vmatprep.subr.bf16.mxu1 %v5989_v20  ;;  %v3145_v50 = vld [vmem:[%s11198_s0 + $0x188] sm:$0xff]  ;;  %v4171_v20 = vunpack.c.h.s8.bf16 %v3115_v4 }
 0x7cc   : > { %7467 = vmatprep.subr.bf16.mxu0 %v5991_v22  ;;  %v4168_v22 = vunpack.c.h.s8.bf16 %v3112_v13  ;;  %v3243_v13 = vld [vmem:[%s11198_s0 + $0x498] sm:$0xff] }
 0x7ce   : > { %7304 = vmatpush1.bf16.msra.mxu1 %v5988_v24  ;;  %v4201_v24 = vunpack.c.l.s8.bf16 %v3145_v50 }
 0x7cf   : > { %7468 = vmatpush1.bf16.msra.mxu0 %v5990_v26  ;;  %7305 = vmatprep.subr.bf16.mxu1 %v6021_v27  ;;  %v3144_v26 = vld [vmem:[%s11198_s0 + $0x180] sm:$0xff]  ;;  %v4203_v27 = vunpack.c.l.s8.bf16 %v3147_v21 }
 0x7d0   : > { %7469 = vmatprep.subr.bf16.mxu0 %v6023_v30  ;;  %v3146_v30 = vld [vmem:[%s11198_s0 + $0x190] sm:$0xff]  ;;  %v4200_v56 = vunpack.c.l.s8.bf16 %v3144_v26 }
 0x7d1   : > { %v4202_v36 = vunpack.c.l.s8.bf16 %v3146_v30  ;;  %v4234_v40 = vunpack.c.h.s8.bf16 %v3146_v30 }
 0x7d2   : > { %7306 = vmatpush1.bf16.msra.mxu1 %v6020_v37  ;;  %v4233_v37 = vunpack.c.h.s8.bf16 %v3145_v50  ;;  %v3242_v50 = vld [vmem:[%s11198_s0 + $0x490] sm:$0xff] }
 0x7d3   : > { %7470 = vmatpush1.bf16.msra.mxu0 %v6022_v38  ;;  %7307 = vmatprep.subr.bf16.mxu1 %v6053_v28  ;;  %v4235_v38 = vunpack.c.h.s8.bf16 %v3147_v21  ;;  %v3177_v28 = vld [vmem:[%s11198_s0 + $0x288] sm:$0xff]  ;;  %v4394_v21 = vunpack.c.l.s8.bf16 %v3242_v50  ;;  %v4426_v30 = vunpack.c.h.s8.bf16 %v3242_v50 }
 0x7d4   : > { %7471 = vmatprep.subr.bf16.mxu0 %v6055_v52  ;;  %v4232_v52 = vunpack.c.h.s8.bf16 %v3144_v26  ;;  %v3275_v26 = vld [vmem:[%s11198_s0 + $0x598] sm:$0xff] }
 0x7d6   : > { %7308 = vmatpush1.bf16.msra.mxu1 %v6052_v41  ;;  %v4265_v41 = vunpack.c.l.s8.bf16 %v3177_v28 }
 0x7d7   : > { %7472 = vmatpush1.bf16.msra.mxu0 %v6054_v42  ;;  %7309 = vmatprep.subr.bf16.mxu1 %v6085_v33  ;;  %v3176_v42 = vld [vmem:[%s11198_s0 + $0x280] sm:$0xff]  ;;  %v4267_v33 = vunpack.c.l.s8.bf16 %v3179_v47 }
 0x7d8   : > { %7473 = vmatprep.subr.bf16.mxu0 %v6087_v39  ;;  %v3178_v39 = vld [vmem:[%s11198_s0 + $0x290] sm:$0xff]  ;;  %v4264_v43 = vunpack.c.l.s8.bf16 %v3176_v42 }
 0x7d9   : > { %v4266_v44 = vunpack.c.l.s8.bf16 %v3178_v39  ;;  %v4298_v58 = vunpack.c.h.s8.bf16 %v3178_v39 }
 0x7da   : > { %7310 = vmatpush1.bf16.msra.mxu1 %v6084_v45  ;;  %v4297_v45 = vunpack.c.h.s8.bf16 %v3177_v28 }
 0x7db   : > { %7474 = vmatpush1.bf16.msra.mxu0 %v6086_v48  ;;  %7311 = vmatprep.subr.bf16.mxu1 %v6117_v49  ;;  %v4299_v48 = vunpack.c.h.s8.bf16 %v3179_v47  ;;  %v3209_v49 = vld [vmem:[%s11198_s0 + $0x388] sm:$0xff] }
 0x7dc   : > { %7475 = vmatprep.subr.bf16.mxu0 %v6119_v55  ;;  %v4296_v55 = vunpack.c.h.s8.bf16 %v3176_v42  ;;  %v3307_v42 = vld [vmem:[%s11198_s0 + $0x698] sm:$0xff] }
 0x7de   : > { %7312 = vmatpush1.bf16.msra.mxu1 %v6116_v61  ;;  %v4329_v61 = vunpack.c.l.s8.bf16 %v3209_v49 }
 0x7df   : > { %7476 = vmatpush1.bf16.msra.mxu0 %v6118_v32  ;;  %7313 = vmatprep.subr.bf16.mxu1 %v6149_v62  ;;  %v3208_v32 = vld [vmem:[%s11198_s0 + $0x380] sm:$0xff]  ;;  %v4331_v62 = vunpack.c.l.s8.bf16 %v3211_v53 }
 0x7e0   : > { %7477 = vmatprep.subr.bf16.mxu0 %v6151_v63  ;;  %v3210_v63 = vld [vmem:[%s11198_s0 + $0x390] sm:$0xff]  ;;  %v4328_v3 = vunpack.c.l.s8.bf16 %v3208_v32 }
 0x7e1   : > { %v4330_v4 = vunpack.c.l.s8.bf16 %v3210_v63  ;;  %v4362_v14 = vunpack.c.h.s8.bf16 %v3210_v63 }
 0x7e2   : > { %7314 = vmatpush1.bf16.msra.mxu1 %v6148_v10  ;;  %v4361_v10 = vunpack.c.h.s8.bf16 %v3209_v49 }
 0x7e3   : > { %7478 = vmatpush1.bf16.msra.mxu0 %v6150_v6  ;;  %7488 = vmatprep.subr.bf16.mxu1 %v4137_v7  ;;  %v4363_v6 = vunpack.c.h.s8.bf16 %v3211_v53  ;;  %v3241_v7 = vld [vmem:[%s11198_s0 + $0x488] sm:$0xff] }
 0x7e4   : > { %7652 = vmatprep.subr.bf16.mxu0 %v4139_v12  ;;  %v4360_v12 = vunpack.c.h.s8.bf16 %v3208_v32  ;;  %v3339_v32 = vld [vmem:[%s11198_s0 + $0x798] sm:$0xff] }
 0x7e5   : > { %7316 = vmatmul.mubr.bf16.vlgmr.msra.gmra.mrb[24].mxu1 %v11455_v0 }
 0x7e6   : > { %7480 = vmatmul.mubr.bf16.vlgmr.msra.gmra.mrb[28].mxu0 %v11455_v0  ;;  %7489 = vmatpush1.bf16.msra.mxu1 %v4136_v15  ;;  %v4393_v15 = vunpack.c.l.s8.bf16 %v3241_v7 }
 0x7e7   : > { %7520 = vmatprep.mubr.bf16.mxu1 %v11306_v57  ;;  %7653 = vmatpush1.bf16.msra.mxu0 %v4138_v18  ;;  %v3240_v18 = vld [vmem:[%s11198_s0 + $0x480] sm:$0xff] }
 0x7e8   : > { %7684 = vmatprep.mubr.bf16.mxu0 %v11306_v57  ;;  %7490 = vmatprep.subr.bf16.mxu1 %v4169_v19  ;;  %v4395_v19 = vunpack.c.l.s8.bf16 %v3243_v13 }
 0x7e9   : > { %7654 = vmatprep.subr.bf16.mxu0 %v4171_v20  ;;  %v4392_v20 = vunpack.c.l.s8.bf16 %v3240_v18 }
 0x7ea   : > { %7491 = vmatpush1.bf16.msra.mxu1 %v4168_v22  ;;  %v4425_v22 = vunpack.c.h.s8.bf16 %v3241_v7 }
 0x7eb   : > { %7655 = vmatpush1.bf16.msra.mxu0 %v4170_v23  ;;  %7492 = vmatprep.subr.bf16.mxu1 %v4201_v24  ;;  %v4427_v23 = vunpack.c.h.s8.bf16 %v3243_v13  ;;  %v3273_v24 = vld [vmem:[%s11198_s0 + $0x588] sm:$0xff] }
 0x7ec   : > { %7656 = vmatprep.subr.bf16.mxu0 %v4203_v27  ;;  %v4424_v27 = vunpack.c.h.s8.bf16 %v3240_v18  ;;  %v3371_v18 = vld [vmem:[%s11198_s0 + $0x898] sm:$0xff] }
 0x7ee   : > { %7493 = vmatpush1.bf16.msra.mxu1 %v4200_v56  ;;  %v4457_v56 = vunpack.c.l.s8.bf16 %v3273_v24 }
 0x7ef   : > { %7657 = vmatpush1.bf16.msra.mxu0 %v4202_v36  ;;  %7494 = vmatprep.subr.bf16.mxu1 %v4233_v37  ;;  %v3272_v36 = vld [vmem:[%s11198_s0 + $0x580] sm:$0xff]  ;;  %v4459_v37 = vunpack.c.l.s8.bf16 %v3275_v26 }
 0x7f0   : > { %7658 = vmatprep.subr.bf16.mxu0 %v4235_v38  ;;  %v3274_v38 = vld [vmem:[%s11198_s0 + $0x590] sm:$0xff]  ;;  %v4456_v28 = vunpack.c.l.s8.bf16 %v3272_v36 }
 0x7f1   : > { %v4458_v47 = vunpack.c.l.s8.bf16 %v3274_v38  ;;  %v4490_v39 = vunpack.c.h.s8.bf16 %v3274_v38 }
 0x7f2   : > { %7495 = vmatpush1.bf16.msra.mxu1 %v4232_v52  ;;  %v4489_v52 = vunpack.c.h.s8.bf16 %v3273_v24 }
 0x7f3   : > { %7659 = vmatpush1.bf16.msra.mxu0 %v4234_v40  ;;  %7496 = vmatprep.subr.bf16.mxu1 %v4265_v41  ;;  %v4491_v40 = vunpack.c.h.s8.bf16 %v3275_v26  ;;  %v3305_v41 = vld [vmem:[%s11198_s0 + $0x688] sm:$0xff] }
 0x7f4   : > { %7660 = vmatprep.subr.bf16.mxu0 %v4267_v33  ;;  %v4488_v33 = vunpack.c.h.s8.bf16 %v3272_v36  ;;  %v3403_v36 = vld [vmem:[%s11198_s0 + $0x998] sm:$0xff] }
 0x7f6   : > { %7497 = vmatpush1.bf16.msra.mxu1 %v4264_v43  ;;  %v4521_v43 = vunpack.c.l.s8.bf16 %v3305_v41 }
 0x7f7   : > { %7661 = vmatpush1.bf16.msra.mxu0 %v4266_v44  ;;  %7498 = vmatprep.subr.bf16.mxu1 %v4297_v45  ;;  %v3304_v44 = vld [vmem:[%s11198_s0 + $0x680] sm:$0xff]  ;;  %v4523_v45 = vunpack.c.l.s8.bf16 %v3307_v42 }
 0x7f8   : > { %7662 = vmatprep.subr.bf16.mxu0 %v4299_v48  ;;  %v3306_v48 = vld [vmem:[%s11198_s0 + $0x690] sm:$0xff]  ;;  %v4520_v49 = vunpack.c.l.s8.bf16 %v3304_v44 }
 0x7f9   : > { %v4522_v53 = vunpack.c.l.s8.bf16 %v3306_v48  ;;  %v4554_v63 = vunpack.c.h.s8.bf16 %v3306_v48 }
 0x7fa   : > { %7499 = vmatpush1.bf16.msra.mxu1 %v4296_v55  ;;  %v4553_v55 = vunpack.c.h.s8.bf16 %v3305_v41 }
 0x7fb   : > { %7663 = vmatpush1.bf16.msra.mxu0 %v4298_v58  ;;  %7500 = vmatprep.subr.bf16.mxu1 %v4329_v61  ;;  %v4555_v58 = vunpack.c.h.s8.bf16 %v3307_v42  ;;  %v3337_v61 = vld [vmem:[%s11198_s0 + $0x788] sm:$0xff] }
 0x7fc   : > { %7664 = vmatprep.subr.bf16.mxu0 %v4331_v62  ;;  %v4552_v62 = vunpack.c.h.s8.bf16 %v3304_v44  ;;  %v3435_v44 = vld [vmem:[%s11198_s0 + $0xa98] sm:$0xff] }
 0x7fe   : > { %7501 = vmatpush1.bf16.msra.mxu1 %v4328_v3  ;;  %v4585_v3 = vunpack.c.l.s8.bf16 %v3337_v61 }
 0x7ff   : > { %7665 = vmatpush1.bf16.msra.mxu0 %v4330_v4  ;;  %7502 = vmatprep.subr.bf16.mxu1 %v4361_v10  ;;  %v3336_v4 = vld [vmem:[%s11198_s0 + $0x780] sm:$0xff]  ;;  %v4587_v10 = vunpack.c.l.s8.bf16 %v3339_v32 }
 0x800   : > { %7666 = vmatprep.subr.bf16.mxu0 %v4363_v6  ;;  %v3338_v6 = vld [vmem:[%s11198_s0 + $0x790] sm:$0xff]  ;;  %v4584_v7 = vunpack.c.l.s8.bf16 %v3336_v4 }
 0x801   : > { %v4586_v13 = vunpack.c.l.s8.bf16 %v3338_v6  ;;  %v4618_v50 = vunpack.c.h.s8.bf16 %v3338_v6 }
 0x802   : > { %7503 = vmatpush1.bf16.msra.mxu1 %v4360_v12  ;;  %v4617_v12 = vunpack.c.h.s8.bf16 %v3337_v61 }
 0x803   : > { %7667 = vmatpush1.bf16.msra.mxu0 %v4362_v14  ;;  %7504 = vmatprep.subr.bf16.mxu1 %v4393_v15  ;;  %v4619_v14 = vunpack.c.h.s8.bf16 %v3339_v32  ;;  %v3369_v15 = vld [vmem:[%s11198_s0 + $0x888] sm:$0xff] }
 0x804   : > { %7668 = vmatprep.subr.bf16.mxu0 %v4395_v19  ;;  %v4616_v19 = vunpack.c.h.s8.bf16 %v3336_v4  ;;  %v3467_v4 = vld [vmem:[%s11198_s0 + $0xb98] sm:$0xff] }
 0x806   : > { %7505 = vmatpush1.bf16.msra.mxu1 %v4392_v20  ;;  %v4649_v20 = vunpack.c.l.s8.bf16 %v3369_v15 }
 0x807   : > { %7669 = vmatpush1.bf16.msra.mxu0 %v4394_v21  ;;  %7506 = vmatprep.subr.bf16.mxu1 %v4425_v22  ;;  %v3368_v21 = vld [vmem:[%s11198_s0 + $0x880] sm:$0xff]  ;;  %v4651_v22 = vunpack.c.l.s8.bf16 %v3371_v18 }
 0x808   : > { %7670 = vmatprep.subr.bf16.mxu0 %v4427_v23  ;;  %v3370_v23 = vld [vmem:[%s11198_s0 + $0x890] sm:$0xff]  ;;  %v4648_v24 = vunpack.c.l.s8.bf16 %v3368_v21 }
 0x809   : > { %v4650_v26 = vunpack.c.l.s8.bf16 %v3370_v23  ;;  %v4682_v38 = vunpack.c.h.s8.bf16 %v3370_v23 }
 0x80a   : > { %7507 = vmatpush1.bf16.msra.mxu1 %v4424_v27  ;;  %v4681_v27 = vunpack.c.h.s8.bf16 %v3369_v15 }
 0x80b   : > { %7671 = vmatpush1.bf16.msra.mxu0 %v4426_v30  ;;  %7508 = vmatprep.subr.bf16.mxu1 %v4457_v56  ;;  %v3401_v30 = vld [vmem:[%s11198_s0 + $0x988] sm:$0xff]  ;;  %v4683_v56 = vunpack.c.h.s8.bf16 %v3371_v18 }
 0x80c   : > { %7672 = vmatprep.subr.bf16.mxu0 %v4459_v37  ;;  %v4680_v37 = vunpack.c.h.s8.bf16 %v3368_v21  ;;  %v3499_v21 = vld [vmem:[%s11198_s0 + $0xc98] sm:$0xff] }
 0x80e   : > { %7509 = vmatpush1.bf16.msra.mxu1 %v4456_v28  ;;  %v4713_v28 = vunpack.c.l.s8.bf16 %v3401_v30 }
 0x80f   : > { %7673 = vmatpush1.bf16.msra.mxu0 %v4458_v47  ;;  %7510 = vmatprep.subr.bf16.mxu1 %v4489_v52  ;;  %v3400_v47 = vld [vmem:[%s11198_s0 + $0x980] sm:$0xff]  ;;  %v4715_v52 = vunpack.c.l.s8.bf16 %v3403_v36 }
 0x810   : > { %7674 = vmatprep.subr.bf16.mxu0 %v4491_v40  ;;  %v3402_v40 = vld [vmem:[%s11198_s0 + $0x990] sm:$0xff]  ;;  %v4712_v41 = vunpack.c.l.s8.bf16 %v3400_v47 }
 0x811   : > { %v4714_v42 = vunpack.c.l.s8.bf16 %v3402_v40  ;;  %v4746_v48 = vunpack.c.h.s8.bf16 %v3402_v40 }
 0x812   : > { %7511 = vmatpush1.bf16.msra.mxu1 %v4488_v33  ;;  %v4745_v33 = vunpack.c.h.s8.bf16 %v3401_v30  ;;  %v3498_v30 = vld [vmem:[%s11198_s0 + $0xc90] sm:$0xff] }
 0x813   : > { %7675 = vmatpush1.bf16.msra.mxu0 %v4490_v39  ;;  %7512 = vmatprep.subr.bf16.mxu1 %v4521_v43  ;;  %v4747_v39 = vunpack.c.h.s8.bf16 %v3403_v36  ;;  %v3433_v43 = vld [vmem:[%s11198_s0 + $0xa88] sm:$0xff]  ;;  %v4906_v36 = vunpack.c.l.s8.bf16 %v3498_v30  ;;  %v4938_v40 = vunpack.c.h.s8.bf16 %v3498_v30 }
 0x814   : > { %7676 = vmatprep.subr.bf16.mxu0 %v4523_v45  ;;  %v4744_v45 = vunpack.c.h.s8.bf16 %v3400_v47  ;;  %v3531_v47 = vld [vmem:[%s11198_s0 + $0xd98] sm:$0xff] }
 0x816   : > { %7513 = vmatpush1.bf16.msra.mxu1 %v4520_v49  ;;  %v4777_v49 = vunpack.c.l.s8.bf16 %v3433_v43 }
 0x817   : > { %7677 = vmatpush1.bf16.msra.mxu0 %v4522_v53  ;;  %7514 = vmatprep.subr.bf16.mxu1 %v4553_v55  ;;  %v3432_v53 = vld [vmem:[%s11198_s0 + $0xa80] sm:$0xff]  ;;  %v4779_v55 = vunpack.c.l.s8.bf16 %v3435_v44 }
 0x818   : > { %7678 = vmatprep.subr.bf16.mxu0 %v4555_v58  ;;  %v3434_v58 = vld [vmem:[%s11198_s0 + $0xa90] sm:$0xff]  ;;  %v4776_v61 = vunpack.c.l.s8.bf16 %v3432_v53 }
 0x819   : > { %v4778_v32 = vunpack.c.l.s8.bf16 %v3434_v58  ;;  %v4810_v6 = vunpack.c.h.s8.bf16 %v3434_v58 }
 0x81a   : > { %7515 = vmatpush1.bf16.msra.mxu1 %v4552_v62  ;;  %v4809_v62 = vunpack.c.h.s8.bf16 %v3433_v43 }
 0x81b   : > { %7679 = vmatpush1.bf16.msra.mxu0 %v4554_v63  ;;  %7516 = vmatprep.subr.bf16.mxu1 %v4585_v3  ;;  %v4811_v63 = vunpack.c.h.s8.bf16 %v3435_v44  ;;  %v3465_v3 = vld [vmem:[%s11198_s0 + $0xb88] sm:$0xff] }
 0x81c   : > { %7680 = vmatprep.subr.bf16.mxu0 %v4587_v10  ;;  %v4808_v10 = vunpack.c.h.s8.bf16 %v3432_v53  ;;  %v3563_v53 = vld [vmem:[%s11198_s0 + $0xe98] sm:$0xff] }
 0x81e   : > { %7517 = vmatpush1.bf16.msra.mxu1 %v4584_v7  ;;  %v4841_v7 = vunpack.c.l.s8.bf16 %v3465_v3 }
 0x81f   : > { %7681 = vmatpush1.bf16.msra.mxu0 %v4586_v13  ;;  %7518 = vmatprep.subr.bf16.mxu1 %v4617_v12  ;;  %v3464_v13 = vld [vmem:[%s11198_s0 + $0xb80] sm:$0xff]  ;;  %v4843_v12 = vunpack.c.l.s8.bf16 %v3467_v4 }
 0x820   : > { %7682 = vmatprep.subr.bf16.mxu0 %v4619_v14  ;;  %v3466_v14 = vld [vmem:[%s11198_s0 + $0xb90] sm:$0xff]  ;;  %v4840_v15 = vunpack.c.l.s8.bf16 %v3464_v13 }
 0x821   : > { %v4842_v18 = vunpack.c.l.s8.bf16 %v3466_v14  ;;  %v4874_v23 = vunpack.c.h.s8.bf16 %v3466_v14 }
 0x822   : > { %7519 = vmatpush1.bf16.msra.mxu1 %v4616_v19  ;;  %v4873_v19 = vunpack.c.h.s8.bf16 %v3465_v3 }
 0x823   : > { %7683 = vmatpush1.bf16.msra.mxu0 %v4618_v50  ;;  %7529 = vmatprep.subr.bf16.mxu1 %v4649_v20  ;;  %v4875_v50 = vunpack.c.h.s8.bf16 %v3467_v4  ;;  %v3497_v20 = vld [vmem:[%s11198_s0 + $0xc88] sm:$0xff] }
 0x824   : > { %7693 = vmatprep.subr.bf16.mxu0 %v4651_v22  ;;  %v4872_v22 = vunpack.c.h.s8.bf16 %v3464_v13  ;;  %v3595_v13 = vld [vmem:[%s11198_s0 + $0xf98] sm:$0xff] }
 0x825   : > { %7521 = vmatmul.mubr.bf16.vlgmr.msra.gmra.mrb[28].mxu1 %v11308_v60 }
 0x826   : > { %7685 = vmatmul.mubr.bf16.vlgmr.msra.gmra.mrb[32].mxu0 %v11308_v60  ;;  %7530 = vmatpush1.bf16.msra.mxu1 %v4648_v24  ;;  %v4905_v24 = vunpack.c.l.s8.bf16 %v3497_v20 }
 0x827   : > { %7561 = vmatprep.mubr.bf16.mxu1 %v11314_v1  ;;  %7694 = vmatpush1.bf16.msra.mxu0 %v4650_v26  ;;  %v3496_v26 = vld [vmem:[%s11198_s0 + $0xc80] sm:$0xff] }
 0x828   : > { %7725 = vmatprep.mubr.bf16.mxu0 %v11314_v1  ;;  %7531 = vmatprep.subr.bf16.mxu1 %v4681_v27  ;;  %v4907_v27 = vunpack.c.l.s8.bf16 %v3499_v21 }
 0x829   : > { %7695 = vmatprep.subr.bf16.mxu0 %v4683_v56  ;;  %v4904_v56 = vunpack.c.l.s8.bf16 %v3496_v26 }
 0x82a   : > { %7532 = vmatpush1.bf16.msra.mxu1 %v4680_v37  ;;  %v4937_v37 = vunpack.c.h.s8.bf16 %v3497_v20 }
 0x82b   : > { %7696 = vmatpush1.bf16.msra.mxu0 %v4682_v38  ;;  %7533 = vmatprep.subr.bf16.mxu1 %v4713_v28  ;;  %v4939_v38 = vunpack.c.h.s8.bf16 %v3499_v21  ;;  %v3529_v28 = vld [vmem:[%s11198_s0 + $0xd88] sm:$0xff] }
 0x82c   : > { %7697 = vmatprep.subr.bf16.mxu0 %v4715_v52  ;;  %v4936_v52 = vunpack.c.h.s8.bf16 %v3496_v26  ;;  %v3627_v26 = vld [vmem:[%s11198_s0 + $0x1098] sm:$0xff] }
 0x82e   : > { %7534 = vmatpush1.bf16.msra.mxu1 %v4712_v41  ;;  %v4969_v41 = vunpack.c.l.s8.bf16 %v3529_v28 }
 0x82f   : > { %7698 = vmatpush1.bf16.msra.mxu0 %v4714_v42  ;;  %7535 = vmatprep.subr.bf16.mxu1 %v4745_v33  ;;  %v3528_v42 = vld [vmem:[%s11198_s0 + $0xd80] sm:$0xff]  ;;  %v4971_v33 = vunpack.c.l.s8.bf16 %v3531_v47 }
 0x830   : > { %7699 = vmatprep.subr.bf16.mxu0 %v4747_v39  ;;  %v3530_v39 = vld [vmem:[%s11198_s0 + $0xd90] sm:$0xff]  ;;  %v4968_v43 = vunpack.c.l.s8.bf16 %v3528_v42 }
 0x831   : > { %v4970_v44 = vunpack.c.l.s8.bf16 %v3530_v39  ;;  %v5002_v58 = vunpack.c.h.s8.bf16 %v3530_v39 }
 0x832   : > { %7536 = vmatpush1.bf16.msra.mxu1 %v4744_v45  ;;  %v5001_v45 = vunpack.c.h.s8.bf16 %v3529_v28 }
 0x833   : > { %7700 = vmatpush1.bf16.msra.mxu0 %v4746_v48  ;;  %7537 = vmatprep.subr.bf16.mxu1 %v4777_v49  ;;  %v5003_v48 = vunpack.c.h.s8.bf16 %v3531_v47  ;;  %v3561_v49 = vld [vmem:[%s11198_s0 + $0xe88] sm:$0xff] }
 0x834   : > { %7701 = vmatprep.subr.bf16.mxu0 %v4779_v55  ;;  %v5000_v55 = vunpack.c.h.s8.bf16 %v3528_v42  ;;  %v3659_v42 = vld [vmem:[%s11198_s0 + $0x1198] sm:$0xff] }
 0x836   : > { %7538 = vmatpush1.bf16.msra.mxu1 %v4776_v61  ;;  %v5033_v61 = vunpack.c.l.s8.bf16 %v3561_v49 }
 0x837   : > { %7702 = vmatpush1.bf16.msra.mxu0 %v4778_v32  ;;  %7539 = vmatprep.subr.bf16.mxu1 %v4809_v62  ;;  %v3560_v32 = vld [vmem:[%s11198_s0 + $0xe80] sm:$0xff]  ;;  %v5035_v62 = vunpack.c.l.s8.bf16 %v3563_v53 }
 0x838   : > { %7703 = vmatprep.subr.bf16.mxu0 %v4811_v63  ;;  %v3562_v63 = vld [vmem:[%s11198_s0 + $0xe90] sm:$0xff]  ;;  %v5032_v3 = vunpack.c.l.s8.bf16 %v3560_v32 }
 0x839   : > { %v5034_v4 = vunpack.c.l.s8.bf16 %v3562_v63  ;;  %v5066_v14 = vunpack.c.h.s8.bf16 %v3562_v63 }
 0x83a   : > { %7540 = vmatpush1.bf16.msra.mxu1 %v4808_v10  ;;  %v5065_v10 = vunpack.c.h.s8.bf16 %v3561_v49 }
 0x83b   : > { %7704 = vmatpush1.bf16.msra.mxu0 %v4810_v6  ;;  %7541 = vmatprep.subr.bf16.mxu1 %v4841_v7  ;;  %v5067_v6 = vunpack.c.h.s8.bf16 %v3563_v53  ;;  %v3593_v7 = vld [vmem:[%s11198_s0 + $0xf88] sm:$0xff] }
 0x83c   : > { %7705 = vmatprep.subr.bf16.mxu0 %v4843_v12  ;;  %v5064_v12 = vunpack.c.h.s8.bf16 %v3560_v32  ;;  %v3691_v32 = vld [vmem:[%s11198_s0 + $0x1298] sm:$0xff] }
 0x83e   : > { %7542 = vmatpush1.bf16.msra.mxu1 %v4840_v15  ;;  %v5097_v15 = vunpack.c.l.s8.bf16 %v3593_v7 }
 0x83f   : > { %7706 = vmatpush1.bf16.msra.mxu0 %v4842_v18  ;;  %7543 = vmatprep.subr.bf16.mxu1 %v4873_v19  ;;  %v3592_v18 = vld [vmem:[%s11198_s0 + $0xf80] sm:$0xff]  ;;  %v5099_v19 = vunpack.c.l.s8.bf16 %v3595_v13 }
 0x840   : > { %7707 = vmatprep.subr.bf16.mxu0 %v4875_v50  ;;  %v3594_v50 = vld [vmem:[%s11198_s0 + $0xf90] sm:$0xff]  ;;  %v5096_v20 = vunpack.c.l.s8.bf16 %v3592_v18 }
 0x841   : > { %v5098_v21 = vunpack.c.l.s8.bf16 %v3594_v50  ;;  %v5130_v30 = vunpack.c.h.s8.bf16 %v3594_v50 }
 0x842   : > { %7544 = vmatpush1.bf16.msra.mxu1 %v4872_v22  ;;  %v5129_v22 = vunpack.c.h.s8.bf16 %v3593_v7 }
 0x843   : > { %7708 = vmatpush1.bf16.msra.mxu0 %v4874_v23  ;;  %7545 = vmatprep.subr.bf16.mxu1 %v4905_v24  ;;  %v5131_v23 = vunpack.c.h.s8.bf16 %v3595_v13  ;;  %v3625_v24 = vld [vmem:[%s11198_s0 + $0x1088] sm:$0xff] }
 0x844   : > { %7709 = vmatprep.subr.bf16.mxu0 %v4907_v27  ;;  %v5128_v27 = vunpack.c.h.s8.bf16 %v3592_v18  ;;  %v3723_v18 = vld [vmem:[%s11198_s0 + $0x1398] sm:$0xff] }
 0x846   : > { %7546 = vmatpush1.bf16.msra.mxu1 %v4904_v56  ;;  %v5161_v56 = vunpack.c.l.s8.bf16 %v3625_v24 }
 0x847   : > { %7710 = vmatpush1.bf16.msra.mxu0 %v4906_v36  ;;  %7547 = vmatprep.subr.bf16.mxu1 %v4937_v37  ;;  %v3624_v36 = vld [vmem:[%s11198_s0 + $0x1080] sm:$0xff]  ;;  %v5163_v37 = vunpack.c.l.s8.bf16 %v3627_v26 }
 0x848   : > { %7711 = vmatprep.subr.bf16.mxu0 %v4939_v38  ;;  %v3626_v38 = vld [vmem:[%s11198_s0 + $0x1090] sm:$0xff]  ;;  %v5160_v28 = vunpack.c.l.s8.bf16 %v3624_v36 }
 0x849   : > { %v5162_v47 = vunpack.c.l.s8.bf16 %v3626_v38  ;;  %v5194_v39 = vunpack.c.h.s8.bf16 %v3626_v38 }
 0x84a   : > { %7548 = vmatpush1.bf16.msra.mxu1 %v4936_v52  ;;  %v5193_v52 = vunpack.c.h.s8.bf16 %v3625_v24 }
 0x84b   : > { %7712 = vmatpush1.bf16.msra.mxu0 %v4938_v40  ;;  %7549 = vmatprep.subr.bf16.mxu1 %v4969_v41  ;;  %v3657_v40 = vld [vmem:[%s11198_s0 + $0x1188] sm:$0xff]  ;;  %v5195_v41 = vunpack.c.h.s8.bf16 %v3627_v26 }
 0x84c   : > { %7713 = vmatprep.subr.bf16.mxu0 %v4971_v33  ;;  %v5192_v33 = vunpack.c.h.s8.bf16 %v3624_v36  ;;  %v3755_v36 = vld [vmem:[%s11198_s0 + $0x1498] sm:$0xff] }
 0x84e   : > { %7550 = vmatpush1.bf16.msra.mxu1 %v4968_v43  ;;  %v5225_v43 = vunpack.c.l.s8.bf16 %v3657_v40 }
 0x84f   : > { %7714 = vmatpush1.bf16.msra.mxu0 %v4970_v44  ;;  %7551 = vmatprep.subr.bf16.mxu1 %v5001_v45  ;;  %v3656_v44 = vld [vmem:[%s11198_s0 + $0x1180] sm:$0xff]  ;;  %v5227_v45 = vunpack.c.l.s8.bf16 %v3659_v42 }
 0x850   : > { %7715 = vmatprep.subr.bf16.mxu0 %v5003_v48  ;;  %v3658_v48 = vld [vmem:[%s11198_s0 + $0x1190] sm:$0xff]  ;;  %v5224_v49 = vunpack.c.l.s8.bf16 %v3656_v44 }
 0x851   : > { %v5226_v53 = vunpack.c.l.s8.bf16 %v3658_v48  ;;  %v5258_v63 = vunpack.c.h.s8.bf16 %v3658_v48 }
 0x852   : > { %7552 = vmatpush1.bf16.msra.mxu1 %v5000_v55  ;;  %v5257_v55 = vunpack.c.h.s8.bf16 %v3657_v40  ;;  %v3754_v40 = vld [vmem:[%s11198_s0 + $0x1490] sm:$0xff] }
 0x853   : > { %7716 = vmatpush1.bf16.msra.mxu0 %v5002_v58  ;;  %7553 = vmatprep.subr.bf16.mxu1 %v5033_v61  ;;  %v5259_v58 = vunpack.c.h.s8.bf16 %v3659_v42  ;;  %v3689_v61 = vld [vmem:[%s11198_s0 + $0x1288] sm:$0xff]  ;;  %v5418_v42 = vunpack.c.l.s8.bf16 %v3754_v40  ;;  %v5450_v48 = vunpack.c.h.s8.bf16 %v3754_v40 }
 0x854   : > { %7717 = vmatprep.subr.bf16.mxu0 %v5035_v62  ;;  %v5256_v62 = vunpack.c.h.s8.bf16 %v3656_v44  ;;  %v3787_v44 = vld [vmem:[%s11198_s0 + $0x1598] sm:$0xff] }
 0x856   : > { %7554 = vmatpush1.bf16.msra.mxu1 %v5032_v3  ;;  %v5289_v3 = vunpack.c.l.s8.bf16 %v3689_v61 }
 0x857   : > { %7718 = vmatpush1.bf16.msra.mxu0 %v5034_v4  ;;  %7555 = vmatprep.subr.bf16.mxu1 %v5065_v10  ;;  %v3688_v4 = vld [vmem:[%s11198_s0 + $0x1280] sm:$0xff]  ;;  %v5291_v10 = vunpack.c.l.s8.bf16 %v3691_v32 }
 0x858   : > { %7719 = vmatprep.subr.bf16.mxu0 %v5067_v6  ;;  %v3690_v6 = vld [vmem:[%s11198_s0 + $0x1290] sm:$0xff]  ;;  %v5288_v7 = vunpack.c.l.s8.bf16 %v3688_v4 }
 0x859   : > { %v5290_v13 = vunpack.c.l.s8.bf16 %v3690_v6  ;;  %v5322_v50 = vunpack.c.h.s8.bf16 %v3690_v6 }
 0x85a   : > { %7556 = vmatpush1.bf16.msra.mxu1 %v5064_v12  ;;  %v5321_v12 = vunpack.c.h.s8.bf16 %v3689_v61 }
 0x85b   : > { %7720 = vmatpush1.bf16.msra.mxu0 %v5066_v14  ;;  %7557 = vmatprep.subr.bf16.mxu1 %v5097_v15  ;;  %v5323_v14 = vunpack.c.h.s8.bf16 %v3691_v32  ;;  %v3721_v15 = vld [vmem:[%s11198_s0 + $0x1388] sm:$0xff] }
 0x85c   : > { %7721 = vmatprep.subr.bf16.mxu0 %v5099_v19  ;;  %v5320_v19 = vunpack.c.h.s8.bf16 %v3688_v4  ;;  %v3819_v4 = vld [vmem:[%s11198_s0 + $0x1698] sm:$0xff] }
 0x85e   : > { %7558 = vmatpush1.bf16.msra.mxu1 %v5096_v20  ;;  %v5353_v20 = vunpack.c.l.s8.bf16 %v3721_v15 }
 0x85f   : > { %7722 = vmatpush1.bf16.msra.mxu0 %v5098_v21  ;;  %7559 = vmatprep.subr.bf16.mxu1 %v5129_v22  ;;  %v3720_v21 = vld [vmem:[%s11198_s0 + $0x1380] sm:$0xff]  ;;  %v5355_v22 = vunpack.c.l.s8.bf16 %v3723_v18 }
 0x860   : > { %7723 = vmatprep.subr.bf16.mxu0 %v5131_v23  ;;  %v3722_v23 = vld [vmem:[%s11198_s0 + $0x1390] sm:$0xff]  ;;  %v5352_v24 = vunpack.c.l.s8.bf16 %v3720_v21 }
 0x861   : > { %v5354_v26 = vunpack.c.l.s8.bf16 %v3722_v23  ;;  %v5386_v38 = vunpack.c.h.s8.bf16 %v3722_v23 }
 0x862   : > { %7560 = vmatpush1.bf16.msra.mxu1 %v5128_v27  ;;  %v5385_v27 = vunpack.c.h.s8.bf16 %v3721_v15 }
 0x863   : > { %7724 = vmatpush1.bf16.msra.mxu0 %v5130_v30  ;;  %7570 = vmatprep.subr.bf16.mxu1 %v5161_v56  ;;  %v5387_v30 = vunpack.c.h.s8.bf16 %v3723_v18  ;;  %v3753_v56 = vld [vmem:[%s11198_s0 + $0x1488] sm:$0xff] }
 0x864   : > { %7734 = vmatprep.subr.bf16.mxu0 %v5163_v37  ;;  %v5384_v37 = vunpack.c.h.s8.bf16 %v3720_v21  ;;  %v3851_v21 = vld [vmem:[%s11198_s0 + $0x1798] sm:$0xff] }
 0x865   : > { %7562 = vmatmul.mubr.bf16.vlgmr.msra.gmra.mrb[28].mxu1 %v11353_v46 }
 0x866   : > { %7726 = vmatmul.mubr.bf16.vlgmr.msra.gmra.mrb[32].mxu0 %v11353_v46  ;;  %7571 = vmatpush1.bf16.msra.mxu1 %v5160_v28  ;;  %v5417_v28 = vunpack.c.l.s8.bf16 %v3753_v56 }
 0x867   : > { %7602 = vmatprep.mubr.bf16.mxu1 %v11406_v54  ;;  %7735 = vmatpush1.bf16.msra.mxu0 %v5162_v47  ;;  %v3752_v47 = vld [vmem:[%s11198_s0 + $0x1480] sm:$0xff] }
 0x868   : > { %7766 = vmatprep.mubr.bf16.mxu0 %v11406_v54  ;;  %7572 = vmatprep.subr.bf16.mxu1 %v5193_v52  ;;  %v5419_v52 = vunpack.c.l.s8.bf16 %v3755_v36 }
 0x869   : > { %7736 = vmatprep.subr.bf16.mxu0 %v5195_v41  ;;  %v5416_v41 = vunpack.c.l.s8.bf16 %v3752_v47 }
 0x86a   : > { %7573 = vmatpush1.bf16.msra.mxu1 %v5192_v33  ;;  %v5449_v33 = vunpack.c.h.s8.bf16 %v3753_v56 }
 0x86b   : > { %7737 = vmatpush1.bf16.msra.mxu0 %v5194_v39  ;;  %7574 = vmatprep.subr.bf16.mxu1 %v5225_v43  ;;  %v5451_v39 = vunpack.c.h.s8.bf16 %v3755_v36  ;;  %v3785_v43 = vld [vmem:[%s11198_s0 + $0x1588] sm:$0xff] }
 0x86c   : > { %7738 = vmatprep.subr.bf16.mxu0 %v5227_v45  ;;  %v5448_v45 = vunpack.c.h.s8.bf16 %v3752_v47  ;;  %v3883_v47 = vld [vmem:[%s11198_s0 + $0x1898] sm:$0xff] }
 0x86e   : > { %7575 = vmatpush1.bf16.msra.mxu1 %v5224_v49  ;;  %v5481_v49 = vunpack.c.l.s8.bf16 %v3785_v43 }
 0x86f   : > { %7739 = vmatpush1.bf16.msra.mxu0 %v5226_v53  ;;  %7576 = vmatprep.subr.bf16.mxu1 %v5257_v55  ;;  %v3784_v53 = vld [vmem:[%s11198_s0 + $0x1580] sm:$0xff]  ;;  %v5483_v55 = vunpack.c.l.s8.bf16 %v3787_v44 }
 0x870   : > { %7740 = vmatprep.subr.bf16.mxu0 %v5259_v58  ;;  %v3786_v58 = vld [vmem:[%s11198_s0 + $0x1590] sm:$0xff]  ;;  %v5480_v61 = vunpack.c.l.s8.bf16 %v3784_v53 }
 0x871   : > { %v5482_v32 = vunpack.c.l.s8.bf16 %v3786_v58  ;;  %v5514_v6 = vunpack.c.h.s8.bf16 %v3786_v58 }
 0x872   : > { %7577 = vmatpush1.bf16.msra.mxu1 %v5256_v62  ;;  %v5513_v62 = vunpack.c.h.s8.bf16 %v3785_v43 }
 0x873   : > { %7741 = vmatpush1.bf16.msra.mxu0 %v5258_v63  ;;  %7578 = vmatprep.subr.bf16.mxu1 %v5289_v3  ;;  %v5515_v63 = vunpack.c.h.s8.bf16 %v3787_v44  ;;  %v3817_v3 = vld [vmem:[%s11198_s0 + $0x1688] sm:$0xff] }
 0x874   : > { %7742 = vmatprep.subr.bf16.mxu0 %v5291_v10  ;;  %v5512_v10 = vunpack.c.h.s8.bf16 %v3784_v53  ;;  %v3915_v53 = vld [vmem:[%s11198_s0 + $0x1998] sm:$0xff] }
 0x876   : > { %7579 = vmatpush1.bf16.msra.mxu1 %v5288_v7  ;;  %v5545_v7 = vunpack.c.l.s8.bf16 %v3817_v3 }
 0x877   : > { %7743 = vmatpush1.bf16.msra.mxu0 %v5290_v13  ;;  %7580 = vmatprep.subr.bf16.mxu1 %v5321_v12  ;;  %v3816_v13 = vld [vmem:[%s11198_s0 + $0x1680] sm:$0xff]  ;;  %v5547_v12 = vunpack.c.l.s8.bf16 %v3819_v4 }
 0x878   : > { %7744 = vmatprep.subr.bf16.mxu0 %v5323_v14  ;;  %v3818_v14 = vld [vmem:[%s11198_s0 + $0x1690] sm:$0xff]  ;;  %v5544_v15 = vunpack.c.l.s8.bf16 %v3816_v13 }
 0x879   : > { %v5546_v18 = vunpack.c.l.s8.bf16 %v3818_v14  ;;  %v5578_v23 = vunpack.c.h.s8.bf16 %v3818_v14 }
 0x87a   : > { %7581 = vmatpush1.bf16.msra.mxu1 %v5320_v19  ;;  %v5577_v19 = vunpack.c.h.s8.bf16 %v3817_v3 }
 0x87b   : > { %7745 = vmatpush1.bf16.msra.mxu0 %v5322_v50  ;;  %7582 = vmatprep.subr.bf16.mxu1 %v5353_v20  ;;  %v5579_v50 = vunpack.c.h.s8.bf16 %v3819_v4  ;;  %v3849_v20 = vld [vmem:[%s11198_s0 + $0x1788] sm:$0xff] }
 0x87c   : > { %7746 = vmatprep.subr.bf16.mxu0 %v5355_v22  ;;  %v5576_v22 = vunpack.c.h.s8.bf16 %v3816_v13  ;;  %v3947_v13 = vld [vmem:[%s11198_s0 + $0x1a98] sm:$0xff] }
 0x87e   : > { %7583 = vmatpush1.bf16.msra.mxu1 %v5352_v24  ;;  %v5609_v24 = vunpack.c.l.s8.bf16 %v3849_v20 }
 0x87f   : > { %7747 = vmatpush1.bf16.msra.mxu0 %v5354_v26  ;;  %7584 = vmatprep.subr.bf16.mxu1 %v5385_v27  ;;  %v3848_v26 = vld [vmem:[%s11198_s0 + $0x1780] sm:$0xff]  ;;  %v5611_v27 = vunpack.c.l.s8.bf16 %v3851_v21 }
 0x880   : > { %7748 = vmatprep.subr.bf16.mxu0 %v5387_v30  ;;  %v3850_v30 = vld [vmem:[%s11198_s0 + $0x1790] sm:$0xff]  ;;  %v5608_v56 = vunpack.c.l.s8.bf16 %v3848_v26 }
 0x881   : > { %v5610_v36 = vunpack.c.l.s8.bf16 %v3850_v30  ;;  %v5642_v40 = vunpack.c.h.s8.bf16 %v3850_v30  ;;  %v3979_v30 = vld [vmem:[%s11198_s0 + $0x1b98] sm:$0xff] }
 0x882   : > { %7585 = vmatpush1.bf16.msra.mxu1 %v5384_v37  ;;  %v5641_v37 = vunpack.c.h.s8.bf16 %v3849_v20 }
 0x883   : > { %7749 = vmatpush1.bf16.msra.mxu0 %v5386_v38  ;;  %7586 = vmatprep.subr.bf16.mxu1 %v5417_v28  ;;  %v5643_v38 = vunpack.c.h.s8.bf16 %v3851_v21  ;;  %v3881_v28 = vld [vmem:[%s11198_s0 + $0x1888] sm:$0xff] }
 0x884   : > { %7750 = vmatprep.subr.bf16.mxu0 %v5419_v52  ;;  %v5640_v52 = vunpack.c.h.s8.bf16 %v3848_v26  ;;  %v10457_v26 = vld [vmem:[%s11581_s10 + $0x8] sm:$0xff] }
 0x886   : > { %7587 = vmatpush1.bf16.msra.mxu1 %v5416_v41  ;;  %v5673_v41 = vunpack.c.l.s8.bf16 %v3881_v28 }
 0x887   : > { %7751 = vmatpush1.bf16.msra.mxu0 %v5418_v42  ;;  %7588 = vmatprep.subr.bf16.mxu1 %v5449_v33  ;;  %v3880_v42 = vld [vmem:[%s11198_s0 + $0x1880] sm:$0xff]  ;;  %v5675_v33 = vunpack.c.l.s8.bf16 %v3883_v47 }
 0x888   : > { %7752 = vmatprep.subr.bf16.mxu0 %v5451_v39  ;;  %v3882_v39 = vld [vmem:[%s11198_s0 + $0x1890] sm:$0xff]  ;;  %v5672_v43 = vunpack.c.l.s8.bf16 %v3880_v42 }
 0x889   : > { %v5674_v44 = vunpack.c.l.s8.bf16 %v3882_v39  ;;  %v5706_v58 = vunpack.c.h.s8.bf16 %v3882_v39 }
 0x88a   : > { %7589 = vmatpush1.bf16.msra.mxu1 %v5448_v45  ;;  %v5705_v45 = vunpack.c.h.s8.bf16 %v3881_v28 }
 0x88b   : > { %7753 = vmatpush1.bf16.msra.mxu0 %v5450_v48  ;;  %7590 = vmatprep.subr.bf16.mxu1 %v5481_v49  ;;  %v3913_v48 = vld [vmem:[%s11198_s0 + $0x1988] sm:$0xff]  ;;  %v5707_v49 = vunpack.c.h.s8.bf16 %v3883_v47  ;;  %v8871_v47 = vrot.slane %v10457_v26, %v11390_v16 }
 0x88c   : > { %7754 = vmatprep.subr.bf16.mxu0 %v5483_v55  ;;  %v5704_v55 = vunpack.c.h.s8.bf16 %v3880_v42 }
 0x88e   : > { %7591 = vmatpush1.bf16.msra.mxu1 %v5480_v61  ;;  %v5737_v61 = vunpack.c.l.s8.bf16 %v3913_v48 }
 0x88f   : > { %7755 = vmatpush1.bf16.msra.mxu0 %v5482_v32  ;;  %7592 = vmatprep.subr.bf16.mxu1 %v5513_v62  ;;  %v3912_v32 = vld [vmem:[%s11198_s0 + $0x1980] sm:$0xff]  ;;  %v5739_v62 = vunpack.c.l.s8.bf16 %v3915_v53 }
 0x890   : > { %7756 = vmatprep.subr.bf16.mxu0 %v5515_v63  ;;  %v3914_v63 = vld [vmem:[%s11198_s0 + $0x1990] sm:$0xff]  ;;  %v5736_v3 = vunpack.c.l.s8.bf16 %v3912_v32 }
 0x891   : > { %v5738_v4 = vunpack.c.l.s8.bf16 %v3914_v63  ;;  %v5770_v14 = vunpack.c.h.s8.bf16 %v3914_v63 }
 0x892   : > { %7593 = vmatpush1.bf16.msra.mxu1 %v5512_v10  ;;  %v5769_v10 = vunpack.c.h.s8.bf16 %v3913_v48 }
 0x893   : > { %7757 = vmatpush1.bf16.msra.mxu0 %v5514_v6  ;;  %7594 = vmatprep.subr.bf16.mxu1 %v5545_v7  ;;  %v5771_v6 = vunpack.c.h.s8.bf16 %v3915_v53  ;;  %v3945_v7 = vld [vmem:[%s11198_s0 + $0x1a88] sm:$0xff] }
 0x894   : > { %7758 = vmatprep.subr.bf16.mxu0 %v5547_v12  ;;  %v5768_v12 = vunpack.c.h.s8.bf16 %v3912_v32 }
 0x896   : > { %7595 = vmatpush1.bf16.msra.mxu1 %v5544_v15  ;;  %v5801_v15 = vunpack.c.l.s8.bf16 %v3945_v7 }
 0x897   : > { %7759 = vmatpush1.bf16.msra.mxu0 %v5546_v18  ;;  %7596 = vmatprep.subr.bf16.mxu1 %v5577_v19  ;;  %v3944_v18 = vld [vmem:[%s11198_s0 + $0x1a80] sm:$0xff]  ;;  %v5803_v19 = vunpack.c.l.s8.bf16 %v3947_v13 }
 0x898   : > { %7760 = vmatprep.subr.bf16.mxu0 %v5579_v50  ;;  %v3946_v50 = vld [vmem:[%s11198_s0 + $0x1a90] sm:$0xff]  ;;  %v5800_v20 = vunpack.c.l.s8.bf16 %v3944_v18 }
 0x899   : > { %v5802_v21 = vunpack.c.l.s8.bf16 %v3946_v50 }
 0x89a   : > { %7597 = vmatpush1.bf16.msra.mxu1 %v5576_v22  ;;  %v5833_v22 = vunpack.c.h.s8.bf16 %v3945_v7 }
 0x89b   : > { %7761 = vmatpush1.bf16.msra.mxu0 %v5578_v23  ;;  %7598 = vmatprep.subr.bf16.mxu1 %v5609_v24  ;;  %v5835_v23 = vunpack.c.h.s8.bf16 %v3947_v13  ;;  %v3977_v24 = vld [vmem:[%s11198_s0 + $0x1b88] sm:$0xff] }
 0x89c   : > { %7762 = vmatprep.subr.bf16.mxu0 %v5611_v27  ;;  %v8859_v27 = vrot.slane %v10457_v26, %v11384_v34  ;;  %v5897_v7 = vunpack.c.h.s8.bf16 %v3977_v24 }
 0x89e   : > { %7599 = vmatpush1.bf16.msra.mxu1 %v5608_v56  ;;  %v8867_v56 = vrot.slane %v10457_v26, %v11443_v25 }
 0x89f   : > { %7763 = vmatpush1.bf16.msra.mxu0 %v5610_v36  ;;  %7600 = vmatprep.subr.bf16.mxu1 %v5641_v37  ;;  %v8863_v36 = vrot.slane %v10457_v26, %v11387_v17  ;;  %v5832_v37 = vunpack.c.h.s8.bf16 %v3944_v18  ;;  %v4009_v18 = vld [vmem:[%s11198_s0 + $0x1c88] sm:$0xff] }
 0x8a0   : > { %7764 = vmatprep.subr.bf16.mxu0 %v5643_v38  ;;  %v10458_v38 = vld [vmem:[%s11585_s29 + $0x8] sm:$0xff]  ;;  %v5929_v26 = vunpack.c.l.s8.bf16 %v4009_v18 }
 0x8a1   : > { %v9059_v28 = vrot.slane %v10458_v38, %v11384_v34  ;;  %v9063_v39 = vrot.slane %v10458_v38, %v11387_v17  ;;  %v9071_v53 = vrot.slane %v10458_v38, %v11390_v16 }
 0x8a2   : > { %7601 = vmatpush1.bf16.msra.mxu1 %v5640_v52  ;;  %v5834_v52 = vunpack.c.h.s8.bf16 %v3946_v50  ;;  %v4011_v50 = vld [vmem:[%s11198_s0 + $0x1c98] sm:$0xff] }
 0x8a3   : > { %7765 = vmatpush1.bf16.msra.mxu0 %v5642_v40  ;;  %7611 = vmatprep.subr.bf16.mxu1 %v5673_v41  ;;  %v5865_v40 = vunpack.c.l.s8.bf16 %v3977_v24  ;;  %v3976_v41 = vld [vmem:[%s11198_s0 + $0x1b80] sm:$0xff] }
 0x8a4   : > { %7775 = vmatprep.subr.bf16.mxu0 %v5675_v33  ;;  %v9067_v33 = vrot.slane %v10458_v38, %v11443_v25  ;;  %v4008_v24 = vld [vmem:[%s11198_s0 + $0x1c80] sm:$0xff] }
 0x8a5   : > { %7603 = vmatmul.mubr.bf16.vlgmr.msra.gmra.mrb[28].mxu1 %v11408_v9 }
 0x8a6   : > { %7767 = vmatmul.mubr.bf16.vlgmr.msra.gmra.mrb[32].mxu0 %v11408_v9  ;;  %7612 = vmatpush1.bf16.msra.mxu1 %v5672_v43  ;;  %v5867_v43 = vunpack.c.l.s8.bf16 %v3979_v30 }
 0x8a7   : > { %7643 = vmatprep.mubr.bf16.mxu1 %v11414_v2  ;;  %7776 = vmatpush1.bf16.msra.mxu0 %v5674_v44  ;;  %v3978_v44 = vld [vmem:[%s11198_s0 + $0x1b90] sm:$0xff] }
 0x8a8   : > { %7807 = vmatprep.mubr.bf16.mxu0 %v11414_v2  ;;  %7613 = vmatprep.subr.bf16.mxu1 %v5705_v45 }
 0x8a9   : > { %7777 = vmatprep.subr.bf16.mxu0 %v5707_v49 }
 0x8aa   : > { %7614 = vmatpush1.bf16.msra.mxu1 %v5704_v55 }
 0x8ab   : > { %7778 = vmatpush1.bf16.msra.mxu0 %v5706_v58  ;;  %7615 = vmatprep.subr.bf16.mxu1 %v5737_v61 }
 0x8ac   : > { %7779 = vmatprep.subr.bf16.mxu0 %v5739_v62  ;;  %v5864_v62 = vunpack.c.l.s8.bf16 %v3976_v41 }
 0x8ae   : > { %7616 = vmatpush1.bf16.msra.mxu1 %v5736_v3 }
 0x8af   : > { %7780 = vmatpush1.bf16.msra.mxu0 %v5738_v4  ;;  %7617 = vmatprep.subr.bf16.mxu1 %v5769_v10 }
 0x8b0   : > { %7781 = vmatprep.subr.bf16.mxu0 %v5771_v6  ;;  %v5866_v6 = vunpack.c.l.s8.bf16 %v3978_v44 }
 0x8b2   : > { %7618 = vmatpush1.bf16.msra.mxu1 %v5768_v12 }
 0x8b3   : > { %7782 = vmatpush1.bf16.msra.mxu0 %v5770_v14  ;;  %7619 = vmatprep.subr.bf16.mxu1 %v5801_v15  ;;  %v5899_v15 = vunpack.c.h.s8.bf16 %v3979_v30  ;;  %v4010_v30 = vld [vmem:[%s11198_s0 + $0x1c90] sm:$0xff] }
 0x8b4   : > { %7783 = vmatprep.subr.bf16.mxu0 %v5803_v19 }
 0x8b6   : > { %7620 = vmatpush1.bf16.msra.mxu1 %v5800_v20 }
 0x8b7   : > { %7784 = vmatpush1.bf16.msra.mxu0 %v5802_v21  ;;  %7621 = vmatprep.subr.bf16.mxu1 %v5833_v22  ;;  %v5896_v21 = vunpack.c.h.s8.bf16 %v3976_v41  ;;  %v9321_v41 = vrot.slane %v9313_v11, %v11601_v35 }
 0x8b8   : > { %v7317_v42 = vpop.f32.mrb[24].mxu1  ;;  %7785 = vmatprep.subr.bf16.mxu0 %v5835_v23  ;;  %v5898_v23 = vunpack.c.h.s8.bf16 %v3978_v44  ;;  %v5962_v44 = vunpack.c.h.s8.bf16 %v4010_v30 }
 0x8b9   : > { %v8980_v45 = vmul.f32 %v8859_v27, %v7317_v42  ;;  %v7481_v48 = vpop.f32.mrb[28].mxu0  ;;  %v7319_v49 = vpop.f32.mrb[25].mxu1 }
 0x8ba   : > { %v8982_v55 = vmul.f32 %v8867_v56, %v7481_v48  ;;  %v8981_v58 = vmul.f32 %v8863_v36, %v7319_v49  ;;  %v7483_v61 = vpop.f32.mrb[29].mxu0  ;;  %v7321_v32 = vpop.f32.mrb[26].mxu1  ;;  %7622 = vmatpush1.bf16.msra.mxu1 %v5832_v37  ;;  %v5931_v56 = vunpack.c.l.s8.bf16 %v4011_v50  ;;  %v5928_v37 = vunpack.c.l.s8.bf16 %v4008_v24  ;;  %v4040_v48 = vld [vmem:[%s11198_s0 + $0x1d80] sm:$0xff] }
 0x8bb   : > { %v9180_v63 = vadd.f32 %v9059_v28, %v8980_v45  ;;  %v8983_v3 = vmul.f32 %v8871_v47, %v7483_v61  ;;  %v7485_v4 = vpop.f32.mrb[30].mxu0  ;;  %7786 = vmatpush1.bf16.msra.mxu0 %v5834_v52  ;;  %v7322_v10 = vpop.f32.mrb[27].mxu1  ;;  %7623 = vmatprep.subr.bf16.mxu1 %v5865_v40  ;;  %v5930_v28 = vunpack.c.l.s8.bf16 %v4010_v30  ;;  %v5961_v47 = vunpack.c.h.s8.bf16 %v4009_v18  ;;  %v4041_v40 = vld [vmem:[%s11198_s0 + $0x1d88] sm:$0xff]  ;;  %v4075_v61 = vld [vmem:[%s11198_s0 + $0x1e98] sm:$0xff] }
 0x8bc   : > { %v9182_v13 = vadd.f32 %v9067_v33, %v8982_v55  ;;  %v9181_v12 = vadd.f32 %v9063_v39, %v8981_v58  ;;  %v7486_v14 = vpop.f32.mrb[31].mxu0  ;;  %7787 = vmatprep.subr.bf16.mxu0 %v5867_v43  ;;  %v5963_v52 = vunpack.c.h.s8.bf16 %v4011_v50  ;;  %v4043_v33 = vld [vmem:[%s11198_s0 + $0x1d98] sm:$0xff]  ;;  %v5960_v39 = vunpack.c.h.s8.bf16 %v4008_v24  ;;  %v4073_v58 = vld [vmem:[%s11198_s0 + $0x1e88] sm:$0xff]  ;;  %v4074_v10 = vld [vmem:[%s11198_s0 + $0x1e90] sm:$0xff] }
 0x8bd   : > { %v9183_v19 = vadd.f32 %v9071_v53, %v8983_v3  ;;  %v5993_v45 = vunpack.c.l.s8.bf16 %v4041_v40  ;;  %v5995_v49 = vunpack.c.l.s8.bf16 %v4043_v33  ;;  %v4042_v53 = vld [vmem:[%s11198_s0 + $0x1d90] sm:$0xff]  ;;  %v5992_v5 = vunpack.c.l.s8.bf16 %v4040_v48  ;;  %v4072_v3 = vld [vmem:[%s11198_s0 + $0x1e80] sm:$0xff]  ;;  %v4105_v14 = vld [vmem:[%s11198_s0 + $0x1f88] sm:$0xff] }
 0x8be   : > { %v9283_v20 = vcombine.low %v9180_v63, %v9181_v12  ;;  %7624 = vmatpush1.bf16.msra.mxu1 %v5864_v62  ;;  %v5994_v8 = vunpack.c.l.s8.bf16 %v4042_v53  ;;  %v6025_v11 = vunpack.c.h.s8.bf16 %v4041_v40  ;;  %v6027_v55 = vunpack.c.h.s8.bf16 %v4043_v33  ;;  %v3119_v30 = vld [vmem:[%s11198_s0 + $0xb8] sm:$0xff]  ;;  %v3149_v33 = vld [vmem:[%s11198_s0 + $0x1a8] sm:$0xff] }
 0x8bf   : > { %v9284_v22 = vcombine.low %v9182_v13, %v9183_v19  ;;  %7788 = vmatpush1.bf16.msra.mxu0 %v5866_v6  ;;  %7625 = vmatprep.subr.bf16.mxu1 %v5897_v7  ;;  %v6024_v32 = vunpack.c.h.s8.bf16 %v4040_v48  ;;  %v6026_v62 = vunpack.c.h.s8.bf16 %v4042_v53  ;;  %v6057_v63 = vunpack.c.l.s8.bf16 %v4073_v58 }
 0x8c0   : > { %v9305_v27 = vrot.slane %v9283_v20, %v11601_v35  ;;  %7789 = vmatprep.subr.bf16.mxu0 %v5899_v15  ;;  %v6059_v4 = vunpack.c.l.s8.bf16 %v4075_v61  ;;  %v6056_v6 = vunpack.c.l.s8.bf16 %v4072_v3  ;;  %v6058_v7 = vunpack.c.l.s8.bf16 %v4074_v10  ;;  %v4107_v15 = vld [vmem:[%s11198_s0 + $0x1f98] sm:$0xff]  ;;  %v4104_v20 = vld [vmem:[%s11198_s0 + $0x1f80] sm:$0xff] }
 0x8c1   : > { %v9312_v36 = vrot.slane %v9284_v22, %v11601_v35  ;;  %v6089_v13 = vunpack.c.h.s8.bf16 %v4073_v58  ;;  %v6091_v12 = vunpack.c.h.s8.bf16 %v4075_v61  ;;  %v6088_v18 = vunpack.c.h.s8.bf16 %v4072_v3  ;;  %v4106_v22 = vld [vmem:[%s11198_s0 + $0x1f90] sm:$0xff]  ;;  %v3181_v61 = vld [vmem:[%s11198_s0 + $0x2a8] sm:$0xff] }
 0x8c2   : > { %7626 = vmatpush1.bf16.msra.mxu1 %v5896_v21  ;;  %v6090_v19 = vunpack.c.h.s8.bf16 %v4074_v10  ;;  %v6121_v50 = vunpack.c.l.s8.bf16 %v4105_v14  ;;  %v6123_v21 = vunpack.c.l.s8.bf16 %v4107_v15  ;;  %v6153_v24 = vunpack.c.h.s8.bf16 %v4105_v14 }
 0x8c3   : > { %v9314_v38 = vcombine.low %v9305_v27, %v9312_v36  ;;  %7790 = vmatpush1.bf16.msra.mxu0 %v5898_v23  ;;  %7627 = vmatprep.subr.bf16.mxu1 %v5929_v26  ;;  %v6120_v23 = vunpack.c.l.s8.bf16 %v4104_v20  ;;  %v6122_v26 = vunpack.c.l.s8.bf16 %v4106_v22  ;;  %v6155_v27 = vunpack.c.h.s8.bf16 %v4107_v15  ;;  %v3213_v15 = vld [vmem:[%s11198_s0 + $0x3a8] sm:$0xff] }
 0x8c4   : > { %7791 = vmatprep.subr.bf16.mxu0 %v5931_v56  ;;  %v3117_v56 = vld [vmem:[%s11198_s0 + $0xa8] sm:$0xff]  ;;  %v6152_v36 = vunpack.c.h.s8.bf16 %v4104_v20  ;;  %v4205_v48 = vunpack.c.l.s8.bf16 %v3149_v33  ;;  %v4269_v3 = vunpack.c.l.s8.bf16 %v3181_v61  ;;  %v4333_v20 = vunpack.c.l.s8.bf16 %v3213_v15 }
 0x8c5   : > { %v9328_v42 = vrot.slane %v9314_v38, %v11601_v35  ;;  %v4141_v38 = vunpack.c.l.s8.bf16 %v3117_v56 }
 0x8c6   : > { %7628 = vmatpush1.bf16.msra.mxu1 %v5928_v37  ;;  %v6154_v37 = vunpack.c.h.s8.bf16 %v4106_v22 }
 0x8c7   : > { %v9329_v43 = vcombine.low %v9321_v41, %v9328_v42  ;;  %7792 = vmatpush1.bf16.msra.mxu0 %v5930_v28  ;;  %7629 = vmatprep.subr.bf16.mxu1 %v5961_v47  ;;  %v3116_v28 = vld [vmem:[%s11198_s0 + $0xa0] sm:$0xff]  ;;  %v4143_v47 = vunpack.c.l.s8.bf16 %v3119_v30  ;;  %v4173_v42 = vunpack.c.h.s8.bf16 %v3117_v56 }
 0x8c8   : > { %7793 = vmatprep.subr.bf16.mxu0 %v5963_v52  ;;  %v3118_v52 = vld [vmem:[%s11198_s0 + $0xb0] sm:$0xff]  ;;  %v4140_v40 = vunpack.c.l.s8.bf16 %v3116_v28 }
 0x8c9   : > { %9433 = vst [vmem:[%s11781_s2 + $0x8] sm:$0xff] %v9329_v43  ;;  %v4142_v41 = vunpack.c.l.s8.bf16 %v3118_v52  ;;  %v3151_v43 = vld [vmem:[%s11198_s0 + $0x1b8] sm:$0xff] }
 0x8ca   : > { %7630 = vmatpush1.bf16.msra.mxu1 %v5960_v39  ;;  %v4175_v39 = vunpack.c.h.s8.bf16 %v3119_v30  ;;  %v4207_v53 = vunpack.c.l.s8.bf16 %v3151_v43  ;;  %v4239_v58 = vunpack.c.h.s8.bf16 %v3151_v43  ;;  %v3245_v30 = vld [vmem:[%s11198_s0 + $0x4a8] sm:$0xff] }
 0x8cb   : > { %7794 = vmatpush1.bf16.msra.mxu0 %v5962_v44  ;;  %7631 = vmatprep.subr.bf16.mxu1 %v5993_v45  ;;  %v4172_v44 = vunpack.c.h.s8.bf16 %v3116_v28  ;;  %v4174_v45 = vunpack.c.h.s8.bf16 %v3118_v52  ;;  %v4397_v28 = vunpack.c.l.s8.bf16 %v3245_v30  ;;  %v3277_v43 = vld [vmem:[%s11198_s0 + $0x5a8] sm:$0xff] }
 0x8cc   : > { %7795 = vmatprep.subr.bf16.mxu0 %v5995_v49  ;;  %v3148_v49 = vld [vmem:[%s11198_s0 + $0x1a0] sm:$0xff] }
 0x8ce   : > { %7632 = vmatpush1.bf16.msra.mxu1 %v5992_v5  ;;  %v3150_v5 = vld [vmem:[%s11198_s0 + $0x1b0] sm:$0xff] }
 0x8cf   : > { %7796 = vmatpush1.bf16.msra.mxu0 %v5994_v8  ;;  %7633 = vmatprep.subr.bf16.mxu1 %v6025_v11  ;;  %v4204_v8 = vunpack.c.l.s8.bf16 %v3148_v49  ;;  %v4206_v11 = vunpack.c.l.s8.bf16 %v3150_v5 }
 0x8d0   : > { %7797 = vmatprep.subr.bf16.mxu0 %v6027_v55  ;;  %v4237_v55 = vunpack.c.h.s8.bf16 %v3149_v33  ;;  %v4429_v33 = vunpack.c.h.s8.bf16 %v3245_v30 }
 0x8d2   : > { %7634 = vmatpush1.bf16.msra.mxu1 %v6024_v32  ;;  %v3183_v32 = vld [vmem:[%s11198_s0 + $0x2b8] sm:$0xff] }
 0x8d3   : > { %7798 = vmatpush1.bf16.msra.mxu0 %v6026_v62  ;;  %7635 = vmatprep.subr.bf16.mxu1 %v6057_v63  ;;  %v4236_v62 = vunpack.c.h.s8.bf16 %v3148_v49  ;;  %v4238_v63 = vunpack.c.h.s8.bf16 %v3150_v5  ;;  %v4271_v10 = vunpack.c.l.s8.bf16 %v3183_v32  ;;  %v4303_v14 = vunpack.c.h.s8.bf16 %v3183_v32  ;;  %v3309_v32 = vld [vmem:[%s11198_s0 + $0x6a8] sm:$0xff] }
 0x8d4   : > { %7799 = vmatprep.subr.bf16.mxu0 %v6059_v4  ;;  %v3180_v4 = vld [vmem:[%s11198_s0 + $0x2a0] sm:$0xff]  ;;  %v4461_v49 = vunpack.c.l.s8.bf16 %v3277_v43 }
 0x8d6   : > { %7636 = vmatpush1.bf16.msra.mxu1 %v6056_v6  ;;  %v3182_v6 = vld [vmem:[%s11198_s0 + $0x2b0] sm:$0xff] }
 0x8d7   : > { %7800 = vmatpush1.bf16.msra.mxu0 %v6058_v7  ;;  %7637 = vmatprep.subr.bf16.mxu1 %v6089_v13  ;;  %v4268_v7 = vunpack.c.l.s8.bf16 %v3180_v4  ;;  %v4270_v13 = vunpack.c.l.s8.bf16 %v3182_v6 }
 0x8d8   : > { %7801 = vmatprep.subr.bf16.mxu0 %v6091_v12  ;;  %v4301_v12 = vunpack.c.h.s8.bf16 %v3181_v61 }
 0x8da   : > { %7638 = vmatpush1.bf16.msra.mxu1 %v6088_v18  ;;  %v3215_v18 = vld [vmem:[%s11198_s0 + $0x3b8] sm:$0xff] }
 0x8db   : > { %7802 = vmatpush1.bf16.msra.mxu0 %v6090_v19  ;;  %7639 = vmatprep.subr.bf16.mxu1 %v6121_v50  ;;  %v4300_v19 = vunpack.c.h.s8.bf16 %v3180_v4  ;;  %v4302_v50 = vunpack.c.h.s8.bf16 %v3182_v6  ;;  %v4335_v22 = vunpack.c.l.s8.bf16 %v3215_v18  ;;  %v4367_v56 = vunpack.c.h.s8.bf16 %v3215_v18  ;;  %v3341_v18 = vld [vmem:[%s11198_s0 + $0x7a8] sm:$0xff] }
 0x8dc   : > { %7803 = vmatprep.subr.bf16.mxu0 %v6123_v21  ;;  %v3212_v21 = vld [vmem:[%s11198_s0 + $0x3a0] sm:$0xff]  ;;  %v4525_v4 = vunpack.c.l.s8.bf16 %v3309_v32 }
 0x8de   : > { %7640 = vmatpush1.bf16.msra.mxu1 %v6120_v23  ;;  %v3214_v23 = vld [vmem:[%s11198_s0 + $0x3b0] sm:$0xff] }
 0x8df   : > { %7804 = vmatpush1.bf16.msra.mxu0 %v6122_v26  ;;  %7641 = vmatprep.subr.bf16.mxu1 %v6153_v24  ;;  %v4332_v26 = vunpack.c.l.s8.bf16 %v3212_v21  ;;  %v4334_v24 = vunpack.c.l.s8.bf16 %v3214_v23 }
 0x8e0   : > { %7805 = vmatprep.subr.bf16.mxu0 %v6155_v27  ;;  %v4365_v27 = vunpack.c.h.s8.bf16 %v3213_v15 }
 0x8e2   : > { %7642 = vmatpush1.bf16.msra.mxu1 %v6152_v36  ;;  %v3247_v36 = vld [vmem:[%s11198_s0 + $0x4b8] sm:$0xff] }
 0x8e3   : > { %7806 = vmatpush1.bf16.msra.mxu0 %v6154_v37  ;;  %7816 = vmatprep.subr.bf16.mxu1 %v4141_v38  ;;  %v4364_v37 = vunpack.c.h.s8.bf16 %v3212_v21  ;;  %v4366_v38 = vunpack.c.h.s8.bf16 %v3214_v23  ;;  %v4399_v52 = vunpack.c.l.s8.bf16 %v3247_v36  ;;  %v4589_v21 = vunpack.c.l.s8.bf16 %v3341_v18 }
 0x8e4   : > { %7980 = vmatprep.subr.bf16.mxu0 %v4143_v47  ;;  %v3244_v47 = vld [vmem:[%s11198_s0 + $0x4a0] sm:$0xff] }
 0x8e5   : > { %7644 = vmatmul.mubr.bf16.vlgmr.msra.gmra.mrb[28].mxu1 %v11455_v0 }
 0x8e6   : > { %7808 = vmatmul.mubr.bf16.vlgmr.msra.gmra.mrb[32].mxu0 %v11455_v0  ;;  %7817 = vmatpush1.bf16.msra.mxu1 %v4140_v40  ;;  %v3246_v40 = vld [vmem:[%s11198_s0 + $0x4b0] sm:$0xff] }
 0x8e7   : > { %7848 = vmatprep.mubr.bf16.mxu1 %v11306_v57  ;;  %7981 = vmatpush1.bf16.msra.mxu0 %v4142_v41  ;;  %v4396_v41 = vunpack.c.l.s8.bf16 %v3244_v47 }
 0x8e8   : > { %8012 = vmatprep.mubr.bf16.mxu0 %v11306_v57  ;;  %7818 = vmatprep.subr.bf16.mxu1 %v4173_v42  ;;  %v4398_v42 = vunpack.c.l.s8.bf16 %v3246_v40 }
 0x8e9   : > { %7982 = vmatprep.subr.bf16.mxu0 %v4175_v39  ;;  %v4431_v39 = vunpack.c.h.s8.bf16 %v3247_v36  ;;  %v3373_v36 = vld [vmem:[%s11198_s0 + $0x8a8] sm:$0xff] }
 0x8ea   : > { %7819 = vmatpush1.bf16.msra.mxu1 %v4172_v44  ;;  %v3279_v44 = vld [vmem:[%s11198_s0 + $0x5b8] sm:$0xff] }
 0x8eb   : > { %7983 = vmatpush1.bf16.msra.mxu0 %v4174_v45  ;;  %7820 = vmatprep.subr.bf16.mxu1 %v4205_v48  ;;  %v4428_v45 = vunpack.c.h.s8.bf16 %v3244_v47  ;;  %v4430_v48 = vunpack.c.h.s8.bf16 %v3246_v40  ;;  %v4463_v5 = vunpack.c.l.s8.bf16 %v3279_v44  ;;  %v4495_v61 = vunpack.c.h.s8.bf16 %v3279_v44 }
 0x8ec   : > { %7984 = vmatprep.subr.bf16.mxu0 %v4207_v53  ;;  %v3276_v53 = vld [vmem:[%s11198_s0 + $0x5a0] sm:$0xff]  ;;  %v4653_v47 = vunpack.c.l.s8.bf16 %v3373_v36 }
 0x8ee   : > { %7821 = vmatpush1.bf16.msra.mxu1 %v4204_v8  ;;  %v3278_v8 = vld [vmem:[%s11198_s0 + $0x5b0] sm:$0xff] }
 0x8ef   : > { %7985 = vmatpush1.bf16.msra.mxu0 %v4206_v11  ;;  %7822 = vmatprep.subr.bf16.mxu1 %v4237_v55  ;;  %v4460_v11 = vunpack.c.l.s8.bf16 %v3276_v53  ;;  %v4462_v55 = vunpack.c.l.s8.bf16 %v3278_v8 }
 0x8f0   : > { %7986 = vmatprep.subr.bf16.mxu0 %v4239_v58  ;;  %v4493_v58 = vunpack.c.h.s8.bf16 %v3277_v43  ;;  %v3405_v43 = vld [vmem:[%s11198_s0 + $0x9a8] sm:$0xff] }
 0x8f2   : > { %7823 = vmatpush1.bf16.msra.mxu1 %v4236_v62  ;;  %v3311_v62 = vld [vmem:[%s11198_s0 + $0x6b8] sm:$0xff] }
 0x8f3   : > { %7987 = vmatpush1.bf16.msra.mxu0 %v4238_v63  ;;  %7824 = vmatprep.subr.bf16.mxu1 %v4269_v3  ;;  %v4492_v63 = vunpack.c.h.s8.bf16 %v3276_v53  ;;  %v4494_v3 = vunpack.c.h.s8.bf16 %v3278_v8  ;;  %v4527_v6 = vunpack.c.l.s8.bf16 %v3311_v62  ;;  %v4559_v15 = vunpack.c.h.s8.bf16 %v3311_v62  ;;  %v3437_v62 = vld [vmem:[%s11198_s0 + $0xaa8] sm:$0xff] }
 0x8f4   : > { %7988 = vmatprep.subr.bf16.mxu0 %v4271_v10  ;;  %v3308_v10 = vld [vmem:[%s11198_s0 + $0x6a0] sm:$0xff]  ;;  %v4717_v53 = vunpack.c.l.s8.bf16 %v3405_v43 }
 0x8f6   : > { %7825 = vmatpush1.bf16.msra.mxu1 %v4268_v7  ;;  %v3310_v7 = vld [vmem:[%s11198_s0 + $0x6b0] sm:$0xff] }
 0x8f7   : > { %7989 = vmatpush1.bf16.msra.mxu0 %v4270_v13  ;;  %7826 = vmatprep.subr.bf16.mxu1 %v4301_v12  ;;  %v4524_v13 = vunpack.c.l.s8.bf16 %v3308_v10  ;;  %v4526_v12 = vunpack.c.l.s8.bf16 %v3310_v7 }
 0x8f8   : > { %7990 = vmatprep.subr.bf16.mxu0 %v4303_v14  ;;  %v4557_v14 = vunpack.c.h.s8.bf16 %v3309_v32 }
 0x8fa   : > { %7827 = vmatpush1.bf16.msra.mxu1 %v4300_v19  ;;  %v3343_v19 = vld [vmem:[%s11198_s0 + $0x7b8] sm:$0xff] }
 0x8fb   : > { %7991 = vmatpush1.bf16.msra.mxu0 %v4302_v50  ;;  %7828 = vmatprep.subr.bf16.mxu1 %v4333_v20  ;;  %v4556_v50 = vunpack.c.h.s8.bf16 %v3308_v10  ;;  %v4558_v20 = vunpack.c.h.s8.bf16 %v3310_v7  ;;  %v4591_v23 = vunpack.c.l.s8.bf16 %v3343_v19  ;;  %v4623_v30 = vunpack.c.h.s8.bf16 %v3343_v19  ;;  %v3469_v19 = vld [vmem:[%s11198_s0 + $0xba8] sm:$0xff] }
 0x8fc   : > { %7992 = vmatprep.subr.bf16.mxu0 %v4335_v22  ;;  %v3340_v22 = vld [vmem:[%s11198_s0 + $0x7a0] sm:$0xff]  ;;  %v4781_v10 = vunpack.c.l.s8.bf16 %v3437_v62 }
 0x8fe   : > { %7829 = vmatpush1.bf16.msra.mxu1 %v4332_v26  ;;  %v3342_v26 = vld [vmem:[%s11198_s0 + $0x7b0] sm:$0xff] }
 0x8ff   : > { %7993 = vmatpush1.bf16.msra.mxu0 %v4334_v24  ;;  %7830 = vmatprep.subr.bf16.mxu1 %v4365_v27  ;;  %v4588_v24 = vunpack.c.l.s8.bf16 %v3340_v22  ;;  %v4590_v27 = vunpack.c.l.s8.bf16 %v3342_v26 }
 0x900   : > { %7994 = vmatprep.subr.bf16.mxu0 %v4367_v56  ;;  %v4621_v56 = vunpack.c.h.s8.bf16 %v3341_v18 }
 0x902   : > { %7831 = vmatpush1.bf16.msra.mxu1 %v4364_v37  ;;  %v3375_v37 = vld [vmem:[%s11198_s0 + $0x8b8] sm:$0xff] }
 0x903   : > { %7995 = vmatpush1.bf16.msra.mxu0 %v4366_v38  ;;  %7832 = vmatprep.subr.bf16.mxu1 %v4397_v28  ;;  %v4620_v38 = vunpack.c.h.s8.bf16 %v3340_v22  ;;  %v4622_v28 = vunpack.c.h.s8.bf16 %v3342_v26  ;;  %v4655_v40 = vunpack.c.l.s8.bf16 %v3375_v37  ;;  %v4687_v44 = vunpack.c.h.s8.bf16 %v3375_v37  ;;  %v3501_v37 = vld [vmem:[%s11198_s0 + $0xca8] sm:$0xff] }
 0x904   : > { %7996 = vmatprep.subr.bf16.mxu0 %v4399_v52  ;;  %v3372_v52 = vld [vmem:[%s11198_s0 + $0x8a0] sm:$0xff]  ;;  %v4845_v22 = vunpack.c.l.s8.bf16 %v3469_v19 }
 0x906   : > { %7833 = vmatpush1.bf16.msra.mxu1 %v4396_v41  ;;  %v3374_v41 = vld [vmem:[%s11198_s0 + $0x8b0] sm:$0xff] }
 0x907   : > { %7997 = vmatpush1.bf16.msra.mxu0 %v4398_v42  ;;  %7834 = vmatprep.subr.bf16.mxu1 %v4429_v33  ;;  %v4652_v42 = vunpack.c.l.s8.bf16 %v3372_v52  ;;  %v4654_v33 = vunpack.c.l.s8.bf16 %v3374_v41 }
 0x908   : > { %7998 = vmatprep.subr.bf16.mxu0 %v4431_v39  ;;  %v4685_v39 = vunpack.c.h.s8.bf16 %v3373_v36 }
 0x90a   : > { %7835 = vmatpush1.bf16.msra.mxu1 %v4428_v45  ;;  %v3407_v45 = vld [vmem:[%s11198_s0 + $0x9b8] sm:$0xff] }
 0x90b   : > { %7999 = vmatpush1.bf16.msra.mxu0 %v4430_v48  ;;  %7836 = vmatprep.subr.bf16.mxu1 %v4461_v49  ;;  %v4684_v48 = vunpack.c.h.s8.bf16 %v3372_v52  ;;  %v4686_v49 = vunpack.c.h.s8.bf16 %v3374_v41  ;;  %v4719_v8 = vunpack.c.l.s8.bf16 %v3407_v45  ;;  %v4751_v32 = vunpack.c.h.s8.bf16 %v3407_v45  ;;  %v3533_v45 = vld [vmem:[%s11198_s0 + $0xda8] sm:$0xff] }
 0x90c   : > { %8000 = vmatprep.subr.bf16.mxu0 %v4463_v5  ;;  %v3404_v5 = vld [vmem:[%s11198_s0 + $0x9a0] sm:$0xff]  ;;  %v4909_v52 = vunpack.c.l.s8.bf16 %v3501_v37 }
 0x90e   : > { %7837 = vmatpush1.bf16.msra.mxu1 %v4460_v11  ;;  %v3406_v11 = vld [vmem:[%s11198_s0 + $0x9b0] sm:$0xff] }
 0x90f   : > { %8001 = vmatpush1.bf16.msra.mxu0 %v4462_v55  ;;  %7838 = vmatprep.subr.bf16.mxu1 %v4493_v58  ;;  %v4716_v55 = vunpack.c.l.s8.bf16 %v3404_v5  ;;  %v4718_v58 = vunpack.c.l.s8.bf16 %v3406_v11 }
 0x910   : > { %8002 = vmatprep.subr.bf16.mxu0 %v4495_v61  ;;  %v4749_v61 = vunpack.c.h.s8.bf16 %v3405_v43  ;;  %v4941_v43 = vunpack.c.h.s8.bf16 %v3501_v37 }
 0x912   : > { %7839 = vmatpush1.bf16.msra.mxu1 %v4492_v63  ;;  %v3439_v63 = vld [vmem:[%s11198_s0 + $0xab8] sm:$0xff] }
 0x913   : > { %8003 = vmatpush1.bf16.msra.mxu0 %v4494_v3  ;;  %7840 = vmatprep.subr.bf16.mxu1 %v4525_v4  ;;  %v4748_v3 = vunpack.c.h.s8.bf16 %v3404_v5  ;;  %v4750_v4 = vunpack.c.h.s8.bf16 %v3406_v11  ;;  %v4783_v7 = vunpack.c.l.s8.bf16 %v3439_v63  ;;  %v4815_v18 = vunpack.c.h.s8.bf16 %v3439_v63  ;;  %v3565_v63 = vld [vmem:[%s11198_s0 + $0xea8] sm:$0xff] }
 0x914   : > { %8004 = vmatprep.subr.bf16.mxu0 %v4527_v6  ;;  %v3436_v6 = vld [vmem:[%s11198_s0 + $0xaa0] sm:$0xff]  ;;  %v4973_v5 = vunpack.c.l.s8.bf16 %v3533_v45 }
 0x916   : > { %7841 = vmatpush1.bf16.msra.mxu1 %v4524_v13  ;;  %v3438_v13 = vld [vmem:[%s11198_s0 + $0xab0] sm:$0xff] }
 0x917   : > { %8005 = vmatpush1.bf16.msra.mxu0 %v4526_v12  ;;  %7842 = vmatprep.subr.bf16.mxu1 %v4557_v14  ;;  %v4780_v12 = vunpack.c.l.s8.bf16 %v3436_v6  ;;  %v4782_v14 = vunpack.c.l.s8.bf16 %v3438_v13 }
 0x918   : > { %8006 = vmatprep.subr.bf16.mxu0 %v4559_v15  ;;  %v4813_v15 = vunpack.c.h.s8.bf16 %v3437_v62 }
 0x91a   : > { %7843 = vmatpush1.bf16.msra.mxu1 %v4556_v50  ;;  %v3471_v50 = vld [vmem:[%s11198_s0 + $0xbb8] sm:$0xff] }
 0x91b   : > { %8007 = vmatpush1.bf16.msra.mxu0 %v4558_v20  ;;  %7844 = vmatprep.subr.bf16.mxu1 %v4589_v21  ;;  %v4812_v20 = vunpack.c.h.s8.bf16 %v3436_v6  ;;  %v4814_v21 = vunpack.c.h.s8.bf16 %v3438_v13  ;;  %v4847_v26 = vunpack.c.l.s8.bf16 %v3471_v50  ;;  %v4879_v36 = vunpack.c.h.s8.bf16 %v3471_v50  ;;  %v3597_v50 = vld [vmem:[%s11198_s0 + $0xfa8] sm:$0xff] }
 0x91c   : > { %8008 = vmatprep.subr.bf16.mxu0 %v4591_v23  ;;  %v3468_v23 = vld [vmem:[%s11198_s0 + $0xba0] sm:$0xff]  ;;  %v5037_v6 = vunpack.c.l.s8.bf16 %v3565_v63 }
 0x91e   : > { %7845 = vmatpush1.bf16.msra.mxu1 %v4588_v24  ;;  %v3470_v24 = vld [vmem:[%s11198_s0 + $0xbb0] sm:$0xff] }
 0x91f   : > { %8009 = vmatpush1.bf16.msra.mxu0 %v4590_v27  ;;  %7846 = vmatprep.subr.bf16.mxu1 %v4621_v56  ;;  %v4844_v27 = vunpack.c.l.s8.bf16 %v3468_v23  ;;  %v4846_v56 = vunpack.c.l.s8.bf16 %v3470_v24 }
 0x920   : > { %8010 = vmatprep.subr.bf16.mxu0 %v4623_v30  ;;  %v4877_v30 = vunpack.c.h.s8.bf16 %v3469_v19 }
 0x922   : > { %7847 = vmatpush1.bf16.msra.mxu1 %v4620_v38  ;;  %v3503_v38 = vld [vmem:[%s11198_s0 + $0xcb8] sm:$0xff] }
 0x923   : > { %8011 = vmatpush1.bf16.msra.mxu0 %v4622_v28  ;;  %7857 = vmatprep.subr.bf16.mxu1 %v4653_v47  ;;  %v4876_v28 = vunpack.c.h.s8.bf16 %v3468_v23  ;;  %v4878_v47 = vunpack.c.h.s8.bf16 %v3470_v24  ;;  %v4911_v41 = vunpack.c.l.s8.bf16 %v3503_v38  ;;  %v5101_v23 = vunpack.c.l.s8.bf16 %v3597_v50 }
 0x924   : > { %8021 = vmatprep.subr.bf16.mxu0 %v4655_v40  ;;  %v3500_v40 = vld [vmem:[%s11198_s0 + $0xca0] sm:$0xff] }
 0x925   : > { %7849 = vmatmul.mubr.bf16.vlgmr.msra.gmra.mrb[32].mxu1 %v11308_v60 }
 0x926   : > { %8013 = vmatmul.mubr.bf16.vlgmr.msra.gmra.mrb[36].mxu0 %v11308_v60  ;;  %7858 = vmatpush1.bf16.msra.mxu1 %v4652_v42  ;;  %v3502_v42 = vld [vmem:[%s11198_s0 + $0xcb0] sm:$0xff] }
 0x927   : > { %7889 = vmatprep.mubr.bf16.mxu1 %v11314_v1  ;;  %8022 = vmatpush1.bf16.msra.mxu0 %v4654_v33  ;;  %v4908_v33 = vunpack.c.l.s8.bf16 %v3500_v40 }
 0x928   : > { %8053 = vmatprep.mubr.bf16.mxu0 %v11314_v1  ;;  %7859 = vmatprep.subr.bf16.mxu1 %v4685_v39  ;;  %v4910_v39 = vunpack.c.l.s8.bf16 %v3502_v42 }
 0x929   : > { %8023 = vmatprep.subr.bf16.mxu0 %v4687_v44  ;;  %v4943_v44 = vunpack.c.h.s8.bf16 %v3503_v38  ;;  %v3629_v38 = vld [vmem:[%s11198_s0 + $0x10a8] sm:$0xff] }
 0x92a   : > { %7860 = vmatpush1.bf16.msra.mxu1 %v4684_v48  ;;  %v3535_v48 = vld [vmem:[%s11198_s0 + $0xdb8] sm:$0xff] }
 0x92b   : > { %8024 = vmatpush1.bf16.msra.mxu0 %v4686_v49  ;;  %7861 = vmatprep.subr.bf16.mxu1 %v4717_v53  ;;  %v4940_v49 = vunpack.c.h.s8.bf16 %v3500_v40  ;;  %v4942_v53 = vunpack.c.h.s8.bf16 %v3502_v42  ;;  %v4975_v11 = vunpack.c.l.s8.bf16 %v3535_v48  ;;  %v5007_v62 = vunpack.c.h.s8.bf16 %v3535_v48 }
 0x92c   : > { %8025 = vmatprep.subr.bf16.mxu0 %v4719_v8  ;;  %v3532_v8 = vld [vmem:[%s11198_s0 + $0xda0] sm:$0xff]  ;;  %v5165_v40 = vunpack.c.l.s8.bf16 %v3629_v38 }
 0x92e   : > { %7862 = vmatpush1.bf16.msra.mxu1 %v4716_v55  ;;  %v3534_v55 = vld [vmem:[%s11198_s0 + $0xdb0] sm:$0xff] }
 0x92f   : > { %8026 = vmatpush1.bf16.msra.mxu0 %v4718_v58  ;;  %7863 = vmatprep.subr.bf16.mxu1 %v4749_v61  ;;  %v4972_v58 = vunpack.c.l.s8.bf16 %v3532_v8  ;;  %v4974_v61 = vunpack.c.l.s8.bf16 %v3534_v55 }
 0x930   : > { %8027 = vmatprep.subr.bf16.mxu0 %v4751_v32  ;;  %v5005_v32 = vunpack.c.h.s8.bf16 %v3533_v45  ;;  %v3661_v45 = vld [vmem:[%s11198_s0 + $0x11a8] sm:$0xff] }
 0x932   : > { %7864 = vmatpush1.bf16.msra.mxu1 %v4748_v3  ;;  %v3567_v3 = vld [vmem:[%s11198_s0 + $0xeb8] sm:$0xff] }
 0x933   : > { %8028 = vmatpush1.bf16.msra.mxu0 %v4750_v4  ;;  %7865 = vmatprep.subr.bf16.mxu1 %v4781_v10  ;;  %v5004_v4 = vunpack.c.h.s8.bf16 %v3532_v8  ;;  %v5006_v10 = vunpack.c.h.s8.bf16 %v3534_v55  ;;  %v5039_v13 = vunpack.c.l.s8.bf16 %v3567_v3  ;;  %v5071_v19 = vunpack.c.h.s8.bf16 %v3567_v3  ;;  %v3693_v3 = vld [vmem:[%s11198_s0 + $0x12a8] sm:$0xff] }
 0x934   : > { %8029 = vmatprep.subr.bf16.mxu0 %v4783_v7  ;;  %v3564_v7 = vld [vmem:[%s11198_s0 + $0xea0] sm:$0xff]  ;;  %v5229_v8 = vunpack.c.l.s8.bf16 %v3661_v45 }
 0x936   : > { %7866 = vmatpush1.bf16.msra.mxu1 %v4780_v12  ;;  %v3566_v12 = vld [vmem:[%s11198_s0 + $0xeb0] sm:$0xff] }
 0x937   : > { %8030 = vmatpush1.bf16.msra.mxu0 %v4782_v14  ;;  %7867 = vmatprep.subr.bf16.mxu1 %v4813_v15  ;;  %v5036_v14 = vunpack.c.l.s8.bf16 %v3564_v7  ;;  %v5038_v15 = vunpack.c.l.s8.bf16 %v3566_v12 }
 0x938   : > { %8031 = vmatprep.subr.bf16.mxu0 %v4815_v18  ;;  %v5069_v18 = vunpack.c.h.s8.bf16 %v3565_v63 }
 0x93a   : > { %7868 = vmatpush1.bf16.msra.mxu1 %v4812_v20  ;;  %v3599_v20 = vld [vmem:[%s11198_s0 + $0xfb8] sm:$0xff] }
 0x93b   : > { %8032 = vmatpush1.bf16.msra.mxu0 %v4814_v21  ;;  %7869 = vmatprep.subr.bf16.mxu1 %v4845_v22  ;;  %v5068_v21 = vunpack.c.h.s8.bf16 %v3564_v7  ;;  %v5070_v22 = vunpack.c.h.s8.bf16 %v3566_v12  ;;  %v5103_v24 = vunpack.c.l.s8.bf16 %v3599_v20  ;;  %v5135_v37 = vunpack.c.h.s8.bf16 %v3599_v20  ;;  %v3725_v20 = vld [vmem:[%s11198_s0 + $0x13a8] sm:$0xff] }
 0x93c   : > { %8033 = vmatprep.subr.bf16.mxu0 %v4847_v26  ;;  %v3596_v26 = vld [vmem:[%s11198_s0 + $0xfa0] sm:$0xff]  ;;  %v5293_v7 = vunpack.c.l.s8.bf16 %v3693_v3 }
 0x93e   : > { %7870 = vmatpush1.bf16.msra.mxu1 %v4844_v27  ;;  %v3598_v27 = vld [vmem:[%s11198_s0 + $0xfb0] sm:$0xff] }
 0x93f   : > { %8034 = vmatpush1.bf16.msra.mxu0 %v4846_v56  ;;  %7871 = vmatprep.subr.bf16.mxu1 %v4877_v30  ;;  %v5100_v56 = vunpack.c.l.s8.bf16 %v3596_v26  ;;  %v5102_v30 = vunpack.c.l.s8.bf16 %v3598_v27 }
 0x940   : > { %8035 = vmatprep.subr.bf16.mxu0 %v4879_v36  ;;  %v5133_v36 = vunpack.c.h.s8.bf16 %v3597_v50 }
 0x942   : > { %7872 = vmatpush1.bf16.msra.mxu1 %v4876_v28  ;;  %v3631_v28 = vld [vmem:[%s11198_s0 + $0x10b8] sm:$0xff] }
 0x943   : > { %8036 = vmatpush1.bf16.msra.mxu0 %v4878_v47  ;;  %7873 = vmatprep.subr.bf16.mxu1 %v4909_v52  ;;  %v5132_v47 = vunpack.c.h.s8.bf16 %v3596_v26  ;;  %v5134_v52 = vunpack.c.h.s8.bf16 %v3598_v27  ;;  %v5167_v42 = vunpack.c.l.s8.bf16 %v3631_v28  ;;  %v5199_v48 = vunpack.c.h.s8.bf16 %v3631_v28  ;;  %v3757_v28 = vld [vmem:[%s11198_s0 + $0x14a8] sm:$0xff] }
 0x944   : > { %8037 = vmatprep.subr.bf16.mxu0 %v4911_v41  ;;  %v3628_v41 = vld [vmem:[%s11198_s0 + $0x10a0] sm:$0xff]  ;;  %v5357_v26 = vunpack.c.l.s8.bf16 %v3725_v20 }
 0x946   : > { %7874 = vmatpush1.bf16.msra.mxu1 %v4908_v33  ;;  %v3630_v33 = vld [vmem:[%s11198_s0 + $0x10b0] sm:$0xff] }
 0x947   : > { %8038 = vmatpush1.bf16.msra.mxu0 %v4910_v39  ;;  %7875 = vmatprep.subr.bf16.mxu1 %v4941_v43  ;;  %v5164_v39 = vunpack.c.l.s8.bf16 %v3628_v41  ;;  %v5166_v43 = vunpack.c.l.s8.bf16 %v3630_v33 }
 0x948   : > { %8039 = vmatprep.subr.bf16.mxu0 %v4943_v44  ;;  %v5197_v44 = vunpack.c.h.s8.bf16 %v3629_v38 }
 0x94a   : > { %7876 = vmatpush1.bf16.msra.mxu1 %v4940_v49  ;;  %v3663_v49 = vld [vmem:[%s11198_s0 + $0x11b8] sm:$0xff] }
 0x94b   : > { %8040 = vmatpush1.bf16.msra.mxu0 %v4942_v53  ;;  %7877 = vmatprep.subr.bf16.mxu1 %v4973_v5  ;;  %v5196_v53 = vunpack.c.h.s8.bf16 %v3628_v41  ;;  %v5198_v5 = vunpack.c.h.s8.bf16 %v3630_v33  ;;  %v5231_v55 = vunpack.c.l.s8.bf16 %v3663_v49  ;;  %v5263_v63 = vunpack.c.h.s8.bf16 %v3663_v49  ;;  %v3789_v49 = vld [vmem:[%s11198_s0 + $0x15a8] sm:$0xff] }
 0x94c   : > { %8041 = vmatprep.subr.bf16.mxu0 %v4975_v11  ;;  %v3660_v11 = vld [vmem:[%s11198_s0 + $0x11a0] sm:$0xff]  ;;  %v5421_v41 = vunpack.c.l.s8.bf16 %v3757_v28 }
 0x94e   : > { %7878 = vmatpush1.bf16.msra.mxu1 %v4972_v58  ;;  %v3662_v58 = vld [vmem:[%s11198_s0 + $0x11b0] sm:$0xff] }
 0x94f   : > { %8042 = vmatpush1.bf16.msra.mxu0 %v4974_v61  ;;  %7879 = vmatprep.subr.bf16.mxu1 %v5005_v32  ;;  %v5228_v61 = vunpack.c.l.s8.bf16 %v3660_v11  ;;  %v5230_v32 = vunpack.c.l.s8.bf16 %v3662_v58 }
 0x950   : > { %8043 = vmatprep.subr.bf16.mxu0 %v5007_v62  ;;  %v5261_v62 = vunpack.c.h.s8.bf16 %v3661_v45  ;;  %v5453_v45 = vunpack.c.h.s8.bf16 %v3757_v28 }
 0x952   : > { %7880 = vmatpush1.bf16.msra.mxu1 %v5004_v4  ;;  %v3695_v4 = vld [vmem:[%s11198_s0 + $0x12b8] sm:$0xff] }
 0x953   : > { %8044 = vmatpush1.bf16.msra.mxu0 %v5006_v10  ;;  %7881 = vmatprep.subr.bf16.mxu1 %v5037_v6  ;;  %v5260_v10 = vunpack.c.h.s8.bf16 %v3660_v11  ;;  %v5262_v6 = vunpack.c.h.s8.bf16 %v3662_v58  ;;  %v5295_v12 = vunpack.c.l.s8.bf16 %v3695_v4  ;;  %v5327_v50 = vunpack.c.h.s8.bf16 %v3695_v4  ;;  %v3821_v4 = vld [vmem:[%s11198_s0 + $0x16a8] sm:$0xff] }
 0x954   : > { %8045 = vmatprep.subr.bf16.mxu0 %v5039_v13  ;;  %v3692_v13 = vld [vmem:[%s11198_s0 + $0x12a0] sm:$0xff]  ;;  %v5485_v11 = vunpack.c.l.s8.bf16 %v3789_v49 }
 0x956   : > { %7882 = vmatpush1.bf16.msra.mxu1 %v5036_v14  ;;  %v3694_v14 = vld [vmem:[%s11198_s0 + $0x12b0] sm:$0xff] }
 0x957   : > { %8046 = vmatpush1.bf16.msra.mxu0 %v5038_v15  ;;  %7883 = vmatprep.subr.bf16.mxu1 %v5069_v18  ;;  %v5292_v15 = vunpack.c.l.s8.bf16 %v3692_v13  ;;  %v5294_v18 = vunpack.c.l.s8.bf16 %v3694_v14 }
 0x958   : > { %8047 = vmatprep.subr.bf16.mxu0 %v5071_v19  ;;  %v5325_v19 = vunpack.c.h.s8.bf16 %v3693_v3 }
 0x95a   : > { %7884 = vmatpush1.bf16.msra.mxu1 %v5068_v21  ;;  %v3727_v21 = vld [vmem:[%s11198_s0 + $0x13b8] sm:$0xff] }
 0x95b   : > { %8048 = vmatpush1.bf16.msra.mxu0 %v5070_v22  ;;  %7885 = vmatprep.subr.bf16.mxu1 %v5101_v23  ;;  %v5324_v22 = vunpack.c.h.s8.bf16 %v3692_v13  ;;  %v5326_v23 = vunpack.c.h.s8.bf16 %v3694_v14  ;;  %v5359_v27 = vunpack.c.l.s8.bf16 %v3727_v21  ;;  %v5391_v38 = vunpack.c.h.s8.bf16 %v3727_v21  ;;  %v3853_v21 = vld [vmem:[%s11198_s0 + $0x17a8] sm:$0xff] }
 0x95c   : > { %8049 = vmatprep.subr.bf16.mxu0 %v5103_v24  ;;  %v3724_v24 = vld [vmem:[%s11198_s0 + $0x13a0] sm:$0xff]  ;;  %v5549_v13 = vunpack.c.l.s8.bf16 %v3821_v4 }
 0x95e   : > { %7886 = vmatpush1.bf16.msra.mxu1 %v5100_v56  ;;  %v3726_v56 = vld [vmem:[%s11198_s0 + $0x13b0] sm:$0xff] }
 0x95f   : > { %8050 = vmatpush1.bf16.msra.mxu0 %v5102_v30  ;;  %7887 = vmatprep.subr.bf16.mxu1 %v5133_v36  ;;  %v5356_v30 = vunpack.c.l.s8.bf16 %v3724_v24  ;;  %v5358_v36 = vunpack.c.l.s8.bf16 %v3726_v56 }
 0x960   : > { %8051 = vmatprep.subr.bf16.mxu0 %v5135_v37  ;;  %v5389_v37 = vunpack.c.h.s8.bf16 %v3725_v20 }
 0x962   : > { %7888 = vmatpush1.bf16.msra.mxu1 %v5132_v47  ;;  %v3759_v47 = vld [vmem:[%s11198_s0 + $0x14b8] sm:$0xff] }
 0x963   : > { %8052 = vmatpush1.bf16.msra.mxu0 %v5134_v52  ;;  %7898 = vmatprep.subr.bf16.mxu1 %v5165_v40  ;;  %v5388_v52 = vunpack.c.h.s8.bf16 %v3724_v24  ;;  %v5390_v40 = vunpack.c.h.s8.bf16 %v3726_v56  ;;  %v5423_v33 = vunpack.c.l.s8.bf16 %v3759_v47  ;;  %v5613_v24 = vunpack.c.l.s8.bf16 %v3853_v21 }
 0x964   : > { %8062 = vmatprep.subr.bf16.mxu0 %v5167_v42  ;;  %v3756_v42 = vld [vmem:[%s11198_s0 + $0x14a0] sm:$0xff] }
 0x965   : > { %7890 = vmatmul.mubr.bf16.vlgmr.msra.gmra.mrb[32].mxu1 %v11353_v46 }
 0x966   : > { %8054 = vmatmul.mubr.bf16.vlgmr.msra.gmra.mrb[36].mxu0 %v11353_v46  ;;  %7899 = vmatpush1.bf16.msra.mxu1 %v5164_v39  ;;  %v3758_v39 = vld [vmem:[%s11198_s0 + $0x14b0] sm:$0xff] }
 0x967   : > { %7930 = vmatprep.mubr.bf16.mxu1 %v11406_v54  ;;  %8063 = vmatpush1.bf16.msra.mxu0 %v5166_v43  ;;  %v5420_v43 = vunpack.c.l.s8.bf16 %v3756_v42 }
 0x968   : > { %8094 = vmatprep.mubr.bf16.mxu0 %v11406_v54  ;;  %7900 = vmatprep.subr.bf16.mxu1 %v5197_v44  ;;  %v5422_v44 = vunpack.c.l.s8.bf16 %v3758_v39 }
 0x969   : > { %8064 = vmatprep.subr.bf16.mxu0 %v5199_v48  ;;  %v5455_v48 = vunpack.c.h.s8.bf16 %v3759_v47  ;;  %v3885_v47 = vld [vmem:[%s11198_s0 + $0x18a8] sm:$0xff] }
 0x96a   : > { %7901 = vmatpush1.bf16.msra.mxu1 %v5196_v53  ;;  %v3791_v53 = vld [vmem:[%s11198_s0 + $0x15b8] sm:$0xff] }
 0x96b   : > { %8065 = vmatpush1.bf16.msra.mxu0 %v5198_v5  ;;  %7902 = vmatprep.subr.bf16.mxu1 %v5229_v8  ;;  %v5452_v5 = vunpack.c.h.s8.bf16 %v3756_v42  ;;  %v5454_v8 = vunpack.c.h.s8.bf16 %v3758_v39  ;;  %v5487_v58 = vunpack.c.l.s8.bf16 %v3791_v53  ;;  %v5519_v3 = vunpack.c.h.s8.bf16 %v3791_v53 }
 0x96c   : > { %8066 = vmatprep.subr.bf16.mxu0 %v5231_v55  ;;  %v3788_v55 = vld [vmem:[%s11198_s0 + $0x15a0] sm:$0xff]  ;;  %v5677_v42 = vunpack.c.l.s8.bf16 %v3885_v47 }
 0x96e   : > { %7903 = vmatpush1.bf16.msra.mxu1 %v5228_v61  ;;  %v3790_v61 = vld [vmem:[%s11198_s0 + $0x15b0] sm:$0xff] }
 0x96f   : > { %8067 = vmatpush1.bf16.msra.mxu0 %v5230_v32  ;;  %7904 = vmatprep.subr.bf16.mxu1 %v5261_v62  ;;  %v5484_v32 = vunpack.c.l.s8.bf16 %v3788_v55  ;;  %v5486_v62 = vunpack.c.l.s8.bf16 %v3790_v61 }
 0x970   : > { %8068 = vmatprep.subr.bf16.mxu0 %v5263_v63  ;;  %v5517_v63 = vunpack.c.h.s8.bf16 %v3789_v49  ;;  %v3917_v49 = vld [vmem:[%s11198_s0 + $0x19a8] sm:$0xff] }
 0x972   : > { %7905 = vmatpush1.bf16.msra.mxu1 %v5260_v10  ;;  %v3823_v10 = vld [vmem:[%s11198_s0 + $0x16b8] sm:$0xff] }
 0x973   : > { %8069 = vmatpush1.bf16.msra.mxu0 %v5262_v6  ;;  %7906 = vmatprep.subr.bf16.mxu1 %v5293_v7  ;;  %v5516_v6 = vunpack.c.h.s8.bf16 %v3788_v55  ;;  %v5518_v7 = vunpack.c.h.s8.bf16 %v3790_v61  ;;  %v5551_v14 = vunpack.c.l.s8.bf16 %v3823_v10  ;;  %v5583_v20 = vunpack.c.h.s8.bf16 %v3823_v10  ;;  %v3949_v10 = vld [vmem:[%s11198_s0 + $0x1aa8] sm:$0xff] }
 0x974   : > { %8070 = vmatprep.subr.bf16.mxu0 %v5295_v12  ;;  %v3820_v12 = vld [vmem:[%s11198_s0 + $0x16a0] sm:$0xff]  ;;  %v5741_v55 = vunpack.c.l.s8.bf16 %v3917_v49 }
 0x976   : > { %7907 = vmatpush1.bf16.msra.mxu1 %v5292_v15  ;;  %v3822_v15 = vld [vmem:[%s11198_s0 + $0x16b0] sm:$0xff] }
 0x977   : > { %8071 = vmatpush1.bf16.msra.mxu0 %v5294_v18  ;;  %7908 = vmatprep.subr.bf16.mxu1 %v5325_v19  ;;  %v5548_v18 = vunpack.c.l.s8.bf16 %v3820_v12  ;;  %v5550_v19 = vunpack.c.l.s8.bf16 %v3822_v15 }
 0x978   : > { %8072 = vmatprep.subr.bf16.mxu0 %v5327_v50  ;;  %v5581_v50 = vunpack.c.h.s8.bf16 %v3821_v4 }
 0x97a   : > { %7909 = vmatpush1.bf16.msra.mxu1 %v5324_v22  ;;  %v3855_v22 = vld [vmem:[%s11198_s0 + $0x17b8] sm:$0xff] }
 0x97b   : > { %8073 = vmatpush1.bf16.msra.mxu0 %v5326_v23  ;;  %7910 = vmatprep.subr.bf16.mxu1 %v5357_v26  ;;  %v5580_v23 = vunpack.c.h.s8.bf16 %v3820_v12  ;;  %v5582_v26 = vunpack.c.h.s8.bf16 %v3822_v15  ;;  %v5615_v56 = vunpack.c.l.s8.bf16 %v3855_v22  ;;  %v5647_v28 = vunpack.c.h.s8.bf16 %v3855_v22  ;;  %v9002_v22 = vld [vmem:[%s11585_s29 + $0x10] sm:$0xff] }
 0x97c   : > { %8074 = vmatprep.subr.bf16.mxu0 %v5359_v27  ;;  %v3852_v27 = vld [vmem:[%s11198_s0 + $0x17a0] sm:$0xff]  ;;  %v5805_v12 = vunpack.c.l.s8.bf16 %v3949_v10 }
 0x97e   : > { %7911 = vmatpush1.bf16.msra.mxu1 %v5356_v30  ;;  %v3854_v30 = vld [vmem:[%s11198_s0 + $0x17b0] sm:$0xff] }
 0x97f   : > { %8075 = vmatpush1.bf16.msra.mxu0 %v5358_v36  ;;  %7912 = vmatprep.subr.bf16.mxu1 %v5389_v37  ;;  %v5612_v36 = vunpack.c.l.s8.bf16 %v3852_v27  ;;  %v5614_v37 = vunpack.c.l.s8.bf16 %v3854_v30 }
 0x980   : > { %8076 = vmatprep.subr.bf16.mxu0 %v5391_v38  ;;  %v5645_v38 = vunpack.c.h.s8.bf16 %v3853_v21  ;;  %v5837_v21 = vunpack.c.h.s8.bf16 %v3949_v10 }
 0x982   : > { %7913 = vmatpush1.bf16.msra.mxu1 %v5388_v52  ;;  %v3887_v52 = vld [vmem:[%s11198_s0 + $0x18b8] sm:$0xff] }
 0x983   : > { %8077 = vmatpush1.bf16.msra.mxu0 %v5390_v40  ;;  %7914 = vmatprep.subr.bf16.mxu1 %v5421_v41  ;;  %v5644_v40 = vunpack.c.h.s8.bf16 %v3852_v27  ;;  %v5646_v41 = vunpack.c.h.s8.bf16 %v3854_v30  ;;  %v5679_v39 = vunpack.c.l.s8.bf16 %v3887_v52  ;;  %v5711_v53 = vunpack.c.h.s8.bf16 %v3887_v52  ;;  %v3983_v27 = vld [vmem:[%s11198_s0 + $0x1bb8] sm:$0xff]  ;;  %v3980_v52 = vld [vmem:[%s11198_s0 + $0x1ba0] sm:$0xff] }
 0x984   : > { %8078 = vmatprep.subr.bf16.mxu0 %v5423_v33  ;;  %v3884_v33 = vld [vmem:[%s11198_s0 + $0x18a0] sm:$0xff] }
 0x986   : > { %7915 = vmatpush1.bf16.msra.mxu1 %v5420_v43  ;;  %v3886_v43 = vld [vmem:[%s11198_s0 + $0x18b0] sm:$0xff] }
 0x987   : > { %8079 = vmatpush1.bf16.msra.mxu0 %v5422_v44  ;;  %7916 = vmatprep.subr.bf16.mxu1 %v5453_v45  ;;  %v5676_v44 = vunpack.c.l.s8.bf16 %v3884_v33  ;;  %v5678_v45 = vunpack.c.l.s8.bf16 %v3886_v43 }
 0x988   : > { %8080 = vmatprep.subr.bf16.mxu0 %v5455_v48  ;;  %v5709_v48 = vunpack.c.h.s8.bf16 %v3885_v47 }
 0x98a   : > { %7917 = vmatpush1.bf16.msra.mxu1 %v5452_v5  ;;  %v3919_v5 = vld [vmem:[%s11198_s0 + $0x19b8] sm:$0xff] }
 0x98b   : > { %8081 = vmatpush1.bf16.msra.mxu0 %v5454_v8  ;;  %7918 = vmatprep.subr.bf16.mxu1 %v5485_v11  ;;  %v5708_v8 = vunpack.c.h.s8.bf16 %v3884_v33  ;;  %v5710_v11 = vunpack.c.h.s8.bf16 %v3886_v43  ;;  %v5743_v61 = vunpack.c.l.s8.bf16 %v3919_v5  ;;  %v5775_v4 = vunpack.c.h.s8.bf16 %v3919_v5 }
 0x98c   : > { %8082 = vmatprep.subr.bf16.mxu0 %v5487_v58  ;;  %v3916_v58 = vld [vmem:[%s11198_s0 + $0x19a0] sm:$0xff]  ;;  %v5871_v33 = vunpack.c.l.s8.bf16 %v3983_v27 }
 0x98e   : > { %7919 = vmatpush1.bf16.msra.mxu1 %v5484_v32  ;;  %v3918_v32 = vld [vmem:[%s11198_s0 + $0x19b0] sm:$0xff] }
 0x98f   : > { %8083 = vmatpush1.bf16.msra.mxu0 %v5486_v62  ;;  %7920 = vmatprep.subr.bf16.mxu1 %v5517_v63  ;;  %v5740_v62 = vunpack.c.l.s8.bf16 %v3916_v58  ;;  %v5742_v63 = vunpack.c.l.s8.bf16 %v3918_v32 }
 0x990   : > { %8084 = vmatprep.subr.bf16.mxu0 %v5519_v3  ;;  %v5773_v3 = vunpack.c.h.s8.bf16 %v3917_v49 }
 0x992   : > { %7921 = vmatpush1.bf16.msra.mxu1 %v5516_v6  ;;  %v3951_v6 = vld [vmem:[%s11198_s0 + $0x1ab8] sm:$0xff] }
 0x993   : > { %8085 = vmatpush1.bf16.msra.mxu0 %v5518_v7  ;;  %7922 = vmatprep.subr.bf16.mxu1 %v5549_v13  ;;  %v5772_v7 = vunpack.c.h.s8.bf16 %v3916_v58  ;;  %v5774_v13 = vunpack.c.h.s8.bf16 %v3918_v32  ;;  %v5807_v15 = vunpack.c.l.s8.bf16 %v3951_v6 }
 0x994   : > { %8086 = vmatprep.subr.bf16.mxu0 %v5551_v14  ;;  %v3948_v14 = vld [vmem:[%s11198_s0 + $0x1aa0] sm:$0xff] }
 0x996   : > { %7923 = vmatpush1.bf16.msra.mxu1 %v5548_v18  ;;  %v3950_v18 = vld [vmem:[%s11198_s0 + $0x1ab0] sm:$0xff] }
 0x997   : > { %8087 = vmatpush1.bf16.msra.mxu0 %v5550_v19  ;;  %7924 = vmatprep.subr.bf16.mxu1 %v5581_v50  ;;  %v5804_v19 = vunpack.c.l.s8.bf16 %v3948_v14  ;;  %v8802_v50 = vld [vmem:[%s11581_s10 + $0x10] sm:$0xff] }
 0x998   : > { %8088 = vmatprep.subr.bf16.mxu0 %v5583_v20  ;;  %v5806_v20 = vunpack.c.l.s8.bf16 %v3950_v18  ;;  %v8879_v30 = vrot.slane %v8802_v50, %v11213_v31 }
 0x99a   : > { %7925 = vmatpush1.bf16.msra.mxu1 %v5580_v23  ;;  %v5839_v23 = vunpack.c.h.s8.bf16 %v3951_v6  ;;  %v5903_v6 = vunpack.c.h.s8.bf16 %v3983_v27 }
 0x99b   : > { %8089 = vmatpush1.bf16.msra.mxu0 %v5582_v26  ;;  %7926 = vmatprep.subr.bf16.mxu1 %v5613_v24  ;;  %v3981_v26 = vld [vmem:[%s11198_s0 + $0x1ba8] sm:$0xff]  ;;  %v8875_v24 = vrot.slane %v8802_v50, %v11210_v29 }
 0x99c   : > { %8090 = vmatprep.subr.bf16.mxu0 %v5615_v56  ;;  %v8883_v56 = vrot.slane %v8802_v50, %v11243_v59  ;;  %v5869_v47 = vunpack.c.l.s8.bf16 %v3981_v26 }
 0x99e   : > { %7927 = vmatpush1.bf16.msra.mxu1 %v5612_v36  ;;  %v5836_v36 = vunpack.c.h.s8.bf16 %v3948_v14 }
 0x99f   : > { %8091 = vmatpush1.bf16.msra.mxu0 %v5614_v37  ;;  %7928 = vmatprep.subr.bf16.mxu1 %v5645_v38  ;;  %v9075_v37 = vrot.slane %v9002_v22, %v11210_v29  ;;  %v8887_v38 = vrot.slane %v8802_v50, %v11220_v51 }
 0x9a0   : > { %8092 = vmatprep.subr.bf16.mxu0 %v5647_v28  ;;  %v5838_v28 = vunpack.c.h.s8.bf16 %v3950_v18 }
 0x9a2   : > { %7929 = vmatpush1.bf16.msra.mxu1 %v5644_v40 }
 0x9a3   : > { %8093 = vmatpush1.bf16.msra.mxu0 %v5646_v41  ;;  %7939 = vmatprep.subr.bf16.mxu1 %v5677_v42  ;;  %v9083_v41 = vrot.slane %v9002_v22, %v11243_v59  ;;  %v9079_v42 = vrot.slane %v9002_v22, %v11213_v31 }
 0x9a4   : > { %8103 = vmatprep.subr.bf16.mxu0 %v5679_v39  ;;  %v3982_v39 = vld [vmem:[%s11198_s0 + $0x1bb0] sm:$0xff] }
 0x9a5   : > { %7931 = vmatmul.mubr.bf16.vlgmr.msra.gmra.mrb[32].mxu1 %v11408_v9 }
 0x9a6   : > { %8095 = vmatmul.mubr.bf16.vlgmr.msra.gmra.mrb[36].mxu0 %v11408_v9  ;;  %7940 = vmatpush1.bf16.msra.mxu1 %v5676_v44 }
 0x9a7   : > { %7971 = vmatprep.mubr.bf16.mxu1 %v11414_v2  ;;  %8104 = vmatpush1.bf16.msra.mxu0 %v5678_v45 }
 0x9a8   : > { %8135 = vmatprep.mubr.bf16.mxu0 %v11414_v2  ;;  %7941 = vmatprep.subr.bf16.mxu1 %v5709_v48  ;;  %v9087_v48 = vrot.slane %v9002_v22, %v11220_v51 }
 0x9a9   : > { %8105 = vmatprep.subr.bf16.mxu0 %v5711_v53 }
 0x9aa   : > { %7942 = vmatpush1.bf16.msra.mxu1 %v5708_v8 }
 0x9ab   : > { %8106 = vmatpush1.bf16.msra.mxu0 %v5710_v11  ;;  %7943 = vmatprep.subr.bf16.mxu1 %v5741_v55  ;;  %v5868_v11 = vunpack.c.l.s8.bf16 %v3980_v52 }
 0x9ac   : > { %8107 = vmatprep.subr.bf16.mxu0 %v5743_v61 }
 0x9ae   : > { %7944 = vmatpush1.bf16.msra.mxu1 %v5740_v62  ;;  %v5870_v62 = vunpack.c.l.s8.bf16 %v3982_v39 }
 0x9af   : > { %8108 = vmatpush1.bf16.msra.mxu0 %v5742_v63  ;;  %7945 = vmatprep.subr.bf16.mxu1 %v5773_v3  ;;  %v5901_v63 = vunpack.c.h.s8.bf16 %v3981_v26 }
 0x9b0   : > { %8109 = vmatprep.subr.bf16.mxu0 %v5775_v4 }
 0x9b2   : > { %7946 = vmatpush1.bf16.msra.mxu1 %v5772_v7  ;;  %v4013_v7 = vld [vmem:[%s11198_s0 + $0x1ca8] sm:$0xff] }
 0x9b3   : > { %8110 = vmatpush1.bf16.msra.mxu0 %v5774_v13  ;;  %7947 = vmatprep.subr.bf16.mxu1 %v5805_v12  ;;  %v4015_v12 = vld [vmem:[%s11198_s0 + $0x1cb8] sm:$0xff]  ;;  %v5933_v50 = vunpack.c.l.s8.bf16 %v4013_v7 }
 0x9b4   : > { %8111 = vmatprep.subr.bf16.mxu0 %v5807_v15  ;;  %v5900_v15 = vunpack.c.h.s8.bf16 %v3980_v52  ;;  %v5935_v22 = vunpack.c.l.s8.bf16 %v4015_v12 }
 0x9b6   : > { %7948 = vmatpush1.bf16.msra.mxu1 %v5804_v19  ;;  %v5902_v19 = vunpack.c.h.s8.bf16 %v3982_v39 }
 0x9b7   : > { %8112 = vmatpush1.bf16.msra.mxu0 %v5806_v20  ;;  %7949 = vmatprep.subr.bf16.mxu1 %v5837_v21  ;;  %v4012_v20 = vld [vmem:[%s11198_s0 + $0x1ca0] sm:$0xff] }
 0x9b8   : > { %v7645_v40 = vpop.f32.mrb[28].mxu1  ;;  %8113 = vmatprep.subr.bf16.mxu0 %v5839_v23  ;;  %v4014_v23 = vld [vmem:[%s11198_s0 + $0x1cb0] sm:$0xff] }
 0x9b9   : > { %v8984_v43 = vmul.f32 %v8875_v24, %v7645_v40  ;;  %v7809_v44 = vpop.f32.mrb[32].mxu0  ;;  %v7647_v45 = vpop.f32.mrb[29].mxu1  ;;  %v5932_v24 = vunpack.c.l.s8.bf16 %v4012_v20  ;;  %v4044_v40 = vld [vmem:[%s11198_s0 + $0x1da0] sm:$0xff] }
 0x9ba   : > { %v8986_v49 = vmul.f32 %v8883_v56, %v7809_v44  ;;  %v8985_v53 = vmul.f32 %v8879_v30, %v7647_v45  ;;  %v7811_v5 = vpop.f32.mrb[33].mxu0  ;;  %v7649_v8 = vpop.f32.mrb[30].mxu1  ;;  %7950 = vmatpush1.bf16.msra.mxu1 %v5836_v36  ;;  %v5934_v56 = vunpack.c.l.s8.bf16 %v4014_v23  ;;  %v5965_v30 = vunpack.c.h.s8.bf16 %v4013_v7  ;;  %v4077_v45 = vld [vmem:[%s11198_s0 + $0x1ea8] sm:$0xff]  ;;  %v4108_v7 = vld [vmem:[%s11198_s0 + $0x1fa0] sm:$0xff] }
 0x9bb   : > { %v9184_v55 = vadd.f32 %v9075_v37, %v8984_v43  ;;  %v8987_v58 = vmul.f32 %v8887_v38, %v7811_v5  ;;  %v7813_v61 = vpop.f32.mrb[34].mxu0  ;;  %8114 = vmatpush1.bf16.msra.mxu0 %v5838_v28  ;;  %v7650_v32 = vpop.f32.mrb[31].mxu1  ;;  %7951 = vmatprep.subr.bf16.mxu1 %v5869_v47  ;;  %v5967_v36 = vunpack.c.h.s8.bf16 %v4015_v12  ;;  %v4045_v37 = vld [vmem:[%s11198_s0 + $0x1da8] sm:$0xff]  ;;  %v4047_v38 = vld [vmem:[%s11198_s0 + $0x1db8] sm:$0xff]  ;;  %v5964_v28 = vunpack.c.h.s8.bf16 %v4012_v20  ;;  %v4076_v8 = vld [vmem:[%s11198_s0 + $0x1ea0] sm:$0xff] }
 0x9bc   : > { %v9186_v3 = vadd.f32 %v9083_v41, %v8986_v49  ;;  %v9185_v4 = vadd.f32 %v9079_v42, %v8985_v53  ;;  %v7814_v10 = vpop.f32.mrb[35].mxu0  ;;  %8115 = vmatprep.subr.bf16.mxu0 %v5871_v33  ;;  %v5966_v47 = vunpack.c.h.s8.bf16 %v4014_v23  ;;  %v5997_v52 = vunpack.c.l.s8.bf16 %v4045_v37  ;;  %v4046_v42 = vld [vmem:[%s11198_s0 + $0x1db0] sm:$0xff]  ;;  %v3123_v20 = vld [vmem:[%s11198_s0 + $0xd8] sm:$0xff] }
 0x9bd   : > { %v9187_v13 = vadd.f32 %v9087_v48, %v8987_v58  ;;  %v5999_v41 = vunpack.c.l.s8.bf16 %v4047_v38  ;;  %v5996_v33 = vunpack.c.l.s8.bf16 %v4044_v40  ;;  %v5998_v39 = vunpack.c.l.s8.bf16 %v4046_v42  ;;  %v4079_v48 = vld [vmem:[%s11198_s0 + $0x1eb8] sm:$0xff]  ;;  %v4110_v12 = vld [vmem:[%s11198_s0 + $0x1fb0] sm:$0xff] }
 0x9be   : > { %v9330_v14 = vcombine.low %v9184_v55, %v9185_v4  ;;  %7952 = vmatpush1.bf16.msra.mxu1 %v5868_v11  ;;  %v6029_v43 = vunpack.c.h.s8.bf16 %v4045_v37  ;;  %v6031_v44 = vunpack.c.h.s8.bf16 %v4047_v38  ;;  %v6028_v49 = vunpack.c.h.s8.bf16 %v4044_v40  ;;  %v4078_v55 = vld [vmem:[%s11198_s0 + $0x1eb0] sm:$0xff]  ;;  %v3155_v40 = vld [vmem:[%s11198_s0 + $0x1d8] sm:$0xff] }
 0x9bf   : > { %v9331_v18 = vcombine.low %v9186_v3, %v9187_v13  ;;  %8116 = vmatpush1.bf16.msra.mxu0 %v5870_v62  ;;  %7953 = vmatprep.subr.bf16.mxu1 %v5901_v63  ;;  %v6030_v53 = vunpack.c.h.s8.bf16 %v4046_v42  ;;  %v6061_v5 = vunpack.c.l.s8.bf16 %v4077_v45  ;;  %v6063_v11 = vunpack.c.l.s8.bf16 %v4079_v48  ;;  %v4109_v63 = vld [vmem:[%s11198_s0 + $0x1fa8] sm:$0xff]  ;;  %v4111_v3 = vld [vmem:[%s11198_s0 + $0x1fb8] sm:$0xff] }
 0x9c0   : > { %v12258_v21 = vrot.slane %v9330_v14, %v11601_v35  ;;  %8117 = vmatprep.subr.bf16.mxu0 %v5903_v6  ;;  %v6060_v58 = vunpack.c.l.s8.bf16 %v4076_v8  ;;  %v6062_v61 = vunpack.c.l.s8.bf16 %v4078_v55  ;;  %v6093_v32 = vunpack.c.h.s8.bf16 %v4077_v45 }
 0x9c1   : > { %v12262_v26 = vrot.slane %v9331_v18, %v11601_v35  ;;  %v6095_v62 = vunpack.c.h.s8.bf16 %v4079_v48  ;;  %v6092_v4 = vunpack.c.h.s8.bf16 %v4076_v8  ;;  %v6094_v10 = vunpack.c.h.s8.bf16 %v4078_v55  ;;  %v3187_v8 = vld [vmem:[%s11198_s0 + $0x2d8] sm:$0xff] }
 0x9c2   : > { %7954 = vmatpush1.bf16.msra.mxu1 %v5900_v15  ;;  %v6125_v6 = vunpack.c.l.s8.bf16 %v4109_v63  ;;  %v6127_v13 = vunpack.c.l.s8.bf16 %v4111_v3  ;;  %v6124_v14 = vunpack.c.l.s8.bf16 %v4108_v7  ;;  %v6126_v15 = vunpack.c.l.s8.bf16 %v4110_v12 }
 0x9c3   : > { %v9362_v27 = vcombine.low %v12258_v21, %v12262_v26  ;;  %8118 = vmatpush1.bf16.msra.mxu0 %v5902_v19  ;;  %7955 = vmatprep.subr.bf16.mxu1 %v5933_v50  ;;  %v6157_v18 = vunpack.c.h.s8.bf16 %v4109_v63  ;;  %v6159_v19 = vunpack.c.h.s8.bf16 %v4111_v3  ;;  %v3121_v50 = vld [vmem:[%s11198_s0 + $0xc8] sm:$0xff]  ;;  %v6158_v23 = vunpack.c.h.s8.bf16 %v4110_v12 }
 0x9c4   : > { %8119 = vmatprep.subr.bf16.mxu0 %v5935_v22  ;;  %v6156_v22 = vunpack.c.h.s8.bf16 %v4108_v7  ;;  %v3219_v7 = vld [vmem:[%s11198_s0 + $0x3d8] sm:$0xff] }
 0x9c6   : > { %7956 = vmatpush1.bf16.msra.mxu1 %v5932_v24  ;;  %v4145_v24 = vunpack.c.l.s8.bf16 %v3121_v50 }
 0x9c7   : > { %8120 = vmatpush1.bf16.msra.mxu0 %v5934_v56  ;;  %7957 = vmatprep.subr.bf16.mxu1 %v5965_v30  ;;  %v3120_v56 = vld [vmem:[%s11198_s0 + $0xc0] sm:$0xff]  ;;  %v4147_v30 = vunpack.c.l.s8.bf16 %v3123_v20 }
 0x9c8   : > { %8121 = vmatprep.subr.bf16.mxu0 %v5967_v36  ;;  %v3122_v36 = vld [vmem:[%s11198_s0 + $0xd0] sm:$0xff]  ;;  %v4144_v37 = vunpack.c.l.s8.bf16 %v3120_v56 }
 0x9c9   : > { %v4146_v38 = vunpack.c.l.s8.bf16 %v3122_v36  ;;  %v4178_v42 = vunpack.c.h.s8.bf16 %v3122_v36 }
 0x9ca   : > { %7958 = vmatpush1.bf16.msra.mxu1 %v5964_v28  ;;  %v4177_v28 = vunpack.c.h.s8.bf16 %v3121_v50 }
 0x9cb   : > { %8122 = vmatpush1.bf16.msra.mxu0 %v5966_v47  ;;  %7959 = vmatprep.subr.bf16.mxu1 %v5997_v52  ;;  %v3153_v47 = vld [vmem:[%s11198_s0 + $0x1c8] sm:$0xff]  ;;  %v4179_v52 = vunpack.c.h.s8.bf16 %v3123_v20 }
 0x9cc   : > { %8123 = vmatprep.subr.bf16.mxu0 %v5999_v41  ;;  %v4176_v41 = vunpack.c.h.s8.bf16 %v3120_v56  ;;  %v3251_v56 = vld [vmem:[%s11198_s0 + $0x4d8] sm:$0xff] }
 0x9ce   : > { %7960 = vmatpush1.bf16.msra.mxu1 %v5996_v33  ;;  %v4209_v33 = vunpack.c.l.s8.bf16 %v3153_v47 }
 0x9cf   : > { %8124 = vmatpush1.bf16.msra.mxu0 %v5998_v39  ;;  %7961 = vmatprep.subr.bf16.mxu1 %v6029_v43  ;;  %v3152_v39 = vld [vmem:[%s11198_s0 + $0x1c0] sm:$0xff]  ;;  %v4211_v43 = vunpack.c.l.s8.bf16 %v3155_v40 }
 0x9d0   : > { %8125 = vmatprep.subr.bf16.mxu0 %v6031_v44  ;;  %v3154_v44 = vld [vmem:[%s11198_s0 + $0x1d0] sm:$0xff]  ;;  %v4208_v45 = vunpack.c.l.s8.bf16 %v3152_v39 }
 0x9d1   : > { %v4210_v48 = vunpack.c.l.s8.bf16 %v3154_v44  ;;  %v4242_v55 = vunpack.c.h.s8.bf16 %v3154_v44 }
 0x9d2   : > { %7962 = vmatpush1.bf16.msra.mxu1 %v6028_v49  ;;  %v4241_v49 = vunpack.c.h.s8.bf16 %v3153_v47  ;;  %v3250_v47 = vld [vmem:[%s11198_s0 + $0x4d0] sm:$0xff] }
 0x9d3   : > { %8126 = vmatpush1.bf16.msra.mxu0 %v6030_v53  ;;  %7963 = vmatprep.subr.bf16.mxu1 %v6061_v5  ;;  %v4243_v53 = vunpack.c.h.s8.bf16 %v3155_v40  ;;  %v3185_v5 = vld [vmem:[%s11198_s0 + $0x2c8] sm:$0xff]  ;;  %v4402_v40 = vunpack.c.l.s8.bf16 %v3250_v47  ;;  %v4434_v44 = vunpack.c.h.s8.bf16 %v3250_v47 }
 0x9d4   : > { %8127 = vmatprep.subr.bf16.mxu0 %v6063_v11  ;;  %v4240_v11 = vunpack.c.h.s8.bf16 %v3152_v39  ;;  %v3283_v39 = vld [vmem:[%s11198_s0 + $0x5d8] sm:$0xff] }
 0x9d6   : > { %7964 = vmatpush1.bf16.msra.mxu1 %v6060_v58  ;;  %v4273_v58 = vunpack.c.l.s8.bf16 %v3185_v5 }
 0x9d7   : > { %8128 = vmatpush1.bf16.msra.mxu0 %v6062_v61  ;;  %7965 = vmatprep.subr.bf16.mxu1 %v6093_v32  ;;  %v3184_v61 = vld [vmem:[%s11198_s0 + $0x2c0] sm:$0xff]  ;;  %v4275_v32 = vunpack.c.l.s8.bf16 %v3187_v8 }
 0x9d8   : > { %8129 = vmatprep.subr.bf16.mxu0 %v6095_v62  ;;  %v3186_v62 = vld [vmem:[%s11198_s0 + $0x2d0] sm:$0xff]  ;;  %v4272_v63 = vunpack.c.l.s8.bf16 %v3184_v61 }
 0x9d9   : > { %v4274_v3 = vunpack.c.l.s8.bf16 %v3186_v62  ;;  %v4306_v12 = vunpack.c.h.s8.bf16 %v3186_v62 }
 0x9da   : > { %7966 = vmatpush1.bf16.msra.mxu1 %v6092_v4  ;;  %v4305_v4 = vunpack.c.h.s8.bf16 %v3185_v5 }
 0x9db   : > { %8130 = vmatpush1.bf16.msra.mxu0 %v6094_v10  ;;  %7967 = vmatprep.subr.bf16.mxu1 %v6125_v6  ;;  %v4307_v10 = vunpack.c.h.s8.bf16 %v3187_v8  ;;  %v3217_v6 = vld [vmem:[%s11198_s0 + $0x3c8] sm:$0xff] }
 0x9dc   : > { %8131 = vmatprep.subr.bf16.mxu0 %v6127_v13  ;;  %v4304_v13 = vunpack.c.h.s8.bf16 %v3184_v61  ;;  %v3315_v61 = vld [vmem:[%s11198_s0 + $0x6d8] sm:$0xff] }
 0x9de   : > { %7968 = vmatpush1.bf16.msra.mxu1 %v6124_v14  ;;  %v4337_v14 = vunpack.c.l.s8.bf16 %v3217_v6 }
 0x9df   : > { %8132 = vmatpush1.bf16.msra.mxu0 %v6126_v15  ;;  %7969 = vmatprep.subr.bf16.mxu1 %v6157_v18  ;;  %v3216_v15 = vld [vmem:[%s11198_s0 + $0x3c0] sm:$0xff]  ;;  %v4339_v18 = vunpack.c.l.s8.bf16 %v3219_v7 }
 0x9e0   : > { %8133 = vmatprep.subr.bf16.mxu0 %v6159_v19  ;;  %v3218_v19 = vld [vmem:[%s11198_s0 + $0x3d0] sm:$0xff]  ;;  %v4336_v50 = vunpack.c.l.s8.bf16 %v3216_v15 }
 0x9e1   : > { %v4338_v20 = vunpack.c.l.s8.bf16 %v3218_v19  ;;  %v4370_v36 = vunpack.c.h.s8.bf16 %v3218_v19 }
 0x9e2   : > { %7970 = vmatpush1.bf16.msra.mxu1 %v6156_v22  ;;  %v4369_v22 = vunpack.c.h.s8.bf16 %v3217_v6 }
 0x9e3   : > { %8134 = vmatpush1.bf16.msra.mxu0 %v6158_v23  ;;  %8144 = vmatprep.subr.bf16.mxu1 %v4145_v24  ;;  %v4371_v23 = vunpack.c.h.s8.bf16 %v3219_v7  ;;  %v3249_v24 = vld [vmem:[%s11198_s0 + $0x4c8] sm:$0xff] }
 0x9e4   : > { %8308 = vmatprep.subr.bf16.mxu0 %v4147_v30  ;;  %v4368_v30 = vunpack.c.h.s8.bf16 %v3216_v15  ;;  %v3347_v15 = vld [vmem:[%s11198_s0 + $0x7d8] sm:$0xff] }
 0x9e5   : > { %7972 = vmatmul.mubr.bf16.vlgmr.msra.gmra.mrb[32].mxu1 %v11455_v0 }
 0x9e6   : > { %8136 = vmatmul.mubr.bf16.vlgmr.msra.gmra.mrb[36].mxu0 %v11455_v0  ;;  %8145 = vmatpush1.bf16.msra.mxu1 %v4144_v37  ;;  %v4401_v37 = vunpack.c.l.s8.bf16 %v3249_v24 }
 0x9e7   : > { %8176 = vmatprep.mubr.bf16.mxu1 %v11306_v57  ;;  %8309 = vmatpush1.bf16.msra.mxu0 %v4146_v38  ;;  %v3248_v38 = vld [vmem:[%s11198_s0 + $0x4c0] sm:$0xff] }
 0x9e8   : > { %8340 = vmatprep.mubr.bf16.mxu0 %v11306_v57  ;;  %8146 = vmatprep.subr.bf16.mxu1 %v4177_v28  ;;  %v4403_v28 = vunpack.c.l.s8.bf16 %v3251_v56 }
 0x9e9   : > { %8310 = vmatprep.subr.bf16.mxu0 %v4179_v52  ;;  %v4400_v52 = vunpack.c.l.s8.bf16 %v3248_v38 }
 0x9ea   : > { %8147 = vmatpush1.bf16.msra.mxu1 %v4176_v41  ;;  %v4433_v41 = vunpack.c.h.s8.bf16 %v3249_v24 }
 0x9eb   : > { %8311 = vmatpush1.bf16.msra.mxu0 %v4178_v42  ;;  %8148 = vmatprep.subr.bf16.mxu1 %v4209_v33  ;;  %v4435_v42 = vunpack.c.h.s8.bf16 %v3251_v56  ;;  %v3281_v33 = vld [vmem:[%s11198_s0 + $0x5c8] sm:$0xff] }
 0x9ec   : > { %8312 = vmatprep.subr.bf16.mxu0 %v4211_v43  ;;  %v4432_v43 = vunpack.c.h.s8.bf16 %v3248_v38  ;;  %v3379_v38 = vld [vmem:[%s11198_s0 + $0x8d8] sm:$0xff] }
 0x9ee   : > { %8149 = vmatpush1.bf16.msra.mxu1 %v4208_v45  ;;  %v4465_v45 = vunpack.c.l.s8.bf16 %v3281_v33 }
 0x9ef   : > { %8313 = vmatpush1.bf16.msra.mxu0 %v4210_v48  ;;  %8150 = vmatprep.subr.bf16.mxu1 %v4241_v49  ;;  %v3280_v48 = vld [vmem:[%s11198_s0 + $0x5c0] sm:$0xff]  ;;  %v4467_v49 = vunpack.c.l.s8.bf16 %v3283_v39 }
 0x9f0   : > { %8314 = vmatprep.subr.bf16.mxu0 %v4243_v53  ;;  %v3282_v53 = vld [vmem:[%s11198_s0 + $0x5d0] sm:$0xff]  ;;  %v4464_v5 = vunpack.c.l.s8.bf16 %v3280_v48 }
 0x9f1   : > { %v4466_v8 = vunpack.c.l.s8.bf16 %v3282_v53  ;;  %v4498_v62 = vunpack.c.h.s8.bf16 %v3282_v53 }
 0x9f2   : > { %8151 = vmatpush1.bf16.msra.mxu1 %v4240_v11  ;;  %v4497_v11 = vunpack.c.h.s8.bf16 %v3281_v33 }
 0x9f3   : > { %8315 = vmatpush1.bf16.msra.mxu0 %v4242_v55  ;;  %8152 = vmatprep.subr.bf16.mxu1 %v4273_v58  ;;  %v4499_v55 = vunpack.c.h.s8.bf16 %v3283_v39  ;;  %v3313_v58 = vld [vmem:[%s11198_s0 + $0x6c8] sm:$0xff] }
 0x9f4   : > { %8316 = vmatprep.subr.bf16.mxu0 %v4275_v32  ;;  %v4496_v32 = vunpack.c.h.s8.bf16 %v3280_v48  ;;  %v3411_v48 = vld [vmem:[%s11198_s0 + $0x9d8] sm:$0xff] }
 0x9f6   : > { %8153 = vmatpush1.bf16.msra.mxu1 %v4272_v63  ;;  %v4529_v63 = vunpack.c.l.s8.bf16 %v3313_v58 }
 0x9f7   : > { %8317 = vmatpush1.bf16.msra.mxu0 %v4274_v3  ;;  %8154 = vmatprep.subr.bf16.mxu1 %v4305_v4  ;;  %v3312_v3 = vld [vmem:[%s11198_s0 + $0x6c0] sm:$0xff]  ;;  %v4531_v4 = vunpack.c.l.s8.bf16 %v3315_v61 }
 0x9f8   : > { %8318 = vmatprep.subr.bf16.mxu0 %v4307_v10  ;;  %v3314_v10 = vld [vmem:[%s11198_s0 + $0x6d0] sm:$0xff]  ;;  %v4528_v6 = vunpack.c.l.s8.bf16 %v3312_v3 }
 0x9f9   : > { %v4530_v7 = vunpack.c.l.s8.bf16 %v3314_v10  ;;  %v4562_v19 = vunpack.c.h.s8.bf16 %v3314_v10 }
 0x9fa   : > { %8155 = vmatpush1.bf16.msra.mxu1 %v4304_v13  ;;  %v4561_v13 = vunpack.c.h.s8.bf16 %v3313_v58 }
 0x9fb   : > { %8319 = vmatpush1.bf16.msra.mxu0 %v4306_v12  ;;  %8156 = vmatprep.subr.bf16.mxu1 %v4337_v14  ;;  %v4563_v12 = vunpack.c.h.s8.bf16 %v3315_v61  ;;  %v3345_v14 = vld [vmem:[%s11198_s0 + $0x7c8] sm:$0xff] }
 0x9fc   : > { %8320 = vmatprep.subr.bf16.mxu0 %v4339_v18  ;;  %v4560_v18 = vunpack.c.h.s8.bf16 %v3312_v3  ;;  %v3443_v3 = vld [vmem:[%s11198_s0 + $0xad8] sm:$0xff] }
 0x9fe   : > { %8157 = vmatpush1.bf16.msra.mxu1 %v4336_v50  ;;  %v4593_v50 = vunpack.c.l.s8.bf16 %v3345_v14 }
 0x9ff   : > { %8321 = vmatpush1.bf16.msra.mxu0 %v4338_v20  ;;  %8158 = vmatprep.subr.bf16.mxu1 %v4369_v22  ;;  %v3344_v20 = vld [vmem:[%s11198_s0 + $0x7c0] sm:$0xff]  ;;  %v4595_v22 = vunpack.c.l.s8.bf16 %v3347_v15 }
 0xa00   : > { %8322 = vmatprep.subr.bf16.mxu0 %v4371_v23  ;;  %v3346_v23 = vld [vmem:[%s11198_s0 + $0x7d0] sm:$0xff]  ;;  %v4592_v24 = vunpack.c.l.s8.bf16 %v3344_v20 }
 0xa01   : > { %v4594_v56 = vunpack.c.l.s8.bf16 %v3346_v23  ;;  %v4626_v47 = vunpack.c.h.s8.bf16 %v3346_v23 }
 0xa02   : > { %8159 = vmatpush1.bf16.msra.mxu1 %v4368_v30  ;;  %v4625_v30 = vunpack.c.h.s8.bf16 %v3345_v14 }
 0xa03   : > { %8323 = vmatpush1.bf16.msra.mxu0 %v4370_v36  ;;  %8160 = vmatprep.subr.bf16.mxu1 %v4401_v37  ;;  %v4627_v36 = vunpack.c.h.s8.bf16 %v3347_v15  ;;  %v3377_v37 = vld [vmem:[%s11198_s0 + $0x8c8] sm:$0xff] }
 0xa04   : > { %8324 = vmatprep.subr.bf16.mxu0 %v4403_v28  ;;  %v4624_v28 = vunpack.c.h.s8.bf16 %v3344_v20  ;;  %v3475_v20 = vld [vmem:[%s11198_s0 + $0xbd8] sm:$0xff] }
 0xa06   : > { %8161 = vmatpush1.bf16.msra.mxu1 %v4400_v52  ;;  %v4657_v52 = vunpack.c.l.s8.bf16 %v3377_v37 }
 0xa07   : > { %8325 = vmatpush1.bf16.msra.mxu0 %v4402_v40  ;;  %8162 = vmatprep.subr.bf16.mxu1 %v4433_v41  ;;  %v3376_v40 = vld [vmem:[%s11198_s0 + $0x8c0] sm:$0xff]  ;;  %v4659_v41 = vunpack.c.l.s8.bf16 %v3379_v38 }
 0xa08   : > { %8326 = vmatprep.subr.bf16.mxu0 %v4435_v42  ;;  %v3378_v42 = vld [vmem:[%s11198_s0 + $0x8d0] sm:$0xff]  ;;  %v4656_v33 = vunpack.c.l.s8.bf16 %v3376_v40 }
 0xa09   : > { %v4658_v39 = vunpack.c.l.s8.bf16 %v3378_v42  ;;  %v4690_v53 = vunpack.c.h.s8.bf16 %v3378_v42 }
 0xa0a   : > { %8163 = vmatpush1.bf16.msra.mxu1 %v4432_v43  ;;  %v4689_v43 = vunpack.c.h.s8.bf16 %v3377_v37 }
 0xa0b   : > { %8327 = vmatpush1.bf16.msra.mxu0 %v4434_v44  ;;  %8164 = vmatprep.subr.bf16.mxu1 %v4465_v45  ;;  %v3409_v44 = vld [vmem:[%s11198_s0 + $0x9c8] sm:$0xff]  ;;  %v4691_v45 = vunpack.c.h.s8.bf16 %v3379_v38 }
 0xa0c   : > { %8328 = vmatprep.subr.bf16.mxu0 %v4467_v49  ;;  %v4688_v49 = vunpack.c.h.s8.bf16 %v3376_v40  ;;  %v3507_v40 = vld [vmem:[%s11198_s0 + $0xcd8] sm:$0xff] }
 0xa0e   : > { %8165 = vmatpush1.bf16.msra.mxu1 %v4464_v5  ;;  %v4721_v5 = vunpack.c.l.s8.bf16 %v3409_v44 }
 0xa0f   : > { %8329 = vmatpush1.bf16.msra.mxu0 %v4466_v8  ;;  %8166 = vmatprep.subr.bf16.mxu1 %v4497_v11  ;;  %v3408_v8 = vld [vmem:[%s11198_s0 + $0x9c0] sm:$0xff]  ;;  %v4723_v11 = vunpack.c.l.s8.bf16 %v3411_v48 }
 0xa10   : > { %8330 = vmatprep.subr.bf16.mxu0 %v4499_v55  ;;  %v3410_v55 = vld [vmem:[%s11198_s0 + $0x9d0] sm:$0xff]  ;;  %v4720_v58 = vunpack.c.l.s8.bf16 %v3408_v8 }
 0xa11   : > { %v4722_v61 = vunpack.c.l.s8.bf16 %v3410_v55  ;;  %v4754_v10 = vunpack.c.h.s8.bf16 %v3410_v55 }
 0xa12   : > { %8167 = vmatpush1.bf16.msra.mxu1 %v4496_v32  ;;  %v4753_v32 = vunpack.c.h.s8.bf16 %v3409_v44  ;;  %v3506_v44 = vld [vmem:[%s11198_s0 + $0xcd0] sm:$0xff] }
 0xa13   : > { %8331 = vmatpush1.bf16.msra.mxu0 %v4498_v62  ;;  %8168 = vmatprep.subr.bf16.mxu1 %v4529_v63  ;;  %v4755_v62 = vunpack.c.h.s8.bf16 %v3411_v48  ;;  %v3441_v63 = vld [vmem:[%s11198_s0 + $0xac8] sm:$0xff]  ;;  %v4914_v48 = vunpack.c.l.s8.bf16 %v3506_v44  ;;  %v4946_v55 = vunpack.c.h.s8.bf16 %v3506_v44 }
 0xa14   : > { %8332 = vmatprep.subr.bf16.mxu0 %v4531_v4  ;;  %v4752_v4 = vunpack.c.h.s8.bf16 %v3408_v8  ;;  %v3539_v8 = vld [vmem:[%s11198_s0 + $0xdd8] sm:$0xff] }
 0xa16   : > { %8169 = vmatpush1.bf16.msra.mxu1 %v4528_v6  ;;  %v4785_v6 = vunpack.c.l.s8.bf16 %v3441_v63 }
 0xa17   : > { %8333 = vmatpush1.bf16.msra.mxu0 %v4530_v7  ;;  %8170 = vmatprep.subr.bf16.mxu1 %v4561_v13  ;;  %v3440_v7 = vld [vmem:[%s11198_s0 + $0xac0] sm:$0xff]  ;;  %v4787_v13 = vunpack.c.l.s8.bf16 %v3443_v3 }
 0xa18   : > { %8334 = vmatprep.subr.bf16.mxu0 %v4563_v12  ;;  %v3442_v12 = vld [vmem:[%s11198_s0 + $0xad0] sm:$0xff]  ;;  %v4784_v14 = vunpack.c.l.s8.bf16 %v3440_v7 }
 0xa19   : > { %v4786_v15 = vunpack.c.l.s8.bf16 %v3442_v12  ;;  %v4818_v23 = vunpack.c.h.s8.bf16 %v3442_v12 }
 0xa1a   : > { %8171 = vmatpush1.bf16.msra.mxu1 %v4560_v18  ;;  %v4817_v18 = vunpack.c.h.s8.bf16 %v3441_v63 }
 0xa1b   : > { %8335 = vmatpush1.bf16.msra.mxu0 %v4562_v19  ;;  %8172 = vmatprep.subr.bf16.mxu1 %v4593_v50  ;;  %v4819_v19 = vunpack.c.h.s8.bf16 %v3443_v3  ;;  %v3473_v50 = vld [vmem:[%s11198_s0 + $0xbc8] sm:$0xff] }
 0xa1c   : > { %8336 = vmatprep.subr.bf16.mxu0 %v4595_v22  ;;  %v4816_v22 = vunpack.c.h.s8.bf16 %v3440_v7  ;;  %v3571_v7 = vld [vmem:[%s11198_s0 + $0xed8] sm:$0xff] }
 0xa1e   : > { %8173 = vmatpush1.bf16.msra.mxu1 %v4592_v24  ;;  %v4849_v24 = vunpack.c.l.s8.bf16 %v3473_v50 }
 0xa1f   : > { %8337 = vmatpush1.bf16.msra.mxu0 %v4594_v56  ;;  %8174 = vmatprep.subr.bf16.mxu1 %v4625_v30  ;;  %v3472_v56 = vld [vmem:[%s11198_s0 + $0xbc0] sm:$0xff]  ;;  %v4851_v30 = vunpack.c.l.s8.bf16 %v3475_v20 }
 0xa20   : > { %8338 = vmatprep.subr.bf16.mxu0 %v4627_v36  ;;  %v3474_v36 = vld [vmem:[%s11198_s0 + $0xbd0] sm:$0xff]  ;;  %v4848_v37 = vunpack.c.l.s8.bf16 %v3472_v56 }
 0xa21   : > { %v4850_v38 = vunpack.c.l.s8.bf16 %v3474_v36  ;;  %v4882_v42 = vunpack.c.h.s8.bf16 %v3474_v36 }
 0xa22   : > { %8175 = vmatpush1.bf16.msra.mxu1 %v4624_v28  ;;  %v4881_v28 = vunpack.c.h.s8.bf16 %v3473_v50 }
 0xa23   : > { %8339 = vmatpush1.bf16.msra.mxu0 %v4626_v47  ;;  %8185 = vmatprep.subr.bf16.mxu1 %v4657_v52  ;;  %v4883_v47 = vunpack.c.h.s8.bf16 %v3475_v20  ;;  %v3505_v52 = vld [vmem:[%s11198_s0 + $0xcc8] sm:$0xff] }
 0xa24   : > { %8349 = vmatprep.subr.bf16.mxu0 %v4659_v41  ;;  %v4880_v41 = vunpack.c.h.s8.bf16 %v3472_v56  ;;  %v3603_v56 = vld [vmem:[%s11198_s0 + $0xfd8] sm:$0xff] }
 0xa25   : > { %8177 = vmatmul.mubr.bf16.vlgmr.msra.gmra.mrb[36].mxu1 %v11308_v60 }
 0xa26   : > { %8341 = vmatmul.mubr.bf16.vlgmr.msra.gmra.mrb[40].mxu0 %v11308_v60  ;;  %8186 = vmatpush1.bf16.msra.mxu1 %v4656_v33  ;;  %v4913_v33 = vunpack.c.l.s8.bf16 %v3505_v52 }
 0xa27   : > { %8217 = vmatprep.mubr.bf16.mxu1 %v11314_v1  ;;  %8350 = vmatpush1.bf16.msra.mxu0 %v4658_v39  ;;  %v3504_v39 = vld [vmem:[%s11198_s0 + $0xcc0] sm:$0xff] }
 0xa28   : > { %8381 = vmatprep.mubr.bf16.mxu0 %v11314_v1  ;;  %8187 = vmatprep.subr.bf16.mxu1 %v4689_v43  ;;  %v4915_v43 = vunpack.c.l.s8.bf16 %v3507_v40 }
 0xa29   : > { %8351 = vmatprep.subr.bf16.mxu0 %v4691_v45  ;;  %v4912_v45 = vunpack.c.l.s8.bf16 %v3504_v39 }
 0xa2a   : > { %8188 = vmatpush1.bf16.msra.mxu1 %v4688_v49  ;;  %v4945_v49 = vunpack.c.h.s8.bf16 %v3505_v52 }
 0xa2b   : > { %8352 = vmatpush1.bf16.msra.mxu0 %v4690_v53  ;;  %8189 = vmatprep.subr.bf16.mxu1 %v4721_v5  ;;  %v4947_v53 = vunpack.c.h.s8.bf16 %v3507_v40  ;;  %v3537_v5 = vld [vmem:[%s11198_s0 + $0xdc8] sm:$0xff] }
 0xa2c   : > { %8353 = vmatprep.subr.bf16.mxu0 %v4723_v11  ;;  %v4944_v11 = vunpack.c.h.s8.bf16 %v3504_v39  ;;  %v3635_v39 = vld [vmem:[%s11198_s0 + $0x10d8] sm:$0xff] }
 0xa2e   : > { %8190 = vmatpush1.bf16.msra.mxu1 %v4720_v58  ;;  %v4977_v58 = vunpack.c.l.s8.bf16 %v3537_v5 }
 0xa2f   : > { %8354 = vmatpush1.bf16.msra.mxu0 %v4722_v61  ;;  %8191 = vmatprep.subr.bf16.mxu1 %v4753_v32  ;;  %v3536_v61 = vld [vmem:[%s11198_s0 + $0xdc0] sm:$0xff]  ;;  %v4979_v32 = vunpack.c.l.s8.bf16 %v3539_v8 }
 0xa30   : > { %8355 = vmatprep.subr.bf16.mxu0 %v4755_v62  ;;  %v3538_v62 = vld [vmem:[%s11198_s0 + $0xdd0] sm:$0xff]  ;;  %v4976_v63 = vunpack.c.l.s8.bf16 %v3536_v61 }
 0xa31   : > { %v4978_v3 = vunpack.c.l.s8.bf16 %v3538_v62  ;;  %v5010_v12 = vunpack.c.h.s8.bf16 %v3538_v62 }
 0xa32   : > { %8192 = vmatpush1.bf16.msra.mxu1 %v4752_v4  ;;  %v5009_v4 = vunpack.c.h.s8.bf16 %v3537_v5 }
 0xa33   : > { %8356 = vmatpush1.bf16.msra.mxu0 %v4754_v10  ;;  %8193 = vmatprep.subr.bf16.mxu1 %v4785_v6  ;;  %v5011_v10 = vunpack.c.h.s8.bf16 %v3539_v8  ;;  %v3569_v6 = vld [vmem:[%s11198_s0 + $0xec8] sm:$0xff] }
 0xa34   : > { %8357 = vmatprep.subr.bf16.mxu0 %v4787_v13  ;;  %v5008_v13 = vunpack.c.h.s8.bf16 %v3536_v61  ;;  %v3667_v61 = vld [vmem:[%s11198_s0 + $0x11d8] sm:$0xff] }
 0xa36   : > { %8194 = vmatpush1.bf16.msra.mxu1 %v4784_v14  ;;  %v5041_v14 = vunpack.c.l.s8.bf16 %v3569_v6 }
 0xa37   : > { %8358 = vmatpush1.bf16.msra.mxu0 %v4786_v15  ;;  %8195 = vmatprep.subr.bf16.mxu1 %v4817_v18  ;;  %v3568_v15 = vld [vmem:[%s11198_s0 + $0xec0] sm:$0xff]  ;;  %v5043_v18 = vunpack.c.l.s8.bf16 %v3571_v7 }
 0xa38   : > { %8359 = vmatprep.subr.bf16.mxu0 %v4819_v19  ;;  %v3570_v19 = vld [vmem:[%s11198_s0 + $0xed0] sm:$0xff]  ;;  %v5040_v50 = vunpack.c.l.s8.bf16 %v3568_v15 }
 0xa39   : > { %v5042_v20 = vunpack.c.l.s8.bf16 %v3570_v19  ;;  %v5074_v36 = vunpack.c.h.s8.bf16 %v3570_v19 }
 0xa3a   : > { %8196 = vmatpush1.bf16.msra.mxu1 %v4816_v22  ;;  %v5073_v22 = vunpack.c.h.s8.bf16 %v3569_v6 }
 0xa3b   : > { %8360 = vmatpush1.bf16.msra.mxu0 %v4818_v23  ;;  %8197 = vmatprep.subr.bf16.mxu1 %v4849_v24  ;;  %v5075_v23 = vunpack.c.h.s8.bf16 %v3571_v7  ;;  %v3601_v24 = vld [vmem:[%s11198_s0 + $0xfc8] sm:$0xff] }
 0xa3c   : > { %8361 = vmatprep.subr.bf16.mxu0 %v4851_v30  ;;  %v5072_v30 = vunpack.c.h.s8.bf16 %v3568_v15  ;;  %v3699_v15 = vld [vmem:[%s11198_s0 + $0x12d8] sm:$0xff] }
 0xa3e   : > { %8198 = vmatpush1.bf16.msra.mxu1 %v4848_v37  ;;  %v5105_v37 = vunpack.c.l.s8.bf16 %v3601_v24 }
 0xa3f   : > { %8362 = vmatpush1.bf16.msra.mxu0 %v4850_v38  ;;  %8199 = vmatprep.subr.bf16.mxu1 %v4881_v28  ;;  %v3600_v38 = vld [vmem:[%s11198_s0 + $0xfc0] sm:$0xff]  ;;  %v5107_v28 = vunpack.c.l.s8.bf16 %v3603_v56 }
 0xa40   : > { %8363 = vmatprep.subr.bf16.mxu0 %v4883_v47  ;;  %v3602_v47 = vld [vmem:[%s11198_s0 + $0xfd0] sm:$0xff]  ;;  %v5104_v52 = vunpack.c.l.s8.bf16 %v3600_v38 }
 0xa41   : > { %v5106_v40 = vunpack.c.l.s8.bf16 %v3602_v47  ;;  %v5138_v44 = vunpack.c.h.s8.bf16 %v3602_v47 }
 0xa42   : > { %8200 = vmatpush1.bf16.msra.mxu1 %v4880_v41  ;;  %v5137_v41 = vunpack.c.h.s8.bf16 %v3601_v24 }
 0xa43   : > { %8364 = vmatpush1.bf16.msra.mxu0 %v4882_v42  ;;  %8201 = vmatprep.subr.bf16.mxu1 %v4913_v33  ;;  %v5139_v42 = vunpack.c.h.s8.bf16 %v3603_v56  ;;  %v3633_v33 = vld [vmem:[%s11198_s0 + $0x10c8] sm:$0xff] }
 0xa44   : > { %8365 = vmatprep.subr.bf16.mxu0 %v4915_v43  ;;  %v5136_v43 = vunpack.c.h.s8.bf16 %v3600_v38  ;;  %v3731_v38 = vld [vmem:[%s11198_s0 + $0x13d8] sm:$0xff] }
 0xa46   : > { %8202 = vmatpush1.bf16.msra.mxu1 %v4912_v45  ;;  %v5169_v45 = vunpack.c.l.s8.bf16 %v3633_v33 }
 0xa47   : > { %8366 = vmatpush1.bf16.msra.mxu0 %v4914_v48  ;;  %8203 = vmatprep.subr.bf16.mxu1 %v4945_v49  ;;  %v3632_v48 = vld [vmem:[%s11198_s0 + $0x10c0] sm:$0xff]  ;;  %v5171_v49 = vunpack.c.l.s8.bf16 %v3635_v39 }
 0xa48   : > { %8367 = vmatprep.subr.bf16.mxu0 %v4947_v53  ;;  %v3634_v53 = vld [vmem:[%s11198_s0 + $0x10d0] sm:$0xff]  ;;  %v5168_v5 = vunpack.c.l.s8.bf16 %v3632_v48 }
 0xa49   : > { %v5170_v8 = vunpack.c.l.s8.bf16 %v3634_v53  ;;  %v5202_v62 = vunpack.c.h.s8.bf16 %v3634_v53 }
 0xa4a   : > { %8204 = vmatpush1.bf16.msra.mxu1 %v4944_v11  ;;  %v5201_v11 = vunpack.c.h.s8.bf16 %v3633_v33 }
 0xa4b   : > { %8368 = vmatpush1.bf16.msra.mxu0 %v4946_v55  ;;  %8205 = vmatprep.subr.bf16.mxu1 %v4977_v58  ;;  %v3665_v55 = vld [vmem:[%s11198_s0 + $0x11c8] sm:$0xff]  ;;  %v5203_v58 = vunpack.c.h.s8.bf16 %v3635_v39 }
 0xa4c   : > { %8369 = vmatprep.subr.bf16.mxu0 %v4979_v32  ;;  %v5200_v32 = vunpack.c.h.s8.bf16 %v3632_v48  ;;  %v3763_v48 = vld [vmem:[%s11198_s0 + $0x14d8] sm:$0xff] }
 0xa4e   : > { %8206 = vmatpush1.bf16.msra.mxu1 %v4976_v63  ;;  %v5233_v63 = vunpack.c.l.s8.bf16 %v3665_v55 }
 0xa4f   : > { %8370 = vmatpush1.bf16.msra.mxu0 %v4978_v3  ;;  %8207 = vmatprep.subr.bf16.mxu1 %v5009_v4  ;;  %v3664_v3 = vld [vmem:[%s11198_s0 + $0x11c0] sm:$0xff]  ;;  %v5235_v4 = vunpack.c.l.s8.bf16 %v3667_v61 }
 0xa50   : > { %8371 = vmatprep.subr.bf16.mxu0 %v5011_v10  ;;  %v3666_v10 = vld [vmem:[%s11198_s0 + $0x11d0] sm:$0xff]  ;;  %v5232_v6 = vunpack.c.l.s8.bf16 %v3664_v3 }
 0xa51   : > { %v5234_v7 = vunpack.c.l.s8.bf16 %v3666_v10  ;;  %v5266_v19 = vunpack.c.h.s8.bf16 %v3666_v10 }
 0xa52   : > { %8208 = vmatpush1.bf16.msra.mxu1 %v5008_v13  ;;  %v5265_v13 = vunpack.c.h.s8.bf16 %v3665_v55  ;;  %v3762_v55 = vld [vmem:[%s11198_s0 + $0x14d0] sm:$0xff] }
 0xa53   : > { %8372 = vmatpush1.bf16.msra.mxu0 %v5010_v12  ;;  %8209 = vmatprep.subr.bf16.mxu1 %v5041_v14  ;;  %v5267_v12 = vunpack.c.h.s8.bf16 %v3667_v61  ;;  %v3697_v14 = vld [vmem:[%s11198_s0 + $0x12c8] sm:$0xff]  ;;  %v5426_v61 = vunpack.c.l.s8.bf16 %v3762_v55  ;;  %v5458_v10 = vunpack.c.h.s8.bf16 %v3762_v55 }
 0xa54   : > { %8373 = vmatprep.subr.bf16.mxu0 %v5043_v18  ;;  %v5264_v18 = vunpack.c.h.s8.bf16 %v3664_v3  ;;  %v3795_v3 = vld [vmem:[%s11198_s0 + $0x15d8] sm:$0xff] }
 0xa56   : > { %8210 = vmatpush1.bf16.msra.mxu1 %v5040_v50  ;;  %v5297_v50 = vunpack.c.l.s8.bf16 %v3697_v14 }
 0xa57   : > { %8374 = vmatpush1.bf16.msra.mxu0 %v5042_v20  ;;  %8211 = vmatprep.subr.bf16.mxu1 %v5073_v22  ;;  %v3696_v20 = vld [vmem:[%s11198_s0 + $0x12c0] sm:$0xff]  ;;  %v5299_v22 = vunpack.c.l.s8.bf16 %v3699_v15 }
 0xa58   : > { %8375 = vmatprep.subr.bf16.mxu0 %v5075_v23  ;;  %v3698_v23 = vld [vmem:[%s11198_s0 + $0x12d0] sm:$0xff]  ;;  %v5296_v24 = vunpack.c.l.s8.bf16 %v3696_v20 }
 0xa59   : > { %v5298_v56 = vunpack.c.l.s8.bf16 %v3698_v23  ;;  %v5330_v47 = vunpack.c.h.s8.bf16 %v3698_v23 }
 0xa5a   : > { %8212 = vmatpush1.bf16.msra.mxu1 %v5072_v30  ;;  %v5329_v30 = vunpack.c.h.s8.bf16 %v3697_v14 }
 0xa5b   : > { %8376 = vmatpush1.bf16.msra.mxu0 %v5074_v36  ;;  %8213 = vmatprep.subr.bf16.mxu1 %v5105_v37  ;;  %v5331_v36 = vunpack.c.h.s8.bf16 %v3699_v15  ;;  %v3729_v37 = vld [vmem:[%s11198_s0 + $0x13c8] sm:$0xff] }
 0xa5c   : > { %8377 = vmatprep.subr.bf16.mxu0 %v5107_v28  ;;  %v5328_v28 = vunpack.c.h.s8.bf16 %v3696_v20  ;;  %v3827_v20 = vld [vmem:[%s11198_s0 + $0x16d8] sm:$0xff] }
 0xa5e   : > { %8214 = vmatpush1.bf16.msra.mxu1 %v5104_v52  ;;  %v5361_v52 = vunpack.c.l.s8.bf16 %v3729_v37 }
 0xa5f   : > { %8378 = vmatpush1.bf16.msra.mxu0 %v5106_v40  ;;  %8215 = vmatprep.subr.bf16.mxu1 %v5137_v41  ;;  %v3728_v40 = vld [vmem:[%s11198_s0 + $0x13c0] sm:$0xff]  ;;  %v5363_v41 = vunpack.c.l.s8.bf16 %v3731_v38 }
 0xa60   : > { %8379 = vmatprep.subr.bf16.mxu0 %v5139_v42  ;;  %v3730_v42 = vld [vmem:[%s11198_s0 + $0x13d0] sm:$0xff]  ;;  %v5360_v33 = vunpack.c.l.s8.bf16 %v3728_v40 }
 0xa61   : > { %v5362_v39 = vunpack.c.l.s8.bf16 %v3730_v42  ;;  %v5394_v53 = vunpack.c.h.s8.bf16 %v3730_v42 }
 0xa62   : > { %8216 = vmatpush1.bf16.msra.mxu1 %v5136_v43  ;;  %v5393_v43 = vunpack.c.h.s8.bf16 %v3729_v37 }
 0xa63   : > { %8380 = vmatpush1.bf16.msra.mxu0 %v5138_v44  ;;  %8226 = vmatprep.subr.bf16.mxu1 %v5169_v45  ;;  %v5395_v44 = vunpack.c.h.s8.bf16 %v3731_v38  ;;  %v3761_v45 = vld [vmem:[%s11198_s0 + $0x14c8] sm:$0xff] }
 0xa64   : > { %8390 = vmatprep.subr.bf16.mxu0 %v5171_v49  ;;  %v5392_v49 = vunpack.c.h.s8.bf16 %v3728_v40  ;;  %v3859_v40 = vld [vmem:[%s11198_s0 + $0x17d8] sm:$0xff] }
 0xa65   : > { %8218 = vmatmul.mubr.bf16.vlgmr.msra.gmra.mrb[36].mxu1 %v11353_v46 }
 0xa66   : > { %8382 = vmatmul.mubr.bf16.vlgmr.msra.gmra.mrb[40].mxu0 %v11353_v46  ;;  %8227 = vmatpush1.bf16.msra.mxu1 %v5168_v5  ;;  %v5425_v5 = vunpack.c.l.s8.bf16 %v3761_v45 }
 0xa67   : > { %8258 = vmatprep.mubr.bf16.mxu1 %v11406_v54  ;;  %8391 = vmatpush1.bf16.msra.mxu0 %v5170_v8  ;;  %v3760_v8 = vld [vmem:[%s11198_s0 + $0x14c0] sm:$0xff] }
 0xa68   : > { %8422 = vmatprep.mubr.bf16.mxu0 %v11406_v54  ;;  %8228 = vmatprep.subr.bf16.mxu1 %v5201_v11  ;;  %v5427_v11 = vunpack.c.l.s8.bf16 %v3763_v48 }
 0xa69   : > { %8392 = vmatprep.subr.bf16.mxu0 %v5203_v58  ;;  %v5424_v58 = vunpack.c.l.s8.bf16 %v3760_v8 }
 0xa6a   : > { %8229 = vmatpush1.bf16.msra.mxu1 %v5200_v32  ;;  %v5457_v32 = vunpack.c.h.s8.bf16 %v3761_v45 }
 0xa6b   : > { %8393 = vmatpush1.bf16.msra.mxu0 %v5202_v62  ;;  %8230 = vmatprep.subr.bf16.mxu1 %v5233_v63  ;;  %v5459_v62 = vunpack.c.h.s8.bf16 %v3763_v48  ;;  %v3793_v63 = vld [vmem:[%s11198_s0 + $0x15c8] sm:$0xff] }
 0xa6c   : > { %8394 = vmatprep.subr.bf16.mxu0 %v5235_v4  ;;  %v5456_v4 = vunpack.c.h.s8.bf16 %v3760_v8  ;;  %v3891_v8 = vld [vmem:[%s11198_s0 + $0x18d8] sm:$0xff] }
 0xa6e   : > { %8231 = vmatpush1.bf16.msra.mxu1 %v5232_v6  ;;  %v5489_v6 = vunpack.c.l.s8.bf16 %v3793_v63 }
 0xa6f   : > { %8395 = vmatpush1.bf16.msra.mxu0 %v5234_v7  ;;  %8232 = vmatprep.subr.bf16.mxu1 %v5265_v13  ;;  %v3792_v7 = vld [vmem:[%s11198_s0 + $0x15c0] sm:$0xff]  ;;  %v5491_v13 = vunpack.c.l.s8.bf16 %v3795_v3 }
 0xa70   : > { %8396 = vmatprep.subr.bf16.mxu0 %v5267_v12  ;;  %v3794_v12 = vld [vmem:[%s11198_s0 + $0x15d0] sm:$0xff]  ;;  %v5488_v14 = vunpack.c.l.s8.bf16 %v3792_v7 }
 0xa71   : > { %v5490_v15 = vunpack.c.l.s8.bf16 %v3794_v12  ;;  %v5522_v23 = vunpack.c.h.s8.bf16 %v3794_v12 }
 0xa72   : > { %8233 = vmatpush1.bf16.msra.mxu1 %v5264_v18  ;;  %v5521_v18 = vunpack.c.h.s8.bf16 %v3793_v63 }
 0xa73   : > { %8397 = vmatpush1.bf16.msra.mxu0 %v5266_v19  ;;  %8234 = vmatprep.subr.bf16.mxu1 %v5297_v50  ;;  %v5523_v19 = vunpack.c.h.s8.bf16 %v3795_v3  ;;  %v3825_v50 = vld [vmem:[%s11198_s0 + $0x16c8] sm:$0xff] }
 0xa74   : > { %8398 = vmatprep.subr.bf16.mxu0 %v5299_v22  ;;  %v5520_v22 = vunpack.c.h.s8.bf16 %v3792_v7  ;;  %v3923_v7 = vld [vmem:[%s11198_s0 + $0x19d8] sm:$0xff] }
 0xa76   : > { %8235 = vmatpush1.bf16.msra.mxu1 %v5296_v24  ;;  %v5553_v24 = vunpack.c.l.s8.bf16 %v3825_v50 }
 0xa77   : > { %8399 = vmatpush1.bf16.msra.mxu0 %v5298_v56  ;;  %8236 = vmatprep.subr.bf16.mxu1 %v5329_v30  ;;  %v3824_v56 = vld [vmem:[%s11198_s0 + $0x16c0] sm:$0xff]  ;;  %v5555_v30 = vunpack.c.l.s8.bf16 %v3827_v20 }
 0xa78   : > { %8400 = vmatprep.subr.bf16.mxu0 %v5331_v36  ;;  %v3826_v36 = vld [vmem:[%s11198_s0 + $0x16d0] sm:$0xff]  ;;  %v5552_v37 = vunpack.c.l.s8.bf16 %v3824_v56 }
 0xa79   : > { %v5554_v38 = vunpack.c.l.s8.bf16 %v3826_v36  ;;  %v5586_v42 = vunpack.c.h.s8.bf16 %v3826_v36 }
 0xa7a   : > { %8237 = vmatpush1.bf16.msra.mxu1 %v5328_v28  ;;  %v5585_v28 = vunpack.c.h.s8.bf16 %v3825_v50 }
 0xa7b   : > { %8401 = vmatpush1.bf16.msra.mxu0 %v5330_v47  ;;  %8238 = vmatprep.subr.bf16.mxu1 %v5361_v52  ;;  %v5587_v47 = vunpack.c.h.s8.bf16 %v3827_v20  ;;  %v3857_v52 = vld [vmem:[%s11198_s0 + $0x17c8] sm:$0xff] }
 0xa7c   : > { %8402 = vmatprep.subr.bf16.mxu0 %v5363_v41  ;;  %v5584_v41 = vunpack.c.h.s8.bf16 %v3824_v56  ;;  %v3955_v56 = vld [vmem:[%s11198_s0 + $0x1ad8] sm:$0xff] }
 0xa7e   : > { %8239 = vmatpush1.bf16.msra.mxu1 %v5360_v33  ;;  %v5617_v33 = vunpack.c.l.s8.bf16 %v3857_v52 }
 0xa7f   : > { %8403 = vmatpush1.bf16.msra.mxu0 %v5362_v39  ;;  %8240 = vmatprep.subr.bf16.mxu1 %v5393_v43  ;;  %v3856_v39 = vld [vmem:[%s11198_s0 + $0x17c0] sm:$0xff]  ;;  %v5619_v43 = vunpack.c.l.s8.bf16 %v3859_v40 }
 0xa80   : > { %8404 = vmatprep.subr.bf16.mxu0 %v5395_v44  ;;  %v3858_v44 = vld [vmem:[%s11198_s0 + $0x17d0] sm:$0xff]  ;;  %v5616_v45 = vunpack.c.l.s8.bf16 %v3856_v39 }
 0xa81   : > { %v5618_v48 = vunpack.c.l.s8.bf16 %v3858_v44  ;;  %v5650_v55 = vunpack.c.h.s8.bf16 %v3858_v44  ;;  %v3987_v44 = vld [vmem:[%s11198_s0 + $0x1bd8] sm:$0xff] }
 0xa82   : > { %8241 = vmatpush1.bf16.msra.mxu1 %v5392_v49  ;;  %v5649_v49 = vunpack.c.h.s8.bf16 %v3857_v52 }
 0xa83   : > { %8405 = vmatpush1.bf16.msra.mxu0 %v5394_v53  ;;  %8242 = vmatprep.subr.bf16.mxu1 %v5425_v5  ;;  %v5651_v53 = vunpack.c.h.s8.bf16 %v3859_v40  ;;  %v3889_v5 = vld [vmem:[%s11198_s0 + $0x18c8] sm:$0xff] }
 0xa84   : > { %8406 = vmatprep.subr.bf16.mxu0 %v5427_v11  ;;  %v5648_v11 = vunpack.c.h.s8.bf16 %v3856_v39  ;;  %v10459_v39 = vld [vmem:[%s11581_s10 + $0x10] sm:$0xff] }
 0xa86   : > { %8243 = vmatpush1.bf16.msra.mxu1 %v5424_v58  ;;  %v5681_v58 = vunpack.c.l.s8.bf16 %v3889_v5 }
 0xa87   : > { %8407 = vmatpush1.bf16.msra.mxu0 %v5426_v61  ;;  %8244 = vmatprep.subr.bf16.mxu1 %v5457_v32  ;;  %v3888_v61 = vld [vmem:[%s11198_s0 + $0x18c0] sm:$0xff]  ;;  %v5683_v32 = vunpack.c.l.s8.bf16 %v3891_v8 }
 0xa88   : > { %8408 = vmatprep.subr.bf16.mxu0 %v5459_v62  ;;  %v3890_v62 = vld [vmem:[%s11198_s0 + $0x18d0] sm:$0xff]  ;;  %v5680_v63 = vunpack.c.l.s8.bf16 %v3888_v61 }
 0xa89   : > { %v5682_v3 = vunpack.c.l.s8.bf16 %v3890_v62  ;;  %v5714_v12 = vunpack.c.h.s8.bf16 %v3890_v62 }
 0xa8a   : > { %8245 = vmatpush1.bf16.msra.mxu1 %v5456_v4  ;;  %v5713_v4 = vunpack.c.h.s8.bf16 %v3889_v5 }
 0xa8b   : > { %8409 = vmatpush1.bf16.msra.mxu0 %v5458_v10  ;;  %8246 = vmatprep.subr.bf16.mxu1 %v5489_v6  ;;  %v3921_v10 = vld [vmem:[%s11198_s0 + $0x19c8] sm:$0xff]  ;;  %v5715_v6 = vunpack.c.h.s8.bf16 %v3891_v8  ;;  %v8903_v8 = vrot.slane %v10459_v39, %v11390_v16 }
 0xa8c   : > { %8410 = vmatprep.subr.bf16.mxu0 %v5491_v13  ;;  %v5712_v13 = vunpack.c.h.s8.bf16 %v3888_v61 }
 0xa8e   : > { %8247 = vmatpush1.bf16.msra.mxu1 %v5488_v14  ;;  %v5745_v14 = vunpack.c.l.s8.bf16 %v3921_v10 }
 0xa8f   : > { %8411 = vmatpush1.bf16.msra.mxu0 %v5490_v15  ;;  %8248 = vmatprep.subr.bf16.mxu1 %v5521_v18  ;;  %v3920_v15 = vld [vmem:[%s11198_s0 + $0x19c0] sm:$0xff]  ;;  %v5747_v18 = vunpack.c.l.s8.bf16 %v3923_v7 }
 0xa90   : > { %8412 = vmatprep.subr.bf16.mxu0 %v5523_v19  ;;  %v3922_v19 = vld [vmem:[%s11198_s0 + $0x19d0] sm:$0xff]  ;;  %v5744_v50 = vunpack.c.l.s8.bf16 %v3920_v15 }
 0xa91   : > { %v5746_v20 = vunpack.c.l.s8.bf16 %v3922_v19  ;;  %v5778_v36 = vunpack.c.h.s8.bf16 %v3922_v19 }
 0xa92   : > { %8249 = vmatpush1.bf16.msra.mxu1 %v5520_v22  ;;  %v5777_v22 = vunpack.c.h.s8.bf16 %v3921_v10 }
 0xa93   : > { %8413 = vmatpush1.bf16.msra.mxu0 %v5522_v23  ;;  %8250 = vmatprep.subr.bf16.mxu1 %v5553_v24  ;;  %v5779_v23 = vunpack.c.h.s8.bf16 %v3923_v7  ;;  %v3953_v24 = vld [vmem:[%s11198_s0 + $0x1ac8] sm:$0xff] }
 0xa94   : > { %8414 = vmatprep.subr.bf16.mxu0 %v5555_v30  ;;  %v5776_v30 = vunpack.c.h.s8.bf16 %v3920_v15 }
 0xa96   : > { %8251 = vmatpush1.bf16.msra.mxu1 %v5552_v37  ;;  %v5809_v37 = vunpack.c.l.s8.bf16 %v3953_v24 }
 0xa97   : > { %8415 = vmatpush1.bf16.msra.mxu0 %v5554_v38  ;;  %8252 = vmatprep.subr.bf16.mxu1 %v5585_v28  ;;  %v3952_v38 = vld [vmem:[%s11198_s0 + $0x1ac0] sm:$0xff]  ;;  %v5811_v28 = vunpack.c.l.s8.bf16 %v3955_v56 }
 0xa98   : > { %8416 = vmatprep.subr.bf16.mxu0 %v5587_v47  ;;  %v3954_v47 = vld [vmem:[%s11198_s0 + $0x1ad0] sm:$0xff]  ;;  %v5808_v52 = vunpack.c.l.s8.bf16 %v3952_v38 }
 0xa99   : > { %v5810_v40 = vunpack.c.l.s8.bf16 %v3954_v47 }
 0xa9a   : > { %8253 = vmatpush1.bf16.msra.mxu1 %v5584_v41  ;;  %v5841_v41 = vunpack.c.h.s8.bf16 %v3953_v24 }
 0xa9b   : > { %8417 = vmatpush1.bf16.msra.mxu0 %v5586_v42  ;;  %8254 = vmatprep.subr.bf16.mxu1 %v5617_v33  ;;  %v5843_v42 = vunpack.c.h.s8.bf16 %v3955_v56  ;;  %v3985_v33 = vld [vmem:[%s11198_s0 + $0x1bc8] sm:$0xff] }
 0xa9c   : > { %8418 = vmatprep.subr.bf16.mxu0 %v5619_v43  ;;  %v8891_v43 = vrot.slane %v10459_v39, %v11384_v34  ;;  %v5905_v24 = vunpack.c.h.s8.bf16 %v3985_v33 }
 0xa9e   : > { %8255 = vmatpush1.bf16.msra.mxu1 %v5616_v45  ;;  %v8899_v45 = vrot.slane %v10459_v39, %v11443_v25 }
 0xa9f   : > { %8419 = vmatpush1.bf16.msra.mxu0 %v5618_v48  ;;  %8256 = vmatprep.subr.bf16.mxu1 %v5649_v49  ;;  %v8895_v48 = vrot.slane %v10459_v39, %v11387_v17  ;;  %v5840_v49 = vunpack.c.h.s8.bf16 %v3952_v38  ;;  %v4017_v38 = vld [vmem:[%s11198_s0 + $0x1cc8] sm:$0xff] }
 0xaa0   : > { %8420 = vmatprep.subr.bf16.mxu0 %v5651_v53  ;;  %v10460_v53 = vld [vmem:[%s11585_s29 + $0x10] sm:$0xff]  ;;  %v5937_v39 = vunpack.c.l.s8.bf16 %v4017_v38 }
 0xaa1   : > { %v9091_v5 = vrot.slane %v10460_v53, %v11384_v34  ;;  %v9095_v62 = vrot.slane %v10460_v53, %v11387_v17  ;;  %v9103_v7 = vrot.slane %v10460_v53, %v11390_v16 }
 0xaa2   : > { %8257 = vmatpush1.bf16.msra.mxu1 %v5648_v11  ;;  %v5842_v11 = vunpack.c.h.s8.bf16 %v3954_v47  ;;  %v4019_v47 = vld [vmem:[%s11198_s0 + $0x1cd8] sm:$0xff] }
 0xaa3   : > { %8421 = vmatpush1.bf16.msra.mxu0 %v5650_v55  ;;  %8267 = vmatprep.subr.bf16.mxu1 %v5681_v58  ;;  %v5873_v55 = vunpack.c.l.s8.bf16 %v3985_v33  ;;  %v3984_v58 = vld [vmem:[%s11198_s0 + $0x1bc0] sm:$0xff] }
 0xaa4   : > { %8431 = vmatprep.subr.bf16.mxu0 %v5683_v32  ;;  %v9099_v32 = vrot.slane %v10460_v53, %v11443_v25  ;;  %v4016_v33 = vld [vmem:[%s11198_s0 + $0x1cc0] sm:$0xff] }
 0xaa5   : > { %8259 = vmatmul.mubr.bf16.vlgmr.msra.gmra.mrb[36].mxu1 %v11408_v9 }
 0xaa6   : > { %8423 = vmatmul.mubr.bf16.vlgmr.msra.gmra.mrb[40].mxu0 %v11408_v9  ;;  %8268 = vmatpush1.bf16.msra.mxu1 %v5680_v63  ;;  %v5875_v63 = vunpack.c.l.s8.bf16 %v3987_v44 }
 0xaa7   : > { %8299 = vmatprep.mubr.bf16.mxu1 %v11414_v2  ;;  %8432 = vmatpush1.bf16.msra.mxu0 %v5682_v3  ;;  %v3986_v3 = vld [vmem:[%s11198_s0 + $0x1bd0] sm:$0xff] }
 0xaa8   : > { %8463 = vmatprep.mubr.bf16.mxu0 %v11414_v2  ;;  %8269 = vmatprep.subr.bf16.mxu1 %v5713_v4 }
 0xaa9   : > { %8433 = vmatprep.subr.bf16.mxu0 %v5715_v6 }
 0xaaa   : > { %8270 = vmatpush1.bf16.msra.mxu1 %v5712_v13 }
 0xaab   : > { %8434 = vmatpush1.bf16.msra.mxu0 %v5714_v12  ;;  %8271 = vmatprep.subr.bf16.mxu1 %v5745_v14 }
 0xaac   : > { %8435 = vmatprep.subr.bf16.mxu0 %v5747_v18  ;;  %v5872_v18 = vunpack.c.l.s8.bf16 %v3984_v58 }
 0xaae   : > { %8272 = vmatpush1.bf16.msra.mxu1 %v5744_v50 }
 0xaaf   : > { %8436 = vmatpush1.bf16.msra.mxu0 %v5746_v20  ;;  %8273 = vmatprep.subr.bf16.mxu1 %v5777_v22 }
 0xab0   : > { %8437 = vmatprep.subr.bf16.mxu0 %v5779_v23  ;;  %v5874_v23 = vunpack.c.l.s8.bf16 %v3986_v3 }
 0xab2   : > { %8274 = vmatpush1.bf16.msra.mxu1 %v5776_v30 }
 0xab3   : > { %8438 = vmatpush1.bf16.msra.mxu0 %v5778_v36  ;;  %8275 = vmatprep.subr.bf16.mxu1 %v5809_v37  ;;  %v5907_v37 = vunpack.c.h.s8.bf16 %v3987_v44  ;;  %v4018_v44 = vld [vmem:[%s11198_s0 + $0x1cd0] sm:$0xff] }
 0xab4   : > { %8439 = vmatprep.subr.bf16.mxu0 %v5811_v28 }
 0xab6   : > { %8276 = vmatpush1.bf16.msra.mxu1 %v5808_v52 }
 0xab7   : > { %8440 = vmatpush1.bf16.msra.mxu0 %v5810_v40  ;;  %8277 = vmatprep.subr.bf16.mxu1 %v5841_v41  ;;  %v5904_v40 = vunpack.c.h.s8.bf16 %v3984_v58  ;;  %v9370_v58 = vrot.slane %v9362_v27, %v11601_v35 }
 0xab8   : > { %v7973_v61 = vpop.f32.mrb[32].mxu1  ;;  %8441 = vmatprep.subr.bf16.mxu0 %v5843_v42  ;;  %v5906_v42 = vunpack.c.h.s8.bf16 %v3986_v3  ;;  %v5970_v3 = vunpack.c.h.s8.bf16 %v4018_v44 }
 0xab9   : > { %v8988_v4 = vmul.f32 %v8891_v43, %v7973_v61  ;;  %v8137_v10 = vpop.f32.mrb[36].mxu0  ;;  %v7975_v6 = vpop.f32.mrb[33].mxu1 }
 0xaba   : > { %v8990_v13 = vmul.f32 %v8899_v45, %v8137_v10  ;;  %v8989_v12 = vmul.f32 %v8895_v48, %v7975_v6  ;;  %v8139_v14 = vpop.f32.mrb[37].mxu0  ;;  %v7977_v15 = vpop.f32.mrb[34].mxu1  ;;  %8278 = vmatpush1.bf16.msra.mxu1 %v5840_v49  ;;  %v5939_v45 = vunpack.c.l.s8.bf16 %v4019_v47  ;;  %v5936_v49 = vunpack.c.l.s8.bf16 %v4016_v33  ;;  %v4048_v10 = vld [vmem:[%s11198_s0 + $0x1dc0] sm:$0xff] }
 0xabb   : > { %v9188_v19 = vadd.f32 %v9091_v5, %v8988_v4  ;;  %v8991_v50 = vmul.f32 %v8903_v8, %v8139_v14  ;;  %v8141_v20 = vpop.f32.mrb[38].mxu0  ;;  %8442 = vmatpush1.bf16.msra.mxu0 %v5842_v11  ;;  %v7978_v22 = vpop.f32.mrb[35].mxu1  ;;  %8279 = vmatprep.subr.bf16.mxu1 %v5873_v55  ;;  %v5938_v5 = vunpack.c.l.s8.bf16 %v4018_v44  ;;  %v5969_v8 = vunpack.c.h.s8.bf16 %v4017_v38  ;;  %v4049_v55 = vld [vmem:[%s11198_s0 + $0x1dc8] sm:$0xff]  ;;  %v4083_v14 = vld [vmem:[%s11198_s0 + $0x1ed8] sm:$0xff] }
 0xabc   : > { %v9190_v56 = vadd.f32 %v9099_v32, %v8990_v13  ;;  %v9189_v30 = vadd.f32 %v9095_v62, %v8989_v12  ;;  %v8142_v36 = vpop.f32.mrb[39].mxu0  ;;  %8443 = vmatprep.subr.bf16.mxu0 %v5875_v63  ;;  %v5971_v11 = vunpack.c.h.s8.bf16 %v4019_v47  ;;  %v4051_v32 = vld [vmem:[%s11198_s0 + $0x1dd8] sm:$0xff]  ;;  %v5968_v62 = vunpack.c.h.s8.bf16 %v4016_v33  ;;  %v4081_v12 = vld [vmem:[%s11198_s0 + $0x1ec8] sm:$0xff]  ;;  %v4082_v22 = vld [vmem:[%s11198_s0 + $0x1ed0] sm:$0xff] }
 0xabd   : > { %v9191_v28 = vadd.f32 %v9103_v7, %v8991_v50  ;;  %v6001_v4 = vunpack.c.l.s8.bf16 %v4049_v55  ;;  %v6003_v6 = vunpack.c.l.s8.bf16 %v4051_v32  ;;  %v4050_v7 = vld [vmem:[%s11198_s0 + $0x1dd0] sm:$0xff]  ;;  %v6000_v21 = vunpack.c.l.s8.bf16 %v4048_v10  ;;  %v4080_v50 = vld [vmem:[%s11198_s0 + $0x1ec0] sm:$0xff]  ;;  %v4113_v36 = vld [vmem:[%s11198_s0 + $0x1fc8] sm:$0xff] }
 0xabe   : > { %v9332_v52 = vcombine.low %v9188_v19, %v9189_v30  ;;  %8280 = vmatpush1.bf16.msra.mxu1 %v5872_v18  ;;  %v6002_v26 = vunpack.c.l.s8.bf16 %v4050_v7  ;;  %v6033_v27 = vunpack.c.h.s8.bf16 %v4049_v55  ;;  %v6035_v13 = vunpack.c.h.s8.bf16 %v4051_v32  ;;  %v3127_v44 = vld [vmem:[%s11198_s0 + $0xf8] sm:$0xff]  ;;  %v3157_v32 = vld [vmem:[%s11198_s0 + $0x1e8] sm:$0xff] }
 0xabf   : > { %v9333_v41 = vcombine.low %v9190_v56, %v9191_v28  ;;  %8444 = vmatpush1.bf16.msra.mxu0 %v5874_v23  ;;  %8281 = vmatprep.subr.bf16.mxu1 %v5905_v24  ;;  %v6032_v15 = vunpack.c.h.s8.bf16 %v4048_v10  ;;  %v6034_v18 = vunpack.c.h.s8.bf16 %v4050_v7  ;;  %v6065_v19 = vunpack.c.l.s8.bf16 %v4081_v12 }
 0xac0   : > { %v9354_v43 = vrot.slane %v9332_v52, %v11601_v35  ;;  %8445 = vmatprep.subr.bf16.mxu0 %v5907_v37  ;;  %v6067_v20 = vunpack.c.l.s8.bf16 %v4083_v14  ;;  %v6064_v23 = vunpack.c.l.s8.bf16 %v4080_v50  ;;  %v6066_v24 = vunpack.c.l.s8.bf16 %v4082_v22  ;;  %v4115_v37 = vld [vmem:[%s11198_s0 + $0x1fd8] sm:$0xff]  ;;  %v4112_v52 = vld [vmem:[%s11198_s0 + $0x1fc0] sm:$0xff] }
 0xac1   : > { %v9361_v48 = vrot.slane %v9333_v41, %v11601_v35  ;;  %v6097_v56 = vunpack.c.h.s8.bf16 %v4081_v12  ;;  %v6099_v30 = vunpack.c.h.s8.bf16 %v4083_v14  ;;  %v6096_v38 = vunpack.c.h.s8.bf16 %v4080_v50  ;;  %v4114_v41 = vld [vmem:[%s11198_s0 + $0x1fd0] sm:$0xff]  ;;  %v3189_v14 = vld [vmem:[%s11198_s0 + $0x2e8] sm:$0xff]  ;;  %v3188_v50 = vld [vmem:[%s11198_s0 + $0x2e0] sm:$0xff] }
 0xac2   : > { %8282 = vmatpush1.bf16.msra.mxu1 %v5904_v40  ;;  %v6098_v28 = vunpack.c.h.s8.bf16 %v4082_v22  ;;  %v6129_v47 = vunpack.c.l.s8.bf16 %v4113_v36  ;;  %v6131_v40 = vunpack.c.l.s8.bf16 %v4115_v37  ;;  %v6161_v33 = vunpack.c.h.s8.bf16 %v4113_v36  ;;  %v3190_v22 = vld [vmem:[%s11198_s0 + $0x2f0] sm:$0xff]  ;;  %v3221_v36 = vld [vmem:[%s11198_s0 + $0x3e8] sm:$0xff] }
 0xac3   : > { %v9363_v53 = vcombine.low %v9354_v43, %v9361_v48  ;;  %8446 = vmatpush1.bf16.msra.mxu0 %v5906_v42  ;;  %8283 = vmatprep.subr.bf16.mxu1 %v5937_v39  ;;  %v6128_v42 = vunpack.c.l.s8.bf16 %v4112_v52  ;;  %v6130_v39 = vunpack.c.l.s8.bf16 %v4114_v41  ;;  %v6163_v43 = vunpack.c.h.s8.bf16 %v4115_v37  ;;  %v3223_v37 = vld [vmem:[%s11198_s0 + $0x3f8] sm:$0xff] }
 0xac4   : > { %8447 = vmatprep.subr.bf16.mxu0 %v5939_v45  ;;  %v3125_v45 = vld [vmem:[%s11198_s0 + $0xe8] sm:$0xff]  ;;  %v6160_v48 = vunpack.c.h.s8.bf16 %v4112_v52  ;;  %v4213_v10 = vunpack.c.l.s8.bf16 %v3157_v32  ;;  %v3220_v52 = vld [vmem:[%s11198_s0 + $0x3e0] sm:$0xff] }
 0xac5   : > { %v9377_v61 = vrot.slane %v9363_v53, %v11601_v35  ;;  %v4149_v53 = vunpack.c.l.s8.bf16 %v3125_v45 }
 0xac6   : > { %8284 = vmatpush1.bf16.msra.mxu1 %v5936_v49  ;;  %v6162_v49 = vunpack.c.h.s8.bf16 %v4114_v41  ;;  %v3222_v41 = vld [vmem:[%s11198_s0 + $0x3f0] sm:$0xff] }
 0xac7   : > { %v9378_v63 = vcombine.low %v9370_v58, %v9377_v61  ;;  %8448 = vmatpush1.bf16.msra.mxu0 %v5938_v5  ;;  %8285 = vmatprep.subr.bf16.mxu1 %v5969_v8  ;;  %v3124_v5 = vld [vmem:[%s11198_s0 + $0xe0] sm:$0xff]  ;;  %v4151_v8 = vunpack.c.l.s8.bf16 %v3127_v44  ;;  %v4181_v61 = vunpack.c.h.s8.bf16 %v3125_v45  ;;  %v3253_v45 = vld [vmem:[%s11198_s0 + $0x4e8] sm:$0xff] }
 0xac8   : > { %8449 = vmatprep.subr.bf16.mxu0 %v5971_v11  ;;  %v3126_v11 = vld [vmem:[%s11198_s0 + $0xf0] sm:$0xff]  ;;  %v4148_v55 = vunpack.c.l.s8.bf16 %v3124_v5 }
 0xac9   : > { %9434 = vst [vmem:[%s11781_s2 + $0x10] sm:$0xff] %v9378_v63  ;;  %v4150_v58 = vunpack.c.l.s8.bf16 %v3126_v11  ;;  %v3159_v63 = vld [vmem:[%s11198_s0 + $0x1f8] sm:$0xff] }
 0xaca   : > { %8286 = vmatpush1.bf16.msra.mxu1 %v5968_v62  ;;  %v4183_v62 = vunpack.c.h.s8.bf16 %v3127_v44  ;;  %v4215_v7 = vunpack.c.l.s8.bf16 %v3159_v63  ;;  %v4247_v12 = vunpack.c.h.s8.bf16 %v3159_v63  ;;  %v3255_v44 = vld [vmem:[%s11198_s0 + $0x4f8] sm:$0xff] }
 0xacb   : > { %8450 = vmatpush1.bf16.msra.mxu0 %v5970_v3  ;;  %8287 = vmatprep.subr.bf16.mxu1 %v6001_v4  ;;  %v4180_v3 = vunpack.c.h.s8.bf16 %v3124_v5  ;;  %v4182_v4 = vunpack.c.h.s8.bf16 %v3126_v11  ;;  %v3252_v5 = vld [vmem:[%s11198_s0 + $0x4e0] sm:$0xff]  ;;  %v3254_v11 = vld [vmem:[%s11198_s0 + $0x4f0] sm:$0xff]  ;;  %v3287_v63 = vld [vmem:[%s11198_s0 + $0x5f8] sm:$0xff] }
 0xacc   : > { %8451 = vmatprep.subr.bf16.mxu0 %v6003_v6  ;;  %v3156_v6 = vld [vmem:[%s11198_s0 + $0x1e0] sm:$0xff] }
 0xace   : > { %8288 = vmatpush1.bf16.msra.mxu1 %v6000_v21  ;;  %v3158_v21 = vld [vmem:[%s11198_s0 + $0x1f0] sm:$0xff] }
 0xacf   : > { %8452 = vmatpush1.bf16.msra.mxu0 %v6002_v26  ;;  %8289 = vmatprep.subr.bf16.mxu1 %v6033_v27  ;;  %v4212_v26 = vunpack.c.l.s8.bf16 %v3156_v6  ;;  %v4214_v27 = vunpack.c.l.s8.bf16 %v3158_v21 }
 0xad0   : > { %8453 = vmatprep.subr.bf16.mxu0 %v6035_v13  ;;  %v4245_v13 = vunpack.c.h.s8.bf16 %v3157_v32  ;;  %v4439_v32 = vunpack.c.h.s8.bf16 %v3255_v44 }
 0xad2   : > { %8290 = vmatpush1.bf16.msra.mxu1 %v6032_v15  ;;  %v3191_v15 = vld [vmem:[%s11198_s0 + $0x2f8] sm:$0xff] }
 0xad3   : > { %8454 = vmatpush1.bf16.msra.mxu0 %v6034_v18  ;;  %8291 = vmatprep.subr.bf16.mxu1 %v6065_v19  ;;  %v4244_v18 = vunpack.c.h.s8.bf16 %v3156_v6  ;;  %v4277_v19 = vunpack.c.l.s8.bf16 %v3189_v14  ;;  %v3284_v6 = vld [vmem:[%s11198_s0 + $0x5e0] sm:$0xff] }
 0xad4   : > { %8455 = vmatprep.subr.bf16.mxu0 %v6067_v20  ;;  %v4279_v20 = vunpack.c.l.s8.bf16 %v3191_v15 }
 0xad6   : > { %8292 = vmatpush1.bf16.msra.mxu1 %v6064_v23  ;;  %v4276_v23 = vunpack.c.l.s8.bf16 %v3188_v50 }
 0xad7   : > { %8456 = vmatpush1.bf16.msra.mxu0 %v6066_v24  ;;  %8293 = vmatprep.subr.bf16.mxu1 %v6097_v56  ;;  %v4278_v24 = vunpack.c.l.s8.bf16 %v3190_v22  ;;  %v4309_v56 = vunpack.c.h.s8.bf16 %v3189_v14  ;;  %v3317_v14 = vld [vmem:[%s11198_s0 + $0x6e8] sm:$0xff] }
 0xad8   : > { %8457 = vmatprep.subr.bf16.mxu0 %v6099_v30  ;;  %v4311_v30 = vunpack.c.h.s8.bf16 %v3191_v15  ;;  %v3319_v15 = vld [vmem:[%s11198_s0 + $0x6f8] sm:$0xff] }
 0xada   : > { %8294 = vmatpush1.bf16.msra.mxu1 %v6096_v38  ;;  %v4308_v38 = vunpack.c.h.s8.bf16 %v3188_v50  ;;  %v3316_v50 = vld [vmem:[%s11198_s0 + $0x6e0] sm:$0xff] }
 0xadb   : > { %8458 = vmatpush1.bf16.msra.mxu0 %v6098_v28  ;;  %8295 = vmatprep.subr.bf16.mxu1 %v6129_v47  ;;  %v4310_v28 = vunpack.c.h.s8.bf16 %v3190_v22  ;;  %v4341_v47 = vunpack.c.l.s8.bf16 %v3221_v36  ;;  %v3318_v22 = vld [vmem:[%s11198_s0 + $0x6f0] sm:$0xff] }
 0xadc   : > { %8459 = vmatprep.subr.bf16.mxu0 %v6131_v40  ;;  %v4343_v40 = vunpack.c.l.s8.bf16 %v3223_v37 }
 0xade   : > { %8296 = vmatpush1.bf16.msra.mxu1 %v6128_v42  ;;  %v4340_v42 = vunpack.c.l.s8.bf16 %v3220_v52 }
 0xadf   : > { %8460 = vmatpush1.bf16.msra.mxu0 %v6130_v39  ;;  %8297 = vmatprep.subr.bf16.mxu1 %v6161_v33  ;;  %v4342_v39 = vunpack.c.l.s8.bf16 %v3222_v41  ;;  %v4373_v33 = vunpack.c.h.s8.bf16 %v3221_v36  ;;  %v3349_v36 = vld [vmem:[%s11198_s0 + $0x7e8] sm:$0xff] }
 0xae0   : > { %8461 = vmatprep.subr.bf16.mxu0 %v6163_v43  ;;  %v4375_v43 = vunpack.c.h.s8.bf16 %v3223_v37  ;;  %v3351_v37 = vld [vmem:[%s11198_s0 + $0x7f8] sm:$0xff] }
 0xae2   : > { %8298 = vmatpush1.bf16.msra.mxu1 %v6160_v48  ;;  %v4372_v48 = vunpack.c.h.s8.bf16 %v3220_v52  ;;  %v3348_v52 = vld [vmem:[%s11198_s0 + $0x7e0] sm:$0xff] }
 0xae3   : > { %8462 = vmatpush1.bf16.msra.mxu0 %v6162_v49  ;;  %8472 = vmatprep.subr.bf16.mxu1 %v4149_v53  ;;  %v4374_v49 = vunpack.c.h.s8.bf16 %v3222_v41  ;;  %v4405_v53 = vunpack.c.l.s8.bf16 %v3253_v45  ;;  %v3350_v41 = vld [vmem:[%s11198_s0 + $0x7f0] sm:$0xff] }
 0xae4   : > { %8636 = vmatprep.subr.bf16.mxu0 %v4151_v8  ;;  %v4407_v8 = vunpack.c.l.s8.bf16 %v3255_v44  ;;  %v3383_v44 = vld [vmem:[%s11198_s0 + $0x8f8] sm:$0xff] }
 0xae5   : > { %8300 = vmatmul.mubr.bf16.vlgmr.msra.gmra.mrb[36].mxu1 %v11455_v0 }
 0xae6   : > { %8464 = vmatmul.mubr.bf16.vlgmr.msra.gmra.mrb[40].mxu0 %v11455_v0  ;;  %8473 = vmatpush1.bf16.msra.mxu1 %v4148_v55  ;;  %v4404_v55 = vunpack.c.l.s8.bf16 %v3252_v5 }
 0xae7   : > { %8504 = vmatprep.mubr.bf16.mxu1 %v11306_v57  ;;  %8637 = vmatpush1.bf16.msra.mxu0 %v4150_v58  ;;  %v4406_v58 = vunpack.c.l.s8.bf16 %v3254_v11 }
 0xae8   : > { %8668 = vmatprep.mubr.bf16.mxu0 %v11306_v57  ;;  %8474 = vmatprep.subr.bf16.mxu1 %v4181_v61  ;;  %v4246_v57 = vunpack.c.h.s8.bf16 %v3158_v21  ;;  %v4437_v61 = vunpack.c.h.s8.bf16 %v3253_v45  ;;  %v3286_v21 = vld [vmem:[%s11198_s0 + $0x5f0] sm:$0xff]  ;;  %v3381_v45 = vld [vmem:[%s11198_s0 + $0x8e8] sm:$0xff] }
 0xae9   : > { %8638 = vmatprep.subr.bf16.mxu0 %v4183_v62  ;;  %v3285_v62 = vld [vmem:[%s11198_s0 + $0x5e8] sm:$0xff] }
 0xaea   : > { %8475 = vmatpush1.bf16.msra.mxu1 %v4180_v3  ;;  %v4436_v3 = vunpack.c.h.s8.bf16 %v3252_v5  ;;  %v3380_v5 = vld [vmem:[%s11198_s0 + $0x8e0] sm:$0xff] }
 0xaeb   : > { %8639 = vmatpush1.bf16.msra.mxu0 %v4182_v4  ;;  %8476 = vmatprep.subr.bf16.mxu1 %v4213_v10  ;;  %v4438_v4 = vunpack.c.h.s8.bf16 %v3254_v11  ;;  %v4469_v10 = vunpack.c.l.s8.bf16 %v3285_v62  ;;  %v3382_v11 = vld [vmem:[%s11198_s0 + $0x8f0] sm:$0xff] }
 0xaec   : > { %8640 = vmatprep.subr.bf16.mxu0 %v4215_v7  ;;  %v4471_v7 = vunpack.c.l.s8.bf16 %v3287_v63 }
 0xaee   : > { %8477 = vmatpush1.bf16.msra.mxu1 %v4212_v26  ;;  %v4468_v26 = vunpack.c.l.s8.bf16 %v3284_v6 }
 0xaef   : > { %8641 = vmatpush1.bf16.msra.mxu0 %v4214_v27  ;;  %8478 = vmatprep.subr.bf16.mxu1 %v4245_v13  ;;  %v4470_v27 = vunpack.c.l.s8.bf16 %v3286_v21  ;;  %v4501_v13 = vunpack.c.h.s8.bf16 %v3285_v62  ;;  %v4695_v62 = vunpack.c.h.s8.bf16 %v3383_v44 }
 0xaf0   : > { %8642 = vmatprep.subr.bf16.mxu0 %v4247_v12  ;;  %v4503_v12 = vunpack.c.h.s8.bf16 %v3287_v63  ;;  %v3415_v63 = vld [vmem:[%s11198_s0 + $0x9f8] sm:$0xff] }
 0xaf2   : > { %8479 = vmatpush1.bf16.msra.mxu1 %v4244_v18  ;;  %v4500_v18 = vunpack.c.h.s8.bf16 %v3284_v6  ;;  %v3412_v6 = vld [vmem:[%s11198_s0 + $0x9e0] sm:$0xff] }
 0xaf3   : > { %8643 = vmatpush1.bf16.msra.mxu0 %v4246_v57  ;;  %8480 = vmatprep.subr.bf16.mxu1 %v4277_v19  ;;  %v4502_v57 = vunpack.c.h.s8.bf16 %v3286_v21  ;;  %v4533_v19 = vunpack.c.l.s8.bf16 %v3317_v14  ;;  %v3414_v21 = vld [vmem:[%s11198_s0 + $0x9f0] sm:$0xff] }
 0xaf4   : > { %8644 = vmatprep.subr.bf16.mxu0 %v4279_v20  ;;  %v4535_v20 = vunpack.c.l.s8.bf16 %v3319_v15 }
 0xaf6   : > { %8481 = vmatpush1.bf16.msra.mxu1 %v4276_v23  ;;  %v4532_v23 = vunpack.c.l.s8.bf16 %v3316_v50 }
 0xaf7   : > { %8645 = vmatpush1.bf16.msra.mxu0 %v4278_v24  ;;  %8482 = vmatprep.subr.bf16.mxu1 %v4309_v56  ;;  %v4534_v24 = vunpack.c.l.s8.bf16 %v3318_v22  ;;  %v4565_v56 = vunpack.c.h.s8.bf16 %v3317_v14  ;;  %v3447_v14 = vld [vmem:[%s11198_s0 + $0xaf8] sm:$0xff] }
 0xaf8   : > { %8646 = vmatprep.subr.bf16.mxu0 %v4311_v30  ;;  %v4567_v30 = vunpack.c.h.s8.bf16 %v3319_v15  ;;  %v4756_v15 = vunpack.c.h.s8.bf16 %v3412_v6 }
 0xafa   : > { %8483 = vmatpush1.bf16.msra.mxu1 %v4308_v38  ;;  %v4564_v38 = vunpack.c.h.s8.bf16 %v3316_v50  ;;  %v3446_v50 = vld [vmem:[%s11198_s0 + $0xaf0] sm:$0xff] }
 0xafb   : > { %8647 = vmatpush1.bf16.msra.mxu0 %v4310_v28  ;;  %8484 = vmatprep.subr.bf16.mxu1 %v4341_v47  ;;  %v4566_v28 = vunpack.c.h.s8.bf16 %v3318_v22  ;;  %v4597_v47 = vunpack.c.l.s8.bf16 %v3349_v36  ;;  %v4790_v22 = vunpack.c.l.s8.bf16 %v3446_v50 }
 0xafc   : > { %8648 = vmatprep.subr.bf16.mxu0 %v4343_v40  ;;  %v4599_v40 = vunpack.c.l.s8.bf16 %v3351_v37 }
 0xafe   : > { %8485 = vmatpush1.bf16.msra.mxu1 %v4340_v42  ;;  %v4596_v42 = vunpack.c.l.s8.bf16 %v3348_v52 }
 0xaff   : > { %8649 = vmatpush1.bf16.msra.mxu0 %v4342_v39  ;;  %8486 = vmatprep.subr.bf16.mxu1 %v4373_v33  ;;  %v4598_v39 = vunpack.c.l.s8.bf16 %v3350_v41  ;;  %v4629_v33 = vunpack.c.h.s8.bf16 %v3349_v36 }
 0xb00   : > { %8650 = vmatprep.subr.bf16.mxu0 %v4375_v43  ;;  %v4631_v43 = vunpack.c.h.s8.bf16 %v3351_v37  ;;  %v4822_v37 = vunpack.c.h.s8.bf16 %v3446_v50 }
 0xb02   : > { %8487 = vmatpush1.bf16.msra.mxu1 %v4372_v48  ;;  %v4628_v48 = vunpack.c.h.s8.bf16 %v3348_v52  ;;  %v3478_v52 = vld [vmem:[%s11198_s0 + $0xbf0] sm:$0xff] }
 0xb03   : > { %8651 = vmatpush1.bf16.msra.mxu0 %v4374_v49  ;;  %8488 = vmatprep.subr.bf16.mxu1 %v4405_v53  ;;  %v4630_v49 = vunpack.c.h.s8.bf16 %v3350_v41  ;;  %v4661_v53 = vunpack.c.l.s8.bf16 %v3381_v45  ;;  %v4854_v41 = vunpack.c.l.s8.bf16 %v3478_v52 }
 0xb04   : > { %8652 = vmatprep.subr.bf16.mxu0 %v4407_v8  ;;  %v4663_v8 = vunpack.c.l.s8.bf16 %v3383_v44  ;;  %v4886_v44 = vunpack.c.h.s8.bf16 %v3478_v52 }
 0xb06   : > { %8489 = vmatpush1.bf16.msra.mxu1 %v4404_v55  ;;  %v4660_v55 = vunpack.c.l.s8.bf16 %v3380_v5 }
 0xb07   : > { %8653 = vmatpush1.bf16.msra.mxu0 %v4406_v58  ;;  %8490 = vmatprep.subr.bf16.mxu1 %v4437_v61  ;;  %v4662_v58 = vunpack.c.l.s8.bf16 %v3382_v11  ;;  %v4693_v61 = vunpack.c.h.s8.bf16 %v3381_v45 }
 0xb08   : > { %8654 = vmatprep.subr.bf16.mxu0 %v4439_v32  ;;  %v3413_v32 = vld [vmem:[%s11198_s0 + $0x9e8] sm:$0xff] }
 0xb0a   : > { %8491 = vmatpush1.bf16.msra.mxu1 %v4436_v3  ;;  %v4692_v3 = vunpack.c.h.s8.bf16 %v3380_v5  ;;  %v3510_v5 = vld [vmem:[%s11198_s0 + $0xcf0] sm:$0xff] }
 0xb0b   : > { %8655 = vmatpush1.bf16.msra.mxu0 %v4438_v4  ;;  %8492 = vmatprep.subr.bf16.mxu1 %v4469_v10  ;;  %v4694_v4 = vunpack.c.h.s8.bf16 %v3382_v11  ;;  %v4725_v10 = vunpack.c.l.s8.bf16 %v3413_v32  ;;  %v4918_v11 = vunpack.c.l.s8.bf16 %v3510_v5 }
 0xb0c   : > { %8656 = vmatprep.subr.bf16.mxu0 %v4471_v7  ;;  %v4727_v7 = vunpack.c.l.s8.bf16 %v3415_v63 }
 0xb0e   : > { %8493 = vmatpush1.bf16.msra.mxu1 %v4468_v26  ;;  %v4724_v26 = vunpack.c.l.s8.bf16 %v3412_v6  ;;  %v3542_v6 = vld [vmem:[%s11198_s0 + $0xdf0] sm:$0xff] }
 0xb0f   : > { %8657 = vmatpush1.bf16.msra.mxu0 %v4470_v27  ;;  %8494 = vmatprep.subr.bf16.mxu1 %v4501_v13  ;;  %v4757_v27 = vunpack.c.h.s8.bf16 %v3413_v32  ;;  %v4759_v13 = vunpack.c.h.s8.bf16 %v3415_v63  ;;  %v3543_v32 = vld [vmem:[%s11198_s0 + $0xdf8] sm:$0xff]  ;;  %v4950_v63 = vunpack.c.h.s8.bf16 %v3510_v5 }
 0xb10   : > { %8658 = vmatprep.subr.bf16.mxu0 %v4503_v12  ;;  %v3445_v12 = vld [vmem:[%s11198_s0 + $0xae8] sm:$0xff] }
 0xb12   : > { %8495 = vmatpush1.bf16.msra.mxu1 %v4500_v18  ;;  %v4789_v18 = vunpack.c.l.s8.bf16 %v3445_v12 }
 0xb13   : > { %8659 = vmatpush1.bf16.msra.mxu0 %v4502_v57  ;;  %8496 = vmatprep.subr.bf16.mxu1 %v4533_v19  ;;  %v3444_v57 = vld [vmem:[%s11198_s0 + $0xae0] sm:$0xff]  ;;  %v4791_v19 = vunpack.c.l.s8.bf16 %v3447_v14 }
 0xb14   : > { %8660 = vmatprep.subr.bf16.mxu0 %v4535_v20  ;;  %v4788_v20 = vunpack.c.l.s8.bf16 %v3444_v57  ;;  %v4820_v36 = vunpack.c.h.s8.bf16 %v3444_v57  ;;  %v3574_v57 = vld [vmem:[%s11198_s0 + $0xef0] sm:$0xff] }
 0xb15   : > { %v5046_v50 = vunpack.c.l.s8.bf16 %v3574_v57 }
 0xb16   : > { %8497 = vmatpush1.bf16.msra.mxu1 %v4532_v23  ;;  %v4821_v23 = vunpack.c.h.s8.bf16 %v3445_v12 }
 0xb17   : > { %8661 = vmatpush1.bf16.msra.mxu0 %v4534_v24  ;;  %8498 = vmatprep.subr.bf16.mxu1 %v4565_v56  ;;  %v4823_v24 = vunpack.c.h.s8.bf16 %v3447_v14  ;;  %v3477_v56 = vld [vmem:[%s11198_s0 + $0xbe8] sm:$0xff]  ;;  %v5014_v14 = vunpack.c.h.s8.bf16 %v3542_v6 }
 0xb18   : > { %8662 = vmatprep.subr.bf16.mxu0 %v4567_v30  ;;  %v3479_v30 = vld [vmem:[%s11198_s0 + $0xbf8] sm:$0xff] }
 0xb1a   : > { %8499 = vmatpush1.bf16.msra.mxu1 %v4564_v38  ;;  %v4853_v38 = vunpack.c.l.s8.bf16 %v3477_v56 }
 0xb1b   : > { %8663 = vmatpush1.bf16.msra.mxu0 %v4566_v28  ;;  %8500 = vmatprep.subr.bf16.mxu1 %v4597_v47  ;;  %v3476_v28 = vld [vmem:[%s11198_s0 + $0xbe0] sm:$0xff]  ;;  %v4855_v47 = vunpack.c.l.s8.bf16 %v3479_v30 }
 0xb1c   : > { %8664 = vmatprep.subr.bf16.mxu0 %v4599_v40  ;;  %v4852_v40 = vunpack.c.l.s8.bf16 %v3476_v28  ;;  %v4884_v45 = vunpack.c.h.s8.bf16 %v3476_v28  ;;  %v3606_v28 = vld [vmem:[%s11198_s0 + $0xff0] sm:$0xff] }
 0xb1d   : > { %v5110_v52 = vunpack.c.l.s8.bf16 %v3606_v28 }
 0xb1e   : > { %8501 = vmatpush1.bf16.msra.mxu1 %v4596_v42  ;;  %v4885_v42 = vunpack.c.h.s8.bf16 %v3477_v56 }
 0xb1f   : > { %8665 = vmatpush1.bf16.msra.mxu0 %v4598_v39  ;;  %8502 = vmatprep.subr.bf16.mxu1 %v4629_v33  ;;  %v4887_v39 = vunpack.c.h.s8.bf16 %v3479_v30  ;;  %v3509_v33 = vld [vmem:[%s11198_s0 + $0xce8] sm:$0xff]  ;;  %v5078_v30 = vunpack.c.h.s8.bf16 %v3574_v57 }
 0xb20   : > { %8666 = vmatprep.subr.bf16.mxu0 %v4631_v43  ;;  %v3511_v43 = vld [vmem:[%s11198_s0 + $0xcf8] sm:$0xff] }
 0xb22   : > { %8503 = vmatpush1.bf16.msra.mxu1 %v4628_v48  ;;  %v4917_v48 = vunpack.c.l.s8.bf16 %v3509_v33 }
 0xb23   : > { %8667 = vmatpush1.bf16.msra.mxu0 %v4630_v49  ;;  %8513 = vmatprep.subr.bf16.mxu1 %v4661_v53  ;;  %v3508_v49 = vld [vmem:[%s11198_s0 + $0xce0] sm:$0xff]  ;;  %v4919_v53 = vunpack.c.l.s8.bf16 %v3511_v43 }
 0xb24   : > { %8677 = vmatprep.subr.bf16.mxu0 %v4663_v8  ;;  %v4916_v8 = vunpack.c.l.s8.bf16 %v3508_v49 }
 0xb25   : > { %8505 = vmatmul.mubr.bf16.vlgmr.msra.gmra.mrb[40].mxu1 %v11308_v60 }
 0xb26   : > { %8669 = vmatmul.mubr.bf16.vlgmr.msra.gmra.mrb[44].mxu0 %v11308_v60  ;;  %8514 = vmatpush1.bf16.msra.mxu1 %v4660_v55  ;;  %v4726_v60 = vunpack.c.l.s8.bf16 %v3414_v21  ;;  %v4949_v55 = vunpack.c.h.s8.bf16 %v3509_v33 }
 0xb27   : > { %8545 = vmatprep.mubr.bf16.mxu1 %v11314_v1  ;;  %8678 = vmatpush1.bf16.msra.mxu0 %v4662_v58  ;;  %v4951_v58 = vunpack.c.h.s8.bf16 %v3511_v43  ;;  %v5142_v43 = vunpack.c.h.s8.bf16 %v3606_v28 }
 0xb28   : > { %8709 = vmatprep.mubr.bf16.mxu0 %v11314_v1  ;;  %8515 = vmatprep.subr.bf16.mxu1 %v4693_v61  ;;  %v4758_v1 = vunpack.c.h.s8.bf16 %v3414_v21  ;;  %v3541_v61 = vld [vmem:[%s11198_s0 + $0xde8] sm:$0xff]  ;;  %v4982_v21 = vunpack.c.l.s8.bf16 %v3542_v6 }
 0xb29   : > { %8679 = vmatprep.subr.bf16.mxu0 %v4695_v62  ;;  %v4948_v62 = vunpack.c.h.s8.bf16 %v3508_v49  ;;  %v3638_v49 = vld [vmem:[%s11198_s0 + $0x10f0] sm:$0xff] }
 0xb2a   : > { %8516 = vmatpush1.bf16.msra.mxu1 %v4692_v3  ;;  %v4981_v3 = vunpack.c.l.s8.bf16 %v3541_v61  ;;  %v5174_v5 = vunpack.c.l.s8.bf16 %v3638_v49 }
 0xb2b   : > { %8680 = vmatpush1.bf16.msra.mxu0 %v4694_v4  ;;  %8517 = vmatprep.subr.bf16.mxu1 %v4725_v10  ;;  %v3540_v4 = vld [vmem:[%s11198_s0 + $0xde0] sm:$0xff]  ;;  %v4983_v10 = vunpack.c.l.s8.bf16 %v3543_v32 }
 0xb2c   : > { %8681 = vmatprep.subr.bf16.mxu0 %v4727_v7  ;;  %v4980_v7 = vunpack.c.l.s8.bf16 %v3540_v4  ;;  %v5012_v12 = vunpack.c.h.s8.bf16 %v3540_v4  ;;  %v3670_v4 = vld [vmem:[%s11198_s0 + $0x11f0] sm:$0xff] }
 0xb2e   : > { %8518 = vmatpush1.bf16.msra.mxu1 %v4724_v26  ;;  %v5013_v26 = vunpack.c.h.s8.bf16 %v3541_v61 }
 0xb2f   : > { %8682 = vmatpush1.bf16.msra.mxu0 %v4726_v60  ;;  %8519 = vmatprep.subr.bf16.mxu1 %v4757_v27  ;;  %v5015_v60 = vunpack.c.h.s8.bf16 %v3543_v32  ;;  %v3573_v27 = vld [vmem:[%s11198_s0 + $0xee8] sm:$0xff]  ;;  %v5206_v32 = vunpack.c.h.s8.bf16 %v3638_v49 }
 0xb30   : > { %8683 = vmatprep.subr.bf16.mxu0 %v4759_v13  ;;  %v3575_v13 = vld [vmem:[%s11198_s0 + $0xef8] sm:$0xff] }
 0xb32   : > { %8520 = vmatpush1.bf16.msra.mxu1 %v4756_v15  ;;  %v5045_v15 = vunpack.c.l.s8.bf16 %v3573_v27 }
 0xb33   : > { %8684 = vmatpush1.bf16.msra.mxu0 %v4758_v1  ;;  %8521 = vmatprep.subr.bf16.mxu1 %v4789_v18  ;;  %v3572_v1 = vld [vmem:[%s11198_s0 + $0xee0] sm:$0xff]  ;;  %v5047_v18 = vunpack.c.l.s8.bf16 %v3575_v13 }
 0xb34   : > { %8685 = vmatprep.subr.bf16.mxu0 %v4791_v19  ;;  %v5044_v19 = vunpack.c.l.s8.bf16 %v3572_v1  ;;  %v5076_v56 = vunpack.c.h.s8.bf16 %v3572_v1 }
 0xb36   : > { %8522 = vmatpush1.bf16.msra.mxu1 %v4788_v20  ;;  %v5077_v20 = vunpack.c.h.s8.bf16 %v3573_v27 }
 0xb37   : > { %8686 = vmatpush1.bf16.msra.mxu0 %v4790_v22  ;;  %8523 = vmatprep.subr.bf16.mxu1 %v4821_v23  ;;  %v5079_v22 = vunpack.c.h.s8.bf16 %v3575_v13  ;;  %v3605_v23 = vld [vmem:[%s11198_s0 + $0xfe8] sm:$0xff]  ;;  %v3700_v13 = vld [vmem:[%s11198_s0 + $0x12e0] sm:$0xff] }
 0xb38   : > { %8687 = vmatprep.subr.bf16.mxu0 %v4823_v24  ;;  %v3607_v24 = vld [vmem:[%s11198_s0 + $0xff8] sm:$0xff] }
 0xb3a   : > { %8524 = vmatpush1.bf16.msra.mxu1 %v4820_v36  ;;  %v5109_v36 = vunpack.c.l.s8.bf16 %v3605_v23 }
 0xb3b   : > { %8688 = vmatpush1.bf16.msra.mxu0 %v4822_v37  ;;  %8525 = vmatprep.subr.bf16.mxu1 %v4853_v38  ;;  %v3604_v37 = vld [vmem:[%s11198_s0 + $0xfe0] sm:$0xff]  ;;  %v5111_v38 = vunpack.c.l.s8.bf16 %v3607_v24 }
 0xb3c   : > { %8689 = vmatprep.subr.bf16.mxu0 %v4855_v47  ;;  %v5108_v47 = vunpack.c.l.s8.bf16 %v3604_v37  ;;  %v5140_v33 = vunpack.c.h.s8.bf16 %v3604_v37 }
 0xb3e   : > { %8526 = vmatpush1.bf16.msra.mxu1 %v4852_v40  ;;  %v5141_v40 = vunpack.c.h.s8.bf16 %v3605_v23 }
 0xb3f   : > { %8690 = vmatpush1.bf16.msra.mxu0 %v4854_v41  ;;  %8527 = vmatprep.subr.bf16.mxu1 %v4885_v42  ;;  %v5143_v41 = vunpack.c.h.s8.bf16 %v3607_v24  ;;  %v3637_v42 = vld [vmem:[%s11198_s0 + $0x10e8] sm:$0xff]  ;;  %v3732_v24 = vld [vmem:[%s11198_s0 + $0x13e0] sm:$0xff] }
 0xb40   : > { %8691 = vmatprep.subr.bf16.mxu0 %v4887_v39  ;;  %v3639_v39 = vld [vmem:[%s11198_s0 + $0x10f8] sm:$0xff] }
 0xb42   : > { %8528 = vmatpush1.bf16.msra.mxu1 %v4884_v45  ;;  %v5173_v45 = vunpack.c.l.s8.bf16 %v3637_v42 }
 0xb43   : > { %8692 = vmatpush1.bf16.msra.mxu0 %v4886_v44  ;;  %8529 = vmatprep.subr.bf16.mxu1 %v4917_v48  ;;  %v3636_v44 = vld [vmem:[%s11198_s0 + $0x10e0] sm:$0xff]  ;;  %v5175_v48 = vunpack.c.l.s8.bf16 %v3639_v39 }
 0xb44   : > { %8693 = vmatprep.subr.bf16.mxu0 %v4919_v53  ;;  %v5172_v53 = vunpack.c.l.s8.bf16 %v3636_v44  ;;  %v5204_v61 = vunpack.c.h.s8.bf16 %v3636_v44 }
 0xb46   : > { %8530 = vmatpush1.bf16.msra.mxu1 %v4916_v8  ;;  %v5205_v8 = vunpack.c.h.s8.bf16 %v3637_v42 }
 0xb47   : > { %8694 = vmatpush1.bf16.msra.mxu0 %v4918_v11  ;;  %8531 = vmatprep.subr.bf16.mxu1 %v4949_v55  ;;  %v3669_v11 = vld [vmem:[%s11198_s0 + $0x11e8] sm:$0xff]  ;;  %v5207_v55 = vunpack.c.h.s8.bf16 %v3639_v39  ;;  %v3764_v39 = vld [vmem:[%s11198_s0 + $0x14e0] sm:$0xff] }
 0xb48   : > { %8695 = vmatprep.subr.bf16.mxu0 %v4951_v58  ;;  %v3671_v58 = vld [vmem:[%s11198_s0 + $0x11f8] sm:$0xff]  ;;  %v5269_v6 = vunpack.c.h.s8.bf16 %v3669_v11 }
 0xb4a   : > { %8532 = vmatpush1.bf16.msra.mxu1 %v4948_v62  ;;  %v5237_v62 = vunpack.c.l.s8.bf16 %v3669_v11 }
 0xb4b   : > { %8696 = vmatpush1.bf16.msra.mxu0 %v4950_v63  ;;  %8533 = vmatprep.subr.bf16.mxu1 %v4981_v3  ;;  %v3668_v63 = vld [vmem:[%s11198_s0 + $0x11e0] sm:$0xff]  ;;  %v5239_v3 = vunpack.c.l.s8.bf16 %v3671_v58 }
 0xb4c   : > { %8697 = vmatprep.subr.bf16.mxu0 %v4983_v10  ;;  %v5236_v10 = vunpack.c.l.s8.bf16 %v3668_v63 }
 0xb4e   : > { %8534 = vmatpush1.bf16.msra.mxu1 %v4980_v7  ;;  %v5271_v7 = vunpack.c.h.s8.bf16 %v3671_v58  ;;  %v3796_v58 = vld [vmem:[%s11198_s0 + $0x15e0] sm:$0xff] }
 0xb4f   : > { %8698 = vmatpush1.bf16.msra.mxu0 %v4982_v21  ;;  %8535 = vmatprep.subr.bf16.mxu1 %v5013_v26  ;;  %v3701_v21 = vld [vmem:[%s11198_s0 + $0x12e8] sm:$0xff]  ;;  %v3703_v26 = vld [vmem:[%s11198_s0 + $0x12f8] sm:$0xff] }
 0xb50   : > { %8699 = vmatprep.subr.bf16.mxu0 %v5015_v60  ;;  %v5268_v60 = vunpack.c.h.s8.bf16 %v3668_v63  ;;  %v5301_v27 = vunpack.c.l.s8.bf16 %v3701_v21  ;;  %v5335_v57 = vunpack.c.h.s8.bf16 %v3703_v26 }
 0xb52   : > { %8536 = vmatpush1.bf16.msra.mxu1 %v5012_v12  ;;  %v5303_v12 = vunpack.c.l.s8.bf16 %v3703_v26  ;;  %v3828_v26 = vld [vmem:[%s11198_s0 + $0x16e0] sm:$0xff] }
 0xb53   : > { %8700 = vmatpush1.bf16.msra.mxu0 %v5014_v14  ;;  %8537 = vmatprep.subr.bf16.mxu1 %v5045_v15  ;;  %v3702_v14 = vld [vmem:[%s11198_s0 + $0x12f0] sm:$0xff]  ;;  %v5300_v15 = vunpack.c.l.s8.bf16 %v3700_v13 }
 0xb54   : > { %8701 = vmatprep.subr.bf16.mxu0 %v5047_v18  ;;  %v5302_v1 = vunpack.c.l.s8.bf16 %v3702_v14  ;;  %v5333_v18 = vunpack.c.h.s8.bf16 %v3701_v21 }
 0xb56   : > { %8538 = vmatpush1.bf16.msra.mxu1 %v5044_v19  ;;  %v3733_v19 = vld [vmem:[%s11198_s0 + $0x13e8] sm:$0xff] }
 0xb57   : > { %8702 = vmatpush1.bf16.msra.mxu0 %v5046_v50  ;;  %8539 = vmatprep.subr.bf16.mxu1 %v5077_v20  ;;  %v3735_v50 = vld [vmem:[%s11198_s0 + $0x13f8] sm:$0xff]  ;;  %v5332_v20 = vunpack.c.h.s8.bf16 %v3700_v13  ;;  %v5365_v23 = vunpack.c.l.s8.bf16 %v3733_v19 }
 0xb58   : > { %8703 = vmatprep.subr.bf16.mxu0 %v5079_v22  ;;  %v5334_v22 = vunpack.c.h.s8.bf16 %v3702_v14  ;;  %v5399_v28 = vunpack.c.h.s8.bf16 %v3735_v50 }
 0xb5a   : > { %8540 = vmatpush1.bf16.msra.mxu1 %v5076_v56  ;;  %v5367_v56 = vunpack.c.l.s8.bf16 %v3735_v50  ;;  %v3860_v50 = vld [vmem:[%s11198_s0 + $0x17e0] sm:$0xff] }
 0xb5b   : > { %8704 = vmatpush1.bf16.msra.mxu0 %v5078_v30  ;;  %8541 = vmatprep.subr.bf16.mxu1 %v5109_v36  ;;  %v3734_v30 = vld [vmem:[%s11198_s0 + $0x13f0] sm:$0xff]  ;;  %v5364_v36 = vunpack.c.l.s8.bf16 %v3732_v24 }
 0xb5c   : > { %8705 = vmatprep.subr.bf16.mxu0 %v5111_v38  ;;  %v5366_v37 = vunpack.c.l.s8.bf16 %v3734_v30  ;;  %v5397_v38 = vunpack.c.h.s8.bf16 %v3733_v19 }
 0xb5e   : > { %8542 = vmatpush1.bf16.msra.mxu1 %v5108_v47  ;;  %v3765_v47 = vld [vmem:[%s11198_s0 + $0x14e8] sm:$0xff] }
 0xb5f   : > { %8706 = vmatpush1.bf16.msra.mxu0 %v5110_v52  ;;  %8543 = vmatprep.subr.bf16.mxu1 %v5141_v40  ;;  %v3767_v52 = vld [vmem:[%s11198_s0 + $0x14f8] sm:$0xff]  ;;  %v5396_v40 = vunpack.c.h.s8.bf16 %v3732_v24  ;;  %v5429_v42 = vunpack.c.l.s8.bf16 %v3765_v47 }
 0xb60   : > { %8707 = vmatprep.subr.bf16.mxu0 %v5143_v41  ;;  %v5398_v41 = vunpack.c.h.s8.bf16 %v3734_v30  ;;  %v5463_v49 = vunpack.c.h.s8.bf16 %v3767_v52 }
 0xb62   : > { %8544 = vmatpush1.bf16.msra.mxu1 %v5140_v33  ;;  %v5431_v33 = vunpack.c.l.s8.bf16 %v3767_v52  ;;  %v3892_v52 = vld [vmem:[%s11198_s0 + $0x18e0] sm:$0xff] }
 0xb63   : > { %8708 = vmatpush1.bf16.msra.mxu0 %v5142_v43  ;;  %8554 = vmatprep.subr.bf16.mxu1 %v5173_v45  ;;  %v3766_v43 = vld [vmem:[%s11198_s0 + $0x14f0] sm:$0xff]  ;;  %v5428_v45 = vunpack.c.l.s8.bf16 %v3764_v39 }
 0xb64   : > { %8718 = vmatprep.subr.bf16.mxu0 %v5175_v48  ;;  %v5430_v44 = vunpack.c.l.s8.bf16 %v3766_v43  ;;  %v5461_v48 = vunpack.c.h.s8.bf16 %v3765_v47  ;;  %v5462_v11 = vunpack.c.h.s8.bf16 %v3766_v43  ;;  %v3925_v43 = vld [vmem:[%s11198_s0 + $0x19e8] sm:$0xff] }
 0xb65   : > { %8546 = vmatmul.mubr.bf16.vlgmr.msra.gmra.mrb[40].mxu1 %v11353_v46 }
 0xb66   : > { %8710 = vmatmul.mubr.bf16.vlgmr.msra.gmra.mrb[44].mxu0 %v11353_v46  ;;  %8555 = vmatpush1.bf16.msra.mxu1 %v5172_v53  ;;  %v5238_v46 = vunpack.c.l.s8.bf16 %v3670_v4  ;;  %v3797_v53 = vld [vmem:[%s11198_s0 + $0x15e8] sm:$0xff] }
 0xb67   : > { %8586 = vmatprep.mubr.bf16.mxu1 %v11406_v54  ;;  %8719 = vmatpush1.bf16.msra.mxu0 %v5174_v5  ;;  %v3799_v5 = vld [vmem:[%s11198_s0 + $0x15f8] sm:$0xff] }
 0xb68   : > { %8750 = vmatprep.mubr.bf16.mxu0 %v11406_v54  ;;  %8556 = vmatprep.subr.bf16.mxu1 %v5205_v8  ;;  %v5270_v54 = vunpack.c.h.s8.bf16 %v3670_v4  ;;  %v5460_v8 = vunpack.c.h.s8.bf16 %v3764_v39  ;;  %v5527_v4 = vunpack.c.h.s8.bf16 %v3799_v5 }
 0xb69   : > { %8720 = vmatprep.subr.bf16.mxu0 %v5207_v55  ;;  %v5493_v55 = vunpack.c.l.s8.bf16 %v3797_v53 }
 0xb6a   : > { %8557 = vmatpush1.bf16.msra.mxu1 %v5204_v61  ;;  %v5495_v61 = vunpack.c.l.s8.bf16 %v3799_v5  ;;  %v3924_v5 = vld [vmem:[%s11198_s0 + $0x19e0] sm:$0xff] }
 0xb6b   : > { %8721 = vmatpush1.bf16.msra.mxu0 %v5206_v32  ;;  %8558 = vmatprep.subr.bf16.mxu1 %v5237_v62  ;;  %v3798_v32 = vld [vmem:[%s11198_s0 + $0x15f0] sm:$0xff]  ;;  %v5492_v62 = vunpack.c.l.s8.bf16 %v3796_v58 }
 0xb6c   : > { %8722 = vmatprep.subr.bf16.mxu0 %v5239_v3  ;;  %v5494_v63 = vunpack.c.l.s8.bf16 %v3798_v32  ;;  %v5525_v3 = vunpack.c.h.s8.bf16 %v3797_v53  ;;  %v5749_v53 = vunpack.c.l.s8.bf16 %v3925_v43 }
 0xb6e   : > { %8559 = vmatpush1.bf16.msra.mxu1 %v5236_v10  ;;  %v3829_v10 = vld [vmem:[%s11198_s0 + $0x16e8] sm:$0xff] }
 0xb6f   : > { %8723 = vmatpush1.bf16.msra.mxu0 %v5238_v46  ;;  %8560 = vmatprep.subr.bf16.mxu1 %v5269_v6  ;;  %v3831_v46 = vld [vmem:[%s11198_s0 + $0x16f8] sm:$0xff]  ;;  %v5524_v6 = vunpack.c.h.s8.bf16 %v3796_v58  ;;  %v5557_v21 = vunpack.c.l.s8.bf16 %v3829_v10  ;;  %v5781_v58 = vunpack.c.h.s8.bf16 %v3925_v43 }
 0xb70   : > { %8724 = vmatprep.subr.bf16.mxu0 %v5271_v7  ;;  %v5526_v7 = vunpack.c.h.s8.bf16 %v3798_v32  ;;  %v5591_v14 = vunpack.c.h.s8.bf16 %v3831_v46  ;;  %v3957_v32 = vld [vmem:[%s11198_s0 + $0x1ae8] sm:$0xff] }
 0xb72   : > { %8561 = vmatpush1.bf16.msra.mxu1 %v5268_v60  ;;  %v5559_v60 = vunpack.c.l.s8.bf16 %v3831_v46  ;;  %v3958_v46 = vld [vmem:[%s11198_s0 + $0x1af0] sm:$0xff] }
 0xb73   : > { %8725 = vmatpush1.bf16.msra.mxu0 %v5270_v54  ;;  %8562 = vmatprep.subr.bf16.mxu1 %v5301_v27  ;;  %v3830_v54 = vld [vmem:[%s11198_s0 + $0x16f0] sm:$0xff]  ;;  %v5556_v27 = vunpack.c.l.s8.bf16 %v3828_v26 }
 0xb74   : > { %8726 = vmatprep.subr.bf16.mxu0 %v5303_v12  ;;  %v5558_v13 = vunpack.c.l.s8.bf16 %v3830_v54  ;;  %v5589_v12 = vunpack.c.h.s8.bf16 %v3829_v10 }
 0xb76   : > { %8563 = vmatpush1.bf16.msra.mxu1 %v5300_v15  ;;  %v3861_v15 = vld [vmem:[%s11198_s0 + $0x17e8] sm:$0xff] }
 0xb77   : > { %8727 = vmatpush1.bf16.msra.mxu0 %v5302_v1  ;;  %8564 = vmatprep.subr.bf16.mxu1 %v5333_v18  ;;  %v3863_v1 = vld [vmem:[%s11198_s0 + $0x17f8] sm:$0xff]  ;;  %v5588_v18 = vunpack.c.h.s8.bf16 %v3828_v26  ;;  %v5621_v19 = vunpack.c.l.s8.bf16 %v3861_v15  ;;  %v5845_v26 = vunpack.c.h.s8.bf16 %v3957_v32 }
 0xb78   : > { %8728 = vmatprep.subr.bf16.mxu0 %v5335_v57  ;;  %v5590_v57 = vunpack.c.h.s8.bf16 %v3830_v54  ;;  %v5655_v30 = vunpack.c.h.s8.bf16 %v3863_v1 }
 0xb7a   : > { %8565 = vmatpush1.bf16.msra.mxu1 %v5332_v20  ;;  %v5623_v20 = vunpack.c.l.s8.bf16 %v3863_v1 }
 0xb7b   : > { %8729 = vmatpush1.bf16.msra.mxu0 %v5334_v22  ;;  %8566 = vmatprep.subr.bf16.mxu1 %v5365_v23  ;;  %v3862_v22 = vld [vmem:[%s11198_s0 + $0x17f0] sm:$0xff]  ;;  %v5620_v23 = vunpack.c.l.s8.bf16 %v3860_v50 }
 0xb7c   : > { %8730 = vmatprep.subr.bf16.mxu0 %v5367_v56  ;;  %v5622_v24 = vunpack.c.l.s8.bf16 %v3862_v22  ;;  %v5653_v56 = vunpack.c.h.s8.bf16 %v3861_v15 }
 0xb7e   : > { %8567 = vmatpush1.bf16.msra.mxu1 %v5364_v36  ;;  %v3893_v36 = vld [vmem:[%s11198_s0 + $0x18e8] sm:$0xff] }
 0xb7f   : > { %8731 = vmatpush1.bf16.msra.mxu0 %v5366_v37  ;;  %8568 = vmatprep.subr.bf16.mxu1 %v5397_v38  ;;  %v3895_v37 = vld [vmem:[%s11198_s0 + $0x18f8] sm:$0xff]  ;;  %v5652_v38 = vunpack.c.h.s8.bf16 %v3860_v50  ;;  %v5685_v47 = vunpack.c.l.s8.bf16 %v3893_v36 }
 0xb80   : > { %8732 = vmatprep.subr.bf16.mxu0 %v5399_v28  ;;  %v5654_v28 = vunpack.c.h.s8.bf16 %v3862_v22 }
 0xb82   : > { %8569 = vmatpush1.bf16.msra.mxu1 %v5396_v40  ;;  %v5687_v40 = vunpack.c.l.s8.bf16 %v3895_v37 }
 0xb83   : > { %8733 = vmatpush1.bf16.msra.mxu0 %v5398_v41  ;;  %8570 = vmatprep.subr.bf16.mxu1 %v5429_v42  ;;  %v3894_v41 = vld [vmem:[%s11198_s0 + $0x18f0] sm:$0xff]  ;;  %v5684_v42 = vunpack.c.l.s8.bf16 %v3892_v52 }
 0xb84   : > { %8734 = vmatprep.subr.bf16.mxu0 %v5431_v33  ;;  %v5686_v39 = vunpack.c.l.s8.bf16 %v3894_v41  ;;  %v5717_v33 = vunpack.c.h.s8.bf16 %v3893_v36 }
 0xb86   : > { %8571 = vmatpush1.bf16.msra.mxu1 %v5428_v45  ;;  %v5719_v45 = vunpack.c.h.s8.bf16 %v3895_v37 }
 0xb87   : > { %8735 = vmatpush1.bf16.msra.mxu0 %v5430_v44  ;;  %8572 = vmatprep.subr.bf16.mxu1 %v5461_v48  ;;  %v3927_v44 = vld [vmem:[%s11198_s0 + $0x19f8] sm:$0xff]  ;;  %v5716_v48 = vunpack.c.h.s8.bf16 %v3892_v52 }
 0xb88   : > { %8736 = vmatprep.subr.bf16.mxu0 %v5463_v49  ;;  %v5718_v49 = vunpack.c.h.s8.bf16 %v3894_v41 }
 0xb8a   : > { %8573 = vmatpush1.bf16.msra.mxu1 %v5460_v8  ;;  %v5751_v8 = vunpack.c.l.s8.bf16 %v3927_v44 }
 0xb8b   : > { %8737 = vmatpush1.bf16.msra.mxu0 %v5462_v11  ;;  %8574 = vmatprep.subr.bf16.mxu1 %v5493_v55  ;;  %v3926_v11 = vld [vmem:[%s11198_s0 + $0x19f0] sm:$0xff]  ;;  %v5748_v55 = vunpack.c.l.s8.bf16 %v3924_v5 }
 0xb8c   : > { %8738 = vmatprep.subr.bf16.mxu0 %v5495_v61  ;;  %v5783_v61 = vunpack.c.h.s8.bf16 %v3927_v44 }
 0xb8e   : > { %8575 = vmatpush1.bf16.msra.mxu1 %v5492_v62  ;;  %v3959_v62 = vld [vmem:[%s11198_s0 + $0x1af8] sm:$0xff] }
 0xb8f   : > { %8739 = vmatpush1.bf16.msra.mxu0 %v5494_v63  ;;  %8576 = vmatprep.subr.bf16.mxu1 %v5525_v3  ;;  %v5780_v63 = vunpack.c.h.s8.bf16 %v3924_v5  ;;  %v5813_v3 = vunpack.c.l.s8.bf16 %v3957_v32  ;;  %v5815_v10 = vunpack.c.l.s8.bf16 %v3959_v62  ;;  %v5847_v54 = vunpack.c.h.s8.bf16 %v3959_v62  ;;  %v4023_v5 = vld [vmem:[%s11198_s0 + $0x1cf8] sm:$0xff] }
 0xb90   : > { %8740 = vmatprep.subr.bf16.mxu0 %v5527_v4  ;;  %v3956_v4 = vld [vmem:[%s11198_s0 + $0x1ae0] sm:$0xff]  ;;  %v5943_v62 = vunpack.c.l.s8.bf16 %v4023_v5 }
 0xb91   : > { %v5844_v1 = vunpack.c.h.s8.bf16 %v3956_v4 }
 0xb92   : > { %8577 = vmatpush1.bf16.msra.mxu1 %v5524_v6  ;;  %v5812_v6 = vunpack.c.l.s8.bf16 %v3956_v4 }
 0xb93   : > { %8741 = vmatpush1.bf16.msra.mxu0 %v5526_v7  ;;  %8578 = vmatprep.subr.bf16.mxu1 %v5557_v21  ;;  %v12565_v7 = vld [vmem:[%s11581_s10 + $0x18] sm:$0xff]  ;;  %v5814_v21 = vunpack.c.l.s8.bf16 %v3958_v46 }
 0xb94   : > { %8742 = vmatprep.subr.bf16.mxu0 %v5559_v60  ;;  %v12568_v60 = vld [vmem:[%s11585_s29 + $0x18] sm:$0xff]  ;;  %v8911_v15 = vrot.slane %v12565_v7, %v11213_v31 }
 0xb96   : > { %8579 = vmatpush1.bf16.msra.mxu1 %v5556_v27  ;;  %v3989_v27 = vld [vmem:[%s11198_s0 + $0x1be8] sm:$0xff] }
 0xb97   : > { %8743 = vmatpush1.bf16.msra.mxu0 %v5558_v13  ;;  %8580 = vmatprep.subr.bf16.mxu1 %v5589_v12  ;;  %v8907_v13 = vrot.slane %v12565_v7, %v11210_v29  ;;  %v3991_v12 = vld [vmem:[%s11198_s0 + $0x1bf8] sm:$0xff]  ;;  %v5877_v50 = vunpack.c.l.s8.bf16 %v3989_v27  ;;  %v5909_v43 = vunpack.c.h.s8.bf16 %v3989_v27 }
 0xb98   : > { %8744 = vmatprep.subr.bf16.mxu0 %v5591_v14  ;;  %v8915_v14 = vrot.slane %v12565_v7, %v11243_v59 }
 0xb9a   : > { %8581 = vmatpush1.bf16.msra.mxu1 %v5588_v18  ;;  %v9107_v18 = vrot.slane %v12568_v60, %v11210_v29 }
 0xb9b   : > { %8745 = vmatpush1.bf16.msra.mxu0 %v5590_v57  ;;  %8582 = vmatprep.subr.bf16.mxu1 %v5621_v19  ;;  %v8919_v57 = vrot.slane %v12565_v7, %v11220_v51  ;;  %v5846_v19 = vunpack.c.h.s8.bf16 %v3958_v46 }
 0xb9c   : > { %8746 = vmatprep.subr.bf16.mxu0 %v5623_v20  ;;  %v3988_v20 = vld [vmem:[%s11198_s0 + $0x1be0] sm:$0xff] }
 0xb9d   : > { %v5876_v41 = vunpack.c.l.s8.bf16 %v3988_v20 }
 0xb9e   : > { %8583 = vmatpush1.bf16.msra.mxu1 %v5620_v23  ;;  %v9115_v23 = vrot.slane %v12568_v60, %v11243_v59 }
 0xb9f   : > { %8747 = vmatpush1.bf16.msra.mxu0 %v5622_v24  ;;  %8584 = vmatprep.subr.bf16.mxu1 %v5653_v56  ;;  %v9111_v24 = vrot.slane %v12568_v60, %v11213_v31  ;;  %v5879_v56 = vunpack.c.l.s8.bf16 %v3991_v12 }
 0xba0   : > { %8748 = vmatprep.subr.bf16.mxu0 %v5655_v30  ;;  %v3990_v30 = vld [vmem:[%s11198_s0 + $0x1bf0] sm:$0xff] }
 0xba2   : > { %8585 = vmatpush1.bf16.msra.mxu1 %v5652_v38  ;;  %v9119_v38 = vrot.slane %v12568_v60, %v11220_v51 }
 0xba3   : > { %8749 = vmatpush1.bf16.msra.mxu0 %v5654_v28  ;;  %8595 = vmatprep.subr.bf16.mxu1 %v5685_v47 }
 0xba4   : > { %8759 = vmatprep.subr.bf16.mxu0 %v5687_v40 }
 0xba5   : > { %8587 = vmatmul.mubr.bf16.vlgmr.msra.gmra.mrb[40].mxu1 %v11408_v9 }
 0xba6   : > { %8751 = vmatmul.mubr.bf16.vlgmr.msra.gmra.mrb[44].mxu0 %v11408_v9  ;;  %8596 = vmatpush1.bf16.msra.mxu1 %v5684_v42  ;;  %v5750_v9 = vunpack.c.l.s8.bf16 %v3926_v11 }
 0xba7   : > { %8627 = vmatprep.mubr.bf16.mxu1 %v11414_v2  ;;  %8760 = vmatpush1.bf16.msra.mxu0 %v5686_v39 }
 0xba8   : > { %8791 = vmatprep.mubr.bf16.mxu0 %v11414_v2  ;;  %8597 = vmatprep.subr.bf16.mxu1 %v5717_v33  ;;  %v5782_v2 = vunpack.c.h.s8.bf16 %v3926_v11  ;;  %v5878_v33 = vunpack.c.l.s8.bf16 %v3990_v30  ;;  %v5908_v11 = vunpack.c.h.s8.bf16 %v3988_v20  ;;  %v4087_v20 = vld [vmem:[%s11198_s0 + $0x1ef8] sm:$0xff] }
 0xba9   : > { %8761 = vmatprep.subr.bf16.mxu0 %v5719_v45 }
 0xbaa   : > { %8598 = vmatpush1.bf16.msra.mxu1 %v5716_v48  ;;  %v5911_v48 = vunpack.c.h.s8.bf16 %v3991_v12  ;;  %v4052_v12 = vld [vmem:[%s11198_s0 + $0x1de0] sm:$0xff] }
 0xbab   : > { %8762 = vmatpush1.bf16.msra.mxu0 %v5718_v49  ;;  %8599 = vmatprep.subr.bf16.mxu1 %v5749_v53  ;;  %v4021_v49 = vld [vmem:[%s11198_s0 + $0x1ce8] sm:$0xff] }
 0xbac   : > { %8763 = vmatprep.subr.bf16.mxu0 %v5751_v8  ;;  %v5973_v46 = vunpack.c.h.s8.bf16 %v4021_v49 }
 0xbae   : > { %8600 = vmatpush1.bf16.msra.mxu1 %v5748_v55 }
 0xbaf   : > { %8764 = vmatpush1.bf16.msra.mxu0 %v5750_v9  ;;  %8601 = vmatprep.subr.bf16.mxu1 %v5781_v58  ;;  %v5910_v9 = vunpack.c.h.s8.bf16 %v3990_v30  ;;  %v5941_v58 = vunpack.c.l.s8.bf16 %v4021_v49  ;;  %v6071_v30 = vunpack.c.l.s8.bf16 %v4087_v20  ;;  %v8923_v49 = vrot.slane %v12565_v7, %v11384_v34 }
 0xbb0   : > { %8765 = vmatprep.subr.bf16.mxu0 %v5783_v61  ;;  %v4020_v61 = vld [vmem:[%s11198_s0 + $0x1ce0] sm:$0xff] }
 0xbb2   : > { %8602 = vmatpush1.bf16.msra.mxu1 %v5780_v63  ;;  %v4022_v63 = vld [vmem:[%s11198_s0 + $0x1cf0] sm:$0xff] }
 0xbb3   : > { %8766 = vmatpush1.bf16.msra.mxu0 %v5782_v2  ;;  %8603 = vmatprep.subr.bf16.mxu1 %v5813_v3  ;;  %v5940_v3 = vunpack.c.l.s8.bf16 %v4020_v61  ;;  %v5974_v27 = vunpack.c.h.s8.bf16 %v4022_v63 }
 0xbb4   : > { %8767 = vmatprep.subr.bf16.mxu0 %v5815_v10  ;;  %v5942_v10 = vunpack.c.l.s8.bf16 %v4022_v63  ;;  %v9135_v63 = vrot.slane %v12568_v60, %v11390_v16 }
 0xbb6   : > { %8604 = vmatpush1.bf16.msra.mxu1 %v5812_v6  ;;  %v5975_v6 = vunpack.c.h.s8.bf16 %v4023_v5  ;;  %v8927_v5 = vrot.slane %v12565_v7, %v11387_v17 }
 0xbb7   : > { %8768 = vmatpush1.bf16.msra.mxu0 %v5814_v21  ;;  %8605 = vmatprep.subr.bf16.mxu1 %v5845_v26  ;;  %v4053_v21 = vld [vmem:[%s11198_s0 + $0x1de8] sm:$0xff]  ;;  %v4055_v26 = vld [vmem:[%s11198_s0 + $0x1df8] sm:$0xff] }
 0xbb8   : > { %v8301_v22 = vpop.f32.mrb[36].mxu1  ;;  %8769 = vmatprep.subr.bf16.mxu0 %v5847_v54  ;;  %v5972_v54 = vunpack.c.h.s8.bf16 %v4020_v61 }
 0xbb9   : > { %v8992_v36 = vmul.f32 %v8907_v13, %v8301_v22  ;;  %v8465_v37 = vpop.f32.mrb[40].mxu0  ;;  %v8303_v29 = vpop.f32.mrb[37].mxu1  ;;  %v6005_v13 = vunpack.c.l.s8.bf16 %v4053_v21  ;;  %v6036_v22 = vunpack.c.h.s8.bf16 %v4052_v12 }
 0xbba   : > { %v8994_v28 = vmul.f32 %v8915_v14, %v8465_v37  ;;  %v8993_v47 = vmul.f32 %v8911_v15, %v8303_v29  ;;  %v8467_v52 = vpop.f32.mrb[41].mxu0  ;;  %v8305_v40 = vpop.f32.mrb[38].mxu1  ;;  %8606 = vmatpush1.bf16.msra.mxu1 %v5844_v1  ;;  %v6007_v14 = vunpack.c.l.s8.bf16 %v4055_v26  ;;  %v4054_v15 = vld [vmem:[%s11198_s0 + $0x1df0] sm:$0xff]  ;;  %v6004_v1 = vunpack.c.l.s8.bf16 %v4052_v12 }
 0xbbb   : > { %v9192_v59 = vadd.f32 %v9107_v18, %v8992_v36  ;;  %v8995_v42 = vmul.f32 %v8919_v57, %v8467_v52  ;;  %v8469_v31 = vpop.f32.mrb[42].mxu0  ;;  %8770 = vmatpush1.bf16.msra.mxu0 %v5846_v19  ;;  %v8306_v39 = vpop.f32.mrb[39].mxu1  ;;  %8607 = vmatprep.subr.bf16.mxu1 %v5877_v50  ;;  %v6006_v18 = vunpack.c.l.s8.bf16 %v4054_v15  ;;  %v6037_v57 = vunpack.c.h.s8.bf16 %v4053_v21  ;;  %v4085_v50 = vld [vmem:[%s11198_s0 + $0x1ee8] sm:$0xff]  ;;  %v4086_v36 = vld [vmem:[%s11198_s0 + $0x1ef0] sm:$0xff]  ;;  %v4119_v52 = vld [vmem:[%s11198_s0 + $0x1ff8] sm:$0xff] }
 0xbbc   : > { %v9194_v45 = vadd.f32 %v9115_v23, %v8994_v28  ;;  %v9193_v44 = vadd.f32 %v9111_v24, %v8993_v47  ;;  %v8470_v51 = vpop.f32.mrb[43].mxu0  ;;  %8771 = vmatprep.subr.bf16.mxu0 %v5879_v56  ;;  %v6039_v19 = vunpack.c.h.s8.bf16 %v4055_v26  ;;  %v6038_v23 = vunpack.c.h.s8.bf16 %v4054_v15  ;;  %v4084_v56 = vld [vmem:[%s11198_s0 + $0x1ee0] sm:$0xff]  ;;  %v4117_v47 = vld [vmem:[%s11198_s0 + $0x1fe8] sm:$0xff]  ;;  %v4118_v39 = vld [vmem:[%s11198_s0 + $0x1ff0] sm:$0xff] }
 0xbbd   : > { %v9195_v53 = vadd.f32 %v9119_v38, %v8995_v42  ;;  %v6069_v24 = vunpack.c.l.s8.bf16 %v4085_v50  ;;  %v6068_v37 = vunpack.c.l.s8.bf16 %v4084_v56  ;;  %v6070_v29 = vunpack.c.l.s8.bf16 %v4086_v36  ;;  %v4116_v42 = vld [vmem:[%s11198_s0 + $0x1fe0] sm:$0xff] }
 0xbbe   : > { %v9379_v8 = vcombine.low %v9192_v59, %v9193_v44  ;;  %8608 = vmatpush1.bf16.msra.mxu1 %v5876_v41  ;;  %v6101_v38 = vunpack.c.h.s8.bf16 %v4085_v50  ;;  %v6103_v28 = vunpack.c.h.s8.bf16 %v4087_v20  ;;  %v6100_v40 = vunpack.c.h.s8.bf16 %v4084_v56 }
 0xbbf   : > { %v9380_v55 = vcombine.low %v9194_v45, %v9195_v53  ;;  %8772 = vmatpush1.bf16.msra.mxu0 %v5878_v33  ;;  %8609 = vmatprep.subr.bf16.mxu1 %v5909_v43  ;;  %v6102_v41 = vunpack.c.h.s8.bf16 %v4086_v36  ;;  %v6133_v59 = vunpack.c.l.s8.bf16 %v4117_v47  ;;  %v6135_v31 = vunpack.c.l.s8.bf16 %v4119_v52 }
 0xbc0   : > { %v12594_v32 = vrot.slane %v9379_v8, %v11601_v35  ;;  %8773 = vmatprep.subr.bf16.mxu0 %v5911_v48  ;;  %v6132_v33 = vunpack.c.l.s8.bf16 %v4116_v42  ;;  %v6134_v43 = vunpack.c.l.s8.bf16 %v4118_v39  ;;  %v6165_v45 = vunpack.c.h.s8.bf16 %v4117_v47 }
 0xbc1   : > { %v12598_v2 = vrot.slane %v9380_v55, %v11601_v35  ;;  %v6167_v44 = vunpack.c.h.s8.bf16 %v4119_v52  ;;  %v6164_v51 = vunpack.c.h.s8.bf16 %v4116_v42  ;;  %v6166_v48 = vunpack.c.h.s8.bf16 %v4118_v39 }
 0xbc2   : > { %8610 = vmatpush1.bf16.msra.mxu1 %v5908_v11  ;;  %v8931_v53 = vrot.slane %v12565_v7, %v11443_v25  ;;  %v9123_v8 = vrot.slane %v12568_v60, %v11384_v34  ;;  %v8935_v11 = vrot.slane %v12565_v7, %v11390_v16 }
 0xbc3   : > { %v9411_v4 = vcombine.low %v12594_v32, %v12598_v2  ;;  %8774 = vmatpush1.bf16.msra.mxu0 %v5910_v9  ;;  %8611 = vmatprep.subr.bf16.mxu1 %v5941_v58  ;;  %v9131_v9 = vrot.slane %v12568_v60, %v11443_v25 }
 0xbc4   : > { %8775 = vmatprep.subr.bf16.mxu0 %v5943_v62 }
 0xbc5   : > { %v9419_v15 = vrot.slane %v9411_v4, %v11601_v35 }
 0xbc6   : > { %8612 = vmatpush1.bf16.msra.mxu1 %v5940_v3 }
 0xbc7   : > { %8776 = vmatpush1.bf16.msra.mxu0 %v5942_v10  ;;  %8613 = vmatprep.subr.bf16.mxu1 %v5973_v46 }
 0xbc8   : > { %8777 = vmatprep.subr.bf16.mxu0 %v5975_v6 }
 0xbca   : > { %8614 = vmatpush1.bf16.msra.mxu1 %v5972_v54 }
 0xbcb   : > { %8778 = vmatpush1.bf16.msra.mxu0 %v5974_v27  ;;  %8615 = vmatprep.subr.bf16.mxu1 %v6005_v13 }
 0xbcc   : > { %8779 = vmatprep.subr.bf16.mxu0 %v6007_v14 }
 0xbce   : > { %8616 = vmatpush1.bf16.msra.mxu1 %v6004_v1 }
 0xbcf   : > { %8780 = vmatpush1.bf16.msra.mxu0 %v6006_v18  ;;  %8617 = vmatprep.subr.bf16.mxu1 %v6037_v57 }
 0xbd0   : > { %8781 = vmatprep.subr.bf16.mxu0 %v6039_v19 }
 0xbd2   : > { %8618 = vmatpush1.bf16.msra.mxu1 %v6036_v22 }
 0xbd3   : > { %8782 = vmatpush1.bf16.msra.mxu0 %v6038_v23  ;;  %8619 = vmatprep.subr.bf16.mxu1 %v6069_v24 }
 0xbd4   : > { %8783 = vmatprep.subr.bf16.mxu0 %v6071_v30 }
 0xbd6   : > { %8620 = vmatpush1.bf16.msra.mxu1 %v6068_v37 }
 0xbd7   : > { %8784 = vmatpush1.bf16.msra.mxu0 %v6070_v29  ;;  %8621 = vmatprep.subr.bf16.mxu1 %v6101_v38 }
 0xbd8   : > { %8785 = vmatprep.subr.bf16.mxu0 %v6103_v28 }
 0xbda   : > { %8622 = vmatpush1.bf16.msra.mxu1 %v6100_v40 }
 0xbdb   : > { %8786 = vmatpush1.bf16.msra.mxu0 %v6102_v41  ;;  %8623 = vmatprep.subr.bf16.mxu1 %v6133_v59 }
 0xbdc   : > { %8787 = vmatprep.subr.bf16.mxu0 %v6135_v31 }
 0xbde   : > { %8624 = vmatpush1.bf16.msra.mxu1 %v6132_v33 }
 0xbdf   : > { %8788 = vmatpush1.bf16.msra.mxu0 %v6134_v43  ;;  %8625 = vmatprep.subr.bf16.mxu1 %v6165_v45 }
 0xbe0   : > { %8789 = vmatprep.subr.bf16.mxu0 %v6167_v44 }
 0xbe2   : > { %8626 = vmatpush1.bf16.msra.mxu1 %v6164_v51 }
 0xbe3   : > { %8790 = vmatpush1.bf16.msra.mxu0 %v6166_v48 }
 0xbe5   : > { %8628 = vmatmul.mubr.bf16.vlgmr.msra.gmra.mrb[40].mxu1 %v11455_v0 }
 0xbe6   : > { %8792 = vmatmul.mubr.bf16.vlgmr.msra.gmra.mrb[44].mxu0 %v11455_v0  ;;  %v9127_v0 = vrot.slane %v12568_v60, %v11387_v17 }
 0xcb8   : > { %v8629_v55 = vpop.f32.mrb[40].mxu1 }
 0xcb9   : > { %v8996_v58 = vmul.f32 %v8923_v49, %v8629_v55  ;;  %v8793_v61 = vpop.f32.mrb[44].mxu0  ;;  %v8631_v62 = vpop.f32.mrb[41].mxu1 }
 0xcba   : > { %v8998_v3 = vmul.f32 %v8931_v53, %v8793_v61  ;;  %v8997_v10 = vmul.f32 %v8927_v5, %v8631_v62  ;;  %v8795_v34 = vpop.f32.mrb[45].mxu0  ;;  %v8633_v46 = vpop.f32.mrb[42].mxu1 }
 0xcbb   : > { %v9196_v7 = vadd.f32 %v9123_v8, %v8996_v58  ;;  %v8999_v6 = vmul.f32 %v8935_v11, %v8795_v34  ;;  %v8797_v21 = vpop.f32.mrb[46].mxu0  ;;  %v8634_v26 = vpop.f32.mrb[43].mxu1 }
 0xcbc   : > { %v9198_v25 = vadd.f32 %v9131_v9, %v8998_v3  ;;  %v9197_v54 = vadd.f32 %v9127_v0, %v8997_v10  ;;  %v8798_v17 = vpop.f32.mrb[47].mxu0 }
 0xcbd   : > { %v9199_v27 = vadd.f32 %v9135_v63, %v8999_v6 }
 0xcbe   : > { %v9381_v13 = vcombine.low %v9196_v7, %v9197_v54 }
 0xcbf   : > { %v9382_v12 = vcombine.low %v9198_v25, %v9199_v27 }
 0xcc0   : > { %v9403_v16 = vrot.slane %v9381_v13, %v11601_v35 }
 0xcc1   : > { %v9410_v60 = vrot.slane %v9382_v12, %v11601_v35 }
 0xcc3   : > { %v9412_v14 = vcombine.low %v9403_v16, %v9410_v60 }
 0xcc5   : > { %v9426_v1 = vrot.slane %v9412_v14, %v11601_v35 }
 0xcc7   : > { %v9427_v18 = vcombine.low %v9419_v15, %v9426_v1 }
 0xcc9   : > { %9435 = vst [vmem:[%s11781_s2 + $0x18] sm:$0xff] %v9427_v18 }
 0xcca   : > { %10732 = shalt.err (!%p10729_p7)
}
 0xccb   : > { %s10733_s13 = scalar_lea.hbm %s12644_s30, 512  ;;  %s10737_s1 = scalar_lea.hbm %s12782_s21, 1024 }
 0xccc   : > { %p10734_p10 = scmp.ne.s32.totalorder %s12644_s30, %s10733_s13  ;;  %p10738_p4 = scmp.lt.u32.totalorder %s12644_s30, %s12782_s21 }
 0xccd   : > { %p10739_p12 = scmp.lt.u32.totalorder %s10737_s1, %s10733_s13  ;;  %p10741_p6 = scmp.lt.u32.totalorder %s10733_s13, %s12644_s30 }
 0xcce   : > { %p10735_p11 = pnand %p10734_p10, %p12783_p9 }
 0xccf   : > { %p10740_p5 = por %p10739_p12, %p10738_p4 }
 0xcd0   : > { %p10736_p13 = pneg %p10735_p11 }
 0xcd1   : > { %p10742_p0 = por %p10741_p6, %p10740_p5 }
 0xcd3   : > { %p10743_p2 = pnand %p10742_p0, %p10736_p13 }
 0xcd5   : > { %10746 = shalt.err (!%p10743_p2)
}
 0xcd6   : > { %10238 = dma.vmem_to_hbm [thread:$0]  (%p12783_p9), %s12646_s8, 512, %s12644_s30, %s9437_s19  }
 0xcd7 PF: > { %s12784_s0 = sld [smem:[#allocation23_spill]]  ;;  %s12785_s11 = sld [smem:[#allocation29_spill]] }
 0xcd8   : > { %p12787_p1 = scmp.ge.s32.totalorder %s10801_s16, 2 }
 0xcdd   : > { %s9463_s12 = sand.u32 1, %s12784_s0   ;;  %p12786_p8 = scmp.ne.s32.totalorder %s12785_s11, 0 }
 0xcde   : > { %s9464_s26 = scalar_lea.sflag [#allocation4], %s9463_s12 }
 0xcdf   : > { %p10270_p3 = pnand %p12787_p1, %p12786_p8 }
 0xce1   : > { %10784 = dma.done.wait (!%p10270_p3), %s9464_s26, 512  }
 0xce2   : > { %10786 = vsyncadd (!%p10270_p3), %s9464_s26, 4294966784  ;;  %s12788_s16 = sld [smem:[#allocation25_spill]]  ;;  %s12789_s13 = sld [smem:[#allocation24_spill]] }
 0xce3   : > { %s12790_s27 = sld [smem:[#allocation26_spill]]  ;;  %s12791_s14 = smov %s10797_s15 }
 0xce8   : > { %p24_p7 = scmp.ge.s32.totalorder %s12788_s16, 4  }
 0xce9   : > { %s12792_s15 = smov %s12790_s27 }
 0xcea   :  { %26 = sbr.rel (!%p24_p7) target bundleno = 16 (0x10), region = 150 }
 0xcf1   :  { %9469 = vsyncpa [#allocation3], 1 }
 0xcf2   :  { %9471 = vsyncpa [#allocation3 + $0x1], 1 }
 0xcf3   :  { %9472 = vsyncpa [#allocation6], 1 }
 0xcf4   :  { %9473 = vsyncpa [#allocation9], 1 }
 0xcf5   :  { %9474 = vsyncpa [#allocation12], 1 }
 0xcf6   :  { %9475 = vsyncpa [#allocation4], 1 }
 0xcf7   :  { %9477 = vsyncpa [#allocation4 + $0x1], 1 }

</bundles_post_ra>
